<compile_context>
chip_gen: v7x
topology: tpu7x:2x2x1
jax: 0.10.0
libtpu: 0.0.40
codegen_flags: <defaults>
</compile_context>

<pallas_src>
import functools
import math

import jax
import jax.numpy as jnp
from jax.experimental import pallas as pl
from jax.experimental.pallas import tpu as pltpu

BF16 = jnp.bfloat16
F32 = jnp.float32


# -----------------------------------------------------------------------------
# In-kernel helpers (traced inside the fused Pallas kernel body)
# -----------------------------------------------------------------------------
def _conv3x3_bn_relu(xpad, w9, scale, shift, ho, wo):
    """3x3 / stride-1 conv + folded-BN + ReLU from a VMEM-resident padded tile.

    xpad:  (ho+2, wo+2, cin) bf16 value (1-pixel zero halo)
    w9:    (9, cin, cout)    bf16 value (tap index = dy*3 + dx)
    scale/shift: (1, cout)   f32 values
    returns (ho*wo, cout) f32
    """
    cin = xpad.shape[-1]
    acc = None
    for dy in range(3):
        for dx in range(3):
            tap = xpad[dy:dy + ho, dx:dx + wo, :].reshape(ho * wo, cin)
            part = jnp.dot(tap, w9[dy * 3 + dx],
                           preferred_element_type=jnp.float32)
            acc = part if acc is None else acc + part
    return jnp.maximum(acc * scale + shift, 0.0)


def _conv3x3_s2_bn_relu(phases, w9, scale, shift, ho, wo):
    """3x3 / stride-2 conv + folded-BN + ReLU from the 4 even/odd phases of the
    padded input (phases[a*2+b][i, j] == x_padded[2*i + a, 2*j + b])."""
    cin = phases[0].shape[-1]
    acc = None
    for dy in range(3):
        for dx in range(3):
            ph = phases[(dy % 2) * 2 + (dx % 2)]
            tap = ph[dy // 2:dy // 2 + ho,
                     dx // 2:dx // 2 + wo, :].reshape(ho * wo, cin)
            part = jnp.dot(tap, w9[dy * 3 + dx],
                           preferred_element_type=jnp.float32)
            acc = part if acc is None else acc + part
    return jnp.maximum(acc * scale + shift, 0.0)


def _l2h_upsample_add(l_flat, h_flat, wp, bp, awb, h_coeffs, h2, w2, h, w):
    """1x1 projection at LOW resolution, separable bilinear (align_corners=True)
    upsample and residual add with the high-resolution branch.

    l_flat: (h2*w2, cl) f32   h_flat: (h*w, ch) f32
    wp: (cl, ch) bf16         bp: (1, ch) f32
    awb: (h2, w, w2) bf16     pre-broadcast width interpolation matrix
    h_coeffs: static tuple of (i0, i1, frac) per output row
    returns (h, w, ch) f32
    """
    ch = wp.shape[-1]
    # Projection + bias at low resolution (bias commutes with the bilinear
    # weights since every interpolation row sums to 1).
    proj = jnp.dot(l_flat.astype(BF16), wp,
                   preferred_element_type=jnp.float32) + bp      # (h2*w2, ch)
    proj3 = proj.reshape(h2, w2, ch).astype(BF16)
    # Width interpolation as a batched matmul over the low-res rows (MXU).
    u = jnp.einsum('iwj,ijc->iwc', awb, proj3,
                   preferred_element_type=jnp.float32)           # (h2, w, ch)
    # Height interpolation: exact 2-tap form with static taps / weights.
    rows = []
    for (i0, i1, f) in h_coeffs:
        if f == 0.0:
            rows.append(u[i0])
        else:
            rows.append((1.0 - f) * u[i0] + f * u[i1])
    up = jnp.stack(rows, axis=0)                                 # (h, w, ch)
    return up + h_flat.reshape(h, w, ch)


# -----------------------------------------------------------------------------
# Fused kernel body: all 3 SegBlock stages for one image per grid step
# -----------------------------------------------------------------------------
def _segblock_kernel(xpad_ref, p00_ref, p01_ref, p10_ref, p11_ref,
                     wh_ref, sch_ref, shh_ref,
                     wl_ref, scl_ref, shl_ref,
                     wp_ref, bp_ref, awb_ref,
                     out_ref,
                     hpad_ref, lpad_ref,
                     *, h, w, h2, w2, h_coeffs):
    cl = lpad_ref.shape[-1]

    # In-kernel halo padding: zero both padded scratch tiles (cheap, a few KiB);
    # the interiors are fully overwritten below before every use.
    hpad_ref[...] = jnp.zeros_like(hpad_ref)
    lpad_ref[...] = jnp.zeros_like(lpad_ref)

    awb = awb_ref[...]

    def store_hl(hl):
        hpad_ref[1:h + 1, 1:w + 1, :] = hl.astype(hpad_ref.dtype)

    def store_l(l_flat):
        lpad_ref[1:h2 + 1, 1:w2 + 1, :] = (
            l_flat.reshape(h2, w2, cl).astype(lpad_ref.dtype))

    # ---------------- stage 1 ----------------
    h_out = _conv3x3_bn_relu(xpad_ref[0], wh_ref[0], sch_ref[0], shh_ref[0],
                             h, w)
    l_out = _conv3x3_s2_bn_relu(
        (p00_ref[0], p01_ref[0], p10_ref[0], p11_ref[0]),
        wl_ref[0], scl_ref[0], shl_ref[0], h2, w2)
    hl = _l2h_upsample_add(l_out, h_out, wp_ref[0], bp_ref[0], awb,
                           h_coeffs, h2, w2, h, w)
    store_hl(hl)
    store_l(l_out)

    # ---------------- stage 2 ----------------
    h_out = _conv3x3_bn_relu(hpad_ref[...], wh_ref[1], sch_ref[1], shh_ref[1],
                             h, w)
    l_out = _conv3x3_bn_relu(lpad_ref[...], wl_ref[1], scl_ref[1], shl_ref[1],
                             h2, w2)
    hl = _l2h_upsample_add(l_out, h_out, wp_ref[1], bp_ref[1], awb,
                           h_coeffs, h2, w2, h, w)
    store_hl(hl)
    store_l(l_out)

    # ---------------- stage 3 (l3 never leaves VMEM) ----------------
    h_out = _conv3x3_bn_relu(hpad_ref[...], wh_ref[2], sch_ref[2], shh_ref[2],
                             h, w)
    l_out = _conv3x3_bn_relu(lpad_ref[...], wl_ref[2], scl_ref[2], shl_ref[2],
                             h2, w2)
    hl = _l2h_upsample_add(l_out, h_out, wp_ref[2], bp_ref[2], awb,
                           h_coeffs, h2, w2, h, w)
    out_ref[0] = hl.astype(out_ref.dtype)


# -----------------------------------------------------------------------------
# pallas_call wrapper
# -----------------------------------------------------------------------------
_COMPILER_PARAMS = pltpu.CompilerParams(
    dimension_semantics=("parallel",),       # shard images across TCs on v7x
    # Explicit VMEM limit (v5e scoped default is only 16 MiB).  Per-image VMEM
    # usage here is < 1 MiB; at production H*W re-derive against v7x's 64 MiB
    # physical VMEM and raise toward ~100 MiB on v6e.
    vmem_limit_bytes=32 * 1024 * 1024,
)


def _img_spec(shape):
    tail = (0,) * (len(shape) - 1)
    return pl.BlockSpec((1,) + tuple(shape[1:]), lambda i: (i,) + tail)


def _bcast_spec(shape):
    zeros = (0,) * len(shape)
    return pl.BlockSpec(tuple(shape), lambda i: zeros)


# -----------------------------------------------------------------------------
# Bilinear (align_corners=True) interpolation helpers
# -----------------------------------------------------------------------------
def _bilinear_matrix_1d(out_size, in_size):
    if out_size == 1 or in_size == 1:
        a = jnp.zeros((out_size, in_size), F32)
        return a.at[:, 0].set(1.0)
    dst = jnp.arange(out_size, dtype=F32)
    src = dst * (in_size - 1) / (out_size - 1)
    i0 = jnp.clip(jnp.floor(src).astype(jnp.int32), 0, in_size - 1)
    i1 = jnp.clip(i0 + 1, 0, in_size - 1)
    frac = src - i0.astype(F32)
    rows = jnp.arange(out_size)
    a = jnp.zeros((out_size, in_size), F32)
    a = a.at[rows, i0].add(1.0 - frac)
    a = a.at[rows, i1].add(frac)
    return a


def _bilinear_coeffs_1d(out_size, in_size):
    """Static Python (i0, i1, frac) 2-tap coefficients (align_corners=True)."""
    coeffs = []
    for y in range(out_size):
        if out_size == 1 or in_size == 1:
            coeffs.append((0, 0, 0.0))
            continue
        src = y * (in_size - 1) / (out_size - 1)
        i0 = min(int(math.floor(src)), in_size - 1)
        i1 = min(i0 + 1, in_size - 1)
        coeffs.append((i0, i1, float(src - i0)))
    return tuple(coeffs)


# -----------------------------------------------------------------------------
# Parameter construction (deterministic, synthetic)
# -----------------------------------------------------------------------------
def _make_conv_bn(key, cin, cout, eps=1e-5):
    ks = jax.random.split(key, 6)
    w = jax.random.normal(ks[0], (3, 3, cin, cout), F32) * 0.1
    b = jax.random.normal(ks[1], (cout,), F32) * 0.01
    gamma = 1.0 + 0.1 * jax.random.normal(ks[2], (cout,), F32)
    beta = 0.05 * jax.random.normal(ks[3], (cout,), F32)
    mean = 0.02 * jax.random.normal(ks[4], (cout,), F32)
    var = jax.random.uniform(ks[5], (cout,), F32, 0.5, 1.5)
    scale = gamma / jnp.sqrt(var + eps)
    shift = (b - mean) * scale + beta          # conv bias folded into BN shift
    return {"w": w, "scale": scale, "shift": shift}


def _make_conv1x1(key, cin, cout):
    ks = jax.random.split(key, 2)
    return {"w": jax.random.normal(ks[0], (cin, cout), F32) * 0.1,
            "b": jax.random.normal(ks[1], (cout,), F32) * 0.01}


def make_segblock_params(key, base=32, stage_index=1):
    assert stage_index == 1, "only stage_index=1 is implemented"
    cl = base * int(stage_index ** 2)
    ks = jax.random.split(key, 9)
    return {
        "h1": _make_conv_bn(ks[0], base, base),
        "h2": _make_conv_bn(ks[1], base, base),
        "h3": _make_conv_bn(ks[2], base, base),
        "l1": _make_conv_bn(ks[3], base, cl),      # stride-2 conv
        "l2": _make_conv_bn(ks[4], cl, cl),
        "l3": _make_conv_bn(ks[5], cl, cl),
        "l2h1": _make_conv1x1(ks[6], cl, base),
        "l2h2": _make_conv1x1(ks[7], cl, base),
        "l2h3": _make_conv1x1(ks[8], cl, base),
    }


# -----------------------------------------------------------------------------
# SegBlock forward (stage_index = 1) — single fused Pallas kernel
# -----------------------------------------------------------------------------
@jax.jit
def segblock_forward(x_nchw, params):
    x = jnp.transpose(x_nchw, (0, 2, 3, 1))                    # NHWC
    n, h, w, base = x.shape
    assert h % 2 == 0 and w % 2 == 0 and h >= 4 and w >= 4
    h2, w2 = h // 2, w // 2

    # --- weight prep: stack the three stages (weights stay resident in VMEM) --
    def stack_conv(names):
        ws, scs, shs = [], [], []
        for nm in names:
            p = params[nm]
            wq = p["w"]
            ws.append(wq.reshape(9, wq.shape[2], wq.shape[3]).astype(BF16))
            scs.append(p["scale"].reshape(1, -1).astype(F32))
            shs.append(p["shift"].reshape(1, -1).astype(F32))
        return jnp.stack(ws), jnp.stack(scs), jnp.stack(shs)

    wh, sch, shh = stack_conv(("h1", "h2", "h3"))
    wl, scl, shl = stack_conv(("l1", "l2", "l3"))
    wp = jnp.stack([params[k]["w"].astype(BF16)
                    for k in ("l2h1", "l2h2", "l2h3")])
    bp = jnp.stack([params[k]["b"].reshape(1, -1).astype(F32)
                    for k in ("l2h1", "l2h2", "l2h3")])
    ch = wh.shape[-1]
    cl = wl.shape[-1]
    assert cl == ch, "stage_index=1 => low branch has `base` channels"

    # --- interpolation data: width matrix pre-broadcast wrapper-side (no
    #     broadcast_in_dim re-materialized in the kernel), height as static
    #     2-tap coefficients baked into the kernel ---
    awb = jnp.broadcast_to(_bilinear_matrix_1d(w, w2)[None],
                           (h2, w, w2)).astype(BF16)
    h_coeffs = _bilinear_coeffs_1d(h, h2)

    # --- image inputs ---
    xb = x.astype(BF16)
    xpad = jnp.pad(xb, ((0, 0), (1, 1), (1, 1), (0, 0)))        # (n, h+2, w+2, c)
    # even/odd phases of the padded input for the stage-1 stride-2 conv
    phases = tuple(xpad[:, a::2, b::2, :] for a in (0, 1) for b in (0, 1))

    image_inputs = (xpad,) + phases
    weight_inputs = (wh, sch, shh, wl, scl, shl, wp, bp, awb)

    kernel = functools.partial(_segblock_kernel, h=h, w=w, h2=h2, w2=w2,
                               h_coeffs=h_coeffs)

    out = pl.pallas_call(
        kernel,
        out_shape=jax.ShapeDtypeStruct((n, h, w, ch), F32),
        grid=(n,),
        in_specs=([_img_spec(a.shape) for a in image_inputs]
                  + [_bcast_spec(a.shape) for a in weight_inputs]),
        out_specs=_img_spec((n, h, w, ch)),
        scratch_shapes=[
            pltpu.VMEM((h + 2, w + 2, ch), BF16),    # padded high-branch buffer
            pltpu.VMEM((h2 + 2, w2 + 2, cl), BF16),  # padded low-branch buffer
        ],
        compiler_params=_COMPILER_PARAMS,
    )(*image_inputs, *weight_inputs)

    return jnp.transpose(out, (0, 3, 1, 2))                     # back to NCHW


# -----------------------------------------------------------------------------
# Pure-JAX (XLA) reference for correctness checking
# -----------------------------------------------------------------------------
def _ref_conv_bn_relu(x, p, stride):
    y = jax.lax.conv_general_dilated(
        x, p["w"], window_strides=(stride, stride), padding=((1, 1), (1, 1)),
        dimension_numbers=("NHWC", "HWIO", "NHWC"))
    return jax.nn.relu(y * p["scale"] + p["shift"])


@jax.jit
def segblock_reference(x_nchw, params):
    x = jnp.transpose(x_nchw, (0, 2, 3, 1)).astype(F32)
    _, h, w, _ = x.shape
    h2, w2 = h // 2, w // 2
    a_h = _bilinear_matrix_1d(h, h2)
    a_w = _bilinear_matrix_1d(w, w2)

    def l2h(l, hi, p):
        t = jnp.einsum("hi,nijc->nhjc", a_h, l)
        li = jnp.einsum("wj,nhjc->nhwc", a_w, t)
        return jnp.einsum("nhwc,cd->nhwd", li, p["w"]) + p["b"] + hi

    fh1 = _ref_conv_bn_relu(x, params["h1"], 1)
    fl1 = _ref_conv_bn_relu(x, params["l1"], 2)
    hl1 = l2h(fl1, fh1, params["l2h1"])
    fh2 = _ref_conv_bn_relu(hl1, params["h2"], 1)
    fl2 = _ref_conv_bn_relu(fl1, params["l2"], 1)
    hl2 = l2h(fl2, fh2, params["l2h2"])
    fh3 = _ref_conv_bn_relu(hl2, params["h3"], 1)
    fl3 = _ref_conv_bn_relu(fl2, params["l3"], 1)
    hl3 = l2h(fl3, fh3, params["l2h3"])
    return jnp.transpose(hl3, (0, 3, 1, 2))


# -----------------------------------------------------------------------------
if __name__ == "__main__":
    base = 32            # SegBlock default channel width
    n, hgt, wid = 2, 16, 16

    key = jax.random.PRNGKey(0)
    k_x, k_p = jax.random.split(key)
    x = jax.random.normal(k_x, (n, base, hgt, wid), F32)   # NCHW like PyTorch
    params = make_segblock_params(k_p, base=base, stage_index=1)

    out = jax.block_until_ready(segblock_forward(x, params))

    assert out.shape == (n, base, hgt, wid), out.shape
    assert bool(jnp.all(jnp.isfinite(out)))

    # Numerical check against the pure-XLA f32 reference (loose tolerance for
    # the bf16 MXU operands / bf16 in-VMEM inter-stage intermediates).
    ref = jax.block_until_ready(segblock_reference(x, params))
    max_abs_err = float(jnp.max(jnp.abs(out - ref)))
    ref_scale = float(jnp.max(jnp.abs(ref))) + 1e-6
    assert max_abs_err / ref_scale < 0.08, (max_abs_err, ref_scale)

    print("KERNEL_OK")
</pallas_src>

<mosaic_0001>
module attributes {stable_mosaic.version = 11 : i64} {
  func.func private @main(%arg0: i32) attributes {dimension_semantics = [#tpu.dimension_semantics<core_parallel>], iteration_bounds = array<i64: 2>, tpu.core_type = #tpu.core_type<sc_scalar_subcore>, window_params = []} {
    return
  }
}

module attributes {stable_mosaic.version = 11 : i64} {
  func.func private @main(%arg0: i32) attributes {dimension_semantics = [#tpu.dimension_semantics<core_parallel>], iteration_bounds = array<i64: 2>, tpu.core_type = #tpu.core_type<sc_scalar_subcore>, window_params = []} {
    return
  }
}

module attributes {stable_mosaic.version = 11 : i64} {
  func.func @_segblock_kernel(%arg0: i32, %arg1: memref<1x18x18x32xbf16, #tpu.memory_space<vmem>>, %arg2: memref<1x9x9x32xbf16, #tpu.memory_space<vmem>>, %arg3: memref<1x9x9x32xbf16, #tpu.memory_space<vmem>>, %arg4: memref<1x9x9x32xbf16, #tpu.memory_space<vmem>>, %arg5: memref<1x9x9x32xbf16, #tpu.memory_space<vmem>>, %arg6: memref<3x9x32x32xbf16, #tpu.memory_space<vmem>>, %arg7: memref<3x1x32xf32, #tpu.memory_space<vmem>>, %arg8: memref<3x1x32xf32, #tpu.memory_space<vmem>>, %arg9: memref<3x9x32x32xbf16, #tpu.memory_space<vmem>>, %arg10: memref<3x1x32xf32, #tpu.memory_space<vmem>>, %arg11: memref<3x1x32xf32, #tpu.memory_space<vmem>>, %arg12: memref<3x32x32xbf16, #tpu.memory_space<vmem>>, %arg13: memref<3x1x32xf32, #tpu.memory_space<vmem>>, %arg14: memref<8x16x8xbf16, #tpu.memory_space<vmem>>, %arg15: memref<1x16x16x32xf32, #tpu.memory_space<vmem>>, %arg16: memref<18x18x32xbf16, #tpu.memory_space<vmem>>, %arg17: memref<10x10x32xbf16, #tpu.memory_space<vmem>>) attributes {dimension_semantics = [#tpu.dimension_semantics<parallel>], iteration_bounds = array<i64: 2>, scalar_prefetch = 0 : i64, scratch_operands = 2 : i64, tpu.core_type = #tpu.core_type<tc>, window_params = [{transform_indices = @transform_0, window_bounds = array<i64: 1, 18, 18, 32>}, {transform_indices = @transform_1, window_bounds = array<i64: 1, 9, 9, 32>}, {transform_indices = @transform_2, window_bounds = array<i64: 1, 9, 9, 32>}, {transform_indices = @transform_3, window_bounds = array<i64: 1, 9, 9, 32>}, {transform_indices = @transform_4, window_bounds = array<i64: 1, 9, 9, 32>}, {pipeline_mode = #tpu.pipeline_mode<synchronous>, transform_indices = @transform_5, window_bounds = array<i64: 3, 9, 32, 32>}, {pipeline_mode = #tpu.pipeline_mode<synchronous>, transform_indices = @transform_6, window_bounds = array<i64: 3, 1, 32>}, {pipeline_mode = #tpu.pipeline_mode<synchronous>, transform_indices = @transform_7, window_bounds = array<i64: 3, 1, 32>}, {pipeline_mode = #tpu.pipeline_mode<synchronous>, transform_indices = @transform_8, window_bounds = array<i64: 3, 9, 32, 32>}, {pipeline_mode = #tpu.pipeline_mode<synchronous>, transform_indices = @transform_9, window_bounds = array<i64: 3, 1, 32>}, {pipeline_mode = #tpu.pipeline_mode<synchronous>, transform_indices = @transform_10, window_bounds = array<i64: 3, 1, 32>}, {pipeline_mode = #tpu.pipeline_mode<synchronous>, transform_indices = @transform_11, window_bounds = array<i64: 3, 32, 32>}, {pipeline_mode = #tpu.pipeline_mode<synchronous>, transform_indices = @transform_12, window_bounds = array<i64: 3, 1, 32>}, {pipeline_mode = #tpu.pipeline_mode<synchronous>, transform_indices = @transform_13, window_bounds = array<i64: 8, 16, 8>}, {transform_indices = @transform_14, window_bounds = array<i64: 1, 16, 16, 32>}]} {
    %cst = arith.constant 0.000000e+00 : bf16
    %0 = vector.broadcast %cst : bf16 to vector<18x18x32xbf16>
    %c0 = arith.constant 0 : index
    %c0_0 = arith.constant 0 : index
    %c0_1 = arith.constant 0 : index
    %1 = vector.load %arg16[%c0, %c0_0, %c0_1] : memref<18x18x32xbf16, #tpu.memory_space<vmem>>, vector<18x18x32xbf16>
    tpu.vector_store %arg16[%c0, %c0_0, %c0_1], %0 {strides = array<i32>} : memref<18x18x32xbf16, #tpu.memory_space<vmem>>, vector<18x18x32xbf16>,
    %cst_2 = arith.constant 0.000000e+00 : bf16
    %2 = vector.broadcast %cst_2 : bf16 to vector<10x10x32xbf16>
    %c0_3 = arith.constant 0 : index
    %c0_4 = arith.constant 0 : index
    %c0_5 = arith.constant 0 : index
    %3 = vector.load %arg17[%c0_3, %c0_4, %c0_5] : memref<10x10x32xbf16, #tpu.memory_space<vmem>>, vector<10x10x32xbf16>
    tpu.vector_store %arg17[%c0_3, %c0_4, %c0_5], %2 {strides = array<i32>} : memref<10x10x32xbf16, #tpu.memory_space<vmem>>, vector<10x10x32xbf16>,
    %c0_6 = arith.constant 0 : index
    %c0_7 = arith.constant 0 : index
    %c0_8 = arith.constant 0 : index
    %4 = vector.load %arg14[%c0_6, %c0_7, %c0_8] : memref<8x16x8xbf16, #tpu.memory_space<vmem>>, vector<8x16x8xbf16>
    %c0_9 = arith.constant 0 : index
    %c0_10 = arith.constant 0 : index
    %c0_11 = arith.constant 0 : index
    %c0_12 = arith.constant 0 : index
    %5 = vector.load %arg1[%c0_9, %c0_10, %c0_11, %c0_12] : memref<1x18x18x32xbf16, #tpu.memory_space<vmem>>, vector<1x18x18x32xbf16>
    %6 = vector.shape_cast %5 : vector<1x18x18x32xbf16> to vector<18x18x32xbf16>
    %c0_13 = arith.constant 0 : index
    %c0_14 = arith.constant 0 : index
    %c0_15 = arith.constant 0 : index
    %c0_16 = arith.constant 0 : index
    %7 = vector.load %arg6[%c0_13, %c0_14, %c0_15, %c0_16] : memref<3x9x32x32xbf16, #tpu.memory_space<vmem>>, vector<1x9x32x32xbf16>
    %8 = vector.shape_cast %7 : vector<1x9x32x32xbf16> to vector<9x32x32xbf16>
    %c0_17 = arith.constant 0 : index
    %c0_18 = arith.constant 0 : index
    %c0_19 = arith.constant 0 : index
    %9 = vector.load %arg7[%c0_17, %c0_18, %c0_19] : memref<3x1x32xf32, #tpu.memory_space<vmem>>, vector<1x1x32xf32>
    %10 = vector.shape_cast %9 : vector<1x1x32xf32> to vector<1x32xf32>
    %c0_20 = arith.constant 0 : index
    %c0_21 = arith.constant 0 : index
    %c0_22 = arith.constant 0 : index
    %11 = vector.load %arg8[%c0_20, %c0_21, %c0_22] : memref<3x1x32xf32, #tpu.memory_space<vmem>>, vector<1x1x32xf32>
    %12 = vector.shape_cast %11 : vector<1x1x32xf32> to vector<1x32xf32>
    %13 = vector.extract_strided_slice %6 {offsets = [0, 0, 0], sizes = [16, 16, 32], strides = [1, 1, 1]} : vector<18x18x32xbf16> to vector<16x16x32xbf16>
    %14 = vector.shape_cast %13 : vector<16x16x32xbf16> to vector<256x32xbf16>
    %15 = vector.extract_strided_slice %8 {offsets = [0, 0, 0], sizes = [1, 32, 32], strides = [1, 1, 1]} : vector<9x32x32xbf16> to vector<1x32x32xbf16>
    %16 = vector.shape_cast %15 : vector<1x32x32xbf16> to vector<32x32xbf16>
    %cst_23 = arith.constant dense<0.000000e+00> : vector<256x32xf32>
    %17 = tpu.matmul %14, %16, %cst_23 {dimension_numbers = #tpu.dot_dimension_numbers<[1], [0], [0], [1], [0, 0, 1, 1], [], []>} : vector<256x32xbf16>, vector<32x32xbf16>, vector<256x32xf32> -> vector<256x32xf32>
    %18 = vector.extract_strided_slice %6 {offsets = [0, 1, 0], sizes = [16, 16, 32], strides = [1, 1, 1]} : vector<18x18x32xbf16> to vector<16x16x32xbf16>
    %19 = vector.shape_cast %18 : vector<16x16x32xbf16> to vector<256x32xbf16>
    %20 = vector.extract_strided_slice %8 {offsets = [1, 0, 0], sizes = [1, 32, 32], strides = [1, 1, 1]} : vector<9x32x32xbf16> to vector<1x32x32xbf16>
    %21 = vector.shape_cast %20 : vector<1x32x32xbf16> to vector<32x32xbf16>
    %cst_24 = arith.constant dense<0.000000e+00> : vector<256x32xf32>
    %22 = tpu.matmul %19, %21, %cst_24 {dimension_numbers = #tpu.dot_dimension_numbers<[1], [0], [0], [1], [0, 0, 1, 1], [], []>} : vector<256x32xbf16>, vector<32x32xbf16>, vector<256x32xf32> -> vector<256x32xf32>
    %23 = arith.addf %17, %22 : vector<256x32xf32>
    %24 = vector.extract_strided_slice %6 {offsets = [0, 2, 0], sizes = [16, 16, 32], strides = [1, 1, 1]} : vector<18x18x32xbf16> to vector<16x16x32xbf16>
    %25 = vector.shape_cast %24 : vector<16x16x32xbf16> to vector<256x32xbf16>
    %26 = vector.extract_strided_slice %8 {offsets = [2, 0, 0], sizes = [1, 32, 32], strides = [1, 1, 1]} : vector<9x32x32xbf16> to vector<1x32x32xbf16>
    %27 = vector.shape_cast %26 : vector<1x32x32xbf16> to vector<32x32xbf16>
    %cst_25 = arith.constant dense<0.000000e+00> : vector<256x32xf32>
    %28 = tpu.matmul %25, %27, %cst_25 {dimension_numbers = #tpu.dot_dimension_numbers<[1], [0], [0], [1], [0, 0, 1, 1], [], []>} : vector<256x32xbf16>, vector<32x32xbf16>, vector<256x32xf32> -> vector<256x32xf32>
    %29 = arith.addf %23, %28 : vector<256x32xf32>
    %30 = vector.extract_strided_slice %6 {offsets = [1, 0, 0], sizes = [16, 16, 32], strides = [1, 1, 1]} : vector<18x18x32xbf16> to vector<16x16x32xbf16>
    %31 = vector.shape_cast %30 : vector<16x16x32xbf16> to vector<256x32xbf16>
    %32 = vector.extract_strided_slice %8 {offsets = [3, 0, 0], sizes = [1, 32, 32], strides = [1, 1, 1]} : vector<9x32x32xbf16> to vector<1x32x32xbf16>
    %33 = vector.shape_cast %32 : vector<1x32x32xbf16> to vector<32x32xbf16>
    %cst_26 = arith.constant dense<0.000000e+00> : vector<256x32xf32>
    %34 = tpu.matmul %31, %33, %cst_26 {dimension_numbers = #tpu.dot_dimension_numbers<[1], [0], [0], [1], [0, 0, 1, 1], [], []>} : vector<256x32xbf16>, vector<32x32xbf16>, vector<256x32xf32> -> vector<256x32xf32>
    %35 = arith.addf %29, %34 : vector<256x32xf32>
    %36 = vector.extract_strided_slice %6 {offsets = [1, 1, 0], sizes = [16, 16, 32], strides = [1, 1, 1]} : vector<18x18x32xbf16> to vector<16x16x32xbf16>
    %37 = vector.shape_cast %36 : vector<16x16x32xbf16> to vector<256x32xbf16>
    %38 = vector.extract_strided_slice %8 {offsets = [4, 0, 0], sizes = [1, 32, 32], strides = [1, 1, 1]} : vector<9x32x32xbf16> to vector<1x32x32xbf16>
    %39 = vector.shape_cast %38 : vector<1x32x32xbf16> to vector<32x32xbf16>
    %cst_27 = arith.constant dense<0.000000e+00> : vector<256x32xf32>
    %40 = tpu.matmul %37, %39, %cst_27 {dimension_numbers = #tpu.dot_dimension_numbers<[1], [0], [0], [1], [0, 0, 1, 1], [], []>} : vector<256x32xbf16>, vector<32x32xbf16>, vector<256x32xf32> -> vector<256x32xf32>
    %41 = arith.addf %35, %40 : vector<256x32xf32>
    %42 = vector.extract_strided_slice %6 {offsets = [1, 2, 0], sizes = [16, 16, 32], strides = [1, 1, 1]} : vector<18x18x32xbf16> to vector<16x16x32xbf16>
    %43 = vector.shape_cast %42 : vector<16x16x32xbf16> to vector<256x32xbf16>
    %44 = vector.extract_strided_slice %8 {offsets = [5, 0, 0], sizes = [1, 32, 32], strides = [1, 1, 1]} : vector<9x32x32xbf16> to vector<1x32x32xbf16>
    %45 = vector.shape_cast %44 : vector<1x32x32xbf16> to vector<32x32xbf16>
    %cst_28 = arith.constant dense<0.000000e+00> : vector<256x32xf32>
    %46 = tpu.matmul %43, %45, %cst_28 {dimension_numbers = #tpu.dot_dimension_numbers<[1], [0], [0], [1], [0, 0, 1, 1], [], []>} : vector<256x32xbf16>, vector<32x32xbf16>, vector<256x32xf32> -> vector<256x32xf32>
    %47 = arith.addf %41, %46 : vector<256x32xf32>
    %48 = vector.extract_strided_slice %6 {offsets = [2, 0, 0], sizes = [16, 16, 32], strides = [1, 1, 1]} : vector<18x18x32xbf16> to vector<16x16x32xbf16>
    %49 = vector.shape_cast %48 : vector<16x16x32xbf16> to vector<256x32xbf16>
    %50 = vector.extract_strided_slice %8 {offsets = [6, 0, 0], sizes = [1, 32, 32], strides = [1, 1, 1]} : vector<9x32x32xbf16> to vector<1x32x32xbf16>
    %51 = vector.shape_cast %50 : vector<1x32x32xbf16> to vector<32x32xbf16>
    %cst_29 = arith.constant dense<0.000000e+00> : vector<256x32xf32>
    %52 = tpu.matmul %49, %51, %cst_29 {dimension_numbers = #tpu.dot_dimension_numbers<[1], [0], [0], [1], [0, 0, 1, 1], [], []>} : vector<256x32xbf16>, vector<32x32xbf16>, vector<256x32xf32> -> vector<256x32xf32>
    %53 = arith.addf %47, %52 : vector<256x32xf32>
    %54 = vector.extract_strided_slice %6 {offsets = [2, 1, 0], sizes = [16, 16, 32], strides = [1, 1, 1]} : vector<18x18x32xbf16> to vector<16x16x32xbf16>
    %55 = vector.shape_cast %54 : vector<16x16x32xbf16> to vector<256x32xbf16>
    %56 = vector.extract_strided_slice %8 {offsets = [7, 0, 0], sizes = [1, 32, 32], strides = [1, 1, 1]} : vector<9x32x32xbf16> to vector<1x32x32xbf16>
    %57 = vector.shape_cast %56 : vector<1x32x32xbf16> to vector<32x32xbf16>
    %cst_30 = arith.constant dense<0.000000e+00> : vector<256x32xf32>
    %58 = tpu.matmul %55, %57, %cst_30 {dimension_numbers = #tpu.dot_dimension_numbers<[1], [0], [0], [1], [0, 0, 1, 1], [], []>} : vector<256x32xbf16>, vector<32x32xbf16>, vector<256x32xf32> -> vector<256x32xf32>
    %59 = arith.addf %53, %58 : vector<256x32xf32>
    %60 = vector.extract_strided_slice %6 {offsets = [2, 2, 0], sizes = [16, 16, 32], strides = [1, 1, 1]} : vector<18x18x32xbf16> to vector<16x16x32xbf16>
    %61 = vector.shape_cast %60 : vector<16x16x32xbf16> to vector<256x32xbf16>
    %62 = vector.extract_strided_slice %8 {offsets = [8, 0, 0], sizes = [1, 32, 32], strides = [1, 1, 1]} : vector<9x32x32xbf16> to vector<1x32x32xbf16>
    %63 = vector.shape_cast %62 : vector<1x32x32xbf16> to vector<32x32xbf16>
    %cst_31 = arith.constant dense<0.000000e+00> : vector<256x32xf32>
    %64 = tpu.matmul %61, %63, %cst_31 {dimension_numbers = #tpu.dot_dimension_numbers<[1], [0], [0], [1], [0, 0, 1, 1], [], []>} : vector<256x32xbf16>, vector<32x32xbf16>, vector<256x32xf32> -> vector<256x32xf32>
    %65 = arith.addf %59, %64 : vector<256x32xf32>
    %66 = vector.broadcast %10 : vector<1x32xf32> to vector<256x32xf32>
    %67 = arith.mulf %65, %66 : vector<256x32xf32>
    %68 = vector.broadcast %12 : vector<1x32xf32> to vector<256x32xf32>
    %69 = arith.addf %67, %68 : vector<256x32xf32>
    %cst_32 = arith.constant 0.000000e+00 : f32
    %70 = vector.broadcast %cst_32 : f32 to vector<256x32xf32>
    %71 = arith.maximumf %69, %70 : vector<256x32xf32>
    %c0_33 = arith.constant 0 : index
    %c0_34 = arith.constant 0 : index
    %c0_35 = arith.constant 0 : index
    %c0_36 = arith.constant 0 : index
    %72 = vector.load %arg2[%c0_33, %c0_34, %c0_35, %c0_36] : memref<1x9x9x32xbf16, #tpu.memory_space<vmem>>, vector<1x9x9x32xbf16>
    %73 = vector.shape_cast %72 : vector<1x9x9x32xbf16> to vector<9x9x32xbf16>
    %c0_37 = arith.constant 0 : index
    %c0_38 = arith.constant 0 : index
    %c0_39 = arith.constant 0 : index
    %c0_40 = arith.constant 0 : index
    %74 = vector.load %arg3[%c0_37, %c0_38, %c0_39, %c0_40] : memref<1x9x9x32xbf16, #tpu.memory_space<vmem>>, vector<1x9x9x32xbf16>
    %75 = vector.shape_cast %74 : vector<1x9x9x32xbf16> to vector<9x9x32xbf16>
    %c0_41 = arith.constant 0 : index
    %c0_42 = arith.constant 0 : index
    %c0_43 = arith.constant 0 : index
    %c0_44 = arith.constant 0 : index
    %76 = vector.load %arg4[%c0_41, %c0_42, %c0_43, %c0_44] : memref<1x9x9x32xbf16, #tpu.memory_space<vmem>>, vector<1x9x9x32xbf16>
    %77 = vector.shape_cast %76 : vector<1x9x9x32xbf16> to vector<9x9x32xbf16>
    %c0_45 = arith.constant 0 : index
    %c0_46 = arith.constant 0 : index
    %c0_47 = arith.constant 0 : index
    %c0_48 = arith.constant 0 : index
    %78 = vector.load %arg5[%c0_45, %c0_46, %c0_47, %c0_48] : memref<1x9x9x32xbf16, #tpu.memory_space<vmem>>, vector<1x9x9x32xbf16>
    %79 = vector.shape_cast %78 : vector<1x9x9x32xbf16> to vector<9x9x32xbf16>
    %c0_49 = arith.constant 0 : index
    %c0_50 = arith.constant 0 : index
    %c0_51 = arith.constant 0 : index
    %c0_52 = arith.constant 0 : index
    %80 = vector.load %arg9[%c0_49, %c0_50, %c0_51, %c0_52] : memref<3x9x32x32xbf16, #tpu.memory_space<vmem>>, vector<1x9x32x32xbf16>
    %81 = vector.shape_cast %80 : vector<1x9x32x32xbf16> to vector<9x32x32xbf16>
    %c0_53 = arith.constant 0 : index
    %c0_54 = arith.constant 0 : index
    %c0_55 = arith.constant 0 : index
    %82 = vector.load %arg10[%c0_53, %c0_54, %c0_55] : memref<3x1x32xf32, #tpu.memory_space<vmem>>, vector<1x1x32xf32>
    %83 = vector.shape_cast %82 : vector<1x1x32xf32> to vector<1x32xf32>
    %c0_56 = arith.constant 0 : index
    %c0_57 = arith.constant 0 : index
    %c0_58 = arith.constant 0 : index
    %84 = vector.load %arg11[%c0_56, %c0_57, %c0_58] : memref<3x1x32xf32, #tpu.memory_space<vmem>>, vector<1x1x32xf32>
    %85 = vector.shape_cast %84 : vector<1x1x32xf32> to vector<1x32xf32>
    %86 = vector.extract_strided_slice %73 {offsets = [0, 0, 0], sizes = [8, 8, 32], strides = [1, 1, 1]} : vector<9x9x32xbf16> to vector<8x8x32xbf16>
    %87 = vector.shape_cast %86 : vector<8x8x32xbf16> to vector<64x32xbf16>
    %88 = vector.extract_strided_slice %81 {offsets = [0, 0, 0], sizes = [1, 32, 32], strides = [1, 1, 1]} : vector<9x32x32xbf16> to vector<1x32x32xbf16>
    %89 = vector.shape_cast %88 : vector<1x32x32xbf16> to vector<32x32xbf16>
    %cst_59 = arith.constant dense<0.000000e+00> : vector<64x32xf32>
    %90 = tpu.matmul %87, %89, %cst_59 {dimension_numbers = #tpu.dot_dimension_numbers<[1], [0], [0], [1], [0, 0, 1, 1], [], []>} : vector<64x32xbf16>, vector<32x32xbf16>, vector<64x32xf32> -> vector<64x32xf32>
    %91 = vector.extract_strided_slice %75 {offsets = [0, 0, 0], sizes = [8, 8, 32], strides = [1, 1, 1]} : vector<9x9x32xbf16> to vector<8x8x32xbf16>
    %92 = vector.shape_cast %91 : vector<8x8x32xbf16> to vector<64x32xbf16>
    %93 = vector.extract_strided_slice %81 {offsets = [1, 0, 0], sizes = [1, 32, 32], strides = [1, 1, 1]} : vector<9x32x32xbf16> to vector<1x32x32xbf16>
    %94 = vector.shape_cast %93 : vector<1x32x32xbf16> to vector<32x32xbf16>
    %cst_60 = arith.constant dense<0.000000e+00> : vector<64x32xf32>
    %95 = tpu.matmul %92, %94, %cst_60 {dimension_numbers = #tpu.dot_dimension_numbers<[1], [0], [0], [1], [0, 0, 1, 1], [], []>} : vector<64x32xbf16>, vector<32x32xbf16>, vector<64x32xf32> -> vector<64x32xf32>
    %96 = arith.addf %90, %95 : vector<64x32xf32>
    %97 = vector.extract_strided_slice %73 {offsets = [0, 1, 0], sizes = [8, 8, 32], strides = [1, 1, 1]} : vector<9x9x32xbf16> to vector<8x8x32xbf16>
    %98 = vector.shape_cast %97 : vector<8x8x32xbf16> to vector<64x32xbf16>
    %99 = vector.extract_strided_slice %81 {offsets = [2, 0, 0], sizes = [1, 32, 32], strides = [1, 1, 1]} : vector<9x32x32xbf16> to vector<1x32x32xbf16>
    %100 = vector.shape_cast %99 : vector<1x32x32xbf16> to vector<32x32xbf16>
    %cst_61 = arith.constant dense<0.000000e+00> : vector<64x32xf32>
    %101 = tpu.matmul %98, %100, %cst_61 {dimension_numbers = #tpu.dot_dimension_numbers<[1], [0], [0], [1], [0, 0, 1, 1], [], []>} : vector<64x32xbf16>, vector<32x32xbf16>, vector<64x32xf32> -> vector<64x32xf32>
    %102 = arith.addf %96, %101 : vector<64x32xf32>
    %103 = vector.extract_strided_slice %77 {offsets = [0, 0, 0], sizes = [8, 8, 32], strides = [1, 1, 1]} : vector<9x9x32xbf16> to vector<8x8x32xbf16>
    %104 = vector.shape_cast %103 : vector<8x8x32xbf16> to vector<64x32xbf16>
    %105 = vector.extract_strided_slice %81 {offsets = [3, 0, 0], sizes = [1, 32, 32], strides = [1, 1, 1]} : vector<9x32x32xbf16> to vector<1x32x32xbf16>
    %106 = vector.shape_cast %105 : vector<1x32x32xbf16> to vector<32x32xbf16>
    %cst_62 = arith.constant dense<0.000000e+00> : vector<64x32xf32>
    %107 = tpu.matmul %104, %106, %cst_62 {dimension_numbers = #tpu.dot_dimension_numbers<[1], [0], [0], [1], [0, 0, 1, 1], [], []>} : vector<64x32xbf16>, vector<32x32xbf16>, vector<64x32xf32> -> vector<64x32xf32>
    %108 = arith.addf %102, %107 : vector<64x32xf32>
    %109 = vector.extract_strided_slice %79 {offsets = [0, 0, 0], sizes = [8, 8, 32], strides = [1, 1, 1]} : vector<9x9x32xbf16> to vector<8x8x32xbf16>
    %110 = vector.shape_cast %109 : vector<8x8x32xbf16> to vector<64x32xbf16>
    %111 = vector.extract_strided_slice %81 {offsets = [4, 0, 0], sizes = [1, 32, 32], strides = [1, 1, 1]} : vector<9x32x32xbf16> to vector<1x32x32xbf16>
    %112 = vector.shape_cast %111 : vector<1x32x32xbf16> to vector<32x32xbf16>
    %cst_63 = arith.constant dense<0.000000e+00> : vector<64x32xf32>
    %113 = tpu.matmul %110, %112, %cst_63 {dimension_numbers = #tpu.dot_dimension_numbers<[1], [0], [0], [1], [0, 0, 1, 1], [], []>} : vector<64x32xbf16>, vector<32x32xbf16>, vector<64x32xf32> -> vector<64x32xf32>
    %114 = arith.addf %108, %113 : vector<64x32xf32>
    %115 = vector.extract_strided_slice %77 {offsets = [0, 1, 0], sizes = [8, 8, 32], strides = [1, 1, 1]} : vector<9x9x32xbf16> to vector<8x8x32xbf16>
    %116 = vector.shape_cast %115 : vector<8x8x32xbf16> to vector<64x32xbf16>
    %117 = vector.extract_strided_slice %81 {offsets = [5, 0, 0], sizes = [1, 32, 32], strides = [1, 1, 1]} : vector<9x32x32xbf16> to vector<1x32x32xbf16>
    %118 = vector.shape_cast %117 : vector<1x32x32xbf16> to vector<32x32xbf16>
    %cst_64 = arith.constant dense<0.000000e+00> : vector<64x32xf32>
    %119 = tpu.matmul %116, %118, %cst_64 {dimension_numbers = #tpu.dot_dimension_numbers<[1], [0], [0], [1], [0, 0, 1, 1], [], []>} : vector<64x32xbf16>, vector<32x32xbf16>, vector<64x32xf32> -> vector<64x32xf32>
    %120 = arith.addf %114, %119 : vector<64x32xf32>
    %121 = vector.extract_strided_slice %73 {offsets = [1, 0, 0], sizes = [8, 8, 32], strides = [1, 1, 1]} : vector<9x9x32xbf16> to vector<8x8x32xbf16>
    %122 = vector.shape_cast %121 : vector<8x8x32xbf16> to vector<64x32xbf16>
    %123 = vector.extract_strided_slice %81 {offsets = [6, 0, 0], sizes = [1, 32, 32], strides = [1, 1, 1]} : vector<9x32x32xbf16> to vector<1x32x32xbf16>
    %124 = vector.shape_cast %123 : vector<1x32x32xbf16> to vector<32x32xbf16>
    %cst_65 = arith.constant dense<0.000000e+00> : vector<64x32xf32>
    %125 = tpu.matmul %122, %124, %cst_65 {dimension_numbers = #tpu.dot_dimension_numbers<[1], [0], [0], [1], [0, 0, 1, 1], [], []>} : vector<64x32xbf16>, vector<32x32xbf16>, vector<64x32xf32> -> vector<64x32xf32>
    %126 = arith.addf %120, %125 : vector<64x32xf32>
    %127 = vector.extract_strided_slice %75 {offsets = [1, 0, 0], sizes = [8, 8, 32], strides = [1, 1, 1]} : vector<9x9x32xbf16> to vector<8x8x32xbf16>
    %128 = vector.shape_cast %127 : vector<8x8x32xbf16> to vector<64x32xbf16>
    %129 = vector.extract_strided_slice %81 {offsets = [7, 0, 0], sizes = [1, 32, 32], strides = [1, 1, 1]} : vector<9x32x32xbf16> to vector<1x32x32xbf16>
    %130 = vector.shape_cast %129 : vector<1x32x32xbf16> to vector<32x32xbf16>
    %cst_66 = arith.constant dense<0.000000e+00> : vector<64x32xf32>
    %131 = tpu.matmul %128, %130, %cst_66 {dimension_numbers = #tpu.dot_dimension_numbers<[1], [0], [0], [1], [0, 0, 1, 1], [], []>} : vector<64x32xbf16>, vector<32x32xbf16>, vector<64x32xf32> -> vector<64x32xf32>
    %132 = arith.addf %126, %131 : vector<64x32xf32>
    %133 = vector.extract_strided_slice %73 {offsets = [1, 1, 0], sizes = [8, 8, 32], strides = [1, 1, 1]} : vector<9x9x32xbf16> to vector<8x8x32xbf16>
    %134 = vector.shape_cast %133 : vector<8x8x32xbf16> to vector<64x32xbf16>
    %135 = vector.extract_strided_slice %81 {offsets = [8, 0, 0], sizes = [1, 32, 32], strides = [1, 1, 1]} : vector<9x32x32xbf16> to vector<1x32x32xbf16>
    %136 = vector.shape_cast %135 : vector<1x32x32xbf16> to vector<32x32xbf16>
    %cst_67 = arith.constant dense<0.000000e+00> : vector<64x32xf32>
    %137 = tpu.matmul %134, %136, %cst_67 {dimension_numbers = #tpu.dot_dimension_numbers<[1], [0], [0], [1], [0, 0, 1, 1], [], []>} : vector<64x32xbf16>, vector<32x32xbf16>, vector<64x32xf32> -> vector<64x32xf32>
    %138 = arith.addf %132, %137 : vector<64x32xf32>
    %139 = vector.broadcast %83 : vector<1x32xf32> to vector<64x32xf32>
    %140 = arith.mulf %138, %139 : vector<64x32xf32>
    %141 = vector.broadcast %85 : vector<1x32xf32> to vector<64x32xf32>
    %142 = arith.addf %140, %141 : vector<64x32xf32>
    %cst_68 = arith.constant 0.000000e+00 : f32
    %143 = vector.broadcast %cst_68 : f32 to vector<64x32xf32>
    %144 = arith.maximumf %142, %143 : vector<64x32xf32>
    %c0_69 = arith.constant 0 : index
    %c0_70 = arith.constant 0 : index
    %c0_71 = arith.constant 0 : index
    %145 = vector.load %arg12[%c0_69, %c0_70, %c0_71] : memref<3x32x32xbf16, #tpu.memory_space<vmem>>, vector<1x32x32xbf16>
    %146 = vector.shape_cast %145 : vector<1x32x32xbf16> to vector<32x32xbf16>
    %c0_72 = arith.constant 0 : index
    %c0_73 = arith.constant 0 : index
    %c0_74 = arith.constant 0 : index
    %147 = vector.load %arg13[%c0_72, %c0_73, %c0_74] : memref<3x1x32xf32, #tpu.memory_space<vmem>>, vector<1x1x32xf32>
    %148 = vector.shape_cast %147 : vector<1x1x32xf32> to vector<1x32xf32>
    %149 = arith.truncf %144 : vector<64x32xf32> to vector<64x32xbf16>
    %cst_75 = arith.constant dense<0.000000e+00> : vector<64x32xf32>
    %150 = tpu.matmul %149, %146, %cst_75 {dimension_numbers = #tpu.dot_dimension_numbers<[1], [0], [0], [1], [0, 0, 1, 1], [], []>} : vector<64x32xbf16>, vector<32x32xbf16>, vector<64x32xf32> -> vector<64x32xf32>
    %151 = vector.broadcast %148 : vector<1x32xf32> to vector<64x32xf32>
    %152 = arith.addf %150, %151 : vector<64x32xf32>
    %153 = vector.shape_cast %152 : vector<64x32xf32> to vector<8x8x32xf32>
    %154 = arith.truncf %153 : vector<8x8x32xf32> to vector<8x8x32xbf16>
    "tpu.trace_start"() <{level = 10 : i32, message = "iwj,ijc->iwc"}> : () -> ()
    %cst_76 = arith.constant dense<0.000000e+00> : vector<8x16x32xf32>
    %155 = tpu.matmul %4, %154, %cst_76 {dimension_numbers = #tpu.dot_dimension_numbers<[2], [1], [1], [2], [0, 0, 0, 1, 1, 2], [0], [0]>} : vector<8x16x8xbf16>, vector<8x8x32xbf16>, vector<8x16x32xf32> -> vector<8x16x32xf32>
    "tpu.trace_stop"() : () -> ()
    %156 = vector.extract_strided_slice %155 {offsets = [0, 0, 0], sizes = [1, 16, 32], strides = [1, 1, 1]} : vector<8x16x32xf32> to vector<1x16x32xf32>
    %157 = vector.shape_cast %156 : vector<1x16x32xf32> to vector<16x32xf32>
    %158 = vector.extract_strided_slice %155 {offsets = [0, 0, 0], sizes = [1, 16, 32], strides = [1, 1, 1]} : vector<8x16x32xf32> to vector<1x16x32xf32>
    %159 = vector.shape_cast %158 : vector<1x16x32xf32> to vector<16x32xf32>
    %cst_77 = arith.constant 0.533333361 : f32
    %160 = vector.broadcast %cst_77 : f32 to vector<16x32xf32>
    %161 = arith.mulf %160, %159 : vector<16x32xf32>
    %162 = vector.extract_strided_slice %155 {offsets = [1, 0, 0], sizes = [1, 16, 32], strides = [1, 1, 1]} : vector<8x16x32xf32> to vector<1x16x32xf32>
    %163 = vector.shape_cast %162 : vector<1x16x32xf32> to vector<16x32xf32>
    %cst_78 = arith.constant 0.466666669 : f32
    %164 = vector.broadcast %cst_78 : f32 to vector<16x32xf32>
    %165 = arith.mulf %164, %163 : vector<16x32xf32>
    %166 = arith.addf %161, %165 : vector<16x32xf32>
    %167 = vector.extract_strided_slice %155 {offsets = [0, 0, 0], sizes = [1, 16, 32], strides = [1, 1, 1]} : vector<8x16x32xf32> to vector<1x16x32xf32>
    %168 = vector.shape_cast %167 : vector<1x16x32xf32> to vector<16x32xf32>
    %cst_79 = arith.constant 0.0666666701 : f32
    %169 = vector.broadcast %cst_79 : f32 to vector<16x32xf32>
    %170 = arith.mulf %169, %168 : vector<16x32xf32>
    %171 = vector.extract_strided_slice %155 {offsets = [1, 0, 0], sizes = [1, 16, 32], strides = [1, 1, 1]} : vector<8x16x32xf32> to vector<1x16x32xf32>
    %172 = vector.shape_cast %171 : vector<1x16x32xf32> to vector<16x32xf32>
    %cst_80 = arith.constant 0.933333337 : f32
    %173 = vector.broadcast %cst_80 : f32 to vector<16x32xf32>
    %174 = arith.mulf %173, %172 : vector<16x32xf32>
    %175 = arith.addf %170, %174 : vector<16x32xf32>
    %176 = vector.extract_strided_slice %155 {offsets = [1, 0, 0], sizes = [1, 16, 32], strides = [1, 1, 1]} : vector<8x16x32xf32> to vector<1x16x32xf32>
    %177 = vector.shape_cast %176 : vector<1x16x32xf32> to vector<16x32xf32>
    %cst_81 = arith.constant 6.000000e-01 : f32
    %178 = vector.broadcast %cst_81 : f32 to vector<16x32xf32>
    %179 = arith.mulf %178, %177 : vector<16x32xf32>
    %180 = vector.extract_strided_slice %155 {offsets = [2, 0, 0], sizes = [1, 16, 32], strides = [1, 1, 1]} : vector<8x16x32xf32> to vector<1x16x32xf32>
    %181 = vector.shape_cast %180 : vector<1x16x32xf32> to vector<16x32xf32>
    %cst_82 = arith.constant 4.000000e-01 : f32
    %182 = vector.broadcast %cst_82 : f32 to vector<16x32xf32>
    %183 = arith.mulf %182, %181 : vector<16x32xf32>
    %184 = arith.addf %179, %183 : vector<16x32xf32>
    %185 = vector.extract_strided_slice %155 {offsets = [1, 0, 0], sizes = [1, 16, 32], strides = [1, 1, 1]} : vector<8x16x32xf32> to vector<1x16x32xf32>
    %186 = vector.shape_cast %185 : vector<1x16x32xf32> to vector<16x32xf32>
    %cst_83 = arith.constant 0.13333334 : f32
    %187 = vector.broadcast %cst_83 : f32 to vector<16x32xf32>
    %188 = arith.mulf %187, %186 : vector<16x32xf32>
    %189 = vector.extract_strided_slice %155 {offsets = [2, 0, 0], sizes = [1, 16, 32], strides = [1, 1, 1]} : vector<8x16x32xf32> to vector<1x16x32xf32>
    %190 = vector.shape_cast %189 : vector<1x16x32xf32> to vector<16x32xf32>
    %cst_84 = arith.constant 0.866666674 : f32
    %191 = vector.broadcast %cst_84 : f32 to vector<16x32xf32>
    %192 = arith.mulf %191, %190 : vector<16x32xf32>
    %193 = arith.addf %188, %192 : vector<16x32xf32>
    %194 = vector.extract_strided_slice %155 {offsets = [2, 0, 0], sizes = [1, 16, 32], strides = [1, 1, 1]} : vector<8x16x32xf32> to vector<1x16x32xf32>
    %195 = vector.shape_cast %194 : vector<1x16x32xf32> to vector<16x32xf32>
    %cst_85 = arith.constant 0.666666686 : f32
    %196 = vector.broadcast %cst_85 : f32 to vector<16x32xf32>
    %197 = arith.mulf %196, %195 : vector<16x32xf32>
    %198 = vector.extract_strided_slice %155 {offsets = [3, 0, 0], sizes = [1, 16, 32], strides = [1, 1, 1]} : vector<8x16x32xf32> to vector<1x16x32xf32>
    %199 = vector.shape_cast %198 : vector<1x16x32xf32> to vector<16x32xf32>
    %cst_86 = arith.constant 0.333333343 : f32
    %200 = vector.broadcast %cst_86 : f32 to vector<16x32xf32>
    %201 = arith.mulf %200, %199 : vector<16x32xf32>
    %202 = arith.addf %197, %201 : vector<16x32xf32>
    %203 = vector.extract_strided_slice %155 {offsets = [2, 0, 0], sizes = [1, 16, 32], strides = [1, 1, 1]} : vector<8x16x32xf32> to vector<1x16x32xf32>
    %204 = vector.shape_cast %203 : vector<1x16x32xf32> to vector<16x32xf32>
    %cst_87 = arith.constant 2.000000e-01 : f32
    %205 = vector.broadcast %cst_87 : f32 to vector<16x32xf32>
    %206 = arith.mulf %205, %204 : vector<16x32xf32>
    %207 = vector.extract_strided_slice %155 {offsets = [3, 0, 0], sizes = [1, 16, 32], strides = [1, 1, 1]} : vector<8x16x32xf32> to vector<1x16x32xf32>
    %208 = vector.shape_cast %207 : vector<1x16x32xf32> to vector<16x32xf32>
    %cst_88 = arith.constant 8.000000e-01 : f32
    %209 = vector.broadcast %cst_88 : f32 to vector<16x32xf32>
    %210 = arith.mulf %209, %208 : vector<16x32xf32>
    %211 = arith.addf %206, %210 : vector<16x32xf32>
    %212 = vector.extract_strided_slice %155 {offsets = [3, 0, 0], sizes = [1, 16, 32], strides = [1, 1, 1]} : vector<8x16x32xf32> to vector<1x16x32xf32>
    %213 = vector.shape_cast %212 : vector<1x16x32xf32> to vector<16x32xf32>
    %cst_89 = arith.constant 0.733333349 : f32
    %214 = vector.broadcast %cst_89 : f32 to vector<16x32xf32>
    %215 = arith.mulf %214, %213 : vector<16x32xf32>
    %216 = vector.extract_strided_slice %155 {offsets = [4, 0, 0], sizes = [1, 16, 32], strides = [1, 1, 1]} : vector<8x16x32xf32> to vector<1x16x32xf32>
    %217 = vector.shape_cast %216 : vector<1x16x32xf32> to vector<16x32xf32>
    %cst_90 = arith.constant 0.266666681 : f32
    %218 = vector.broadcast %cst_90 : f32 to vector<16x32xf32>
    %219 = arith.mulf %218, %217 : vector<16x32xf32>
    %220 = arith.addf %215, %219 : vector<16x32xf32>
    %221 = vector.extract_strided_slice %155 {offsets = [3, 0, 0], sizes = [1, 16, 32], strides = [1, 1, 1]} : vector<8x16x32xf32> to vector<1x16x32xf32>
    %222 = vector.shape_cast %221 : vector<1x16x32xf32> to vector<16x32xf32>
    %cst_91 = arith.constant 0.266666681 : f32
    %223 = vector.broadcast %cst_91 : f32 to vector<16x32xf32>
    %224 = arith.mulf %223, %222 : vector<16x32xf32>
    %225 = vector.extract_strided_slice %155 {offsets = [4, 0, 0], sizes = [1, 16, 32], strides = [1, 1, 1]} : vector<8x16x32xf32> to vector<1x16x32xf32>
    %226 = vector.shape_cast %225 : vector<1x16x32xf32> to vector<16x32xf32>
    %cst_92 = arith.constant 0.733333349 : f32
    %227 = vector.broadcast %cst_92 : f32 to vector<16x32xf32>
    %228 = arith.mulf %227, %226 : vector<16x32xf32>
    %229 = arith.addf %224, %228 : vector<16x32xf32>
    %230 = vector.extract_strided_slice %155 {offsets = [4, 0, 0], sizes = [1, 16, 32], strides = [1, 1, 1]} : vector<8x16x32xf32> to vector<1x16x32xf32>
    %231 = vector.shape_cast %230 : vector<1x16x32xf32> to vector<16x32xf32>
    %cst_93 = arith.constant 8.000000e-01 : f32
    %232 = vector.broadcast %cst_93 : f32 to vector<16x32xf32>
    %233 = arith.mulf %232, %231 : vector<16x32xf32>
    %234 = vector.extract_strided_slice %155 {offsets = [5, 0, 0], sizes = [1, 16, 32], strides = [1, 1, 1]} : vector<8x16x32xf32> to vector<1x16x32xf32>
    %235 = vector.shape_cast %234 : vector<1x16x32xf32> to vector<16x32xf32>
    %cst_94 = arith.constant 2.000000e-01 : f32
    %236 = vector.broadcast %cst_94 : f32 to vector<16x32xf32>
    %237 = arith.mulf %236, %235 : vector<16x32xf32>
    %238 = arith.addf %233, %237 : vector<16x32xf32>
    %239 = vector.extract_strided_slice %155 {offsets = [4, 0, 0], sizes = [1, 16, 32], strides = [1, 1, 1]} : vector<8x16x32xf32> to vector<1x16x32xf32>
    %240 = vector.shape_cast %239 : vector<1x16x32xf32> to vector<16x32xf32>
    %cst_95 = arith.constant 0.333333343 : f32
    %241 = vector.broadcast %cst_95 : f32 to vector<16x32xf32>
    %242 = arith.mulf %241, %240 : vector<16x32xf32>
    %243 = vector.extract_strided_slice %155 {offsets = [5, 0, 0], sizes = [1, 16, 32], strides = [1, 1, 1]} : vector<8x16x32xf32> to vector<1x16x32xf32>
    %244 = vector.shape_cast %243 : vector<1x16x32xf32> to vector<16x32xf32>
    %cst_96 = arith.constant 0.666666686 : f32
    %245 = vector.broadcast %cst_96 : f32 to vector<16x32xf32>
    %246 = arith.mulf %245, %244 : vector<16x32xf32>
    %247 = arith.addf %242, %246 : vector<16x32xf32>
    %248 = vector.extract_strided_slice %155 {offsets = [5, 0, 0], sizes = [1, 16, 32], strides = [1, 1, 1]} : vector<8x16x32xf32> to vector<1x16x32xf32>
    %249 = vector.shape_cast %248 : vector<1x16x32xf32> to vector<16x32xf32>
    %cst_97 = arith.constant 0.866666674 : f32
    %250 = vector.broadcast %cst_97 : f32 to vector<16x32xf32>
    %251 = arith.mulf %250, %249 : vector<16x32xf32>
    %252 = vector.extract_strided_slice %155 {offsets = [6, 0, 0], sizes = [1, 16, 32], strides = [1, 1, 1]} : vector<8x16x32xf32> to vector<1x16x32xf32>
    %253 = vector.shape_cast %252 : vector<1x16x32xf32> to vector<16x32xf32>
    %cst_98 = arith.constant 0.13333334 : f32
    %254 = vector.broadcast %cst_98 : f32 to vector<16x32xf32>
    %255 = arith.mulf %254, %253 : vector<16x32xf32>
    %256 = arith.addf %251, %255 : vector<16x32xf32>
    %257 = vector.extract_strided_slice %155 {offsets = [5, 0, 0], sizes = [1, 16, 32], strides = [1, 1, 1]} : vector<8x16x32xf32> to vector<1x16x32xf32>
    %258 = vector.shape_cast %257 : vector<1x16x32xf32> to vector<16x32xf32>
    %cst_99 = arith.constant 4.000000e-01 : f32
    %259 = vector.broadcast %cst_99 : f32 to vector<16x32xf32>
    %260 = arith.mulf %259, %258 : vector<16x32xf32>
    %261 = vector.extract_strided_slice %155 {offsets = [6, 0, 0], sizes = [1, 16, 32], strides = [1, 1, 1]} : vector<8x16x32xf32> to vector<1x16x32xf32>
    %262 = vector.shape_cast %261 : vector<1x16x32xf32> to vector<16x32xf32>
    %cst_100 = arith.constant 6.000000e-01 : f32
    %263 = vector.broadcast %cst_100 : f32 to vector<16x32xf32>
    %264 = arith.mulf %263, %262 : vector<16x32xf32>
    %265 = arith.addf %260, %264 : vector<16x32xf32>
    %266 = vector.extract_strided_slice %155 {offsets = [6, 0, 0], sizes = [1, 16, 32], strides = [1, 1, 1]} : vector<8x16x32xf32> to vector<1x16x32xf32>
    %267 = vector.shape_cast %266 : vector<1x16x32xf32> to vector<16x32xf32>
    %cst_101 = arith.constant 0.933333337 : f32
    %268 = vector.broadcast %cst_101 : f32 to vector<16x32xf32>
    %269 = arith.mulf %268, %267 : vector<16x32xf32>
    %270 = vector.extract_strided_slice %155 {offsets = [7, 0, 0], sizes = [1, 16, 32], strides = [1, 1, 1]} : vector<8x16x32xf32> to vector<1x16x32xf32>
    %271 = vector.shape_cast %270 : vector<1x16x32xf32> to vector<16x32xf32>
    %cst_102 = arith.constant 0.0666666701 : f32
    %272 = vector.broadcast %cst_102 : f32 to vector<16x32xf32>
    %273 = arith.mulf %272, %271 : vector<16x32xf32>
    %274 = arith.addf %269, %273 : vector<16x32xf32>
    %275 = vector.extract_strided_slice %155 {offsets = [6, 0, 0], sizes = [1, 16, 32], strides = [1, 1, 1]} : vector<8x16x32xf32> to vector<1x16x32xf32>
    %276 = vector.shape_cast %275 : vector<1x16x32xf32> to vector<16x32xf32>
    %cst_103 = arith.constant 0.466666669 : f32
    %277 = vector.broadcast %cst_103 : f32 to vector<16x32xf32>
    %278 = arith.mulf %277, %276 : vector<16x32xf32>
    %279 = vector.extract_strided_slice %155 {offsets = [7, 0, 0], sizes = [1, 16, 32], strides = [1, 1, 1]} : vector<8x16x32xf32> to vector<1x16x32xf32>
    %280 = vector.shape_cast %279 : vector<1x16x32xf32> to vector<16x32xf32>
    %cst_104 = arith.constant 0.533333361 : f32
    %281 = vector.broadcast %cst_104 : f32 to vector<16x32xf32>
    %282 = arith.mulf %281, %280 : vector<16x32xf32>
    %283 = arith.addf %278, %282 : vector<16x32xf32>
    %284 = vector.extract_strided_slice %155 {offsets = [7, 0, 0], sizes = [1, 16, 32], strides = [1, 1, 1]} : vector<8x16x32xf32> to vector<1x16x32xf32>
    %285 = vector.shape_cast %284 : vector<1x16x32xf32> to vector<16x32xf32>
    %286 = vector.shape_cast %157 : vector<16x32xf32> to vector<1x16x32xf32>
    %287 = vector.shape_cast %166 : vector<16x32xf32> to vector<1x16x32xf32>
    %288 = vector.shape_cast %175 : vector<16x32xf32> to vector<1x16x32xf32>
    %289 = vector.shape_cast %184 : vector<16x32xf32> to vector<1x16x32xf32>
    %290 = vector.shape_cast %193 : vector<16x32xf32> to vector<1x16x32xf32>
    %291 = vector.shape_cast %202 : vector<16x32xf32> to vector<1x16x32xf32>
    %292 = vector.shape_cast %211 : vector<16x32xf32> to vector<1x16x32xf32>
    %293 = vector.shape_cast %220 : vector<16x32xf32> to vector<1x16x32xf32>
    %294 = vector.shape_cast %229 : vector<16x32xf32> to vector<1x16x32xf32>
    %295 = vector.shape_cast %238 : vector<16x32xf32> to vector<1x16x32xf32>
    %296 = vector.shape_cast %247 : vector<16x32xf32> to vector<1x16x32xf32>
    %297 = vector.shape_cast %256 : vector<16x32xf32> to vector<1x16x32xf32>
    %298 = vector.shape_cast %265 : vector<16x32xf32> to vector<1x16x32xf32>
    %299 = vector.shape_cast %274 : vector<16x32xf32> to vector<1x16x32xf32>
    %300 = vector.shape_cast %283 : vector<16x32xf32> to vector<1x16x32xf32>
    %301 = vector.shape_cast %285 : vector<16x32xf32> to vector<1x16x32xf32>
    %302 = tpu.concatenate %286, %287, %288, %289, %290, %291, %292, %293, %294, %295, %296, %297, %298, %299, %300, %301 in 0 : vector<1x16x32xf32>, vector<1x16x32xf32>, vector<1x16x32xf32>, vector<1x16x32xf32>, vector<1x16x32xf32>, vector<1x16x32xf32>, vector<1x16x32xf32>, vector<1x16x32xf32>, vector<1x16x32xf32>, vector<1x16x32xf32>, vector<1x16x32xf32>, vector<1x16x32xf32>, vector<1x16x32xf32>, vector<1x16x32xf32>, vector<1x16x32xf32>, vector<1x16x32xf32> -> vector<16x16x32xf32>
    %303 = vector.shape_cast %71 : vector<256x32xf32> to vector<16x16x32xf32>
    %304 = arith.addf %302, %303 : vector<16x16x32xf32>
    %305 = arith.truncf %304 : vector<16x16x32xf32> to vector<16x16x32xbf16>
    %c1 = arith.constant 1 : index
    %c1_105 = arith.constant 1 : index
    %c0_106 = arith.constant 0 : index
    %306 = vector.load %arg16[%c1, %c1_105, %c0_106] : memref<18x18x32xbf16, #tpu.memory_space<vmem>>, vector<16x16x32xbf16>
    tpu.vector_store %arg16[%c1, %c1_105, %c0_106], %305 {strides = array<i32>} : memref<18x18x32xbf16, #tpu.memory_space<vmem>>, vector<16x16x32xbf16>,
    %307 = vector.shape_cast %144 : vector<64x32xf32> to vector<8x8x32xf32>
    %308 = arith.truncf %307 : vector<8x8x32xf32> to vector<8x8x32xbf16>
    %c1_107 = arith.constant 1 : index
    %c1_108 = arith.constant 1 : index
    %c0_109 = arith.constant 0 : index
    %309 = vector.load %arg17[%c1_107, %c1_108, %c0_109] : memref<10x10x32xbf16, #tpu.memory_space<vmem>>, vector<8x8x32xbf16>
    tpu.vector_store %arg17[%c1_107, %c1_108, %c0_109], %308 {strides = array<i32>} : memref<10x10x32xbf16, #tpu.memory_space<vmem>>, vector<8x8x32xbf16>,
    %c0_110 = arith.constant 0 : index
    %c0_111 = arith.constant 0 : index
    %c0_112 = arith.constant 0 : index
    %310 = vector.load %arg16[%c0_110, %c0_111, %c0_112] : memref<18x18x32xbf16, #tpu.memory_space<vmem>>, vector<18x18x32xbf16>
    %c1_113 = arith.constant 1 : index
    %c0_114 = arith.constant 0 : index
    %c0_115 = arith.constant 0 : index
    %c0_116 = arith.constant 0 : index
    %311 = vector.load %arg6[%c1_113, %c0_114, %c0_115, %c0_116] : memref<3x9x32x32xbf16, #tpu.memory_space<vmem>>, vector<1x9x32x32xbf16>
    %312 = vector.shape_cast %311 : vector<1x9x32x32xbf16> to vector<9x32x32xbf16>
    %c1_117 = arith.constant 1 : index
    %c0_118 = arith.constant 0 : index
    %c0_119 = arith.constant 0 : index
    %313 = vector.load %arg7[%c1_117, %c0_118, %c0_119] : memref<3x1x32xf32, #tpu.memory_space<vmem>>, vector<1x1x32xf32>
    %314 = vector.shape_cast %313 : vector<1x1x32xf32> to vector<1x32xf32>
    %c1_120 = arith.constant 1 : index
    %c0_121 = arith.constant 0 : index
    %c0_122 = arith.constant 0 : index
    %315 = vector.load %arg8[%c1_120, %c0_121, %c0_122] : memref<3x1x32xf32, #tpu.memory_space<vmem>>, vector<1x1x32xf32>
    %316 = vector.shape_cast %315 : vector<1x1x32xf32> to vector<1x32xf32>
    %317 = vector.extract_strided_slice %310 {offsets = [0, 0, 0], sizes = [16, 16, 32], strides = [1, 1, 1]} : vector<18x18x32xbf16> to vector<16x16x32xbf16>
    %318 = vector.shape_cast %317 : vector<16x16x32xbf16> to vector<256x32xbf16>
    %319 = vector.extract_strided_slice %312 {offsets = [0, 0, 0], sizes = [1, 32, 32], strides = [1, 1, 1]} : vector<9x32x32xbf16> to vector<1x32x32xbf16>
    %320 = vector.shape_cast %319 : vector<1x32x32xbf16> to vector<32x32xbf16>
    %cst_123 = arith.constant dense<0.000000e+00> : vector<256x32xf32>
    %321 = tpu.matmul %318, %320, %cst_123 {dimension_numbers = #tpu.dot_dimension_numbers<[1], [0], [0], [1], [0, 0, 1, 1], [], []>} : vector<256x32xbf16>, vector<32x32xbf16>, vector<256x32xf32> -> vector<256x32xf32>
    %322 = vector.extract_strided_slice %310 {offsets = [0, 1, 0], sizes = [16, 16, 32], strides = [1, 1, 1]} : vector<18x18x32xbf16> to vector<16x16x32xbf16>
    %323 = vector.shape_cast %322 : vector<16x16x32xbf16> to vector<256x32xbf16>
    %324 = vector.extract_strided_slice %312 {offsets = [1, 0, 0], sizes = [1, 32, 32], strides = [1, 1, 1]} : vector<9x32x32xbf16> to vector<1x32x32xbf16>
    %325 = vector.shape_cast %324 : vector<1x32x32xbf16> to vector<32x32xbf16>
    %cst_124 = arith.constant dense<0.000000e+00> : vector<256x32xf32>
    %326 = tpu.matmul %323, %325, %cst_124 {dimension_numbers = #tpu.dot_dimension_numbers<[1], [0], [0], [1], [0, 0, 1, 1], [], []>} : vector<256x32xbf16>, vector<32x32xbf16>, vector<256x32xf32> -> vector<256x32xf32>
    %327 = arith.addf %321, %326 : vector<256x32xf32>
    %328 = vector.extract_strided_slice %310 {offsets = [0, 2, 0], sizes = [16, 16, 32], strides = [1, 1, 1]} : vector<18x18x32xbf16> to vector<16x16x32xbf16>
    %329 = vector.shape_cast %328 : vector<16x16x32xbf16> to vector<256x32xbf16>
    %330 = vector.extract_strided_slice %312 {offsets = [2, 0, 0], sizes = [1, 32, 32], strides = [1, 1, 1]} : vector<9x32x32xbf16> to vector<1x32x32xbf16>
    %331 = vector.shape_cast %330 : vector<1x32x32xbf16> to vector<32x32xbf16>
    %cst_125 = arith.constant dense<0.000000e+00> : vector<256x32xf32>
    %332 = tpu.matmul %329, %331, %cst_125 {dimension_numbers = #tpu.dot_dimension_numbers<[1], [0], [0], [1], [0, 0, 1, 1], [], []>} : vector<256x32xbf16>, vector<32x32xbf16>, vector<256x32xf32> -> vector<256x32xf32>
    %333 = arith.addf %327, %332 : vector<256x32xf32>
    %334 = vector.extract_strided_slice %310 {offsets = [1, 0, 0], sizes = [16, 16, 32], strides = [1, 1, 1]} : vector<18x18x32xbf16> to vector<16x16x32xbf16>
    %335 = vector.shape_cast %334 : vector<16x16x32xbf16> to vector<256x32xbf16>
    %336 = vector.extract_strided_slice %312 {offsets = [3, 0, 0], sizes = [1, 32, 32], strides = [1, 1, 1]} : vector<9x32x32xbf16> to vector<1x32x32xbf16>
    %337 = vector.shape_cast %336 : vector<1x32x32xbf16> to vector<32x32xbf16>
    %cst_126 = arith.constant dense<0.000000e+00> : vector<256x32xf32>
    %338 = tpu.matmul %335, %337, %cst_126 {dimension_numbers = #tpu.dot_dimension_numbers<[1], [0], [0], [1], [0, 0, 1, 1], [], []>} : vector<256x32xbf16>, vector<32x32xbf16>, vector<256x32xf32> -> vector<256x32xf32>
    %339 = arith.addf %333, %338 : vector<256x32xf32>
    %340 = vector.extract_strided_slice %310 {offsets = [1, 1, 0], sizes = [16, 16, 32], strides = [1, 1, 1]} : vector<18x18x32xbf16> to vector<16x16x32xbf16>
    %341 = vector.shape_cast %340 : vector<16x16x32xbf16> to vector<256x32xbf16>
    %342 = vector.extract_strided_slice %312 {offsets = [4, 0, 0], sizes = [1, 32, 32], strides = [1, 1, 1]} : vector<9x32x32xbf16> to vector<1x32x32xbf16>
    %343 = vector.shape_cast %342 : vector<1x32x32xbf16> to vector<32x32xbf16>
    %cst_127 = arith.constant dense<0.000000e+00> : vector<256x32xf32>
    %344 = tpu.matmul %341, %343, %cst_127 {dimension_numbers = #tpu.dot_dimension_numbers<[1], [0], [0], [1], [0, 0, 1, 1], [], []>} : vector<256x32xbf16>, vector<32x32xbf16>, vector<256x32xf32> -> vector<256x32xf32>
    %345 = arith.addf %339, %344 : vector<256x32xf32>
    %346 = vector.extract_strided_slice %310 {offsets = [1, 2, 0], sizes = [16, 16, 32], strides = [1, 1, 1]} : vector<18x18x32xbf16> to vector<16x16x32xbf16>
    %347 = vector.shape_cast %346 : vector<16x16x32xbf16> to vector<256x32xbf16>
    %348 = vector.extract_strided_slice %312 {offsets = [5, 0, 0], sizes = [1, 32, 32], strides = [1, 1, 1]} : vector<9x32x32xbf16> to vector<1x32x32xbf16>
    %349 = vector.shape_cast %348 : vector<1x32x32xbf16> to vector<32x32xbf16>
    %cst_128 = arith.constant dense<0.000000e+00> : vector<256x32xf32>
    %350 = tpu.matmul %347, %349, %cst_128 {dimension_numbers = #tpu.dot_dimension_numbers<[1], [0], [0], [1], [0, 0, 1, 1], [], []>} : vector<256x32xbf16>, vector<32x32xbf16>, vector<256x32xf32> -> vector<256x32xf32>
    %351 = arith.addf %345, %350 : vector<256x32xf32>
    %352 = vector.extract_strided_slice %310 {offsets = [2, 0, 0], sizes = [16, 16, 32], strides = [1, 1, 1]} : vector<18x18x32xbf16> to vector<16x16x32xbf16>
    %353 = vector.shape_cast %352 : vector<16x16x32xbf16> to vector<256x32xbf16>
    %354 = vector.extract_strided_slice %312 {offsets = [6, 0, 0], sizes = [1, 32, 32], strides = [1, 1, 1]} : vector<9x32x32xbf16> to vector<1x32x32xbf16>
    %355 = vector.shape_cast %354 : vector<1x32x32xbf16> to vector<32x32xbf16>
    %cst_129 = arith.constant dense<0.000000e+00> : vector<256x32xf32>
    %356 = tpu.matmul %353, %355, %cst_129 {dimension_numbers = #tpu.dot_dimension_numbers<[1], [0], [0], [1], [0, 0, 1, 1], [], []>} : vector<256x32xbf16>, vector<32x32xbf16>, vector<256x32xf32> -> vector<256x32xf32>
    %357 = arith.addf %351, %356 : vector<256x32xf32>
    %358 = vector.extract_strided_slice %310 {offsets = [2, 1, 0], sizes = [16, 16, 32], strides = [1, 1, 1]} : vector<18x18x32xbf16> to vector<16x16x32xbf16>
    %359 = vector.shape_cast %358 : vector<16x16x32xbf16> to vector<256x32xbf16>
    %360 = vector.extract_strided_slice %312 {offsets = [7, 0, 0], sizes = [1, 32, 32], strides = [1, 1, 1]} : vector<9x32x32xbf16> to vector<1x32x32xbf16>
    %361 = vector.shape_cast %360 : vector<1x32x32xbf16> to vector<32x32xbf16>
    %cst_130 = arith.constant dense<0.000000e+00> : vector<256x32xf32>
    %362 = tpu.matmul %359, %361, %cst_130 {dimension_numbers = #tpu.dot_dimension_numbers<[1], [0], [0], [1], [0, 0, 1, 1], [], []>} : vector<256x32xbf16>, vector<32x32xbf16>, vector<256x32xf32> -> vector<256x32xf32>
    %363 = arith.addf %357, %362 : vector<256x32xf32>
    %364 = vector.extract_strided_slice %310 {offsets = [2, 2, 0], sizes = [16, 16, 32], strides = [1, 1, 1]} : vector<18x18x32xbf16> to vector<16x16x32xbf16>
    %365 = vector.shape_cast %364 : vector<16x16x32xbf16> to vector<256x32xbf16>
    %366 = vector.extract_strided_slice %312 {offsets = [8, 0, 0], sizes = [1, 32, 32], strides = [1, 1, 1]} : vector<9x32x32xbf16> to vector<1x32x32xbf16>
    %367 = vector.shape_cast %366 : vector<1x32x32xbf16> to vector<32x32xbf16>
    %cst_131 = arith.constant dense<0.000000e+00> : vector<256x32xf32>
    %368 = tpu.matmul %365, %367, %cst_131 {dimension_numbers = #tpu.dot_dimension_numbers<[1], [0], [0], [1], [0, 0, 1, 1], [], []>} : vector<256x32xbf16>, vector<32x32xbf16>, vector<256x32xf32> -> vector<256x32xf32>
    %369 = arith.addf %363, %368 : vector<256x32xf32>
    %370 = vector.broadcast %314 : vector<1x32xf32> to vector<256x32xf32>
    %371 = arith.mulf %369, %370 : vector<256x32xf32>
    %372 = vector.broadcast %316 : vector<1x32xf32> to vector<256x32xf32>
    %373 = arith.addf %371, %372 : vector<256x32xf32>
    %cst_132 = arith.constant 0.000000e+00 : f32
    %374 = vector.broadcast %cst_132 : f32 to vector<256x32xf32>
    %375 = arith.maximumf %373, %374 : vector<256x32xf32>
    %c0_133 = arith.constant 0 : index
    %c0_134 = arith.constant 0 : index
    %c0_135 = arith.constant 0 : index
    %376 = vector.load %arg17[%c0_133, %c0_134, %c0_135] : memref<10x10x32xbf16, #tpu.memory_space<vmem>>, vector<10x10x32xbf16>
    %c1_136 = arith.constant 1 : index
    %c0_137 = arith.constant 0 : index
    %c0_138 = arith.constant 0 : index
    %c0_139 = arith.constant 0 : index
    %377 = vector.load %arg9[%c1_136, %c0_137, %c0_138, %c0_139] : memref<3x9x32x32xbf16, #tpu.memory_space<vmem>>, vector<1x9x32x32xbf16>
    %378 = vector.shape_cast %377 : vector<1x9x32x32xbf16> to vector<9x32x32xbf16>
    %c1_140 = arith.constant 1 : index
    %c0_141 = arith.constant 0 : index
    %c0_142 = arith.constant 0 : index
    %379 = vector.load %arg10[%c1_140, %c0_141, %c0_142] : memref<3x1x32xf32, #tpu.memory_space<vmem>>, vector<1x1x32xf32>
    %380 = vector.shape_cast %379 : vector<1x1x32xf32> to vector<1x32xf32>
    %c1_143 = arith.constant 1 : index
    %c0_144 = arith.constant 0 : index
    %c0_145 = arith.constant 0 : index
    %381 = vector.load %arg11[%c1_143, %c0_144, %c0_145] : memref<3x1x32xf32, #tpu.memory_space<vmem>>, vector<1x1x32xf32>
    %382 = vector.shape_cast %381 : vector<1x1x32xf32> to vector<1x32xf32>
    %383 = vector.extract_strided_slice %376 {offsets = [0, 0, 0], sizes = [8, 8, 32], strides = [1, 1, 1]} : vector<10x10x32xbf16> to vector<8x8x32xbf16>
    %384 = vector.shape_cast %383 : vector<8x8x32xbf16> to vector<64x32xbf16>
    %385 = vector.extract_strided_slice %378 {offsets = [0, 0, 0], sizes = [1, 32, 32], strides = [1, 1, 1]} : vector<9x32x32xbf16> to vector<1x32x32xbf16>
    %386 = vector.shape_cast %385 : vector<1x32x32xbf16> to vector<32x32xbf16>
    %cst_146 = arith.constant dense<0.000000e+00> : vector<64x32xf32>
    %387 = tpu.matmul %384, %386, %cst_146 {dimension_numbers = #tpu.dot_dimension_numbers<[1], [0], [0], [1], [0, 0, 1, 1], [], []>} : vector<64x32xbf16>, vector<32x32xbf16>, vector<64x32xf32> -> vector<64x32xf32>
    %388 = vector.extract_strided_slice %376 {offsets = [0, 1, 0], sizes = [8, 8, 32], strides = [1, 1, 1]} : vector<10x10x32xbf16> to vector<8x8x32xbf16>
    %389 = vector.shape_cast %388 : vector<8x8x32xbf16> to vector<64x32xbf16>
    %390 = vector.extract_strided_slice %378 {offsets = [1, 0, 0], sizes = [1, 32, 32], strides = [1, 1, 1]} : vector<9x32x32xbf16> to vector<1x32x32xbf16>
    %391 = vector.shape_cast %390 : vector<1x32x32xbf16> to vector<32x32xbf16>
    %cst_147 = arith.constant dense<0.000000e+00> : vector<64x32xf32>
    %392 = tpu.matmul %389, %391, %cst_147 {dimension_numbers = #tpu.dot_dimension_numbers<[1], [0], [0], [1], [0, 0, 1, 1], [], []>} : vector<64x32xbf16>, vector<32x32xbf16>, vector<64x32xf32> -> vector<64x32xf32>
    %393 = arith.addf %387, %392 : vector<64x32xf32>
    %394 = vector.extract_strided_slice %376 {offsets = [0, 2, 0], sizes = [8, 8, 32], strides = [1, 1, 1]} : vector<10x10x32xbf16> to vector<8x8x32xbf16>
    %395 = vector.shape_cast %394 : vector<8x8x32xbf16> to vector<64x32xbf16>
    %396 = vector.extract_strided_slice %378 {offsets = [2, 0, 0], sizes = [1, 32, 32], strides = [1, 1, 1]} : vector<9x32x32xbf16> to vector<1x32x32xbf16>
    %397 = vector.shape_cast %396 : vector<1x32x32xbf16> to vector<32x32xbf16>
    %cst_148 = arith.constant dense<0.000000e+00> : vector<64x32xf32>
    %398 = tpu.matmul %395, %397, %cst_148 {dimension_numbers = #tpu.dot_dimension_numbers<[1], [0], [0], [1], [0, 0, 1, 1], [], []>} : vector<64x32xbf16>, vector<32x32xbf16>, vector<64x32xf32> -> vector<64x32xf32>
    %399 = arith.addf %393, %398 : vector<64x32xf32>
    %400 = vector.extract_strided_slice %376 {offsets = [1, 0, 0], sizes = [8, 8, 32], strides = [1, 1, 1]} : vector<10x10x32xbf16> to vector<8x8x32xbf16>
    %401 = vector.shape_cast %400 : vector<8x8x32xbf16> to vector<64x32xbf16>
    %402 = vector.extract_strided_slice %378 {offsets = [3, 0, 0], sizes = [1, 32, 32], strides = [1, 1, 1]} : vector<9x32x32xbf16> to vector<1x32x32xbf16>
    %403 = vector.shape_cast %402 : vector<1x32x32xbf16> to vector<32x32xbf16>
    %cst_149 = arith.constant dense<0.000000e+00> : vector<64x32xf32>
    %404 = tpu.matmul %401, %403, %cst_149 {dimension_numbers = #tpu.dot_dimension_numbers<[1], [0], [0], [1], [0, 0, 1, 1], [], []>} : vector<64x32xbf16>, vector<32x32xbf16>, vector<64x32xf32> -> vector<64x32xf32>
    %405 = arith.addf %399, %404 : vector<64x32xf32>
    %406 = vector.extract_strided_slice %376 {offsets = [1, 1, 0], sizes = [8, 8, 32], strides = [1, 1, 1]} : vector<10x10x32xbf16> to vector<8x8x32xbf16>
    %407 = vector.shape_cast %406 : vector<8x8x32xbf16> to vector<64x32xbf16>
    %408 = vector.extract_strided_slice %378 {offsets = [4, 0, 0], sizes = [1, 32, 32], strides = [1, 1, 1]} : vector<9x32x32xbf16> to vector<1x32x32xbf16>
    %409 = vector.shape_cast %408 : vector<1x32x32xbf16> to vector<32x32xbf16>
    %cst_150 = arith.constant dense<0.000000e+00> : vector<64x32xf32>
    %410 = tpu.matmul %407, %409, %cst_150 {dimension_numbers = #tpu.dot_dimension_numbers<[1], [0], [0], [1], [0, 0, 1, 1], [], []>} : vector<64x32xbf16>, vector<32x32xbf16>, vector<64x32xf32> -> vector<64x32xf32>
    %411 = arith.addf %405, %410 : vector<64x32xf32>
    %412 = vector.extract_strided_slice %376 {offsets = [1, 2, 0], sizes = [8, 8, 32], strides = [1, 1, 1]} : vector<10x10x32xbf16> to vector<8x8x32xbf16>
    %413 = vector.shape_cast %412 : vector<8x8x32xbf16> to vector<64x32xbf16>
    %414 = vector.extract_strided_slice %378 {offsets = [5, 0, 0], sizes = [1, 32, 32], strides = [1, 1, 1]} : vector<9x32x32xbf16> to vector<1x32x32xbf16>
    %415 = vector.shape_cast %414 : vector<1x32x32xbf16> to vector<32x32xbf16>
    %cst_151 = arith.constant dense<0.000000e+00> : vector<64x32xf32>
    %416 = tpu.matmul %413, %415, %cst_151 {dimension_numbers = #tpu.dot_dimension_numbers<[1], [0], [0], [1], [0, 0, 1, 1], [], []>} : vector<64x32xbf16>, vector<32x32xbf16>, vector<64x32xf32> -> vector<64x32xf32>
    %417 = arith.addf %411, %416 : vector<64x32xf32>
    %418 = vector.extract_strided_slice %376 {offsets = [2, 0, 0], sizes = [8, 8, 32], strides = [1, 1, 1]} : vector<10x10x32xbf16> to vector<8x8x32xbf16>
    %419 = vector.shape_cast %418 : vector<8x8x32xbf16> to vector<64x32xbf16>
    %420 = vector.extract_strided_slice %378 {offsets = [6, 0, 0], sizes = [1, 32, 32], strides = [1, 1, 1]} : vector<9x32x32xbf16> to vector<1x32x32xbf16>
    %421 = vector.shape_cast %420 : vector<1x32x32xbf16> to vector<32x32xbf16>
    %cst_152 = arith.constant dense<0.000000e+00> : vector<64x32xf32>
    %422 = tpu.matmul %419, %421, %cst_152 {dimension_numbers = #tpu.dot_dimension_numbers<[1], [0], [0], [1], [0, 0, 1, 1], [], []>} : vector<64x32xbf16>, vector<32x32xbf16>, vector<64x32xf32> -> vector<64x32xf32>
    %423 = arith.addf %417, %422 : vector<64x32xf32>
    %424 = vector.extract_strided_slice %376 {offsets = [2, 1, 0], sizes = [8, 8, 32], strides = [1, 1, 1]} : vector<10x10x32xbf16> to vector<8x8x32xbf16>
    %425 = vector.shape_cast %424 : vector<8x8x32xbf16> to vector<64x32xbf16>
    %426 = vector.extract_strided_slice %378 {offsets = [7, 0, 0], sizes = [1, 32, 32], strides = [1, 1, 1]} : vector<9x32x32xbf16> to vector<1x32x32xbf16>
    %427 = vector.shape_cast %426 : vector<1x32x32xbf16> to vector<32x32xbf16>
    %cst_153 = arith.constant dense<0.000000e+00> : vector<64x32xf32>
    %428 = tpu.matmul %425, %427, %cst_153 {dimension_numbers = #tpu.dot_dimension_numbers<[1], [0], [0], [1], [0, 0, 1, 1], [], []>} : vector<64x32xbf16>, vector<32x32xbf16>, vector<64x32xf32> -> vector<64x32xf32>
    %429 = arith.addf %423, %428 : vector<64x32xf32>
    %430 = vector.extract_strided_slice %376 {offsets = [2, 2, 0], sizes = [8, 8, 32], strides = [1, 1, 1]} : vector<10x10x32xbf16> to vector<8x8x32xbf16>
    %431 = vector.shape_cast %430 : vector<8x8x32xbf16> to vector<64x32xbf16>
    %432 = vector.extract_strided_slice %378 {offsets = [8, 0, 0], sizes = [1, 32, 32], strides = [1, 1, 1]} : vector<9x32x32xbf16> to vector<1x32x32xbf16>
    %433 = vector.shape_cast %432 : vector<1x32x32xbf16> to vector<32x32xbf16>
    %cst_154 = arith.constant dense<0.000000e+00> : vector<64x32xf32>
    %434 = tpu.matmul %431, %433, %cst_154 {dimension_numbers = #tpu.dot_dimension_numbers<[1], [0], [0], [1], [0, 0, 1, 1], [], []>} : vector<64x32xbf16>, vector<32x32xbf16>, vector<64x32xf32> -> vector<64x32xf32>
    %435 = arith.addf %429, %434 : vector<64x32xf32>
    %436 = vector.broadcast %380 : vector<1x32xf32> to vector<64x32xf32>
    %437 = arith.mulf %435, %436 : vector<64x32xf32>
    %438 = vector.broadcast %382 : vector<1x32xf32> to vector<64x32xf32>
    %439 = arith.addf %437, %438 : vector<64x32xf32>
    %cst_155 = arith.constant 0.000000e+00 : f32
    %440 = vector.broadcast %cst_155 : f32 to vector<64x32xf32>
    %441 = arith.maximumf %439, %440 : vector<64x32xf32>
    %c1_156 = arith.constant 1 : index
    %c0_157 = arith.constant 0 : index
    %c0_158 = arith.constant 0 : index
    %442 = vector.load %arg12[%c1_156, %c0_157, %c0_158] : memref<3x32x32xbf16, #tpu.memory_space<vmem>>, vector<1x32x32xbf16>
    %443 = vector.shape_cast %442 : vector<1x32x32xbf16> to vector<32x32xbf16>
    %c1_159 = arith.constant 1 : index
    %c0_160 = arith.constant 0 : index
    %c0_161 = arith.constant 0 : index
    %444 = vector.load %arg13[%c1_159, %c0_160, %c0_161] : memref<3x1x32xf32, #tpu.memory_space<vmem>>, vector<1x1x32xf32>
    %445 = vector.shape_cast %444 : vector<1x1x32xf32> to vector<1x32xf32>
    %446 = arith.truncf %441 : vector<64x32xf32> to vector<64x32xbf16>
    %cst_162 = arith.constant dense<0.000000e+00> : vector<64x32xf32>
    %447 = tpu.matmul %446, %443, %cst_162 {dimension_numbers = #tpu.dot_dimension_numbers<[1], [0], [0], [1], [0, 0, 1, 1], [], []>} : vector<64x32xbf16>, vector<32x32xbf16>, vector<64x32xf32> -> vector<64x32xf32>
    %448 = vector.broadcast %445 : vector<1x32xf32> to vector<64x32xf32>
    %449 = arith.addf %447, %448 : vector<64x32xf32>
    %450 = vector.shape_cast %449 : vector<64x32xf32> to vector<8x8x32xf32>
    %451 = arith.truncf %450 : vector<8x8x32xf32> to vector<8x8x32xbf16>
    "tpu.trace_start"() <{level = 10 : i32, message = "iwj,ijc->iwc"}> : () -> ()
    %cst_163 = arith.constant dense<0.000000e+00> : vector<8x16x32xf32>
    %452 = tpu.matmul %4, %451, %cst_163 {dimension_numbers = #tpu.dot_dimension_numbers<[2], [1], [1], [2], [0, 0, 0, 1, 1, 2], [0], [0]>} : vector<8x16x8xbf16>, vector<8x8x32xbf16>, vector<8x16x32xf32> -> vector<8x16x32xf32>
    "tpu.trace_stop"() : () -> ()
    %453 = vector.extract_strided_slice %452 {offsets = [0, 0, 0], sizes = [1, 16, 32], strides = [1, 1, 1]} : vector<8x16x32xf32> to vector<1x16x32xf32>
    %454 = vector.shape_cast %453 : vector<1x16x32xf32> to vector<16x32xf32>
    %455 = vector.extract_strided_slice %452 {offsets = [0, 0, 0], sizes = [1, 16, 32], strides = [1, 1, 1]} : vector<8x16x32xf32> to vector<1x16x32xf32>
    %456 = vector.shape_cast %455 : vector<1x16x32xf32> to vector<16x32xf32>
    %cst_164 = arith.constant 0.533333361 : f32
    %457 = vector.broadcast %cst_164 : f32 to vector<16x32xf32>
    %458 = arith.mulf %457, %456 : vector<16x32xf32>
    %459 = vector.extract_strided_slice %452 {offsets = [1, 0, 0], sizes = [1, 16, 32], strides = [1, 1, 1]} : vector<8x16x32xf32> to vector<1x16x32xf32>
    %460 = vector.shape_cast %459 : vector<1x16x32xf32> to vector<16x32xf32>
    %cst_165 = arith.constant 0.466666669 : f32
    %461 = vector.broadcast %cst_165 : f32 to vector<16x32xf32>
    %462 = arith.mulf %461, %460 : vector<16x32xf32>
    %463 = arith.addf %458, %462 : vector<16x32xf32>
    %464 = vector.extract_strided_slice %452 {offsets = [0, 0, 0], sizes = [1, 16, 32], strides = [1, 1, 1]} : vector<8x16x32xf32> to vector<1x16x32xf32>
    %465 = vector.shape_cast %464 : vector<1x16x32xf32> to vector<16x32xf32>
    %cst_166 = arith.constant 0.0666666701 : f32
    %466 = vector.broadcast %cst_166 : f32 to vector<16x32xf32>
    %467 = arith.mulf %466, %465 : vector<16x32xf32>
    %468 = vector.extract_strided_slice %452 {offsets = [1, 0, 0], sizes = [1, 16, 32], strides = [1, 1, 1]} : vector<8x16x32xf32> to vector<1x16x32xf32>
    %469 = vector.shape_cast %468 : vector<1x16x32xf32> to vector<16x32xf32>
    %cst_167 = arith.constant 0.933333337 : f32
    %470 = vector.broadcast %cst_167 : f32 to vector<16x32xf32>
    %471 = arith.mulf %470, %469 : vector<16x32xf32>
    %472 = arith.addf %467, %471 : vector<16x32xf32>
    %473 = vector.extract_strided_slice %452 {offsets = [1, 0, 0], sizes = [1, 16, 32], strides = [1, 1, 1]} : vector<8x16x32xf32> to vector<1x16x32xf32>
    %474 = vector.shape_cast %473 : vector<1x16x32xf32> to vector<16x32xf32>
    %cst_168 = arith.constant 6.000000e-01 : f32
    %475 = vector.broadcast %cst_168 : f32 to vector<16x32xf32>
    %476 = arith.mulf %475, %474 : vector<16x32xf32>
    %477 = vector.extract_strided_slice %452 {offsets = [2, 0, 0], sizes = [1, 16, 32], strides = [1, 1, 1]} : vector<8x16x32xf32> to vector<1x16x32xf32>
    %478 = vector.shape_cast %477 : vector<1x16x32xf32> to vector<16x32xf32>
    %cst_169 = arith.constant 4.000000e-01 : f32
    %479 = vector.broadcast %cst_169 : f32 to vector<16x32xf32>
    %480 = arith.mulf %479, %478 : vector<16x32xf32>
    %481 = arith.addf %476, %480 : vector<16x32xf32>
    %482 = vector.extract_strided_slice %452 {offsets = [1, 0, 0], sizes = [1, 16, 32], strides = [1, 1, 1]} : vector<8x16x32xf32> to vector<1x16x32xf32>
    %483 = vector.shape_cast %482 : vector<1x16x32xf32> to vector<16x32xf32>
    %cst_170 = arith.constant 0.13333334 : f32
    %484 = vector.broadcast %cst_170 : f32 to vector<16x32xf32>
    %485 = arith.mulf %484, %483 : vector<16x32xf32>
    %486 = vector.extract_strided_slice %452 {offsets = [2, 0, 0], sizes = [1, 16, 32], strides = [1, 1, 1]} : vector<8x16x32xf32> to vector<1x16x32xf32>
    %487 = vector.shape_cast %486 : vector<1x16x32xf32> to vector<16x32xf32>
    %cst_171 = arith.constant 0.866666674 : f32
    %488 = vector.broadcast %cst_171 : f32 to vector<16x32xf32>
    %489 = arith.mulf %488, %487 : vector<16x32xf32>
    %490 = arith.addf %485, %489 : vector<16x32xf32>
    %491 = vector.extract_strided_slice %452 {offsets = [2, 0, 0], sizes = [1, 16, 32], strides = [1, 1, 1]} : vector<8x16x32xf32> to vector<1x16x32xf32>
    %492 = vector.shape_cast %491 : vector<1x16x32xf32> to vector<16x32xf32>
    %cst_172 = arith.constant 0.666666686 : f32
    %493 = vector.broadcast %cst_172 : f32 to vector<16x32xf32>
    %494 = arith.mulf %493, %492 : vector<16x32xf32>
    %495 = vector.extract_strided_slice %452 {offsets = [3, 0, 0], sizes = [1, 16, 32], strides = [1, 1, 1]} : vector<8x16x32xf32> to vector<1x16x32xf32>
    %496 = vector.shape_cast %495 : vector<1x16x32xf32> to vector<16x32xf32>
    %cst_173 = arith.constant 0.333333343 : f32
    %497 = vector.broadcast %cst_173 : f32 to vector<16x32xf32>
    %498 = arith.mulf %497, %496 : vector<16x32xf32>
    %499 = arith.addf %494, %498 : vector<16x32xf32>
    %500 = vector.extract_strided_slice %452 {offsets = [2, 0, 0], sizes = [1, 16, 32], strides = [1, 1, 1]} : vector<8x16x32xf32> to vector<1x16x32xf32>
    %501 = vector.shape_cast %500 : vector<1x16x32xf32> to vector<16x32xf32>
    %cst_174 = arith.constant 2.000000e-01 : f32
    %502 = vector.broadcast %cst_174 : f32 to vector<16x32xf32>
    %503 = arith.mulf %502, %501 : vector<16x32xf32>
    %504 = vector.extract_strided_slice %452 {offsets = [3, 0, 0], sizes = [1, 16, 32], strides = [1, 1, 1]} : vector<8x16x32xf32> to vector<1x16x32xf32>
    %505 = vector.shape_cast %504 : vector<1x16x32xf32> to vector<16x32xf32>
    %cst_175 = arith.constant 8.000000e-01 : f32
    %506 = vector.broadcast %cst_175 : f32 to vector<16x32xf32>
    %507 = arith.mulf %506, %505 : vector<16x32xf32>
    %508 = arith.addf %503, %507 : vector<16x32xf32>
    %509 = vector.extract_strided_slice %452 {offsets = [3, 0, 0], sizes = [1, 16, 32], strides = [1, 1, 1]} : vector<8x16x32xf32> to vector<1x16x32xf32>
    %510 = vector.shape_cast %509 : vector<1x16x32xf32> to vector<16x32xf32>
    %cst_176 = arith.constant 0.733333349 : f32
    %511 = vector.broadcast %cst_176 : f32 to vector<16x32xf32>
    %512 = arith.mulf %511, %510 : vector<16x32xf32>
    %513 = vector.extract_strided_slice %452 {offsets = [4, 0, 0], sizes = [1, 16, 32], strides = [1, 1, 1]} : vector<8x16x32xf32> to vector<1x16x32xf32>
    %514 = vector.shape_cast %513 : vector<1x16x32xf32> to vector<16x32xf32>
    %cst_177 = arith.constant 0.266666681 : f32
    %515 = vector.broadcast %cst_177 : f32 to vector<16x32xf32>
    %516 = arith.mulf %515, %514 : vector<16x32xf32>
    %517 = arith.addf %512, %516 : vector<16x32xf32>
    %518 = vector.extract_strided_slice %452 {offsets = [3, 0, 0], sizes = [1, 16, 32], strides = [1, 1, 1]} : vector<8x16x32xf32> to vector<1x16x32xf32>
    %519 = vector.shape_cast %518 : vector<1x16x32xf32> to vector<16x32xf32>
    %cst_178 = arith.constant 0.266666681 : f32
    %520 = vector.broadcast %cst_178 : f32 to vector<16x32xf32>
    %521 = arith.mulf %520, %519 : vector<16x32xf32>
    %522 = vector.extract_strided_slice %452 {offsets = [4, 0, 0], sizes = [1, 16, 32], strides = [1, 1, 1]} : vector<8x16x32xf32> to vector<1x16x32xf32>
    %523 = vector.shape_cast %522 : vector<1x16x32xf32> to vector<16x32xf32>
    %cst_179 = arith.constant 0.733333349 : f32
    %524 = vector.broadcast %cst_179 : f32 to vector<16x32xf32>
    %525 = arith.mulf %524, %523 : vector<16x32xf32>
    %526 = arith.addf %521, %525 : vector<16x32xf32>
    %527 = vector.extract_strided_slice %452 {offsets = [4, 0, 0], sizes = [1, 16, 32], strides = [1, 1, 1]} : vector<8x16x32xf32> to vector<1x16x32xf32>
    %528 = vector.shape_cast %527 : vector<1x16x32xf32> to vector<16x32xf32>
    %cst_180 = arith.constant 8.000000e-01 : f32
    %529 = vector.broadcast %cst_180 : f32 to vector<16x32xf32>
    %530 = arith.mulf %529, %528 : vector<16x32xf32>
    %531 = vector.extract_strided_slice %452 {offsets = [5, 0, 0], sizes = [1, 16, 32], strides = [1, 1, 1]} : vector<8x16x32xf32> to vector<1x16x32xf32>
    %532 = vector.shape_cast %531 : vector<1x16x32xf32> to vector<16x32xf32>
    %cst_181 = arith.constant 2.000000e-01 : f32
    %533 = vector.broadcast %cst_181 : f32 to vector<16x32xf32>
    %534 = arith.mulf %533, %532 : vector<16x32xf32>
    %535 = arith.addf %530, %534 : vector<16x32xf32>
    %536 = vector.extract_strided_slice %452 {offsets = [4, 0, 0], sizes = [1, 16, 32], strides = [1, 1, 1]} : vector<8x16x32xf32> to vector<1x16x32xf32>
    %537 = vector.shape_cast %536 : vector<1x16x32xf32> to vector<16x32xf32>
    %cst_182 = arith.constant 0.333333343 : f32
    %538 = vector.broadcast %cst_182 : f32 to vector<16x32xf32>
    %539 = arith.mulf %538, %537 : vector<16x32xf32>
    %540 = vector.extract_strided_slice %452 {offsets = [5, 0, 0], sizes = [1, 16, 32], strides = [1, 1, 1]} : vector<8x16x32xf32> to vector<1x16x32xf32>
    %541 = vector.shape_cast %540 : vector<1x16x32xf32> to vector<16x32xf32>
    %cst_183 = arith.constant 0.666666686 : f32
    %542 = vector.broadcast %cst_183 : f32 to vector<16x32xf32>
    %543 = arith.mulf %542, %541 : vector<16x32xf32>
    %544 = arith.addf %539, %543 : vector<16x32xf32>
    %545 = vector.extract_strided_slice %452 {offsets = [5, 0, 0], sizes = [1, 16, 32], strides = [1, 1, 1]} : vector<8x16x32xf32> to vector<1x16x32xf32>
    %546 = vector.shape_cast %545 : vector<1x16x32xf32> to vector<16x32xf32>
    %cst_184 = arith.constant 0.866666674 : f32
    %547 = vector.broadcast %cst_184 : f32 to vector<16x32xf32>
    %548 = arith.mulf %547, %546 : vector<16x32xf32>
    %549 = vector.extract_strided_slice %452 {offsets = [6, 0, 0], sizes = [1, 16, 32], strides = [1, 1, 1]} : vector<8x16x32xf32> to vector<1x16x32xf32>
    %550 = vector.shape_cast %549 : vector<1x16x32xf32> to vector<16x32xf32>
    %cst_185 = arith.constant 0.13333334 : f32
    %551 = vector.broadcast %cst_185 : f32 to vector<16x32xf32>
    %552 = arith.mulf %551, %550 : vector<16x32xf32>
    %553 = arith.addf %548, %552 : vector<16x32xf32>
    %554 = vector.extract_strided_slice %452 {offsets = [5, 0, 0], sizes = [1, 16, 32], strides = [1, 1, 1]} : vector<8x16x32xf32> to vector<1x16x32xf32>
    %555 = vector.shape_cast %554 : vector<1x16x32xf32> to vector<16x32xf32>
    %cst_186 = arith.constant 4.000000e-01 : f32
    %556 = vector.broadcast %cst_186 : f32 to vector<16x32xf32>
    %557 = arith.mulf %556, %555 : vector<16x32xf32>
    %558 = vector.extract_strided_slice %452 {offsets = [6, 0, 0], sizes = [1, 16, 32], strides = [1, 1, 1]} : vector<8x16x32xf32> to vector<1x16x32xf32>
    %559 = vector.shape_cast %558 : vector<1x16x32xf32> to vector<16x32xf32>
    %cst_187 = arith.constant 6.000000e-01 : f32
    %560 = vector.broadcast %cst_187 : f32 to vector<16x32xf32>
    %561 = arith.mulf %560, %559 : vector<16x32xf32>
    %562 = arith.addf %557, %561 : vector<16x32xf32>
    %563 = vector.extract_strided_slice %452 {offsets = [6, 0, 0], sizes = [1, 16, 32], strides = [1, 1, 1]} : vector<8x16x32xf32> to vector<1x16x32xf32>
    %564 = vector.shape_cast %563 : vector<1x16x32xf32> to vector<16x32xf32>
    %cst_188 = arith.constant 0.933333337 : f32
    %565 = vector.broadcast %cst_188 : f32 to vector<16x32xf32>
    %566 = arith.mulf %565, %564 : vector<16x32xf32>
    %567 = vector.extract_strided_slice %452 {offsets = [7, 0, 0], sizes = [1, 16, 32], strides = [1, 1, 1]} : vector<8x16x32xf32> to vector<1x16x32xf32>
    %568 = vector.shape_cast %567 : vector<1x16x32xf32> to vector<16x32xf32>
    %cst_189 = arith.constant 0.0666666701 : f32
    %569 = vector.broadcast %cst_189 : f32 to vector<16x32xf32>
    %570 = arith.mulf %569, %568 : vector<16x32xf32>
    %571 = arith.addf %566, %570 : vector<16x32xf32>
    %572 = vector.extract_strided_slice %452 {offsets = [6, 0, 0], sizes = [1, 16, 32], strides = [1, 1, 1]} : vector<8x16x32xf32> to vector<1x16x32xf32>
    %573 = vector.shape_cast %572 : vector<1x16x32xf32> to vector<16x32xf32>
    %cst_190 = arith.constant 0.466666669 : f32
    %574 = vector.broadcast %cst_190 : f32 to vector<16x32xf32>
    %575 = arith.mulf %574, %573 : vector<16x32xf32>
    %576 = vector.extract_strided_slice %452 {offsets = [7, 0, 0], sizes = [1, 16, 32], strides = [1, 1, 1]} : vector<8x16x32xf32> to vector<1x16x32xf32>
    %577 = vector.shape_cast %576 : vector<1x16x32xf32> to vector<16x32xf32>
    %cst_191 = arith.constant 0.533333361 : f32
    %578 = vector.broadcast %cst_191 : f32 to vector<16x32xf32>
    %579 = arith.mulf %578, %577 : vector<16x32xf32>
    %580 = arith.addf %575, %579 : vector<16x32xf32>
    %581 = vector.extract_strided_slice %452 {offsets = [7, 0, 0], sizes = [1, 16, 32], strides = [1, 1, 1]} : vector<8x16x32xf32> to vector<1x16x32xf32>
    %582 = vector.shape_cast %581 : vector<1x16x32xf32> to vector<16x32xf32>
    %583 = vector.shape_cast %454 : vector<16x32xf32> to vector<1x16x32xf32>
    %584 = vector.shape_cast %463 : vector<16x32xf32> to vector<1x16x32xf32>
    %585 = vector.shape_cast %472 : vector<16x32xf32> to vector<1x16x32xf32>
    %586 = vector.shape_cast %481 : vector<16x32xf32> to vector<1x16x32xf32>
    %587 = vector.shape_cast %490 : vector<16x32xf32> to vector<1x16x32xf32>
    %588 = vector.shape_cast %499 : vector<16x32xf32> to vector<1x16x32xf32>
    %589 = vector.shape_cast %508 : vector<16x32xf32> to vector<1x16x32xf32>
    %590 = vector.shape_cast %517 : vector<16x32xf32> to vector<1x16x32xf32>
    %591 = vector.shape_cast %526 : vector<16x32xf32> to vector<1x16x32xf32>
    %592 = vector.shape_cast %535 : vector<16x32xf32> to vector<1x16x32xf32>
    %593 = vector.shape_cast %544 : vector<16x32xf32> to vector<1x16x32xf32>
    %594 = vector.shape_cast %553 : vector<16x32xf32> to vector<1x16x32xf32>
    %595 = vector.shape_cast %562 : vector<16x32xf32> to vector<1x16x32xf32>
    %596 = vector.shape_cast %571 : vector<16x32xf32> to vector<1x16x32xf32>
    %597 = vector.shape_cast %580 : vector<16x32xf32> to vector<1x16x32xf32>
    %598 = vector.shape_cast %582 : vector<16x32xf32> to vector<1x16x32xf32>
    %599 = tpu.concatenate %583, %584, %585, %586, %587, %588, %589, %590, %591, %592, %593, %594, %595, %596, %597, %598 in 0 : vector<1x16x32xf32>, vector<1x16x32xf32>, vector<1x16x32xf32>, vector<1x16x32xf32>, vector<1x16x32xf32>, vector<1x16x32xf32>, vector<1x16x32xf32>, vector<1x16x32xf32>, vector<1x16x32xf32>, vector<1x16x32xf32>, vector<1x16x32xf32>, vector<1x16x32xf32>, vector<1x16x32xf32>, vector<1x16x32xf32>, vector<1x16x32xf32>, vector<1x16x32xf32> -> vector<16x16x32xf32>
    %600 = vector.shape_cast %375 : vector<256x32xf32> to vector<16x16x32xf32>
    %601 = arith.addf %599, %600 : vector<16x16x32xf32>
    %602 = arith.truncf %601 : vector<16x16x32xf32> to vector<16x16x32xbf16>
    %c1_192 = arith.constant 1 : index
    %c1_193 = arith.constant 1 : index
    %c0_194 = arith.constant 0 : index
    %603 = vector.load %arg16[%c1_192, %c1_193, %c0_194] : memref<18x18x32xbf16, #tpu.memory_space<vmem>>, vector<16x16x32xbf16>
    tpu.vector_store %arg16[%c1_192, %c1_193, %c0_194], %602 {strides = array<i32>} : memref<18x18x32xbf16, #tpu.memory_space<vmem>>, vector<16x16x32xbf16>,
    %604 = vector.shape_cast %441 : vector<64x32xf32> to vector<8x8x32xf32>
    %605 = arith.truncf %604 : vector<8x8x32xf32> to vector<8x8x32xbf16>
    %c1_195 = arith.constant 1 : index
    %c1_196 = arith.constant 1 : index
    %c0_197 = arith.constant 0 : index
    %606 = vector.load %arg17[%c1_195, %c1_196, %c0_197] : memref<10x10x32xbf16, #tpu.memory_space<vmem>>, vector<8x8x32xbf16>
    tpu.vector_store %arg17[%c1_195, %c1_196, %c0_197], %605 {strides = array<i32>} : memref<10x10x32xbf16, #tpu.memory_space<vmem>>, vector<8x8x32xbf16>,
    %c0_198 = arith.constant 0 : index
    %c0_199 = arith.constant 0 : index
    %c0_200 = arith.constant 0 : index
    %607 = vector.load %arg16[%c0_198, %c0_199, %c0_200] : memref<18x18x32xbf16, #tpu.memory_space<vmem>>, vector<18x18x32xbf16>
    %c2 = arith.constant 2 : index
    %c0_201 = arith.constant 0 : index
    %c0_202 = arith.constant 0 : index
    %c0_203 = arith.constant 0 : index
    %608 = vector.load %arg6[%c2, %c0_201, %c0_202, %c0_203] : memref<3x9x32x32xbf16, #tpu.memory_space<vmem>>, vector<1x9x32x32xbf16>
    %609 = vector.shape_cast %608 : vector<1x9x32x32xbf16> to vector<9x32x32xbf16>
    %c2_204 = arith.constant 2 : index
    %c0_205 = arith.constant 0 : index
    %c0_206 = arith.constant 0 : index
    %610 = vector.load %arg7[%c2_204, %c0_205, %c0_206] : memref<3x1x32xf32, #tpu.memory_space<vmem>>, vector<1x1x32xf32>
    %611 = vector.shape_cast %610 : vector<1x1x32xf32> to vector<1x32xf32>
    %c2_207 = arith.constant 2 : index
    %c0_208 = arith.constant 0 : index
    %c0_209 = arith.constant 0 : index
    %612 = vector.load %arg8[%c2_207, %c0_208, %c0_209] : memref<3x1x32xf32, #tpu.memory_space<vmem>>, vector<1x1x32xf32>
    %613 = vector.shape_cast %612 : vector<1x1x32xf32> to vector<1x32xf32>
    %614 = vector.extract_strided_slice %607 {offsets = [0, 0, 0], sizes = [16, 16, 32], strides = [1, 1, 1]} : vector<18x18x32xbf16> to vector<16x16x32xbf16>
    %615 = vector.shape_cast %614 : vector<16x16x32xbf16> to vector<256x32xbf16>
    %616 = vector.extract_strided_slice %609 {offsets = [0, 0, 0], sizes = [1, 32, 32], strides = [1, 1, 1]} : vector<9x32x32xbf16> to vector<1x32x32xbf16>
    %617 = vector.shape_cast %616 : vector<1x32x32xbf16> to vector<32x32xbf16>
    %cst_210 = arith.constant dense<0.000000e+00> : vector<256x32xf32>
    %618 = tpu.matmul %615, %617, %cst_210 {dimension_numbers = #tpu.dot_dimension_numbers<[1], [0], [0], [1], [0, 0, 1, 1], [], []>} : vector<256x32xbf16>, vector<32x32xbf16>, vector<256x32xf32> -> vector<256x32xf32>
    %619 = vector.extract_strided_slice %607 {offsets = [0, 1, 0], sizes = [16, 16, 32], strides = [1, 1, 1]} : vector<18x18x32xbf16> to vector<16x16x32xbf16>
    %620 = vector.shape_cast %619 : vector<16x16x32xbf16> to vector<256x32xbf16>
    %621 = vector.extract_strided_slice %609 {offsets = [1, 0, 0], sizes = [1, 32, 32], strides = [1, 1, 1]} : vector<9x32x32xbf16> to vector<1x32x32xbf16>
    %622 = vector.shape_cast %621 : vector<1x32x32xbf16> to vector<32x32xbf16>
    %cst_211 = arith.constant dense<0.000000e+00> : vector<256x32xf32>
    %623 = tpu.matmul %620, %622, %cst_211 {dimension_numbers = #tpu.dot_dimension_numbers<[1], [0], [0], [1], [0, 0, 1, 1], [], []>} : vector<256x32xbf16>, vector<32x32xbf16>, vector<256x32xf32> -> vector<256x32xf32>
    %624 = arith.addf %618, %623 : vector<256x32xf32>
    %625 = vector.extract_strided_slice %607 {offsets = [0, 2, 0], sizes = [16, 16, 32], strides = [1, 1, 1]} : vector<18x18x32xbf16> to vector<16x16x32xbf16>
    %626 = vector.shape_cast %625 : vector<16x16x32xbf16> to vector<256x32xbf16>
    %627 = vector.extract_strided_slice %609 {offsets = [2, 0, 0], sizes = [1, 32, 32], strides = [1, 1, 1]} : vector<9x32x32xbf16> to vector<1x32x32xbf16>
    %628 = vector.shape_cast %627 : vector<1x32x32xbf16> to vector<32x32xbf16>
    %cst_212 = arith.constant dense<0.000000e+00> : vector<256x32xf32>
    %629 = tpu.matmul %626, %628, %cst_212 {dimension_numbers = #tpu.dot_dimension_numbers<[1], [0], [0], [1], [0, 0, 1, 1], [], []>} : vector<256x32xbf16>, vector<32x32xbf16>, vector<256x32xf32> -> vector<256x32xf32>
    %630 = arith.addf %624, %629 : vector<256x32xf32>
    %631 = vector.extract_strided_slice %607 {offsets = [1, 0, 0], sizes = [16, 16, 32], strides = [1, 1, 1]} : vector<18x18x32xbf16> to vector<16x16x32xbf16>
    %632 = vector.shape_cast %631 : vector<16x16x32xbf16> to vector<256x32xbf16>
    %633 = vector.extract_strided_slice %609 {offsets = [3, 0, 0], sizes = [1, 32, 32], strides = [1, 1, 1]} : vector<9x32x32xbf16> to vector<1x32x32xbf16>
    %634 = vector.shape_cast %633 : vector<1x32x32xbf16> to vector<32x32xbf16>
    %cst_213 = arith.constant dense<0.000000e+00> : vector<256x32xf32>
    %635 = tpu.matmul %632, %634, %cst_213 {dimension_numbers = #tpu.dot_dimension_numbers<[1], [0], [0], [1], [0, 0, 1, 1], [], []>} : vector<256x32xbf16>, vector<32x32xbf16>, vector<256x32xf32> -> vector<256x32xf32>
    %636 = arith.addf %630, %635 : vector<256x32xf32>
    %637 = vector.extract_strided_slice %607 {offsets = [1, 1, 0], sizes = [16, 16, 32], strides = [1, 1, 1]} : vector<18x18x32xbf16> to vector<16x16x32xbf16>
    %638 = vector.shape_cast %637 : vector<16x16x32xbf16> to vector<256x32xbf16>
    %639 = vector.extract_strided_slice %609 {offsets = [4, 0, 0], sizes = [1, 32, 32], strides = [1, 1, 1]} : vector<9x32x32xbf16> to vector<1x32x32xbf16>
    %640 = vector.shape_cast %639 : vector<1x32x32xbf16> to vector<32x32xbf16>
    %cst_214 = arith.constant dense<0.000000e+00> : vector<256x32xf32>
    %641 = tpu.matmul %638, %640, %cst_214 {dimension_numbers = #tpu.dot_dimension_numbers<[1], [0], [0], [1], [0, 0, 1, 1], [], []>} : vector<256x32xbf16>, vector<32x32xbf16>, vector<256x32xf32> -> vector<256x32xf32>
    %642 = arith.addf %636, %641 : vector<256x32xf32>
    %643 = vector.extract_strided_slice %607 {offsets = [1, 2, 0], sizes = [16, 16, 32], strides = [1, 1, 1]} : vector<18x18x32xbf16> to vector<16x16x32xbf16>
    %644 = vector.shape_cast %643 : vector<16x16x32xbf16> to vector<256x32xbf16>
    %645 = vector.extract_strided_slice %609 {offsets = [5, 0, 0], sizes = [1, 32, 32], strides = [1, 1, 1]} : vector<9x32x32xbf16> to vector<1x32x32xbf16>
    %646 = vector.shape_cast %645 : vector<1x32x32xbf16> to vector<32x32xbf16>
    %cst_215 = arith.constant dense<0.000000e+00> : vector<256x32xf32>
    %647 = tpu.matmul %644, %646, %cst_215 {dimension_numbers = #tpu.dot_dimension_numbers<[1], [0], [0], [1], [0, 0, 1, 1], [], []>} : vector<256x32xbf16>, vector<32x32xbf16>, vector<256x32xf32> -> vector<256x32xf32>
    %648 = arith.addf %642, %647 : vector<256x32xf32>
    %649 = vector.extract_strided_slice %607 {offsets = [2, 0, 0], sizes = [16, 16, 32], strides = [1, 1, 1]} : vector<18x18x32xbf16> to vector<16x16x32xbf16>
    %650 = vector.shape_cast %649 : vector<16x16x32xbf16> to vector<256x32xbf16>
    %651 = vector.extract_strided_slice %609 {offsets = [6, 0, 0], sizes = [1, 32, 32], strides = [1, 1, 1]} : vector<9x32x32xbf16> to vector<1x32x32xbf16>
    %652 = vector.shape_cast %651 : vector<1x32x32xbf16> to vector<32x32xbf16>
    %cst_216 = arith.constant dense<0.000000e+00> : vector<256x32xf32>
    %653 = tpu.matmul %650, %652, %cst_216 {dimension_numbers = #tpu.dot_dimension_numbers<[1], [0], [0], [1], [0, 0, 1, 1], [], []>} : vector<256x32xbf16>, vector<32x32xbf16>, vector<256x32xf32> -> vector<256x32xf32>
    %654 = arith.addf %648, %653 : vector<256x32xf32>
    %655 = vector.extract_strided_slice %607 {offsets = [2, 1, 0], sizes = [16, 16, 32], strides = [1, 1, 1]} : vector<18x18x32xbf16> to vector<16x16x32xbf16>
    %656 = vector.shape_cast %655 : vector<16x16x32xbf16> to vector<256x32xbf16>
    %657 = vector.extract_strided_slice %609 {offsets = [7, 0, 0], sizes = [1, 32, 32], strides = [1, 1, 1]} : vector<9x32x32xbf16> to vector<1x32x32xbf16>
    %658 = vector.shape_cast %657 : vector<1x32x32xbf16> to vector<32x32xbf16>
    %cst_217 = arith.constant dense<0.000000e+00> : vector<256x32xf32>
    %659 = tpu.matmul %656, %658, %cst_217 {dimension_numbers = #tpu.dot_dimension_numbers<[1], [0], [0], [1], [0, 0, 1, 1], [], []>} : vector<256x32xbf16>, vector<32x32xbf16>, vector<256x32xf32> -> vector<256x32xf32>
    %660 = arith.addf %654, %659 : vector<256x32xf32>
    %661 = vector.extract_strided_slice %607 {offsets = [2, 2, 0], sizes = [16, 16, 32], strides = [1, 1, 1]} : vector<18x18x32xbf16> to vector<16x16x32xbf16>
    %662 = vector.shape_cast %661 : vector<16x16x32xbf16> to vector<256x32xbf16>
    %663 = vector.extract_strided_slice %609 {offsets = [8, 0, 0], sizes = [1, 32, 32], strides = [1, 1, 1]} : vector<9x32x32xbf16> to vector<1x32x32xbf16>
    %664 = vector.shape_cast %663 : vector<1x32x32xbf16> to vector<32x32xbf16>
    %cst_218 = arith.constant dense<0.000000e+00> : vector<256x32xf32>
    %665 = tpu.matmul %662, %664, %cst_218 {dimension_numbers = #tpu.dot_dimension_numbers<[1], [0], [0], [1], [0, 0, 1, 1], [], []>} : vector<256x32xbf16>, vector<32x32xbf16>, vector<256x32xf32> -> vector<256x32xf32>
    %666 = arith.addf %660, %665 : vector<256x32xf32>
    %667 = vector.broadcast %611 : vector<1x32xf32> to vector<256x32xf32>
    %668 = arith.mulf %666, %667 : vector<256x32xf32>
    %669 = vector.broadcast %613 : vector<1x32xf32> to vector<256x32xf32>
    %670 = arith.addf %668, %669 : vector<256x32xf32>
    %cst_219 = arith.constant 0.000000e+00 : f32
    %671 = vector.broadcast %cst_219 : f32 to vector<256x32xf32>
    %672 = arith.maximumf %670, %671 : vector<256x32xf32>
    %c0_220 = arith.constant 0 : index
    %c0_221 = arith.constant 0 : index
    %c0_222 = arith.constant 0 : index
    %673 = vector.load %arg17[%c0_220, %c0_221, %c0_222] : memref<10x10x32xbf16, #tpu.memory_space<vmem>>, vector<10x10x32xbf16>
    %c2_223 = arith.constant 2 : index
    %c0_224 = arith.constant 0 : index
    %c0_225 = arith.constant 0 : index
    %c0_226 = arith.constant 0 : index
    %674 = vector.load %arg9[%c2_223, %c0_224, %c0_225, %c0_226] : memref<3x9x32x32xbf16, #tpu.memory_space<vmem>>, vector<1x9x32x32xbf16>
    %675 = vector.shape_cast %674 : vector<1x9x32x32xbf16> to vector<9x32x32xbf16>
    %c2_227 = arith.constant 2 : index
    %c0_228 = arith.constant 0 : index
    %c0_229 = arith.constant 0 : index
    %676 = vector.load %arg10[%c2_227, %c0_228, %c0_229] : memref<3x1x32xf32, #tpu.memory_space<vmem>>, vector<1x1x32xf32>
    %677 = vector.shape_cast %676 : vector<1x1x32xf32> to vector<1x32xf32>
    %c2_230 = arith.constant 2 : index
    %c0_231 = arith.constant 0 : index
    %c0_232 = arith.constant 0 : index
    %678 = vector.load %arg11[%c2_230, %c0_231, %c0_232] : memref<3x1x32xf32, #tpu.memory_space<vmem>>, vector<1x1x32xf32>
    %679 = vector.shape_cast %678 : vector<1x1x32xf32> to vector<1x32xf32>
    %680 = vector.extract_strided_slice %673 {offsets = [0, 0, 0], sizes = [8, 8, 32], strides = [1, 1, 1]} : vector<10x10x32xbf16> to vector<8x8x32xbf16>
    %681 = vector.shape_cast %680 : vector<8x8x32xbf16> to vector<64x32xbf16>
    %682 = vector.extract_strided_slice %675 {offsets = [0, 0, 0], sizes = [1, 32, 32], strides = [1, 1, 1]} : vector<9x32x32xbf16> to vector<1x32x32xbf16>
    %683 = vector.shape_cast %682 : vector<1x32x32xbf16> to vector<32x32xbf16>
    %cst_233 = arith.constant dense<0.000000e+00> : vector<64x32xf32>
    %684 = tpu.matmul %681, %683, %cst_233 {dimension_numbers = #tpu.dot_dimension_numbers<[1], [0], [0], [1], [0, 0, 1, 1], [], []>} : vector<64x32xbf16>, vector<32x32xbf16>, vector<64x32xf32> -> vector<64x32xf32>
    %685 = vector.extract_strided_slice %673 {offsets = [0, 1, 0], sizes = [8, 8, 32], strides = [1, 1, 1]} : vector<10x10x32xbf16> to vector<8x8x32xbf16>
    %686 = vector.shape_cast %685 : vector<8x8x32xbf16> to vector<64x32xbf16>
    %687 = vector.extract_strided_slice %675 {offsets = [1, 0, 0], sizes = [1, 32, 32], strides = [1, 1, 1]} : vector<9x32x32xbf16> to vector<1x32x32xbf16>
    %688 = vector.shape_cast %687 : vector<1x32x32xbf16> to vector<32x32xbf16>
    %cst_234 = arith.constant dense<0.000000e+00> : vector<64x32xf32>
    %689 = tpu.matmul %686, %688, %cst_234 {dimension_numbers = #tpu.dot_dimension_numbers<[1], [0], [0], [1], [0, 0, 1, 1], [], []>} : vector<64x32xbf16>, vector<32x32xbf16>, vector<64x32xf32> -> vector<64x32xf32>
    %690 = arith.addf %684, %689 : vector<64x32xf32>
    %691 = vector.extract_strided_slice %673 {offsets = [0, 2, 0], sizes = [8, 8, 32], strides = [1, 1, 1]} : vector<10x10x32xbf16> to vector<8x8x32xbf16>
    %692 = vector.shape_cast %691 : vector<8x8x32xbf16> to vector<64x32xbf16>
    %693 = vector.extract_strided_slice %675 {offsets = [2, 0, 0], sizes = [1, 32, 32], strides = [1, 1, 1]} : vector<9x32x32xbf16> to vector<1x32x32xbf16>
    %694 = vector.shape_cast %693 : vector<1x32x32xbf16> to vector<32x32xbf16>
    %cst_235 = arith.constant dense<0.000000e+00> : vector<64x32xf32>
    %695 = tpu.matmul %692, %694, %cst_235 {dimension_numbers = #tpu.dot_dimension_numbers<[1], [0], [0], [1], [0, 0, 1, 1], [], []>} : vector<64x32xbf16>, vector<32x32xbf16>, vector<64x32xf32> -> vector<64x32xf32>
    %696 = arith.addf %690, %695 : vector<64x32xf32>
    %697 = vector.extract_strided_slice %673 {offsets = [1, 0, 0], sizes = [8, 8, 32], strides = [1, 1, 1]} : vector<10x10x32xbf16> to vector<8x8x32xbf16>
    %698 = vector.shape_cast %697 : vector<8x8x32xbf16> to vector<64x32xbf16>
    %699 = vector.extract_strided_slice %675 {offsets = [3, 0, 0], sizes = [1, 32, 32], strides = [1, 1, 1]} : vector<9x32x32xbf16> to vector<1x32x32xbf16>
    %700 = vector.shape_cast %699 : vector<1x32x32xbf16> to vector<32x32xbf16>
    %cst_236 = arith.constant dense<0.000000e+00> : vector<64x32xf32>
    %701 = tpu.matmul %698, %700, %cst_236 {dimension_numbers = #tpu.dot_dimension_numbers<[1], [0], [0], [1], [0, 0, 1, 1], [], []>} : vector<64x32xbf16>, vector<32x32xbf16>, vector<64x32xf32> -> vector<64x32xf32>
    %702 = arith.addf %696, %701 : vector<64x32xf32>
    %703 = vector.extract_strided_slice %673 {offsets = [1, 1, 0], sizes = [8, 8, 32], strides = [1, 1, 1]} : vector<10x10x32xbf16> to vector<8x8x32xbf16>
    %704 = vector.shape_cast %703 : vector<8x8x32xbf16> to vector<64x32xbf16>
    %705 = vector.extract_strided_slice %675 {offsets = [4, 0, 0], sizes = [1, 32, 32], strides = [1, 1, 1]} : vector<9x32x32xbf16> to vector<1x32x32xbf16>
    %706 = vector.shape_cast %705 : vector<1x32x32xbf16> to vector<32x32xbf16>
    %cst_237 = arith.constant dense<0.000000e+00> : vector<64x32xf32>
    %707 = tpu.matmul %704, %706, %cst_237 {dimension_numbers = #tpu.dot_dimension_numbers<[1], [0], [0], [1], [0, 0, 1, 1], [], []>} : vector<64x32xbf16>, vector<32x32xbf16>, vector<64x32xf32> -> vector<64x32xf32>
    %708 = arith.addf %702, %707 : vector<64x32xf32>
    %709 = vector.extract_strided_slice %673 {offsets = [1, 2, 0], sizes = [8, 8, 32], strides = [1, 1, 1]} : vector<10x10x32xbf16> to vector<8x8x32xbf16>
    %710 = vector.shape_cast %709 : vector<8x8x32xbf16> to vector<64x32xbf16>
    %711 = vector.extract_strided_slice %675 {offsets = [5, 0, 0], sizes = [1, 32, 32], strides = [1, 1, 1]} : vector<9x32x32xbf16> to vector<1x32x32xbf16>
    %712 = vector.shape_cast %711 : vector<1x32x32xbf16> to vector<32x32xbf16>
    %cst_238 = arith.constant dense<0.000000e+00> : vector<64x32xf32>
    %713 = tpu.matmul %710, %712, %cst_238 {dimension_numbers = #tpu.dot_dimension_numbers<[1], [0], [0], [1], [0, 0, 1, 1], [], []>} : vector<64x32xbf16>, vector<32x32xbf16>, vector<64x32xf32> -> vector<64x32xf32>
    %714 = arith.addf %708, %713 : vector<64x32xf32>
    %715 = vector.extract_strided_slice %673 {offsets = [2, 0, 0], sizes = [8, 8, 32], strides = [1, 1, 1]} : vector<10x10x32xbf16> to vector<8x8x32xbf16>
    %716 = vector.shape_cast %715 : vector<8x8x32xbf16> to vector<64x32xbf16>
    %717 = vector.extract_strided_slice %675 {offsets = [6, 0, 0], sizes = [1, 32, 32], strides = [1, 1, 1]} : vector<9x32x32xbf16> to vector<1x32x32xbf16>
    %718 = vector.shape_cast %717 : vector<1x32x32xbf16> to vector<32x32xbf16>
    %cst_239 = arith.constant dense<0.000000e+00> : vector<64x32xf32>
    %719 = tpu.matmul %716, %718, %cst_239 {dimension_numbers = #tpu.dot_dimension_numbers<[1], [0], [0], [1], [0, 0, 1, 1], [], []>} : vector<64x32xbf16>, vector<32x32xbf16>, vector<64x32xf32> -> vector<64x32xf32>
    %720 = arith.addf %714, %719 : vector<64x32xf32>
    %721 = vector.extract_strided_slice %673 {offsets = [2, 1, 0], sizes = [8, 8, 32], strides = [1, 1, 1]} : vector<10x10x32xbf16> to vector<8x8x32xbf16>
    %722 = vector.shape_cast %721 : vector<8x8x32xbf16> to vector<64x32xbf16>
    %723 = vector.extract_strided_slice %675 {offsets = [7, 0, 0], sizes = [1, 32, 32], strides = [1, 1, 1]} : vector<9x32x32xbf16> to vector<1x32x32xbf16>
    %724 = vector.shape_cast %723 : vector<1x32x32xbf16> to vector<32x32xbf16>
    %cst_240 = arith.constant dense<0.000000e+00> : vector<64x32xf32>
    %725 = tpu.matmul %722, %724, %cst_240 {dimension_numbers = #tpu.dot_dimension_numbers<[1], [0], [0], [1], [0, 0, 1, 1], [], []>} : vector<64x32xbf16>, vector<32x32xbf16>, vector<64x32xf32> -> vector<64x32xf32>
    %726 = arith.addf %720, %725 : vector<64x32xf32>
    %727 = vector.extract_strided_slice %673 {offsets = [2, 2, 0], sizes = [8, 8, 32], strides = [1, 1, 1]} : vector<10x10x32xbf16> to vector<8x8x32xbf16>
    %728 = vector.shape_cast %727 : vector<8x8x32xbf16> to vector<64x32xbf16>
    %729 = vector.extract_strided_slice %675 {offsets = [8, 0, 0], sizes = [1, 32, 32], strides = [1, 1, 1]} : vector<9x32x32xbf16> to vector<1x32x32xbf16>
    %730 = vector.shape_cast %729 : vector<1x32x32xbf16> to vector<32x32xbf16>
    %cst_241 = arith.constant dense<0.000000e+00> : vector<64x32xf32>
    %731 = tpu.matmul %728, %730, %cst_241 {dimension_numbers = #tpu.dot_dimension_numbers<[1], [0], [0], [1], [0, 0, 1, 1], [], []>} : vector<64x32xbf16>, vector<32x32xbf16>, vector<64x32xf32> -> vector<64x32xf32>
    %732 = arith.addf %726, %731 : vector<64x32xf32>
    %733 = vector.broadcast %677 : vector<1x32xf32> to vector<64x32xf32>
    %734 = arith.mulf %732, %733 : vector<64x32xf32>
    %735 = vector.broadcast %679 : vector<1x32xf32> to vector<64x32xf32>
    %736 = arith.addf %734, %735 : vector<64x32xf32>
    %cst_242 = arith.constant 0.000000e+00 : f32
    %737 = vector.broadcast %cst_242 : f32 to vector<64x32xf32>
    %738 = arith.maximumf %736, %737 : vector<64x32xf32>
    %c2_243 = arith.constant 2 : index
    %c0_244 = arith.constant 0 : index
    %c0_245 = arith.constant 0 : index
    %739 = vector.load %arg12[%c2_243, %c0_244, %c0_245] : memref<3x32x32xbf16, #tpu.memory_space<vmem>>, vector<1x32x32xbf16>
    %740 = vector.shape_cast %739 : vector<1x32x32xbf16> to vector<32x32xbf16>
    %c2_246 = arith.constant 2 : index
    %c0_247 = arith.constant 0 : index
    %c0_248 = arith.constant 0 : index
    %741 = vector.load %arg13[%c2_246, %c0_247, %c0_248] : memref<3x1x32xf32, #tpu.memory_space<vmem>>, vector<1x1x32xf32>
    %742 = vector.shape_cast %741 : vector<1x1x32xf32> to vector<1x32xf32>
    %743 = arith.truncf %738 : vector<64x32xf32> to vector<64x32xbf16>
    %cst_249 = arith.constant dense<0.000000e+00> : vector<64x32xf32>
    %744 = tpu.matmul %743, %740, %cst_249 {dimension_numbers = #tpu.dot_dimension_numbers<[1], [0], [0], [1], [0, 0, 1, 1], [], []>} : vector<64x32xbf16>, vector<32x32xbf16>, vector<64x32xf32> -> vector<64x32xf32>
    %745 = vector.broadcast %742 : vector<1x32xf32> to vector<64x32xf32>
    %746 = arith.addf %744, %745 : vector<64x32xf32>
    %747 = vector.shape_cast %746 : vector<64x32xf32> to vector<8x8x32xf32>
    %748 = arith.truncf %747 : vector<8x8x32xf32> to vector<8x8x32xbf16>
    "tpu.trace_start"() <{level = 10 : i32, message = "iwj,ijc->iwc"}> : () -> ()
    %cst_250 = arith.constant dense<0.000000e+00> : vector<8x16x32xf32>
    %749 = tpu.matmul %4, %748, %cst_250 {dimension_numbers = #tpu.dot_dimension_numbers<[2], [1], [1], [2], [0, 0, 0, 1, 1, 2], [0], [0]>} : vector<8x16x8xbf16>, vector<8x8x32xbf16>, vector<8x16x32xf32> -> vector<8x16x32xf32>
    "tpu.trace_stop"() : () -> ()
    %750 = vector.extract_strided_slice %749 {offsets = [0, 0, 0], sizes = [1, 16, 32], strides = [1, 1, 1]} : vector<8x16x32xf32> to vector<1x16x32xf32>
    %751 = vector.shape_cast %750 : vector<1x16x32xf32> to vector<16x32xf32>
    %752 = vector.extract_strided_slice %749 {offsets = [0, 0, 0], sizes = [1, 16, 32], strides = [1, 1, 1]} : vector<8x16x32xf32> to vector<1x16x32xf32>
    %753 = vector.shape_cast %752 : vector<1x16x32xf32> to vector<16x32xf32>
    %cst_251 = arith.constant 0.533333361 : f32
    %754 = vector.broadcast %cst_251 : f32 to vector<16x32xf32>
    %755 = arith.mulf %754, %753 : vector<16x32xf32>
    %756 = vector.extract_strided_slice %749 {offsets = [1, 0, 0], sizes = [1, 16, 32], strides = [1, 1, 1]} : vector<8x16x32xf32> to vector<1x16x32xf32>
    %757 = vector.shape_cast %756 : vector<1x16x32xf32> to vector<16x32xf32>
    %cst_252 = arith.constant 0.466666669 : f32
    %758 = vector.broadcast %cst_252 : f32 to vector<16x32xf32>
    %759 = arith.mulf %758, %757 : vector<16x32xf32>
    %760 = arith.addf %755, %759 : vector<16x32xf32>
    %761 = vector.extract_strided_slice %749 {offsets = [0, 0, 0], sizes = [1, 16, 32], strides = [1, 1, 1]} : vector<8x16x32xf32> to vector<1x16x32xf32>
    %762 = vector.shape_cast %761 : vector<1x16x32xf32> to vector<16x32xf32>
    %cst_253 = arith.constant 0.0666666701 : f32
    %763 = vector.broadcast %cst_253 : f32 to vector<16x32xf32>
    %764 = arith.mulf %763, %762 : vector<16x32xf32>
    %765 = vector.extract_strided_slice %749 {offsets = [1, 0, 0], sizes = [1, 16, 32], strides = [1, 1, 1]} : vector<8x16x32xf32> to vector<1x16x32xf32>
    %766 = vector.shape_cast %765 : vector<1x16x32xf32> to vector<16x32xf32>
    %cst_254 = arith.constant 0.933333337 : f32
    %767 = vector.broadcast %cst_254 : f32 to vector<16x32xf32>
    %768 = arith.mulf %767, %766 : vector<16x32xf32>
    %769 = arith.addf %764, %768 : vector<16x32xf32>
    %770 = vector.extract_strided_slice %749 {offsets = [1, 0, 0], sizes = [1, 16, 32], strides = [1, 1, 1]} : vector<8x16x32xf32> to vector<1x16x32xf32>
    %771 = vector.shape_cast %770 : vector<1x16x32xf32> to vector<16x32xf32>
    %cst_255 = arith.constant 6.000000e-01 : f32
    %772 = vector.broadcast %cst_255 : f32 to vector<16x32xf32>
    %773 = arith.mulf %772, %771 : vector<16x32xf32>
    %774 = vector.extract_strided_slice %749 {offsets = [2, 0, 0], sizes = [1, 16, 32], strides = [1, 1, 1]} : vector<8x16x32xf32> to vector<1x16x32xf32>
    %775 = vector.shape_cast %774 : vector<1x16x32xf32> to vector<16x32xf32>
    %cst_256 = arith.constant 4.000000e-01 : f32
    %776 = vector.broadcast %cst_256 : f32 to vector<16x32xf32>
    %777 = arith.mulf %776, %775 : vector<16x32xf32>
    %778 = arith.addf %773, %777 : vector<16x32xf32>
    %779 = vector.extract_strided_slice %749 {offsets = [1, 0, 0], sizes = [1, 16, 32], strides = [1, 1, 1]} : vector<8x16x32xf32> to vector<1x16x32xf32>
    %780 = vector.shape_cast %779 : vector<1x16x32xf32> to vector<16x32xf32>
    %cst_257 = arith.constant 0.13333334 : f32
    %781 = vector.broadcast %cst_257 : f32 to vector<16x32xf32>
    %782 = arith.mulf %781, %780 : vector<16x32xf32>
    %783 = vector.extract_strided_slice %749 {offsets = [2, 0, 0], sizes = [1, 16, 32], strides = [1, 1, 1]} : vector<8x16x32xf32> to vector<1x16x32xf32>
    %784 = vector.shape_cast %783 : vector<1x16x32xf32> to vector<16x32xf32>
    %cst_258 = arith.constant 0.866666674 : f32
    %785 = vector.broadcast %cst_258 : f32 to vector<16x32xf32>
    %786 = arith.mulf %785, %784 : vector<16x32xf32>
    %787 = arith.addf %782, %786 : vector<16x32xf32>
    %788 = vector.extract_strided_slice %749 {offsets = [2, 0, 0], sizes = [1, 16, 32], strides = [1, 1, 1]} : vector<8x16x32xf32> to vector<1x16x32xf32>
    %789 = vector.shape_cast %788 : vector<1x16x32xf32> to vector<16x32xf32>
    %cst_259 = arith.constant 0.666666686 : f32
    %790 = vector.broadcast %cst_259 : f32 to vector<16x32xf32>
    %791 = arith.mulf %790, %789 : vector<16x32xf32>
    %792 = vector.extract_strided_slice %749 {offsets = [3, 0, 0], sizes = [1, 16, 32], strides = [1, 1, 1]} : vector<8x16x32xf32> to vector<1x16x32xf32>
    %793 = vector.shape_cast %792 : vector<1x16x32xf32> to vector<16x32xf32>
    %cst_260 = arith.constant 0.333333343 : f32
    %794 = vector.broadcast %cst_260 : f32 to vector<16x32xf32>
    %795 = arith.mulf %794, %793 : vector<16x32xf32>
    %796 = arith.addf %791, %795 : vector<16x32xf32>
    %797 = vector.extract_strided_slice %749 {offsets = [2, 0, 0], sizes = [1, 16, 32], strides = [1, 1, 1]} : vector<8x16x32xf32> to vector<1x16x32xf32>
    %798 = vector.shape_cast %797 : vector<1x16x32xf32> to vector<16x32xf32>
    %cst_261 = arith.constant 2.000000e-01 : f32
    %799 = vector.broadcast %cst_261 : f32 to vector<16x32xf32>
    %800 = arith.mulf %799, %798 : vector<16x32xf32>
    %801 = vector.extract_strided_slice %749 {offsets = [3, 0, 0], sizes = [1, 16, 32], strides = [1, 1, 1]} : vector<8x16x32xf32> to vector<1x16x32xf32>
    %802 = vector.shape_cast %801 : vector<1x16x32xf32> to vector<16x32xf32>
    %cst_262 = arith.constant 8.000000e-01 : f32
    %803 = vector.broadcast %cst_262 : f32 to vector<16x32xf32>
    %804 = arith.mulf %803, %802 : vector<16x32xf32>
    %805 = arith.addf %800, %804 : vector<16x32xf32>
    %806 = vector.extract_strided_slice %749 {offsets = [3, 0, 0], sizes = [1, 16, 32], strides = [1, 1, 1]} : vector<8x16x32xf32> to vector<1x16x32xf32>
    %807 = vector.shape_cast %806 : vector<1x16x32xf32> to vector<16x32xf32>
    %cst_263 = arith.constant 0.733333349 : f32
    %808 = vector.broadcast %cst_263 : f32 to vector<16x32xf32>
    %809 = arith.mulf %808, %807 : vector<16x32xf32>
    %810 = vector.extract_strided_slice %749 {offsets = [4, 0, 0], sizes = [1, 16, 32], strides = [1, 1, 1]} : vector<8x16x32xf32> to vector<1x16x32xf32>
    %811 = vector.shape_cast %810 : vector<1x16x32xf32> to vector<16x32xf32>
    %cst_264 = arith.constant 0.266666681 : f32
    %812 = vector.broadcast %cst_264 : f32 to vector<16x32xf32>
    %813 = arith.mulf %812, %811 : vector<16x32xf32>
    %814 = arith.addf %809, %813 : vector<16x32xf32>
    %815 = vector.extract_strided_slice %749 {offsets = [3, 0, 0], sizes = [1, 16, 32], strides = [1, 1, 1]} : vector<8x16x32xf32> to vector<1x16x32xf32>
    %816 = vector.shape_cast %815 : vector<1x16x32xf32> to vector<16x32xf32>
    %cst_265 = arith.constant 0.266666681 : f32
    %817 = vector.broadcast %cst_265 : f32 to vector<16x32xf32>
    %818 = arith.mulf %817, %816 : vector<16x32xf32>
    %819 = vector.extract_strided_slice %749 {offsets = [4, 0, 0], sizes = [1, 16, 32], strides = [1, 1, 1]} : vector<8x16x32xf32> to vector<1x16x32xf32>
    %820 = vector.shape_cast %819 : vector<1x16x32xf32> to vector<16x32xf32>
    %cst_266 = arith.constant 0.733333349 : f32
    %821 = vector.broadcast %cst_266 : f32 to vector<16x32xf32>
    %822 = arith.mulf %821, %820 : vector<16x32xf32>
    %823 = arith.addf %818, %822 : vector<16x32xf32>
    %824 = vector.extract_strided_slice %749 {offsets = [4, 0, 0], sizes = [1, 16, 32], strides = [1, 1, 1]} : vector<8x16x32xf32> to vector<1x16x32xf32>
    %825 = vector.shape_cast %824 : vector<1x16x32xf32> to vector<16x32xf32>
    %cst_267 = arith.constant 8.000000e-01 : f32
    %826 = vector.broadcast %cst_267 : f32 to vector<16x32xf32>
    %827 = arith.mulf %826, %825 : vector<16x32xf32>
    %828 = vector.extract_strided_slice %749 {offsets = [5, 0, 0], sizes = [1, 16, 32], strides = [1, 1, 1]} : vector<8x16x32xf32> to vector<1x16x32xf32>
    %829 = vector.shape_cast %828 : vector<1x16x32xf32> to vector<16x32xf32>
    %cst_268 = arith.constant 2.000000e-01 : f32
    %830 = vector.broadcast %cst_268 : f32 to vector<16x32xf32>
    %831 = arith.mulf %830, %829 : vector<16x32xf32>
    %832 = arith.addf %827, %831 : vector<16x32xf32>
    %833 = vector.extract_strided_slice %749 {offsets = [4, 0, 0], sizes = [1, 16, 32], strides = [1, 1, 1]} : vector<8x16x32xf32> to vector<1x16x32xf32>
    %834 = vector.shape_cast %833 : vector<1x16x32xf32> to vector<16x32xf32>
    %cst_269 = arith.constant 0.333333343 : f32
    %835 = vector.broadcast %cst_269 : f32 to vector<16x32xf32>
    %836 = arith.mulf %835, %834 : vector<16x32xf32>
    %837 = vector.extract_strided_slice %749 {offsets = [5, 0, 0], sizes = [1, 16, 32], strides = [1, 1, 1]} : vector<8x16x32xf32> to vector<1x16x32xf32>
    %838 = vector.shape_cast %837 : vector<1x16x32xf32> to vector<16x32xf32>
    %cst_270 = arith.constant 0.666666686 : f32
    %839 = vector.broadcast %cst_270 : f32 to vector<16x32xf32>
    %840 = arith.mulf %839, %838 : vector<16x32xf32>
    %841 = arith.addf %836, %840 : vector<16x32xf32>
    %842 = vector.extract_strided_slice %749 {offsets = [5, 0, 0], sizes = [1, 16, 32], strides = [1, 1, 1]} : vector<8x16x32xf32> to vector<1x16x32xf32>
    %843 = vector.shape_cast %842 : vector<1x16x32xf32> to vector<16x32xf32>
    %cst_271 = arith.constant 0.866666674 : f32
    %844 = vector.broadcast %cst_271 : f32 to vector<16x32xf32>
    %845 = arith.mulf %844, %843 : vector<16x32xf32>
    %846 = vector.extract_strided_slice %749 {offsets = [6, 0, 0], sizes = [1, 16, 32], strides = [1, 1, 1]} : vector<8x16x32xf32> to vector<1x16x32xf32>
    %847 = vector.shape_cast %846 : vector<1x16x32xf32> to vector<16x32xf32>
    %cst_272 = arith.constant 0.13333334 : f32
    %848 = vector.broadcast %cst_272 : f32 to vector<16x32xf32>
    %849 = arith.mulf %848, %847 : vector<16x32xf32>
    %850 = arith.addf %845, %849 : vector<16x32xf32>
    %851 = vector.extract_strided_slice %749 {offsets = [5, 0, 0], sizes = [1, 16, 32], strides = [1, 1, 1]} : vector<8x16x32xf32> to vector<1x16x32xf32>
    %852 = vector.shape_cast %851 : vector<1x16x32xf32> to vector<16x32xf32>
    %cst_273 = arith.constant 4.000000e-01 : f32
    %853 = vector.broadcast %cst_273 : f32 to vector<16x32xf32>
    %854 = arith.mulf %853, %852 : vector<16x32xf32>
    %855 = vector.extract_strided_slice %749 {offsets = [6, 0, 0], sizes = [1, 16, 32], strides = [1, 1, 1]} : vector<8x16x32xf32> to vector<1x16x32xf32>
    %856 = vector.shape_cast %855 : vector<1x16x32xf32> to vector<16x32xf32>
    %cst_274 = arith.constant 6.000000e-01 : f32
    %857 = vector.broadcast %cst_274 : f32 to vector<16x32xf32>
    %858 = arith.mulf %857, %856 : vector<16x32xf32>
    %859 = arith.addf %854, %858 : vector<16x32xf32>
    %860 = vector.extract_strided_slice %749 {offsets = [6, 0, 0], sizes = [1, 16, 32], strides = [1, 1, 1]} : vector<8x16x32xf32> to vector<1x16x32xf32>
    %861 = vector.shape_cast %860 : vector<1x16x32xf32> to vector<16x32xf32>
    %cst_275 = arith.constant 0.933333337 : f32
    %862 = vector.broadcast %cst_275 : f32 to vector<16x32xf32>
    %863 = arith.mulf %862, %861 : vector<16x32xf32>
    %864 = vector.extract_strided_slice %749 {offsets = [7, 0, 0], sizes = [1, 16, 32], strides = [1, 1, 1]} : vector<8x16x32xf32> to vector<1x16x32xf32>
    %865 = vector.shape_cast %864 : vector<1x16x32xf32> to vector<16x32xf32>
    %cst_276 = arith.constant 0.0666666701 : f32
    %866 = vector.broadcast %cst_276 : f32 to vector<16x32xf32>
    %867 = arith.mulf %866, %865 : vector<16x32xf32>
    %868 = arith.addf %863, %867 : vector<16x32xf32>
    %869 = vector.extract_strided_slice %749 {offsets = [6, 0, 0], sizes = [1, 16, 32], strides = [1, 1, 1]} : vector<8x16x32xf32> to vector<1x16x32xf32>
    %870 = vector.shape_cast %869 : vector<1x16x32xf32> to vector<16x32xf32>
    %cst_277 = arith.constant 0.466666669 : f32
    %871 = vector.broadcast %cst_277 : f32 to vector<16x32xf32>
    %872 = arith.mulf %871, %870 : vector<16x32xf32>
    %873 = vector.extract_strided_slice %749 {offsets = [7, 0, 0], sizes = [1, 16, 32], strides = [1, 1, 1]} : vector<8x16x32xf32> to vector<1x16x32xf32>
    %874 = vector.shape_cast %873 : vector<1x16x32xf32> to vector<16x32xf32>
    %cst_278 = arith.constant 0.533333361 : f32
    %875 = vector.broadcast %cst_278 : f32 to vector<16x32xf32>
    %876 = arith.mulf %875, %874 : vector<16x32xf32>
    %877 = arith.addf %872, %876 : vector<16x32xf32>
    %878 = vector.extract_strided_slice %749 {offsets = [7, 0, 0], sizes = [1, 16, 32], strides = [1, 1, 1]} : vector<8x16x32xf32> to vector<1x16x32xf32>
    %879 = vector.shape_cast %878 : vector<1x16x32xf32> to vector<16x32xf32>
    %880 = vector.shape_cast %751 : vector<16x32xf32> to vector<1x16x32xf32>
    %881 = vector.shape_cast %760 : vector<16x32xf32> to vector<1x16x32xf32>
    %882 = vector.shape_cast %769 : vector<16x32xf32> to vector<1x16x32xf32>
    %883 = vector.shape_cast %778 : vector<16x32xf32> to vector<1x16x32xf32>
    %884 = vector.shape_cast %787 : vector<16x32xf32> to vector<1x16x32xf32>
    %885 = vector.shape_cast %796 : vector<16x32xf32> to vector<1x16x32xf32>
    %886 = vector.shape_cast %805 : vector<16x32xf32> to vector<1x16x32xf32>
    %887 = vector.shape_cast %814 : vector<16x32xf32> to vector<1x16x32xf32>
    %888 = vector.shape_cast %823 : vector<16x32xf32> to vector<1x16x32xf32>
    %889 = vector.shape_cast %832 : vector<16x32xf32> to vector<1x16x32xf32>
    %890 = vector.shape_cast %841 : vector<16x32xf32> to vector<1x16x32xf32>
    %891 = vector.shape_cast %850 : vector<16x32xf32> to vector<1x16x32xf32>
    %892 = vector.shape_cast %859 : vector<16x32xf32> to vector<1x16x32xf32>
    %893 = vector.shape_cast %868 : vector<16x32xf32> to vector<1x16x32xf32>
    %894 = vector.shape_cast %877 : vector<16x32xf32> to vector<1x16x32xf32>
    %895 = vector.shape_cast %879 : vector<16x32xf32> to vector<1x16x32xf32>
    %896 = tpu.concatenate %880, %881, %882, %883, %884, %885, %886, %887, %888, %889, %890, %891, %892, %893, %894, %895 in 0 : vector<1x16x32xf32>, vector<1x16x32xf32>, vector<1x16x32xf32>, vector<1x16x32xf32>, vector<1x16x32xf32>, vector<1x16x32xf32>, vector<1x16x32xf32>, vector<1x16x32xf32>, vector<1x16x32xf32>, vector<1x16x32xf32>, vector<1x16x32xf32>, vector<1x16x32xf32>, vector<1x16x32xf32>, vector<1x16x32xf32>, vector<1x16x32xf32>, vector<1x16x32xf32> -> vector<16x16x32xf32>
    %897 = vector.shape_cast %672 : vector<256x32xf32> to vector<16x16x32xf32>
    %898 = arith.addf %896, %897 : vector<16x16x32xf32>
    %c0_279 = arith.constant 0 : index
    %c0_280 = arith.constant 0 : index
    %c0_281 = arith.constant 0 : index
    %c0_282 = arith.constant 0 : index
    %899 = vector.load %arg15[%c0_279, %c0_280, %c0_281, %c0_282] : memref<1x16x16x32xf32, #tpu.memory_space<vmem>>, vector<1x16x16x32xf32>
    %900 = vector.shape_cast %899 : vector<1x16x16x32xf32> to vector<16x16x32xf32>
    %901 = vector.shape_cast %898 : vector<16x16x32xf32> to vector<1x16x16x32xf32>
    tpu.vector_store %arg15[%c0_279, %c0_280, %c0_281, %c0_282], %901 {strides = array<i32>} : memref<1x16x16x32xf32, #tpu.memory_space<vmem>>, vector<1x16x16x32xf32>,
    return
  }
  func.func @transform_0(%arg0: i32) -> (i32, i32, i32, i32) {
    %c0_i32 = arith.constant 0 : i32
    %c0_i32_0 = arith.constant 0 : i32
    %c0_i32_1 = arith.constant 0 : i32
    %c0_i32_2 = arith.constant 0 : i32
    return %arg0, %c0_i32, %c0_i32_0, %c0_i32_1 : i32, i32, i32, i32
  }
  func.func @transform_1(%arg0: i32) -> (i32, i32, i32, i32) {
    %c0_i32 = arith.constant 0 : i32
    %c0_i32_0 = arith.constant 0 : i32
    %c0_i32_1 = arith.constant 0 : i32
    %c0_i32_2 = arith.constant 0 : i32
    return %arg0, %c0_i32, %c0_i32_0, %c0_i32_1 : i32, i32, i32, i32
  }
  func.func @transform_2(%arg0: i32) -> (i32, i32, i32, i32) {
    %c0_i32 = arith.constant 0 : i32
    %c0_i32_0 = arith.constant 0 : i32
    %c0_i32_1 = arith.constant 0 : i32
    %c0_i32_2 = arith.constant 0 : i32
    return %arg0, %c0_i32, %c0_i32_0, %c0_i32_1 : i32, i32, i32, i32
  }
  func.func @transform_3(%arg0: i32) -> (i32, i32, i32, i32) {
    %c0_i32 = arith.constant 0 : i32
    %c0_i32_0 = arith.constant 0 : i32
    %c0_i32_1 = arith.constant 0 : i32
    %c0_i32_2 = arith.constant 0 : i32
    return %arg0, %c0_i32, %c0_i32_0, %c0_i32_1 : i32, i32, i32, i32
  }
  func.func @transform_4(%arg0: i32) -> (i32, i32, i32, i32) {
    %c0_i32 = arith.constant 0 : i32
    %c0_i32_0 = arith.constant 0 : i32
    %c0_i32_1 = arith.constant 0 : i32
    %c0_i32_2 = arith.constant 0 : i32
    return %arg0, %c0_i32, %c0_i32_0, %c0_i32_1 : i32, i32, i32, i32
  }
  func.func @transform_5(%arg0: i32) -> (i32, i32, i32, i32) {
    %c0_i32 = arith.constant 0 : i32
    %c0_i32_0 = arith.constant 0 : i32
    %c0_i32_1 = arith.constant 0 : i32
    %c0_i32_2 = arith.constant 0 : i32
    %c0_i32_3 = arith.constant 0 : i32
    return %c0_i32, %c0_i32_0, %c0_i32_1, %c0_i32_2 : i32, i32, i32, i32
  }
  func.func @transform_6(%arg0: i32) -> (i32, i32, i32) {
    %c0_i32 = arith.constant 0 : i32
    %c0_i32_0 = arith.constant 0 : i32
    %c0_i32_1 = arith.constant 0 : i32
    %c0_i32_2 = arith.constant 0 : i32
    return %c0_i32, %c0_i32_0, %c0_i32_1 : i32, i32, i32
  }
  func.func @transform_7(%arg0: i32) -> (i32, i32, i32) {
    %c0_i32 = arith.constant 0 : i32
    %c0_i32_0 = arith.constant 0 : i32
    %c0_i32_1 = arith.constant 0 : i32
    %c0_i32_2 = arith.constant 0 : i32
    return %c0_i32, %c0_i32_0, %c0_i32_1 : i32, i32, i32
  }
  func.func @transform_8(%arg0: i32) -> (i32, i32, i32, i32) {
    %c0_i32 = arith.constant 0 : i32
    %c0_i32_0 = arith.constant 0 : i32
    %c0_i32_1 = arith.constant 0 : i32
    %c0_i32_2 = arith.constant 0 : i32
    %c0_i32_3 = arith.constant 0 : i32
    return %c0_i32, %c0_i32_0, %c0_i32_1, %c0_i32_2 : i32, i32, i32, i32
  }
  func.func @transform_9(%arg0: i32) -> (i32, i32, i32) {
    %c0_i32 = arith.constant 0 : i32
    %c0_i32_0 = arith.constant 0 : i32
    %c0_i32_1 = arith.constant 0 : i32
    %c0_i32_2 = arith.constant 0 : i32
    return %c0_i32, %c0_i32_0, %c0_i32_1 : i32, i32, i32
  }
  func.func @transform_10(%arg0: i32) -> (i32, i32, i32) {
    %c0_i32 = arith.constant 0 : i32
    %c0_i32_0 = arith.constant 0 : i32
    %c0_i32_1 = arith.constant 0 : i32
    %c0_i32_2 = arith.constant 0 : i32
    return %c0_i32, %c0_i32_0, %c0_i32_1 : i32, i32, i32
  }
  func.func @transform_11(%arg0: i32) -> (i32, i32, i32) {
    %c0_i32 = arith.constant 0 : i32
    %c0_i32_0 = arith.constant 0 : i32
    %c0_i32_1 = arith.constant 0 : i32
    %c0_i32_2 = arith.constant 0 : i32
    return %c0_i32, %c0_i32_0, %c0_i32_1 : i32, i32, i32
  }
  func.func @transform_12(%arg0: i32) -> (i32, i32, i32) {
    %c0_i32 = arith.constant 0 : i32
    %c0_i32_0 = arith.constant 0 : i32
    %c0_i32_1 = arith.constant 0 : i32
    %c0_i32_2 = arith.constant 0 : i32
    return %c0_i32, %c0_i32_0, %c0_i32_1 : i32, i32, i32
  }
  func.func @transform_13(%arg0: i32) -> (i32, i32, i32) {
    %c0_i32 = arith.constant 0 : i32
    %c0_i32_0 = arith.constant 0 : i32
    %c0_i32_1 = arith.constant 0 : i32
    %c0_i32_2 = arith.constant 0 : i32
    return %c0_i32, %c0_i32_0, %c0_i32_1 : i32, i32, i32
  }
  func.func @transform_14(%arg0: i32) -> (i32, i32, i32, i32) {
    %c0_i32 = arith.constant 0 : i32
    %c0_i32_0 = arith.constant 0 : i32
    %c0_i32_1 = arith.constant 0 : i32
    %c0_i32_2 = arith.constant 0 : i32
    return %arg0, %c0_i32, %c0_i32_0, %c0_i32_1 : i32, i32, i32, i32
  }
}

</mosaic_0001>

<bundles_post_ra>
// kernel: segblock_forward.1
= control target key start
LH: loop header
LB: loop body
LE: loop exit
PB: predicated region body
PF: predicated region fallthrough
CT: control target
= control target key end

     0   :  { %s26979_s0 = inlined_call_operand.vmem [shape: bf16[2,18,18,32], index: 0, kind: input, shape index: {}]   ;;  %s26980_s1 = inlined_call_operand.vmem [shape: bf16[2,9,9,32], index: 1, kind: input, shape index: {}]   ;;  %s26981_s2 = inlined_call_operand.vmem [shape: bf16[2,9,9,32], index: 2, kind: input, shape index: {}]   ;;  %s26982_s3 = inlined_call_operand.vmem [shape: bf16[2,9,9,32], index: 3, kind: input, shape index: {}]   ;;  %s26983_s4 = inlined_call_operand.vmem [shape: bf16[2,9,9,32], index: 4, kind: input, shape index: {}]   ;;  %s26984_s5 = inlined_call_operand.vmem [shape: bf16[3,9,32,32], index: 5, kind: input, shape index: {}]   ;;  %s26985_s6 = inlined_call_operand.vmem [shape: f32[3,1,32], index: 6, kind: input, shape index: {}]   ;;  %s26986_s7 = inlined_call_operand.vmem [shape: f32[3,1,32], index: 7, kind: input, shape index: {}]   ;;  %s26987_s8 = inlined_call_operand.vmem [shape: bf16[3,9,32,32], index: 8, kind: input, shape index: {}]   ;;  %s26988_s9 = inlined_call_operand.vmem [shape: f32[3,1,32], index: 9, kind: input, shape index: {}]   ;;  %s26989_s10 = inlined_call_operand.vmem [shape: f32[3,1,32], index: 10, kind: input, shape index: {}]   ;;  %s26990_s11 = inlined_call_operand.vmem [shape: bf16[3,32,32], index: 11, kind: input, shape index: {}]   ;;  %s26991_s12 = inlined_call_operand.vmem [shape: f32[3,1,32], index: 12, kind: input, shape index: {}]   ;;  %s26992_s13 = inlined_call_operand.vmem [shape: bf16[8,16,8], index: 13, kind: input, shape index: {}]   ;;  %s26993_s14 = inlined_call_operand.hbm [shape: f32[2,16,16,32], index: 14, kind: output, shape index: {}]  }
   0x1   :  { %27150 = sst [smem:[#allocation44_spill]] %s26979_s0 }
   0x2   :  { %27151 = sst [smem:[#allocation45_spill]] %s26980_s1 }
   0x3   :  { %27152 = sst [smem:[#allocation46_spill]] %s26981_s2 }
   0x4   :  { %19 = vsyncpa [#allocation5], 0 }
   0x5   :  { %21 = vsyncpa [#allocation5 + $0x1], 0  ;;  %s21440_s29 = smov 0   ;;  %s21442_s30 = smov 0  }
   0x6   :  { %s21444_s15 = smov 0   ;;  %s21446_s16 = smov 0  }
   0x7 LB: > { %s21461_s17 = sadd.s32 4294967295, %s21357_s16   ;;  %s16464_s18 = sadd.s32 4294967294, %s21357_s16   ;;  %s21357_s16 = sphi %s21446_s16, %s27436_s16   ;;  %s21353_s15 = sphi %s21444_s15, %s27435_s15   ;;  %s21349_s30 = sphi %s21442_s30, %s27434_s30   ;;  %s21345_s29 = sphi %s21440_s29, %s27433_s29  }
   0x8   : > { %s21465_s19 = sadd.s32 1, %s21357_s16   ;;  %s353_s20 = sadd.s32 1, %s21353_s15 }
   0x9   : > { %s350_s21 = ssub.s32 %s21357_s16, %s21465_s19  ;;  %p363_p0 = scmp.ne.s32.totalorder %s21353_s15, %s21349_s30 }
   0xa   : > { %p351_p1 = scmp.eq.s32.totalorder %s350_s21, 0  ;;  %p364_p2 = scmp.eq.s32.totalorder %s21461_s17, 1 }
   0xb   : > { %p369_p3 = scmp.ne.s32.totalorder %s21349_s30, %s21345_s29  ;;  %p370_p4 = scmp.eq.s32.totalorder %s16464_s18, 1 }
   0xc   : > { %s21476_s22 = scalar_select %p351_p1, %s21353_s15, %s353_s20  }
   0xd   : > { %p21478_p5 = por %p364_p2, %p363_p0  ;;  %p21482_p6 = por %p370_p4, %p369_p3 }
   0xe   : > { %p16467_p7 = scmp.ge.s32.totalorder %s21357_s16, 1  ;;  %p455_p8 = scmp.lt.s32.totalorder %s21357_s16, 3 }
  0x10   : > { %p456_p9 = pnand %p16467_p7, %p455_p8 }
  0x12   : > { %459 = sbr.rel (%p456_p9) target bundleno = 2787 (0xae3), region = 76 }
  0x19   : > { %v21491_v0 = vld [vmem:[%s26984_s5 + $0x20] sm:$0xff]   ;;  %p521_p10 = scmp.lt.s32.totalorder %s21461_s17, 1  ;;  %v21042_v1 = vld [vmem:[%s26984_s5 + $0x10] sm:$0xff]   ;;  %v21043_v2 = vld [vmem:[%s26984_s5 + $0x28] sm:$0xff]   ;;  %vm1705_vm0 = vcmask 1042432   ;;  %vm1706_vm1 = vcmask 1046532  }
  0x1a   : > { %18627 = vmatprep.subr.bf16.mxu0 %v21491_v0  ;;  %18555 = vmatprep.subr.bf16.mxu1 %v21042_v1  ;;  %v21044_v3 = vld [vmem:[%s26984_s5 + $0x18] sm:$0xff]   ;;  %vm731_vm2 = vsmask.f32 3328  ;;  %vm21509_vm3 = vmor %vm1705_vm0, %vm1706_vm1  ;;  %v27155_v4 = vmov 0  ;;  %vm732_vm4 = vsmask.f32 7440 }
  0x1b   : > { %s21502_s21 = scalar_select %p521_p10, %s21461_s17, 1  ;;  %18628 = vmatpush3.bf16.msra.mxu0 %v21491_v0  ;;  %18556 = vmatpush3.bf16.msra.mxu1 %v21042_v1  ;;  %v27156_v4 = vsel %vm21509_vm3, 4294967295, %v27155_v4  ;;  %vm1178_vm5 = vcmask 261120   ;;  %v21521_v5 = vld [vmem:[%s26984_s5 + $0x30] sm:$0xff]   ;;  %v21046_v36 = vld [vmem:[%s26984_s5 + $0x38] sm:$0xff]   ;;  %vm21564_vm6 = vmor %vm731_vm2, %vm732_vm4  ;;  %v27159_v38 = vmov 0 }
  0x1c   : > { %18629 = vmatprep.subr.bf16.mxu0 %v21043_v2  ;;  %27157 = vst [vmem:[#allocation7_spill] sm:$0xff] %v27156_v4  ;;  %s27158_s0 = sld [smem:[#allocation44_spill]]  ;;  %18557 = vmatprep.subr.bf16.mxu1 %v21044_v3  ;;  %v27160_v38 = vsel %vm21564_vm6, 4294967295, %v27159_v38  ;;  %v21576_v43 = vld [vmem:[%s26984_s5] sm:$0xff]   ;;  %s27203_s2 = sld [smem:[#allocation46_spill]]  ;;  %vm547_vm7 = vcmask 257024  }
  0x1d   : > { %s20995_s25 = smul.u32 216, %s21502_s21  ;;  %27161 = vst [vmem:[#allocation8_spill] sm:$0xff] %v27160_v38  ;;  %s27213_s1 = sld [smem:[#allocation45_spill]]  ;;  %vm550_vm8 = vcmask 253952   ;;  %vm5646_vm9 = vsmask.f32 256 }
  0x1e   : > { %s22124_s28 = smul.u32 72, %s21502_s21  ;;  %vm5971_vm10 = vsmask.f32 7938  ;;  %vm23058_vm12 = vmand %vm550_vm8, %vm5646_vm9  ;;  %vm21361_vm13 = vmmov 0   ;;  %vm5025_vm14 = vcmask 1043456   ;;  %vm5021_vm15 = vcmask 64512  }
  0x1f   : > { %18630 = vmatpush3.bf16.msra.mxu0 %v21043_v2  ;;  %18558 = vmatpush3.bf16.msra.mxu1 %v21044_v3  ;;  %vm23051_vm11 = vmand %vm547_vm7, %vm5971_vm10  ;;  %vm5647_vm0 = vsmask.f32 4368  ;;  %s518_s27 = sand.u32 1, %s21349_s30  }
  0x20   : > { %18663 = vmatprep.subr.bf16.mxu0 %v21521_v5  ;;  %18591 = vmatprep.subr.bf16.mxu1 %v21576_v43  ;;  %s22285_s18 = scalar_lea.vmem %s26983_s4, %s22124_s28  ;;  %vm23831_vm1 = vmor %vm5646_vm9, %vm5647_vm0  ;;  %s16468_s21 = sshll.u32 %s518_s27, 8 }
  0x22   : > { %s21516_s20 = scalar_lea.vmem %s27158_s0, %s20995_s25  ;;  %s22165_s25 = scalar_lea.vmem %s27203_s2, %s22124_s28 }
  0x23   : > { %v21524_v6 = vld [vmem:[%s21516_s20] sm:$0xf]  ;;  %v21527_v7 = vld [vmem:[%s21516_s20 + $0x4] sm:$0xf]  ;;  %v641_v8 = vld [vmem:[%s21516_s20 + $0x8] sm:$0x1]  ;;  %s22216_s26 = scalar_lea.vmem %s27213_s1, %s22124_s28  ;;  %s22515_s2 = scalar_lea.vmem %s26982_s3, %s22124_s28 }
  0x24   : > { %v16542_v9 = vrot.slane %v21524_v6, 9  ;;  %v1710_v10 = vrot.slane %v21527_v7, 5  ;;  %v1713_v11 = vrot.slane %v641_v8, 5  ;;  %v21533_v12 = vld [vmem:[%s21516_s20 + $0xc] sm:$0xf]  ;;  %v735_v13 = vshrl.u32 %v21524_v6, 16 }
  0x25   : > { %v21538_v14 = vld [vmem:[%s21516_s20 + $0x10] sm:$0xf]  ;;  %v644_v15 = vld [vmem:[%s21516_s20 + $0x14] sm:$0x1]  ;;  %v16543_v16 = vrot.slane %v21533_v12, 9  ;;  %v738_v17 = vshll.u32 %v21524_v6, 16 }
  0x26   : > { %v1711_v19 = vsel %vm21509_vm3, %v16542_v9, %v1710_v10  ;;  %v1712_v20 = vrot.slane %v1710_v10, 4  ;;  %v1717_v21 = vrot.slane %v21538_v14, 5  ;;  %v1720_v22 = vrot.slane %v644_v15, 5  ;;  %v21555_v35 = vld [vmem:[%s21516_s20 + $0x1c] sm:$0xf]  ;;  %v21609_v9 = vld [vmem:[%s26984_s5 + $0x40] sm:$0xff]  }
  0x27   : > { %v737_v23 = vrot.slane %v735_v13, 4  ;;  %v740_v24 = vrot.slane %v738_v17, 5  ;;  %v744_v25 = vshll.u32 %v21527_v7, 16  ;;  %v748_v26 = vshrl.u32 %v21527_v7, 16  ;;  %v21571_v42 = vld [vmem:[%s21516_s20 + $0x18] sm:$0xf] }
  0x28   : > { %v1714_v27 = vsel %vm21509_vm3, %v1712_v20, %v1713_v11  ;;  %v1718_v28 = vsel %vm21509_vm3, %v16543_v16, %v1717_v21  ;;  %v1719_v29 = vrot.slane %v1717_v21, 4  ;;  %v754_v30 = vshll.u32 %v641_v8, 16  ;;  %v21583_v48 = vld [vmem:[%s21516_s20 + $0x20] sm:$0x1]  ;;  %v21587_v53 = vld [vmem:[%s21516_s20 + $0x28] sm:$0xf] }
  0x29   : > { %v16558_v31 = vcombine.low %v1711_v19, %v1714_v27  ;;  %v741_v32 = vor.u32 %v740_v24, %v737_v23  ;;  %v746_v33 = vrot.slane %v744_v25, 5  ;;  %v750_v34 = vrot.slane %v748_v26, 4  ;;  %v21596_v58 = vld [vmem:[%s21516_s20 + $0x24] sm:$0xf]  ;;  %v650_v63 = vld [vmem:[%s21516_s20 + $0x2c] sm:$0x1] }
  0x2a   : > { %v1721_v37 = vsel %vm21509_vm3, %v1719_v29, %v1720_v22  ;;  %v756_v39 = vrot.slane %v754_v30, 5  ;;  %v759_v40 = vshrl.u32 %v21533_v12, 16  ;;  %v762_v41 = vshll.u32 %v21533_v12, 16  ;;  %v21867_v18 = vld [vmem:[%s21516_s20 + $0x8c] sm:$0x1]  ;;  %s21362_s28 = smov [#allocation4]  }
  0x2b   : > { %18631 = vmatprep.mubr.msk.bf16.mxu0 %vm1178_vm5, %v16558_v31  ;;  %v21579_v44 = vcombine.low %v1718_v28, %v1721_v37  ;;  %v742_v45 = vrot.slane %v741_v32, 4  ;;  %v751_v46 = vor.u32 %v750_v34, %v746_v33  ;;  %v768_v47 = vshll.u32 %v21538_v14, 16  ;;  %v21057_v37 = vld [vmem:[%s26984_s5 + $0x8] sm:$0xff]   ;;  %v3563_v4 = vld [vmem:[%s22216_s26] sm:$0xf] }
  0x2c   : > { %v761_v49 = vrot.slane %v759_v40, 4  ;;  %v764_v50 = vrot.slane %v762_v41, 5  ;;  %v772_v51 = vshrl.u32 %v21538_v14, 16  ;;  %v778_v52 = vshll.u32 %v644_v15, 16 }
  0x2d   : > { %27162 = vst [vmem:[#allocation9_spill] sm:$0xff] %v21579_v44  ;;  %18632 = vmatmul.mubr.msk.bf16.vlgmr.msra.gmra.mrb[0].mxu0 %vm1178_vm5, %v21579_v44  ;;  %v747_v54 = vsel %vm21564_vm6, %v742_v45, %v746_v33  ;;  %v752_v55 = vrot.slane %v751_v46, 4  ;;  %v770_v56 = vrot.slane %v768_v47, 5  ;;  %v16544_v57 = vrot.slane %v21571_v42, 9 }
  0x2e   : > { %v765_v59 = vor.u32 %v764_v50, %v761_v49  ;;  %v774_v60 = vrot.slane %v772_v51, 4  ;;  %v780_v61 = vrot.slane %v778_v52, 5  ;;  %v1724_v62 = vrot.slane %v21555_v35, 5  ;;  %18664 = vmatpush3.bf16.msra.mxu0 %v21521_v5 }
  0x2f   : > { %v757_v1 = vsel %vm21564_vm6, %v752_v55, %v756_v39  ;;  %v1727_v2 = vrot.slane %v21583_v48, 5  ;;  %v16545_v3 = vrot.slane %v21596_v58, 9  ;;  %v1731_v8 = vrot.slane %v21587_v53, 5  ;;  %18665 = vmatprep.subr.bf16.mxu0 %v21046_v36 }
  0x30   : > { %v16474_v10 = vcombine.low %v747_v54, %v757_v1  ;;  %v766_v11 = vrot.slane %v765_v59, 4  ;;  %v775_v13 = vor.u32 %v774_v60, %v770_v56  ;;  %v1725_v5 = vsel %vm21509_vm3, %v16544_v57, %v1724_v62 }
  0x31   : > { %v1726_v15 = vrot.slane %v1724_v62, 4  ;;  %v1732_v16 = vsel %vm21509_vm3, %v16545_v3, %v1731_v8  ;;  %v1733_v17 = vrot.slane %v1731_v8, 4  ;;  %v1734_v19 = vrot.slane %v650_v63, 5 }
  0x32   : > { %18559 = vmatprep.mubr.msk.bf16.mxu1 %vm1178_vm5, %v16474_v10  ;;  %v771_v20 = vsel %vm21564_vm6, %v766_v11, %v770_v56  ;;  %v776_v21 = vrot.slane %v775_v13, 4  ;;  %v783_v22 = vshrl.u32 %v21571_v42, 16  ;;  %v786_v23 = vshll.u32 %v21571_v42, 16  ;;  %18666 = vmatpush3.bf16.msra.mxu0 %v21046_v36  ;;  %v21674_v13 = vld [vmem:[%s21516_s20 + $0x3c] sm:$0xf] }
  0x33   : > { %v1728_v24 = vsel %vm21509_vm3, %v1726_v15, %v1727_v2  ;;  %v1735_v25 = vsel %vm21509_vm3, %v1733_v17, %v1734_v19  ;;  %v792_v26 = vshll.u32 %v21555_v35, 16  ;;  %v796_v27 = vshrl.u32 %v21555_v35, 16  ;;  %18699 = vmatprep.subr.bf16.mxu0 %v21609_v9  ;;  %v21685_v15 = vld [vmem:[%s21516_s20 + $0x44] sm:$0x1] }
  0x34   : > { %v781_v28 = vsel %vm21564_vm6, %v776_v21, %v780_v61  ;;  %v21629_v29 = vcombine.low %v1725_v5, %v1728_v24  ;;  %v21631_v30 = vcombine.low %v1732_v16, %v1735_v25  ;;  %v785_v31 = vrot.slane %v783_v22, 4  ;;  %v21654_v61 = vld [vmem:[%s21516_s20 + $0x34] sm:$0xf]  ;;  %v21067_v16 = vld [vmem:[%s26984_s5 + $0x48] sm:$0xff]  }
  0x35   : > { %v21633_v32 = vcombine.low %v771_v20, %v781_v28  ;;  %v788_v33 = vrot.slane %v786_v23, 5  ;;  %v794_v34 = vrot.slane %v792_v26, 5  ;;  %v798_v36 = vrot.slane %v796_v27, 4 }
  0x36   : > { %27163 = vst [vmem:[#allocation10_spill] sm:$0xff] %v21629_v29  ;;  %27164 = vst [vmem:[#allocation11_spill] sm:$0xff] %v21631_v30  ;;  %18635 = vmatprep.mubr.msk.bf16.mxu0 %vm1178_vm5, %v21629_v29  ;;  %v802_v39 = vshll.u32 %v21583_v48, 16  ;;  %v807_v40 = vshrl.u32 %v21596_v58, 16  ;;  %v810_v41 = vshll.u32 %v21596_v58, 16  ;;  %v816_v45 = vshll.u32 %v21587_v53, 16 }
  0x37   : > { %18560 = vmatmul.mubr.msk.bf16.vlgmr.msra.gmra.mrb[0].mxu1 %vm1178_vm5, %v21633_v32  ;;  %18636 = vmatmul.mubr.msk.bf16.gmra.mrb[4].mxu0 %vm1178_vm5, %v21631_v30  ;;  %v789_v46 = vor.u32 %v788_v33, %v785_v31  ;;  %v799_v47 = vor.u32 %v798_v36, %v794_v34  ;;  %v820_v49 = vshrl.u32 %v21587_v53, 16  ;;  %v826_v50 = vshll.u32 %v650_v63, 16  ;;  %v21650_v48 = vld [vmem:[%s21516_s20 + $0x30] sm:$0xf] }
  0x38   : > { %v804_v51 = vrot.slane %v802_v39, 5  ;;  %v809_v52 = vrot.slane %v807_v40, 4  ;;  %v812_v54 = vrot.slane %v810_v41, 5  ;;  %v818_v55 = vrot.slane %v816_v45, 5  ;;  %18592 = vmatpush3.bf16.msra.mxu1 %v21576_v43  ;;  %v21665_v43 = vld [vmem:[%s21516_s20 + $0x38] sm:$0x1] }
  0x39   : > { %v790_v56 = vrot.slane %v789_v46, 4  ;;  %v800_v57 = vrot.slane %v799_v47, 4  ;;  %v822_v59 = vrot.slane %v820_v49, 4  ;;  %v828_v60 = vrot.slane %v826_v50, 5  ;;  %18593 = vmatprep.subr.bf16.mxu1 %v21057_v37  ;;  %v21710_v45 = vld [vmem:[%s21516_s20 + $0x48] sm:$0xf] }
  0x3a   : > { %v813_v62 = vor.u32 %v812_v54, %v809_v52  ;;  %v21658_v63 = vcombine.low %v21533_v12, %v21538_v14  ;;  %v21662_v1 = vcombine.low %v21571_v42, %v21555_v35  ;;  %v831_v2 = vshrl.u32 %v21650_v48, 16  ;;  %v21677_v12 = vld [vmem:[%s21516_s20 + $0x40] sm:$0xf]  ;;  %v21715_v46 = vld [vmem:[%s26984_s5 + $0x50] sm:$0xff]   ;;  %v21720_v49 = vld [vmem:[%s21516_s20 + $0x4c] sm:$0xf] }
  0x3b   : > { %v795_v3 = vsel %vm21564_vm6, %v790_v56, %v794_v34  ;;  %v805_v8 = vsel %vm21564_vm6, %v800_v57, %v804_v51  ;;  %v823_v10 = vor.u32 %v822_v59, %v818_v55  ;;  %v834_v11 = vshll.u32 %v21650_v48, 16  ;;  %v21733_v59 = vld [vmem:[%s21516_s20 + $0x50] sm:$0x1] }
  0x3c   : > { %v21679_v14 = vcombine.low %v795_v3, %v805_v8  ;;  %v814_v35 = vrot.slane %v813_v62, 4  ;;  %18667 = vmatprep.mubr.msk.bf16.mxu0 %vm1178_vm5, %v21658_v63  ;;  %v833_v42 = vrot.slane %v831_v2, 4  ;;  %v840_v5 = vshll.u32 %v21654_v61, 16  ;;  %18594 = vmatpush3.bf16.msra.mxu1 %v21057_v37 }
  0x3d   : > { %v824_v17 = vrot.slane %v823_v10, 4  ;;  %v836_v19 = vrot.slane %v834_v11, 5  ;;  %v844_v20 = vshrl.u32 %v21654_v61, 16  ;;  %v850_v21 = vshll.u32 %v21665_v43, 16  ;;  %20031 = vmatprep.subr.bf16.mxu1 %v21491_v0 }
  0x3e   : > { %18563 = vmatprep.mubr.msk.bf16.mxu1 %vm1178_vm5, %v21679_v14  ;;  %v819_v22 = vsel %vm21564_vm6, %v814_v35, %v818_v55  ;;  %v842_v23 = vrot.slane %v840_v5, 5  ;;  %v855_v24 = vshrl.u32 %v21674_v13, 16  ;;  %v858_v25 = vshll.u32 %v21674_v13, 16 }
  0x3f   : > { %v829_v26 = vsel %vm21564_vm6, %v824_v17, %v828_v60  ;;  %18668 = vmatmul.mubr.msk.bf16.vlgmr.msra.gmra.mrb[0].mxu0 %vm1178_vm5, %v21662_v1  ;;  %v837_v27 = vor.u32 %v836_v19, %v833_v42  ;;  %v846_v0 = vrot.slane %v844_v20, 4  ;;  %v852_v28 = vrot.slane %v850_v21, 5  ;;  %v21758_v20 = vld [vmem:[%s21516_s20 + $0x5c] sm:$0x1] }
  0x40   : > { %v21703_v31 = vcombine.low %v819_v22, %v829_v26  ;;  %v857_v33 = vrot.slane %v855_v24, 4  ;;  %v860_v34 = vrot.slane %v858_v25, 5  ;;  %v864_v36 = vshll.u32 %v21677_v12, 16  ;;  %18700 = vmatpush3.bf16.msra.mxu0 %v21609_v9  ;;  %v21766_v25 = vld [vmem:[%s21516_s20 + $0x60] sm:$0xf] }
  0x41   : > { %v838_v37 = vrot.slane %v837_v27, 4  ;;  %v847_v39 = vor.u32 %v846_v0, %v842_v23  ;;  %v868_v40 = vshrl.u32 %v21677_v12, 16  ;;  %v874_v41 = vshll.u32 %v21685_v15, 16  ;;  %18701 = vmatprep.subr.bf16.mxu0 %v21067_v16 }
  0x42   : > { %18564 = vmatmul.mubr.msk.bf16.gmra.mrb[4].mxu1 %vm1178_vm5, %v21703_v31  ;;  %v861_v47 = vor.u32 %v860_v34, %v857_v33  ;;  %v866_v9 = vrot.slane %v864_v36, 5  ;;  %v21726_v56 = vcombine.low %v21596_v58, %v21587_v53  ;;  %v21730_v57 = vcombine.low %v21650_v48, %v21654_v61  ;;  %v21741_v53 = vld [vmem:[%s21516_s20 + $0x54] sm:$0xf]  ;;  %v21744_v58 = vld [vmem:[%s21516_s20 + $0x58] sm:$0xf] }
  0x43   : > { %v843_v50 = vsel %vm21564_vm6, %v838_v37, %v842_v23  ;;  %v848_v51 = vrot.slane %v847_v39, 4  ;;  %v870_v52 = vrot.slane %v868_v40, 4  ;;  %v876_v54 = vrot.slane %v874_v41, 5  ;;  %v21772_v33 = vld [vmem:[%s21516_s20 + $0x64] sm:$0xf] }
  0x44   : > { %v862_v55 = vrot.slane %v861_v47, 4  ;;  %27165 = vst [vmem:[#allocation12_spill] sm:$0xff] %v21726_v56  ;;  %27166 = vst [vmem:[#allocation13_spill] sm:$0xff] %v21730_v57  ;;  %v879_v60 = vshrl.u32 %v21710_v45, 16  ;;  %18702 = vmatpush3.bf16.msra.mxu0 %v21067_v16  ;;  %v882_v3 = vshll.u32 %v21710_v45, 16  ;;  %v888_v8 = vshll.u32 %v21720_v49, 16  ;;  %18671 = vmatprep.mubr.msk.bf16.mxu0 %vm1178_vm5, %v21726_v56 }
  0x45   : > { %v853_v62 = vsel %vm21564_vm6, %v848_v51, %v852_v28  ;;  %v871_v2 = vor.u32 %v870_v52, %v866_v9  ;;  %18735 = vmatprep.subr.bf16.mxu0 %v21715_v46  ;;  %v892_v42 = vshrl.u32 %v21720_v49, 16  ;;  %v898_v19 = vshll.u32 %v21733_v59, 16 }
  0x46   : > { %v21747_v10 = vcombine.low %v843_v50, %v853_v62  ;;  %v867_v11 = vsel %vm21564_vm6, %v862_v55, %v866_v9  ;;  %v881_v35 = vrot.slane %v879_v60, 4  ;;  %v884_v16 = vrot.slane %v882_v3, 5  ;;  %v21778_v50 = vld [vmem:[%s21516_s20 + $0x68] sm:$0x1]  ;;  %v21791_v60 = vld [vmem:[%s21516_s20 + $0x6c] sm:$0xf] }
  0x47   : > { %v872_v5 = vrot.slane %v871_v2, 4  ;;  %18672 = vmatmul.mubr.msk.bf16.gmra.mrb[4].mxu0 %vm1178_vm5, %v21730_v57  ;;  %v890_v17 = vrot.slane %v888_v8, 5  ;;  %v894_v21 = vrot.slane %v892_v42, 4  ;;  %v903_v22 = vshrl.u32 %v21741_v53, 16 }
  0x48   : > { %27167 = vst [vmem:[#allocation14_spill] sm:$0xff] %v21747_v10  ;;  %18567 = vmatprep.mubr.msk.bf16.mxu1 %vm1178_vm5, %v21747_v10  ;;  %v906_v23 = vshll.u32 %v21741_v53, 16  ;;  %v912_v24 = vshll.u32 %v21744_v58, 16  ;;  %v885_v27 = vor.u32 %v884_v16, %v881_v35  ;;  %v900_v0 = vrot.slane %v898_v19, 5 }
  0x49   : > { %v877_v26 = vsel %vm21564_vm6, %v872_v5, %v876_v54  ;;  %v916_v28 = vshrl.u32 %v21744_v58, 16  ;;  %v895_v36 = vor.u32 %v894_v21, %v890_v17  ;;  %v905_v37 = vrot.slane %v903_v22, 4 }
  0x4a   : > { %v21774_v34 = vcombine.low %v867_v11, %v877_v26  ;;  %v908_v39 = vrot.slane %v906_v23, 5  ;;  %v886_v40 = vrot.slane %v885_v27, 4  ;;  %v914_v41 = vrot.slane %v912_v24, 5  ;;  %v21797_v11 = vld [vmem:[%s21516_s20 + $0x70] sm:$0xf] }
  0x4b   : > { %v918_v47 = vrot.slane %v916_v28, 4  ;;  %v922_v9 = vshll.u32 %v21758_v20, 16  ;;  %v896_v51 = vrot.slane %v895_v36, 4  ;;  %v21784_v54 = vcombine.low %v21674_v13, %v21677_v12  ;;  %v21811_v23 = vld [vmem:[%s21516_s20 + $0x74] sm:$0x1] }
  0x4c   : > { %27168 = vst [vmem:[#allocation15_spill] sm:$0xff] %v21774_v34  ;;  %18568 = vmatmul.mubr.msk.bf16.gmra.mrb[8].mxu1 %vm1178_vm5, %v21774_v34  ;;  %v909_v52 = vor.u32 %v908_v39, %v905_v37  ;;  %v21788_v55 = vcombine.low %v21710_v45, %v21720_v49  ;;  %v891_v62 = vsel %vm21564_vm6, %v886_v40, %v890_v17  ;;  %v927_v8 = vshrl.u32 %v21766_v25, 16  ;;  %v21823_v40 = vld [vmem:[%s21516_s20 + $0x78] sm:$0xf] }
  0x4d   : > { %27169 = vst [vmem:[#allocation16_spill] sm:$0xff] %v21784_v54  ;;  %v919_v2 = vor.u32 %v918_v47, %v914_v41  ;;  %v924_v3 = vrot.slane %v922_v9, 5  ;;  %v901_v35 = vsel %vm21564_vm6, %v896_v51, %v900_v0  ;;  %18675 = vmatprep.mubr.msk.bf16.mxu0 %vm1178_vm5, %v21784_v54  ;;  %v930_v5 = vshll.u32 %v21766_v25, 16 }
  0x4e   : > { %27170 = vst [vmem:[#allocation17_spill] sm:$0xff] %v21788_v55  ;;  %v910_v42 = vrot.slane %v909_v52, 4  ;;  %v936_v16 = vshll.u32 %v21772_v33, 16  ;;  %v21805_v19 = vcombine.low %v891_v62, %v901_v35  ;;  %v929_v21 = vrot.slane %v927_v8, 4  ;;  %v21829_v52 = vld [vmem:[%s21516_s20 + $0x7c] sm:$0xf] }
  0x4f   : > { %v920_v17 = vrot.slane %v919_v2, 4  ;;  %18676 = vmatmul.mubr.msk.bf16.gmra.mrb[8].mxu0 %vm1178_vm5, %v21788_v55  ;;  %v940_v22 = vshrl.u32 %v21772_v33, 16  ;;  %v932_v26 = vrot.slane %v930_v5, 5  ;;  %v946_v0 = vshll.u32 %v21778_v50, 16 }
  0x50   : > { %27171 = vst [vmem:[#allocation18_spill] sm:$0xff] %v21805_v19  ;;  %v915_v24 = vsel %vm21564_vm6, %v910_v42, %v914_v41  ;;  %v938_v27 = vrot.slane %v936_v16, 5  ;;  %18571 = vmatprep.mubr.msk.bf16.mxu1 %vm1178_vm5, %v21805_v19  ;;  %v951_v37 = vshrl.u32 %v21791_v60, 16  ;;  %v954_v39 = vshll.u32 %v21791_v60, 16  ;;  %v21890_v19 = vld [vmem:[%s21516_s20 + $0x98] sm:$0x1] }
  0x51   : > { %v925_v28 = vsel %vm21564_vm6, %v920_v17, %v924_v3  ;;  %v942_v36 = vrot.slane %v940_v22, 4  ;;  %v933_v41 = vor.u32 %v932_v26, %v929_v21  ;;  %v948_v9 = vrot.slane %v946_v0, 5  ;;  %v21840_v17 = vld [vmem:[%s21516_s20 + $0x80] sm:$0x1]  ;;  %v21847_v0 = vld [vmem:[%s21516_s20 + $0x84] sm:$0xf] }
  0x52   : > { %v21825_v47 = vcombine.low %v915_v24, %v925_v28  ;;  %v960_v51 = vshll.u32 %v21797_v11, 16  ;;  %v953_v2 = vrot.slane %v951_v37, 4  ;;  %v956_v3 = vrot.slane %v954_v39, 5  ;;  %27178 = vst [vmem:[#allocation25_spill] sm:$0xff] %v21890_v19 }
  0x53   : > { %v943_v62 = vor.u32 %v942_v36, %v938_v27  ;;  %v964_v8 = vshrl.u32 %v21797_v11, 16  ;;  %v934_v35 = vrot.slane %v933_v41, 4  ;;  %v970_v5 = vshll.u32 %v21811_v23, 16  ;;  %v21856_v41 = vld [vmem:[%s21516_s20 + $0x88] sm:$0xf] }
  0x54   : > { %27172 = vst [vmem:[#allocation19_spill] sm:$0xff] %v21825_v47  ;;  %18572 = vmatmul.mubr.msk.bf16.gmra.mrb[12].mxu1 %vm1178_vm5, %v21825_v47  ;;  %v962_v42 = vrot.slane %v960_v51, 5  ;;  %v21837_v16 = vcombine.low %v21741_v53, %v21744_v58  ;;  %v957_v22 = vor.u32 %v956_v3, %v953_v2  ;;  %v21844_v26 = vcombine.low %v21766_v25, %v21772_v33 }
  0x55   : > { %v944_v21 = vrot.slane %v943_v62, 4  ;;  %v966_v24 = vrot.slane %v964_v8, 4  ;;  %v939_v28 = vsel %vm21564_vm6, %v934_v35, %v938_v27  ;;  %v972_v36 = vrot.slane %v970_v5, 5 }
  0x56   : > { %27173 = vst [vmem:[#allocation20_spill] sm:$0xff] %v21837_v16  ;;  %27174 = vst [vmem:[#allocation21_spill] sm:$0xff] %v21844_v26  ;;  %18679 = vmatprep.mubr.msk.bf16.mxu0 %vm1178_vm5, %v21837_v16  ;;  %v975_v37 = vshrl.u32 %v21823_v40, 16  ;;  %v978_v39 = vshll.u32 %v21823_v40, 16  ;;  %v958_v62 = vrot.slane %v957_v22, 4  ;;  %v984_v27 = vshll.u32 %v21829_v52, 16 }
  0x57   : > { %v949_v51 = vsel %vm21564_vm6, %v944_v21, %v948_v9  ;;  %v967_v2 = vor.u32 %v966_v24, %v962_v42  ;;  %18680 = vmatmul.mubr.msk.bf16.gmra.mrb[12].mxu0 %vm1178_vm5, %v21844_v26  ;;  %v988_v5 = vshrl.u32 %v21829_v52, 16  ;;  %v994_v24 = vshll.u32 %v21840_v17, 16 }
  0x58   : > { %v21863_v3 = vcombine.low %v939_v28, %v949_v51  ;;  %v977_v8 = vrot.slane %v975_v37, 4  ;;  %v980_v35 = vrot.slane %v978_v39, 5  ;;  %v963_v9 = vsel %vm21564_vm6, %v958_v62, %v962_v42  ;;  %v21877_v51 = vld [vmem:[%s21516_s20 + $0x90] sm:$0xf] }
  0x59   : > { %v968_v21 = vrot.slane %v967_v2, 4  ;;  %v986_v22 = vrot.slane %v984_v27, 5  ;;  %v990_v28 = vrot.slane %v988_v5, 4  ;;  %v999_v37 = vshrl.u32 %v21847_v0, 16  ;;  %v21884_v27 = vld [vmem:[%s21516_s20 + $0x94] sm:$0xf] }
  0x5a   : > { %27175 = vst [vmem:[#allocation22_spill] sm:$0xff] %v21863_v3  ;;  %18575 = vmatprep.mubr.msk.bf16.mxu1 %vm1178_vm5, %v21863_v3  ;;  %v981_v30 = vor.u32 %v980_v35, %v977_v8  ;;  %v1002_v39 = vshll.u32 %v21847_v0, 16  ;;  %v996_v42 = vrot.slane %v994_v24, 5  ;;  %v1008_v62 = vshll.u32 %v21856_v41, 16  ;;  %27176 = vst [vmem:[#allocation23_spill] sm:$0xff] %v21884_v27 }
  0x5b   : > { %v973_v29 = vsel %vm21564_vm6, %v968_v21, %v972_v36  ;;  %v1012_v2 = vshrl.u32 %v21856_v41, 16  ;;  %v991_v5 = vor.u32 %v990_v28, %v986_v22  ;;  %v1001_v44 = vrot.slane %v999_v37, 4 }
  0x5c   : > { %v21886_v8 = vcombine.low %v963_v9, %v973_v29  ;;  %v982_v35 = vrot.slane %v981_v30, 4  ;;  %v1004_v3 = vrot.slane %v1002_v39, 5  ;;  %v1010_v26 = vrot.slane %v1008_v62, 5  ;;  %v21905_v9 = vld [vmem:[%s21516_s20 + $0x9c] sm:$0xf] }
  0x5d   : > { %v1014_v16 = vrot.slane %v1012_v2, 4  ;;  %v1018_v47 = vshll.u32 %v21867_v18, 16  ;;  %v992_v21 = vrot.slane %v991_v5, 4  ;;  %v21898_v29 = vcombine.low %v21791_v60, %v21797_v11  ;;  %v21916_v5 = vld [vmem:[%s21516_s20 + $0xa0] sm:$0xf] }
  0x5e   : > { %27177 = vst [vmem:[#allocation24_spill] sm:$0xff] %v21886_v8  ;;  %18576 = vmatmul.mubr.msk.bf16.gmra.mrb[16].mxu1 %vm1178_vm5, %v21886_v8  ;;  %v987_v36 = vsel %vm21564_vm6, %v982_v35, %v986_v22  ;;  %v21902_v30 = vcombine.low %v21823_v40, %v21829_v52  ;;  %v1005_v24 = vor.u32 %v1004_v3, %v1001_v44  ;;  %v1023_v39 = vshrl.u32 %v21877_v51, 16 }
  0x5f   : > { %27179 = vst [vmem:[#allocation26_spill] sm:$0xff] %v21898_v29  ;;  %v1015_v28 = vor.u32 %v1014_v16, %v1010_v26  ;;  %v1020_v37 = vrot.slane %v1018_v47, 5  ;;  %v997_v22 = vsel %vm21564_vm6, %v992_v21, %v996_v42  ;;  %18683 = vmatprep.mubr.msk.bf16.mxu0 %vm1178_vm5, %v21898_v29  ;;  %v1026_v62 = vshll.u32 %v21877_v51, 16  ;;  %v21923_v42 = vld [vmem:[%s21516_s20 + $0xa4] sm:$0x1] }
  0x60   : > { %27180 = vst [vmem:[#allocation27_spill] sm:$0xff] %v21902_v30  ;;  %v1032_v2 = vshll.u32 %v21884_v27, 16  ;;  %v1036_v35 = vshrl.u32 %v21884_v27, 16  ;;  %v21918_v44 = vcombine.low %v987_v36, %v997_v22  ;;  %v1006_v47 = vrot.slane %v1005_v24, 4  ;;  %18684 = vmatmul.mubr.msk.bf16.gmra.mrb[16].mxu0 %vm1178_vm5, %v21902_v30  ;;  %27182 = vst [vmem:[#allocation29_spill] sm:$0xff] %v21923_v42 }
  0x61   : > { %v1016_v16 = vrot.slane %v1015_v28, 4  ;;  %v1025_v3 = vrot.slane %v1023_v39, 4  ;;  %v1028_v21 = vrot.slane %v1026_v62, 5  ;;  %v1042_v55 = vshll.u32 %v21890_v19, 16  ;;  %v21935_v22 = vld [vmem:[%s21516_s20 + $0xa8] sm:$0xf] }
  0x62   : > { %27181 = vst [vmem:[#allocation28_spill] sm:$0xff] %v21918_v44  ;;  %v1034_v29 = vrot.slane %v1032_v2, 5  ;;  %v1038_v8 = vrot.slane %v1036_v35, 4  ;;  %18579 = vmatprep.mubr.msk.bf16.mxu1 %vm1178_vm5, %v21918_v44  ;;  %v1011_v36 = vsel %vm21564_vm6, %v1006_v47, %v1010_v26  ;;  %v1047_v28 = vshrl.u32 %v21905_v9, 16  ;;  %v21942_v47 = vld [vmem:[%s21516_s20 + $0xac] sm:$0xf] }
  0x63   : > { %v1021_v24 = vsel %vm21564_vm6, %v1016_v16, %v1020_v37  ;;  %v1050_v39 = vshll.u32 %v21905_v9, 16  ;;  %v1029_v2 = vor.u32 %v1028_v21, %v1025_v3  ;;  %v1044_v30 = vrot.slane %v1042_v55, 5  ;;  %v21945_v37 = vld [vmem:[%s21516_s20 + $0xb0] sm:$0x1] }
  0x64   : > { %v21937_v62 = vcombine.low %v1011_v36, %v1021_v24  ;;  %v1039_v35 = vor.u32 %v1038_v8, %v1034_v29  ;;  %v1049_v54 = vrot.slane %v1047_v28, 4  ;;  %v1056_v34 = vshll.u32 %v21916_v5, 16  ;;  %27184 = vst [vmem:[#allocation31_spill] sm:$0xff] %v21945_v37  ;;  %v21955_v8 = vld [vmem:[%s21516_s20 + $0xb4] sm:$0xf] }
  0x65   : > { %v1052_v44 = vrot.slane %v1050_v39, 5  ;;  %v1060_v26 = vshrl.u32 %v21916_v5, 16  ;;  %v1030_v16 = vrot.slane %v1029_v2, 4  ;;  %v1066_v36 = vshll.u32 %v21923_v42, 16 }
  0x66   : > { %27183 = vst [vmem:[#allocation30_spill] sm:$0xff] %v21937_v62  ;;  %18580 = vmatmul.mubr.msk.bf16.gmra.mrb[20].mxu1 %vm1178_vm5, %v21937_v62  ;;  %v1040_v10 = vrot.slane %v1039_v35, 4  ;;  %v21952_v55 = vcombine.low %v21847_v0, %v21856_v41  ;;  %v1058_v21 = vrot.slane %v1056_v34, 5  ;;  %v21959_v28 = vcombine.low %v21877_v51, %v21884_v27 }
  0x67   : > { %v1053_v3 = vor.u32 %v1052_v44, %v1049_v54  ;;  %v1062_v24 = vrot.slane %v1060_v26, 4  ;;  %v1035_v39 = vsel %vm21564_vm6, %v1030_v16, %v1034_v29  ;;  %v1068_v35 = vrot.slane %v1066_v36, 5  ;;  %v21974_v29 = vld [vmem:[%s21516_s20 + $0xb8] sm:$0xf] }
  0x68   : > { %27185 = vst [vmem:[#allocation32_spill] sm:$0xff] %v21952_v55  ;;  %27186 = vst [vmem:[#allocation33_spill] sm:$0xff] %v21959_v28  ;;  %v1045_v2 = vsel %vm21564_vm6, %v1040_v10, %v1044_v30  ;;  %18687 = vmatprep.mubr.msk.bf16.mxu0 %vm1178_vm5, %v21952_v55  ;;  %v1071_v62 = vshrl.u32 %v21935_v22, 16  ;;  %v1074_v44 = vshll.u32 %v21935_v22, 16  ;;  %v1080_v10 = vshll.u32 %v21942_v47, 16 }
  0x69   : > { %v21968_v57 = vcombine.low %v1035_v39, %v1045_v2  ;;  %v1054_v34 = vrot.slane %v1053_v3, 4  ;;  %v1063_v54 = vor.u32 %v1062_v24, %v1058_v21  ;;  %18688 = vmatmul.mubr.msk.bf16.gmra.mrb[20].mxu0 %vm1178_vm5, %v21959_v28  ;;  %v1084_v30 = vshrl.u32 %v21942_v47, 16 }
  0x6a   : > { %v1073_v26 = vrot.slane %v1071_v62, 4  ;;  %v1090_v16 = vshll.u32 %v21945_v37, 16  ;;  %v1076_v24 = vrot.slane %v1074_v44, 5  ;;  %v1095_v39 = vshrl.u32 %v21955_v8, 16  ;;  %v21985_v62 = vld [vmem:[%s21516_s20 + $0xbc] sm:$0x1] }
  0x6b   : > { %27187 = vst [vmem:[#allocation34_spill] sm:$0xff] %v21968_v57  ;;  %18583 = vmatprep.mubr.msk.bf16.mxu1 %vm1178_vm5, %v21968_v57  ;;  %v1059_v36 = vsel %vm21564_vm6, %v1054_v34, %v1058_v21  ;;  %v1064_v3 = vrot.slane %v1063_v54, 4  ;;  %v1082_v2 = vrot.slane %v1080_v10, 5  ;;  %v1086_v28 = vrot.slane %v1084_v30, 4 }
  0x6c   : > { %v1092_v55 = vrot.slane %v1090_v16, 5  ;;  %v1098_v56 = vshll.u32 %v21955_v8, 16  ;;  %v1077_v42 = vor.u32 %v1076_v24, %v1073_v26  ;;  %v1097_v19 = vrot.slane %v1095_v39, 4 }
  0x6d   : > { %v1069_v37 = vsel %vm21564_vm6, %v1064_v3, %v1068_v35  ;;  %v1104_v57 = vshll.u32 %v21974_v29, 16  ;;  %v1087_v21 = vor.u32 %v1086_v28, %v1082_v2  ;;  %v1108_v54 = vshrl.u32 %v21974_v29, 16 }
  0x6e   : > { %v21991_v27 = vcombine.low %v1059_v36, %v1069_v37  ;;  %v1100_v34 = vrot.slane %v1098_v56, 5  ;;  %v1078_v44 = vrot.slane %v1077_v42, 4  ;;  %v1114_v30 = vshll.u32 %v21985_v62, 16 }
  0x6f   : > { %v1106_v10 = vrot.slane %v1104_v57, 5  ;;  %v21997_v16 = vcombine.low %v21905_v9, %v21916_v5  ;;  %v1088_v35 = vrot.slane %v1087_v21, 4  ;;  %v1110_v37 = vrot.slane %v1108_v54, 4  ;;  %v22027_v21 = vld [vmem:[%s21516_s20 + $0xc4] sm:$0xf] }
  0x70   : > { %27188 = vst [vmem:[#allocation35_spill] sm:$0xff] %v21991_v27  ;;  %18584 = vmatmul.mubr.msk.bf16.gmra.mrb[24].mxu1 %vm1178_vm5, %v21991_v27  ;;  %v1101_v26 = vor.u32 %v1100_v34, %v1097_v19  ;;  %v22003_v56 = vcombine.low %v21935_v22, %v21942_v47  ;;  %v1745_v57 = vrot.slane %v21677_v12, 5  ;;  %v1083_v42 = vsel %vm21564_vm6, %v1078_v44, %v1082_v2  ;;  %v22019_v12 = vld [vmem:[%s21516_s20 + $0xc0] sm:$0xf] }
  0x71   : > { %18691 = vmatprep.mubr.msk.bf16.mxu0 %vm1178_vm5, %v21997_v16  ;;  %v22012_v28 = vcombine.low %v21955_v8, %v21974_v29  ;;  %v1093_v19 = vsel %vm21564_vm6, %v1088_v35, %v1092_v55  ;;  %v1111_v3 = vor.u32 %v1110_v37, %v1106_v10  ;;  %v1116_v24 = vrot.slane %v1114_v30, 5 }
  0x72   : > { %v1102_v36 = vrot.slane %v1101_v26, 4  ;;  %18692 = vmatmul.mubr.msk.bf16.gmra.mrb[24].mxu0 %vm1178_vm5, %v22003_v56  ;;  %v1748_v39 = vrot.slane %v21685_v15, 5  ;;  %v22022_v2 = vcombine.low %v1083_v42, %v1093_v19  ;;  %v16546_v34 = vrot.slane %v21650_v48, 9 }
  0x73   : > { %18695 = vmatprep.mubr.msk.bf16.mxu0 %vm1178_vm5, %v22012_v28  ;;  %v1112_v54 = vrot.slane %v1111_v3, 4  ;;  %v1738_v44 = vrot.slane %v21654_v61, 5  ;;  %v1741_v30 = vrot.slane %v21665_v43, 5  ;;  %v16547_v15 = vrot.slane %v21674_v13, 9 }
  0x74   : > { %27189 = vst [vmem:[#allocation36_spill] sm:$0xff] %v22022_v2  ;;  %v1107_v55 = vsel %vm21564_vm6, %v1102_v36, %v1106_v10  ;;  %18587 = vmatprep.mubr.msk.bf16.mxu1 %vm1178_vm5, %v22022_v2  ;;  %v1747_v35 = vrot.slane %v1745_v57, 4  ;;  %v22041_v48 = vcombine.low %v22019_v12, %v22027_v21  ;;  %v16548_v3 = vrot.slane %v21710_v45, 9 }
  0x75   : > { %v1117_v26 = vsel %vm21564_vm6, %v1112_v54, %v1116_v24  ;;  %v1739_v10 = vsel %vm21509_vm3, %v16546_v34, %v1738_v44  ;;  %v1740_v37 = vrot.slane %v1738_v44, 4  ;;  %v1746_v43 = vsel %vm21509_vm3, %v16547_v15, %v1745_v57 }
  0x76   : > { %v22045_v61 = vcombine.low %v1107_v55, %v1117_v26  ;;  %v1749_v13 = vsel %vm21509_vm3, %v1747_v35, %v1748_v39  ;;  %v27193_v24 = vcombine.low %v21524_v6, %v21527_v7  ;;  %v1752_v57 = vrot.slane %v21720_v49, 5 }
  0x77   : > { %v1742_v42 = vsel %vm21509_vm3, %v1740_v37, %v1741_v30  ;;  %v22053_v19 = vcombine.low %v1746_v43, %v1749_v13  ;;  %v1755_v39 = vrot.slane %v21733_v59, 5  ;;  %v16549_v34 = vrot.slane %v21741_v53, 9 }
  0x78   : > { %27190 = vst [vmem:[#allocation37_spill] sm:$0xff] %v22045_v61  ;;  %18588 = vmatmul.mubr.msk.bf16.gmra.mrb[28].mxu1 %vm1178_vm5, %v22045_v61  ;;  %v22057_v36 = vcombine.low %v1739_v10, %v1742_v42  ;;  %v1759_v55 = vrot.slane %v21744_v58, 5  ;;  %v1762_v45 = vrot.slane %v21758_v20, 5  ;;  %v1753_v6 = vsel %vm21509_vm3, %v16548_v3, %v1752_v57 }
  0x79   : > { %27191 = vst [vmem:[#allocation38_spill] sm:$0xff] %v22053_v19  ;;  %18595 = vmatprep.mubr.msk.bf16.mxu1 %vm1178_vm5, %v27193_v24  ;;  %v1754_v7 = vrot.slane %v1752_v57, 4  ;;  %v16550_v54 = vrot.slane %v21766_v25, 9  ;;  %v1766_v59 = vrot.slane %v21772_v33, 5  ;;  %v1769_v53 = vrot.slane %v21778_v50, 5 }
  0x7a   : > { %27192 = vst [vmem:[#allocation39_spill] sm:$0xff] %v22057_v36  ;;  %18696 = vmatmul.mubr.msk.bf16.gmra.mrb[28].mxu0 %vm1178_vm5, %v22041_v48  ;;  %v1760_v49 = vsel %vm21509_vm3, %v16549_v34, %v1759_v55  ;;  %v1761_v44 = vrot.slane %v1759_v55, 4  ;;  %v16551_v58 = vrot.slane %v21791_v60, 9  ;;  %v1773_v20 = vrot.slane %v21797_v11, 5  ;;  %v21069_v60 = vld [vmem:[%s26984_s5 + $0x58] sm:$0xff]  }
  0x7b   : > { %18703 = vmatprep.mubr.msk.bf16.mxu0 %vm1178_vm5, %v21633_v32  ;;  %v1756_v32 = vsel %vm21509_vm3, %v1754_v7, %v1755_v39  ;;  %v1767_v15 = vsel %vm21509_vm3, %v16550_v54, %v1766_v59  ;;  %v1768_v33 = vrot.slane %v1766_v59, 4  ;;  %v1776_v11 = vrot.slane %v21811_v23, 5 }
  0x7c   : > { %v22084_v30 = vcombine.low %v1753_v6, %v1756_v32  ;;  %v1763_v25 = vsel %vm21509_vm3, %v1761_v44, %v1762_v45  ;;  %v1774_v50 = vsel %vm21509_vm3, %v16551_v58, %v1773_v20  ;;  %v1775_v26 = vrot.slane %v1773_v20, 4  ;;  %v27198_v45 = vld [vmem:[#allocation23_spill] sm:$0xff]  ;;  %v27199_v6 = vld [vmem:[#allocation25_spill] sm:$0xff] }
  0x7d   : > { %v22090_v35 = vcombine.low %v1760_v49, %v1763_v25  ;;  %v16552_v10 = vrot.slane %v21823_v40, 9  ;;  %v1780_v37 = vrot.slane %v21829_v52, 5  ;;  %v1783_v43 = vrot.slane %v21840_v17, 5  ;;  %v21246_v52 = vld [vmem:[%s26984_s5 + $0x20] sm:$0xff]  }
  0x7e   : > { %27194 = vst [vmem:[#allocation40_spill] sm:$0xff] %v22084_v30  ;;  %v16553_v13 = vrot.slane %v21847_v0, 9  ;;  %v1787_v23 = vrot.slane %v21856_v41, 5  ;;  %v1790_v40 = vrot.slane %v21867_v18, 5  ;;  %v1777_v42 = vsel %vm21509_vm3, %v1775_v26, %v1776_v11  ;;  %v21247_v18 = vld [vmem:[%s26984_s5 + $0x28] sm:$0xff]   ;;  %v22133_v41 = vld [vmem:[%s26987_s8 + $0x10] sm:$0xff]  }
  0x7f   : > { %27195 = vst [vmem:[#allocation41_spill] sm:$0xff] %v22090_v35  ;;  %v1781_v0 = vsel %vm21509_vm3, %v16552_v10, %v1780_v37  ;;  %v1782_v3 = vrot.slane %v1780_v37, 4  ;;  %v22135_v24 = vcombine.low %v1774_v50, %v1777_v42  ;;  %v16554_v34 = vrot.slane %v21877_v51, 9  ;;  %v22148_v49 = vld [vmem:[%s26984_s5 + $0x60] sm:$0xff]   ;;  %v27204_v50 = vld [vmem:[#allocation31_spill] sm:$0xff]  ;;  %v27205_v11 = vld [vmem:[#allocation12_spill] sm:$0xff] }
  0x80   : > { %18596 = vmatmul.mubr.msk.bf16.vlgmr.msra.gmra.mrb[0].mxu1 %vm1178_vm5, %v21658_v63  ;;  %v1770_v63 = vsel %vm21509_vm3, %v1768_v33, %v1769_v53  ;;  %v1788_v57 = vsel %vm21509_vm3, %v16553_v13, %v1787_v23  ;;  %v1789_v39 = vrot.slane %v1787_v23, 4  ;;  %v1797_v7 = vrot.slane %v27199_v6, 5  ;;  %v27201_v53 = vld [vmem:[#allocation29_spill] sm:$0xff]  ;;  %v22194_v23 = vld [vmem:[%s22165_s25 + $0x20] sm:$0xf] }
  0x81   : > { %18599 = vmatprep.mubr.msk.bf16.mxu1 %vm1178_vm5, %v21662_v1  ;;  %20033 = vmatpush3.bf16.msra.mxu1 %v21246_v52  ;;  %v22117_v17 = vcombine.low %v1767_v15, %v1770_v63  ;;  %27197 = vst [vmem:[#allocation43_spill] sm:$0xff] %v22135_v24  ;;  %v1784_v55 = vsel %vm21509_vm3, %v1782_v3, %v1783_v43  ;;  %v16555_v54 = vrot.slane %v21905_v9, 9  ;;  %v1801_v59 = vrot.slane %v21916_v5, 5  ;;  %v27206_v43 = vld [vmem:[#allocation13_spill] sm:$0xff] }
  0x82   : > { %18704 = vmatmul.mubr.msk.bf16.vlgmr.msra.gmra.mrb[0].mxu0 %vm1178_vm5, %v21679_v14  ;;  %20032 = vmatprep.subr.bf16.mxu1 %v21247_v18  ;;  %v22150_v44 = vcombine.low %v1781_v0, %v1784_v55  ;;  %v1791_v51 = vsel %vm21509_vm3, %v1789_v39, %v1790_v40  ;;  %v1804_v32 = vrot.slane %v27201_v53, 5  ;;  %v16556_v25 = vrot.slane %v21935_v22, 9  ;;  %v27209_v40 = vld [vmem:[#allocation15_spill] sm:$0xff]  ;;  %v22231_v53 = vld [vmem:[%s22216_s26 + $0x20] sm:$0xf] }
  0x83   : > { %18707 = vmatprep.mubr.msk.bf16.mxu0 %vm1178_vm5, %v21703_v31  ;;  %27196 = vst [vmem:[#allocation42_spill] sm:$0xff] %v22117_v17  ;;  %18736 = vmatpush3.bf16.msra.mxu0 %v21715_v46  ;;  %v1794_v46 = vrot.slane %v27198_v45, 5  ;;  %v22156_v58 = vcombine.low %v1788_v57, %v1791_v51  ;;  %v1802_v5 = vsel %vm21509_vm3, %v16555_v54, %v1801_v59  ;;  %v1803_v15 = vrot.slane %v1801_v59, 4  ;;  %v689_v55 = vld [vmem:[%s21516_s20 + $0xc8] sm:$0x1]  ;;  %v27214_v45 = vld [vmem:[#allocation16_spill] sm:$0xff] }
  0x84   : > { %18737 = vmatprep.subr.bf16.mxu0 %v21069_v60  ;;  %27200 = vst [vmem:[#allocation23_spill] sm:$0xff] %v22150_v44  ;;  %v1808_v33 = vrot.slane %v21942_v47, 5  ;;  %v1811_v26 = vrot.slane %v27204_v50, 5  ;;  %v1815_v10 = vrot.slane %v21974_v29, 5  ;;  %v1818_v37 = vrot.slane %v21985_v62, 5  ;;  %v27207_v47 = vld [vmem:[#allocation14_spill] sm:$0xff] }
  0x85   : > { %20034 = vmatpush3.bf16.msra.mxu1 %v21247_v18  ;;  %27202 = vst [vmem:[#allocation25_spill] sm:$0xff] %v22156_v58  ;;  %v1795_v9 = vsel %vm21509_vm3, %v16554_v34, %v1794_v46  ;;  %v1796_v20 = vrot.slane %v1794_v46, 4  ;;  %v1805_v13 = vsel %vm21509_vm3, %v1803_v15, %v1804_v32  ;;  %v22191_v62 = vld [vmem:[%s22165_s25 + $0x18] sm:$0xf]  ;;  %v16630_v46 = vrot.slane %v22019_v12, 9  ;;  %v27216_v51 = vld [vmem:[#allocation18_spill] sm:$0xff] }
  0x86   : > { %18879 = vmatprep.subr.bf16.mxu1 %v22133_v41  ;;  %v1810_v29 = vrot.slane %v1808_v33, 4  ;;  %v22198_v52 = vcombine.low %v1802_v5, %v1805_v13  ;;  %v1817_v0 = vrot.slane %v1815_v10, 4  ;;  %v2572_v6 = vrot.slane %v22027_v21, 5  ;;  %v27215_v54 = vld [vmem:[#allocation17_spill] sm:$0xff]  ;;  %v27217_v32 = vld [vmem:[#allocation19_spill] sm:$0xff] }
  0x87   : > { %18738 = vmatpush3.bf16.msra.mxu0 %v21069_v60  ;;  %v1798_v22 = vsel %vm21509_vm3, %v1796_v20, %v1797_v7  ;;  %v16557_v60 = vrot.slane %v21955_v8, 9  ;;  %v1809_v8 = vsel %vm21509_vm3, %v16556_v25, %v1808_v33  ;;  %v2575_v7 = vrot.slane %v689_v55, 5  ;;  %v22228_v59 = vld [vmem:[%s22216_s26 + $0x18] sm:$0xf]  ;;  %v3572_v13 = vld [vmem:[%s22216_s26 + $0x24] sm:$0x1] }
  0x88   : > { %18600 = vmatmul.mubr.msk.bf16.gmra.mrb[4].mxu1 %vm1178_vm5, %v27205_v11  ;;  %18771 = vmatprep.subr.bf16.mxu0 %v22148_v49  ;;  %v22184_v63 = vcombine.low %v1795_v9, %v1798_v22  ;;  %27210 = vst [vmem:[#allocation31_spill] sm:$0xff] %v22198_v52  ;;  %v1812_v3 = vsel %vm21509_vm3, %v1810_v29, %v1811_v26  ;;  %v2574_v20 = vrot.slane %v2572_v6, 4  ;;  %v3913_v5 = vshrl.u32 %v22228_v59, 16 }
  0x89   : > { %18603 = vmatprep.mubr.msk.bf16.mxu1 %vm1178_vm5, %v27206_v43  ;;  %v1816_v42 = vsel %vm21509_vm3, %v16557_v60, %v1815_v10  ;;  %v22206_v57 = vcombine.low %v1809_v8, %v1812_v3  ;;  %v1819_v39 = vsel %vm21509_vm3, %v1817_v0, %v1818_v37  ;;  %v2573_v9 = vsel %vm21509_vm3, %v16630_v46, %v2572_v6  ;;  %v3570_v60 = vld [vmem:[%s22216_s26 + $0x1c] sm:$0x1]  ;;  %v27219_v8 = vld [vmem:[#allocation20_spill] sm:$0xff]  ;;  %v27221_v0 = vld [vmem:[#allocation22_spill] sm:$0xff] }
  0x8a   : > { %18708 = vmatmul.mubr.msk.bf16.gmra.mrb[4].mxu0 %vm1178_vm5, %v27207_v47  ;;  %27208 = vst [vmem:[#allocation29_spill] sm:$0xff] %v22184_v63  ;;  %v22210_v34 = vcombine.low %v1816_v42, %v1819_v39  ;;  %v3916_v15 = vshll.u32 %v22228_v59, 16  ;;  %v2576_v33 = vsel %vm21509_vm3, %v2574_v20, %v2575_v7  ;;  %v3927_v26 = vshrl.u32 %v22231_v53, 16  ;;  %v27220_v42 = vld [vmem:[#allocation21_spill] sm:$0xff]  ;;  %v27222_v6 = vld [vmem:[#allocation24_spill] sm:$0xff] }
  0x8b   : > { %18711 = vmatprep.mubr.msk.bf16.mxu0 %vm1178_vm5, %v27209_v40  ;;  %27211 = vst [vmem:[#allocation12_spill] sm:$0xff] %v22206_v57  ;;  %v22243_v50 = vcombine.low %v2573_v9, %v2576_v33  ;;  %v3930_v22 = vshll.u32 %v22231_v53, 16  ;;  %v3915_v10 = vrot.slane %v3913_v5, 4  ;;  %v3922_v29 = vshll.u32 %v3570_v60, 16 }
  0x8c   : > { %27212 = vst [vmem:[#allocation13_spill] sm:$0xff] %v22210_v34  ;;  %v3918_v37 = vrot.slane %v3916_v15, 5  ;;  %v3929_v39 = vrot.slane %v3927_v26, 4  ;;  %v3936_v7 = vshll.u32 %v3572_v13, 16  ;;  %v2335_v26 = vshrl.u32 %v22019_v12, 16 }
  0x8d   : > { %27218 = vst [vmem:[#allocation14_spill] sm:$0xff] %v22243_v50  ;;  %v3932_v46 = vrot.slane %v3930_v22, 5  ;;  %v3924_v20 = vrot.slane %v3922_v29, 5  ;;  %v2338_v22 = vshll.u32 %v22019_v12, 16  ;;  %v2348_v13 = vshrl.u32 %v22027_v21, 16  ;;  %v27225_v29 = vld [vmem:[#allocation27_spill] sm:$0xff] }
  0x8e   : > { %v3919_v3 = vor.u32 %v3918_v37, %v3915_v10  ;;  %v3938_v15 = vrot.slane %v3936_v7, 5  ;;  %v27224_v10 = vld [vmem:[#allocation26_spill] sm:$0xff]  ;;  %v2337_v12 = vrot.slane %v2335_v26, 4  ;;  %v2354_v26 = vshll.u32 %v689_v55, 16 }
  0x8f   : > { %v3933_v5 = vor.u32 %v3932_v46, %v3929_v39  ;;  %v2344_v39 = vshll.u32 %v22027_v21, 16  ;;  %v27227_v46 = vld [vmem:[#allocation30_spill] sm:$0xff]  ;;  %v2340_v7 = vrot.slane %v2338_v22, 5 }
  0x90   : > { %18604 = vmatmul.mubr.msk.bf16.gmra.mrb[8].mxu1 %vm1178_vm5, %v27214_v45  ;;  %v3920_v9 = vrot.slane %v3919_v3, 4  ;;  %v27226_v3 = vld [vmem:[#allocation28_spill] sm:$0xff]  ;;  %v27230_v21 = vld [vmem:[#allocation34_spill] sm:$0xff] }
  0x91   : > { %18607 = vmatprep.mubr.msk.bf16.mxu1 %vm1178_vm5, %v27215_v54  ;;  %v3934_v33 = vrot.slane %v3933_v5, 4  ;;  %v27228_v5 = vld [vmem:[#allocation32_spill] sm:$0xff] }
  0x92   : > { %18712 = vmatmul.mubr.msk.bf16.gmra.mrb[8].mxu0 %vm1178_vm5, %v27216_v51  ;;  %v22259_v60 = vsel %vm21564_vm6, %v3920_v9, %v3924_v20  ;;  %v2346_v9 = vrot.slane %v2344_v39, 5  ;;  %v2350_v20 = vrot.slane %v2348_v13, 4  ;;  %v2356_v39 = vrot.slane %v2354_v26, 5  ;;  %v27234_v26 = vld [vmem:[#allocation11_spill] sm:$0xff] }
  0x93   : > { %18715 = vmatprep.mubr.msk.bf16.mxu0 %vm1178_vm5, %v27217_v32  ;;  %v22263_v18 = vsel %vm21564_vm6, %v3934_v33, %v3938_v15  ;;  %v2341_v15 = vor.u32 %v2340_v7, %v2337_v12  ;;  %v27229_v33 = vld [vmem:[#allocation33_spill] sm:$0xff] }
  0x94   : > { %27223 = vst [vmem:[#allocation15_spill] sm:$0xff] %v22263_v18  ;;  %v2351_v37 = vor.u32 %v2350_v20, %v2346_v9  ;;  %v27232_v7 = vld [vmem:[#allocation9_spill] sm:$0xff]  ;;  %v21084_v20 = vld [vmem:[%s26984_s5 + $0x68] sm:$0xff]  }
  0x95   : > { %v2342_v22 = vrot.slane %v2341_v15, 4  ;;  %v27233_v15 = vld [vmem:[#allocation10_spill] sm:$0xff] }
  0x96   : > { %v2352_v13 = vrot.slane %v2351_v37, 4 }
  0x97   : > { %v2347_v55 = vsel %vm21564_vm6, %v2342_v22, %v2346_v9  ;;  %v21071_v9 = vld [vmem:[%s26987_s8 + $0x18] sm:$0xff]   ;;  %v21077_v22 = vld [vmem:[%s26987_s8] sm:$0xff]  }
  0x98   : > { %18608 = vmatmul.mubr.msk.bf16.gmra.mrb[12].mxu1 %vm1178_vm5, %v27219_v8  ;;  %v2357_v12 = vsel %vm21564_vm6, %v2352_v13, %v2356_v39  ;;  %v22337_v13 = vld [vmem:[%s26984_s5 + $0x70] sm:$0xff]   ;;  %v22340_v39 = vld [vmem:[%s22216_s26 + $0x8] sm:$0xf] }
  0x99   : > { %18611 = vmatprep.mubr.msk.bf16.mxu1 %vm1178_vm5, %v27220_v42  ;;  %v22305_v37 = vcombine.low %v2347_v55, %v2357_v12  ;;  %v3581_v55 = vld [vmem:[%s22165_s25] sm:$0xf]  ;;  %v22380_v12 = vld [vmem:[%s22165_s25 + $0x8] sm:$0xf] }
  0x9a   : > { %18716 = vmatmul.mubr.msk.bf16.gmra.mrb[12].mxu0 %vm1178_vm5, %v27221_v0 }
  0x9b   : > { %18719 = vmatprep.mubr.msk.bf16.mxu0 %vm1178_vm5, %v27222_v6  ;;  %27231 = vst [vmem:[#allocation16_spill] sm:$0xff] %v22305_v37 }
  0xa0   : > { %18612 = vmatmul.mubr.msk.bf16.gmra.mrb[16].mxu1 %vm1178_vm5, %v27224_v10 }
  0xa1   : > { %18615 = vmatprep.mubr.msk.bf16.mxu1 %vm1178_vm5, %v27225_v29 }
  0xa2   : > { %18720 = vmatmul.mubr.msk.bf16.gmra.mrb[16].mxu0 %vm1178_vm5, %v27226_v3 }
  0xa3   : > { %18723 = vmatprep.mubr.msk.bf16.mxu0 %vm1178_vm5, %v27227_v46 }
  0xa8   : > { %18616 = vmatmul.mubr.msk.bf16.gmra.mrb[20].mxu1 %vm1178_vm5, %v27228_v5 }
  0xa9   : > { %18619 = vmatprep.mubr.msk.bf16.mxu1 %vm1178_vm5, %v27229_v33 }
  0xaa   : > { %18724 = vmatmul.mubr.msk.bf16.gmra.mrb[20].mxu0 %vm1178_vm5, %v27230_v21  ;;  %v3578_v21 = vld [vmem:[%s22216_s26 + $0x3c] sm:$0x1] }
  0xab   : > { %18727 = vmatprep.mubr.msk.bf16.mxu0 %vm1178_vm5, %v21991_v27  ;;  %v3574_v27 = vld [vmem:[%s22216_s26 + $0x2c] sm:$0x1] }
  0xb0   : > { %18620 = vmatmul.mubr.msk.bf16.gmra.mrb[24].mxu1 %vm1178_vm5, %v21997_v16 }
  0xb1   : > { %18623 = vmatprep.mubr.msk.bf16.mxu1 %vm1178_vm5, %v22003_v56 }
  0xb2   : > { %18728 = vmatmul.mubr.msk.bf16.gmra.mrb[24].mxu0 %vm1178_vm5, %v22022_v2  ;;  %v22450_v2 = vld [vmem:[%s22216_s26 + $0x30] sm:$0xf] }
  0xb3   : > { %18731 = vmatprep.mubr.msk.bf16.mxu0 %vm1178_vm5, %v22045_v61 }
  0xb8   : > { %18624 = vmatmul.mubr.msk.bf16.gmra.mrb[28].mxu1 %vm1178_vm5, %v22012_v28 }
  0xb9   : > { %18639 = vmatprep.mubr.msk.bf16.mxu1 %vm1178_vm5, %v22057_v36 }
  0xba   : > { %18732 = vmatmul.mubr.msk.bf16.gmra.mrb[28].mxu0 %vm1178_vm5, %v22305_v37 }
  0xbb   : > { %18739 = vmatprep.mubr.msk.bf16.mxu0 %vm1178_vm5, %v27232_v7  ;;  %v16710_v7 = vcombine.low %v3581_v55, %v22380_v12 }
  0xc0   : > { %18640 = vmatmul.mubr.msk.bf16.vlgmr.msra.gmra.mrb[8].mxu1 %vm1178_vm5, %v22053_v19 }
  0xc1   : > { %18643 = vmatprep.mubr.msk.bf16.mxu1 %vm1178_vm5, %v22084_v30  ;;  %18880 = vmatpush3.bf16.msra.mxu1 %v22133_v41  ;;  %v22343_v41 = vld [vmem:[%s22216_s26 + $0x10] sm:$0xf] }
  0xc2   : > { %18740 = vmatmul.mubr.msk.bf16.vlgmr.msra.gmra.mrb[0].mxu0 %vm1178_vm5, %v27233_v15  ;;  %18881 = vmatprep.subr.bf16.mxu1 %v21071_v9  ;;  %v3902_v15 = vshll.u32 %v22343_v41, 16 }
  0xc3   : > { %18743 = vmatprep.mubr.msk.bf16.mxu0 %vm1178_vm5, %v27234_v26  ;;  %18772 = vmatpush3.bf16.msra.mxu0 %v22148_v49  ;;  %v22407_v49 = vld [vmem:[%s22165_s25 + $0x30] sm:$0xf]  ;;  %v3899_v26 = vshrl.u32 %v22343_v41, 16 }
  0xc4   : > { %18773 = vmatprep.subr.bf16.mxu0 %v21084_v20 }
  0xc5   : > { %18882 = vmatpush3.bf16.msra.mxu1 %v21071_v9  ;;  %v22389_v9 = vld [vmem:[%s22165_s25 + $0x10] sm:$0xf] }
  0xc6   : > { %18891 = vmatprep.subr.bf16.mxu1 %v21077_v22  ;;  %v16711_v25 = vcombine.low %v22389_v9, %v22191_v62 }
  0xc7   : > { %18774 = vmatpush3.bf16.msra.mxu0 %v21084_v20  ;;  %v22394_v20 = vld [vmem:[%s22165_s25 + $0x28] sm:$0xf] }
  0xc8   : > { %18644 = vmatmul.mubr.msk.bf16.gmra.mrb[12].mxu1 %vm1178_vm5, %v22090_v35  ;;  %18807 = vmatprep.subr.bf16.mxu0 %v22337_v13  ;;  %v16712_v55 = vcombine.low %v22194_v23, %v22394_v20 }
  0xc9   : > { %18647 = vmatprep.mubr.msk.bf16.mxu1 %vm1178_vm5, %v22117_v17 }
  0xca   : > { %18744 = vmatmul.mubr.msk.bf16.gmra.mrb[4].mxu0 %vm1178_vm5, %v22057_v36  ;;  %v3566_v36 = vld [vmem:[%s22216_s26 + $0xc] sm:$0x1] }
  0xcb   : > { %18747 = vmatprep.mubr.msk.bf16.mxu0 %vm1178_vm5, %v22053_v19 }
  0xd0   : > { %18648 = vmatmul.mubr.msk.bf16.gmra.mrb[16].mxu1 %vm1178_vm5, %v22135_v24 }
  0xd1   : > { %18651 = vmatprep.mubr.msk.bf16.mxu1 %vm1178_vm5, %v22150_v44 }
  0xd2   : > { %18748 = vmatmul.mubr.msk.bf16.gmra.mrb[8].mxu0 %vm1178_vm5, %v22084_v30 }
  0xd3   : > { %18751 = vmatprep.mubr.msk.bf16.mxu0 %vm1178_vm5, %v22090_v35 }
  0xd8   : > { %18652 = vmatmul.mubr.msk.bf16.gmra.mrb[20].mxu1 %vm1178_vm5, %v22156_v58 }
  0xd9   : > { %18655 = vmatprep.mubr.msk.bf16.mxu1 %vm1178_vm5, %v22184_v63 }
  0xda   : > { %18752 = vmatmul.mubr.msk.bf16.gmra.mrb[12].mxu0 %vm1178_vm5, %v22117_v17 }
  0xdb   : > { %18755 = vmatprep.mubr.msk.bf16.mxu0 %vm1178_vm5, %v22135_v24  ;;  %v3888_v24 = vshll.u32 %v22340_v39, 16 }
  0xdd   : > { %v3890_v19 = vrot.slane %v3888_v24, 5 }
  0xe0   : > { %18656 = vmatmul.mubr.msk.bf16.gmra.mrb[24].mxu1 %vm1178_vm5, %v22198_v52 }
  0xe1   : > { %18659 = vmatprep.mubr.msk.bf16.mxu1 %vm1178_vm5, %v22206_v57 }
  0xe2   : > { %18756 = vmatmul.mubr.msk.bf16.gmra.mrb[16].mxu0 %vm1178_vm5, %v22150_v44  ;;  %v3885_v44 = vshrl.u32 %v22340_v39, 16 }
  0xe3   : > { %18759 = vmatprep.mubr.msk.bf16.mxu0 %vm1178_vm5, %v22156_v58  ;;  %v3874_v58 = vshll.u32 %v3563_v4, 16 }
  0xe4   : > { %v3887_v30 = vrot.slane %v3885_v44, 4 }
  0xe5   : > { %v3876_v35 = vrot.slane %v3874_v58, 5  ;;  %v3894_v58 = vshll.u32 %v3566_v36, 16  ;;  %v3901_v36 = vrot.slane %v3899_v26, 4 }
  0xe8   : > { %18660 = vmatmul.mubr.msk.bf16.gmra.mrb[28].mxu1 %vm1178_vm5, %v22210_v34 }
  0xe9   : > { %18883 = vmatprep.mubr.msk.bf16.mxu1 %vm1178_vm5, %v16710_v7  ;;  %v21078_v7 = vld [vmem:[%s26987_s8 + $0x8] sm:$0xff]  }
  0xea   : > { %18760 = vmatmul.mubr.msk.bf16.gmra.mrb[20].mxu0 %vm1178_vm5, %v22184_v63  ;;  %v22412_v63 = vld [vmem:[%s22165_s25 + $0x38] sm:$0xf] }
  0xeb   : > { %18763 = vmatprep.mubr.msk.bf16.mxu0 %vm1178_vm5, %v22198_v52  ;;  %27235 = vst [vmem:[#allocation17_spill] sm:$0xff] %v22412_v63  ;;  %v3871_v52 = vshrl.u32 %v3563_v4, 16 }
  0xed   : > { %v3873_v17 = vrot.slane %v3871_v52, 4  ;;  %v3891_v52 = vor.u32 %v3890_v19, %v3887_v30  ;;  %v3904_v30 = vrot.slane %v3902_v15, 5  ;;  %v3955_v15 = vshrl.u32 %v22450_v2, 16 }
  0xef   : > { %v3877_v37 = vor.u32 %v3876_v35, %v3873_v17  ;;  %v16721_v35 = vcombine.low %v22343_v41, %v22228_v59  ;;  %v3905_v26 = vor.u32 %v3904_v30, %v3901_v36  ;;  %v3950_v30 = vshll.u32 %v3574_v27, 16  ;;  %v22485_v27 = vld [vmem:[%s26984_s5 + $0x80] sm:$0xff]  }
  0xf0   : > { %18884 = vmatmul.mubr.msk.bf16.vlgmr.msra.gmra.mrb[32].mxu1 %vm1178_vm5, %v16711_v25  ;;  %v21086_v25 = vld [vmem:[%s26987_s8 + $0x20] sm:$0xff]  }
  0xf1   : > { %18887 = vmatprep.mubr.msk.bf16.mxu1 %vm1178_vm5, %v16712_v55  ;;  %18892 = vmatpush3.bf16.msra.mxu1 %v21077_v22  ;;  %v16713_v22 = vcombine.low %v22407_v49, %v22412_v63  ;;  %v16720_v55 = vcombine.low %v3563_v4, %v22340_v39  ;;  %v3878_v17 = vrot.slane %v3877_v37, 4  ;;  %v22455_v63 = vld [vmem:[%s22216_s26 + $0x38] sm:$0xf]  ;;  %v3958_v37 = vshll.u32 %v22450_v2, 16 }
  0xf2   : > { %18764 = vmatmul.mubr.msk.bf16.gmra.mrb[24].mxu0 %vm1178_vm5, %v22206_v57  ;;  %18893 = vmatprep.subr.bf16.mxu1 %v21078_v7  ;;  %v3564_v57 = vld [vmem:[%s22216_s26 + $0x4] sm:$0x1] }
  0xf3   : > { %18767 = vmatprep.mubr.msk.bf16.mxu0 %vm1178_vm5, %v22210_v34  ;;  %v22433_v34 = vld [vmem:[%s22216_s26 + $0x28] sm:$0xf]  ;;  %v3880_v4 = vshll.u32 %v3564_v57, 16 }
  0xf4   : > { %v3941_v24 = vshrl.u32 %v22433_v34, 16  ;;  %v3944_v44 = vshll.u32 %v22433_v34, 16  ;;  %v16722_v19 = vcombine.low %v22231_v53, %v22433_v34 }
  0xf5   : > { %18894 = vmatpush3.bf16.msra.mxu1 %v21078_v7  ;;  %v3882_v57 = vrot.slane %v3880_v4, 5  ;;  %v3892_v7 = vrot.slane %v3891_v52, 4  ;;  %v21104_v52 = vld [vmem:[%s26984_s5 + $0x78] sm:$0xff]  }
  0xf6   : > { %18903 = vmatprep.subr.bf16.mxu1 %v21086_v25  ;;  %v3943_v61 = vrot.slane %v3941_v24, 4  ;;  %v3972_v24 = vshll.u32 %v22455_v63, 16 }
  0xf8   : > { %18888 = vmatmul.mubr.msk.bf16.gmra.mrb[36].mxu1 %vm1178_vm5, %v16713_v22  ;;  %v3896_v22 = vrot.slane %v3894_v58, 5  ;;  %v3969_v58 = vshrl.u32 %v22455_v63, 16 }
  0xf9   : > { %18895 = vmatprep.mubr.msk.bf16.mxu1 %vm1178_vm5, %v16720_v55  ;;  %v3568_v55 = vld [vmem:[%s22216_s26 + $0x14] sm:$0x1] }
  0xfa   : > { %18768 = vmatmul.mubr.msk.bf16.gmra.mrb[28].mxu0 %vm1178_vm5, %v22243_v50  ;;  %v21087_v50 = vld [vmem:[%s26987_s8 + $0x28] sm:$0xff]   ;;  %v3908_v4 = vshll.u32 %v3568_v55, 16  ;;  %v3974_v55 = vrot.slane %v3972_v24, 5 }
  0xfb   : > { %18775 = vmatprep.mubr.msk.bf16.mxu0 %vm1178_vm5, %v21662_v1  ;;  %v3946_v1 = vrot.slane %v3944_v44, 5  ;;  %v3883_v44 = vsel %vm21564_vm6, %v3878_v17, %v3882_v57  ;;  %v3906_v57 = vrot.slane %v3905_v26, 4 }
  0xfd   : > { %v3947_v36 = vor.u32 %v3946_v1, %v3943_v61  ;;  %v3576_v61 = vld [vmem:[%s22216_s26 + $0x34] sm:$0x1]  ;;  %v3952_v1 = vrot.slane %v3950_v30, 5 }
  0xfe   : > { %v3964_v26 = vshll.u32 %v3576_v61, 16 }
 0x100   : > { %18896 = vmatmul.mubr.msk.bf16.vlgmr.msra.gmra.mrb[32].mxu1 %vm1178_vm5, %v16721_v35  ;;  %v22469_v35 = vsel %vm21564_vm6, %v3892_v7, %v3896_v22  ;;  %v3957_v7 = vrot.slane %v3955_v15, 4  ;;  %v3971_v22 = vrot.slane %v3969_v58, 4  ;;  %v3966_v24 = vrot.slane %v3964_v26, 5 }
 0x101   : > { %18899 = vmatprep.mubr.msk.bf16.mxu1 %vm1178_vm5, %v16722_v19  ;;  %18904 = vmatpush3.bf16.msra.mxu1 %v21086_v25  ;;  %v21088_v19 = vld [vmem:[%s26987_s8 + $0x30] sm:$0xff]   ;;  %v16723_v25 = vcombine.low %v22450_v2, %v22455_v63  ;;  %v16730_v17 = vcombine.low %v3883_v44, %v22469_v35 }
 0x102   : > { %18776 = vmatmul.mubr.msk.bf16.vlgmr.msra.gmra.mrb[0].mxu0 %vm1178_vm5, %v27205_v11  ;;  %18905 = vmatprep.subr.bf16.mxu1 %v21087_v50  ;;  %v3910_v11 = vrot.slane %v3908_v4, 5  ;;  %v3978_v4 = vshll.u32 %v3578_v21, 16 }
 0x103   : > { %18779 = vmatprep.mubr.msk.bf16.mxu0 %vm1178_vm5, %v27206_v43  ;;  %18808 = vmatpush3.bf16.msra.mxu0 %v22337_v13  ;;  %v3960_v43 = vrot.slane %v3958_v37, 5  ;;  %v3948_v13 = vrot.slane %v3947_v36, 4  ;;  %v3975_v37 = vor.u32 %v3974_v55, %v3971_v22  ;;  %v3600_v22 = vld [vmem:[%s22515_s2 + $0x28] sm:$0xf] }
 0x104   : > { %18809 = vmatprep.subr.bf16.mxu0 %v21104_v52  ;;  %v3980_v21 = vrot.slane %v3978_v4, 5  ;;  %v21100_v4 = vld [vmem:[%s26987_s8 + $0x50] sm:$0xff]  }
 0x105   : > { %18906 = vmatpush3.bf16.msra.mxu1 %v21087_v50  ;;  %v22494_v50 = vsel %vm21564_vm6, %v3906_v57, %v3910_v11  ;;  %v3961_v15 = vor.u32 %v3960_v43, %v3957_v7  ;;  %v3976_v30 = vrot.slane %v3975_v37, 4  ;;  %v3592_v57 = vld [vmem:[%s22515_s2 + $0x8] sm:$0xf]  ;;  %v21094_v11 = vld [vmem:[%s26987_s8 + $0x40] sm:$0xff]   ;;  %v3596_v7 = vld [vmem:[%s22515_s2 + $0x18] sm:$0xf] }
 0x106   : > { %18915 = vmatprep.subr.bf16.mxu1 %v21088_v19  ;;  %v16731_v58 = vcombine.low %v22494_v50, %v22259_v60  ;;  %v3598_v43 = vld [vmem:[%s22515_s2 + $0x20] sm:$0xf]  ;;  %v4340_v37 = vshrl.u32 %v3592_v57, 16 }
 0x107   : > { %18810 = vmatpush3.bf16.msra.mxu0 %v21104_v52  ;;  %v22500_v52 = vsel %vm21564_vm6, %v3948_v13, %v3952_v1  ;;  %v3962_v36 = vrot.slane %v3961_v15, 4  ;;  %v16742_v55 = vcombine.low %v3598_v43, %v3600_v22  ;;  %v21095_v13 = vld [vmem:[%s26987_s8 + $0x48] sm:$0xff]   ;;  %v22553_v1 = vld [vmem:[%s22515_s2 + $0x30] sm:$0xf] }
 0x108   : > { %18900 = vmatmul.mubr.msk.bf16.gmra.mrb[36].mxu1 %vm1178_vm5, %v16723_v25  ;;  %18843 = vmatprep.subr.bf16.mxu0 %v22485_v27  ;;  %v16732_v44 = vcombine.low %v22263_v18, %v22500_v52  ;;  %v22525_v25 = vsel %vm21564_vm6, %v3976_v30, %v3980_v21  ;;  %v21096_v21 = vld [vmem:[%s22285_s18] ss:$8 sps:$4 sm:$0xff]   ;;  %v22597_v18 = vld [vmem:[%s21516_s20 + $0xcc] sm:$0xf] }
 0x109   : > { %18907 = vmatprep.mubr.msk.bf16.mxu1 %vm1178_vm5, %v16730_v17  ;;  %27236 = vst [vmem:[#allocation18_spill] sm:$0xff] %v22525_v25  ;;  %v3590_v17 = vld [vmem:[%s22515_s2] sm:$0xf] }
 0x10a   : > { %18780 = vmatmul.mubr.msk.bf16.gmra.mrb[4].mxu0 %vm1178_vm5, %v27214_v45  ;;  %v21089_v45 = vld [vmem:[%s26987_s8 + $0x38] sm:$0xff]   ;;  %v4326_v26 = vshrl.u32 %v3590_v17, 16  ;;  %v4329_v15 = vshll.u32 %v3590_v17, 16 }
 0x10b   : > { %18783 = vmatprep.mubr.msk.bf16.mxu0 %vm1178_vm5, %v27215_v54  ;;  %v22521_v54 = vsel %vm21564_vm6, %v3962_v36, %v3966_v24  ;;  %v4342_v36 = vrot.slane %v4340_v37, 4  ;;  %v4399_v37 = vshll.u32 %v3600_v22, 16 }
 0x10c   : > { %v16733_v61 = vcombine.low %v22521_v54, %v22525_v25  ;;  %v4328_v24 = vrot.slane %v4326_v26, 4 }
 0x110   : > { %18908 = vmatmul.mubr.msk.bf16.vlgmr.msra.gmra.mrb[32].mxu1 %vm1178_vm5, %v16731_v58 }
 0x111   : > { %18911 = vmatprep.mubr.msk.bf16.mxu1 %vm1178_vm5, %v16732_v44  ;;  %18916 = vmatpush3.bf16.msra.mxu1 %v21088_v19  ;;  %v16740_v19 = vcombine.low %v3590_v17, %v3592_v57  ;;  %v4331_v44 = vrot.slane %v4329_v15, 5  ;;  %v4396_v15 = vshrl.u32 %v3600_v22, 16 }
 0x112   : > { %18784 = vmatmul.mubr.msk.bf16.gmra.mrb[8].mxu0 %vm1178_vm5, %v27219_v8  ;;  %18917 = vmatprep.subr.bf16.mxu1 %v21089_v45  ;;  %v3594_v8 = vld [vmem:[%s22515_s2 + $0x10] sm:$0xf] }
 0x113   : > { %18787 = vmatprep.mubr.msk.bf16.mxu0 %vm1178_vm5, %v27220_v42  ;;  %v16741_v42 = vcombine.low %v3594_v8, %v3596_v7  ;;  %v4354_v17 = vshrl.u32 %v3594_v8, 16 }
 0x115   : > { %18918 = vmatpush3.bf16.msra.mxu1 %v21089_v45  ;;  %v3591_v45 = vld [vmem:[%s22515_s2 + $0x4] sm:$0x1] }
 0x116   : > { %18927 = vmatprep.subr.bf16.mxu1 %v21094_v11 }
 0x118   : > { %18912 = vmatmul.mubr.msk.bf16.gmra.mrb[36].mxu1 %vm1178_vm5, %v16733_v61  ;;  %v4371_v61 = vshll.u32 %v3596_v7, 16 }
 0x119   : > { %18919 = vmatprep.mubr.msk.bf16.mxu1 %vm1178_vm5, %v16740_v19  ;;  %v4382_v19 = vshrl.u32 %v3598_v43, 16 }
 0x11a   : > { %18788 = vmatmul.mubr.msk.bf16.gmra.mrb[12].mxu0 %vm1178_vm5, %v27224_v10  ;;  %v4343_v10 = vshll.u32 %v3592_v57, 16  ;;  %v4357_v57 = vshll.u32 %v3594_v8, 16  ;;  %v4356_v8 = vrot.slane %v4354_v17, 4  ;;  %v4401_v17 = vrot.slane %v4399_v37, 5 }
 0x11b   : > { %18791 = vmatprep.mubr.msk.bf16.mxu0 %vm1178_vm5, %v27225_v29  ;;  %v22557_v29 = vld [vmem:[%s22515_s2 + $0x38] sm:$0xf] }
 0x11c   : > { %v16743_v58 = vcombine.low %v22553_v1, %v22557_v29  ;;  %v4345_v30 = vrot.slane %v4343_v10, 5 }
 0x120   : > { %18920 = vmatmul.mubr.msk.bf16.vlgmr.msra.gmra.mrb[32].mxu1 %vm1178_vm5, %v16741_v42  ;;  %v4335_v42 = vshll.u32 %v3591_v45, 16  ;;  %v3595_v45 = vld [vmem:[%s22515_s2 + $0x14] sm:$0x1] }
 0x121   : > { %18923 = vmatprep.mubr.msk.bf16.mxu1 %vm1178_vm5, %v16742_v55  ;;  %18928 = vmatpush3.bf16.msra.mxu1 %v21094_v11  ;;  %v4368_v11 = vshrl.u32 %v3596_v7, 16  ;;  %v4346_v55 = vor.u32 %v4345_v30, %v4342_v36  ;;  %v4359_v7 = vrot.slane %v4357_v57, 5  ;;  %v21098_v36 = vld [vmem:[%s22285_s18 + $0x20] ss:$8 sps:$4 sm:$0xff]   ;;  %v21101_v57 = vld [vmem:[%s26987_s8 + $0x58] sm:$0xff]  }
 0x122   : > { %18792 = vmatmul.mubr.msk.bf16.gmra.mrb[16].mxu0 %vm1178_vm5, %v27228_v5  ;;  %18929 = vmatprep.subr.bf16.mxu1 %v21095_v13  ;;  %v3593_v5 = vld [vmem:[%s22515_s2 + $0xc] sm:$0x1]  ;;  %v4337_v30 = vrot.slane %v4335_v42, 5  ;;  %v4424_v42 = vshrl.u32 %v22557_v29, 16 }
 0x123   : > { %18795 = vmatprep.mubr.msk.bf16.mxu0 %vm1178_vm5, %v27229_v33  ;;  %v4332_v33 = vor.u32 %v4331_v44, %v4328_v24  ;;  %v4349_v26 = vshll.u32 %v3593_v5, 16  ;;  %v4370_v10 = vrot.slane %v4368_v11, 4  ;;  %v4384_v24 = vrot.slane %v4382_v19, 4  ;;  %v21097_v44 = vld [vmem:[%s22285_s18 + $0x10] ss:$8 sps:$4 sm:$0xff]  }
 0x124   : > { %v3597_v11 = vld [vmem:[%s22515_s2 + $0x1c] sm:$0x1]  ;;  %v3599_v19 = vld [vmem:[%s22515_s2 + $0x24] sm:$0x1] }
 0x125   : > { %18930 = vmatpush3.bf16.msra.mxu1 %v21095_v13  ;;  %v4385_v13 = vshll.u32 %v3598_v43, 16  ;;  %v4333_v43 = vrot.slane %v4332_v33, 4  ;;  %v4351_v22 = vrot.slane %v4349_v26, 5  ;;  %v3601_v33 = vld [vmem:[%s22515_s2 + $0x2c] sm:$0x1]  ;;  %v4360_v26 = vor.u32 %v4359_v7, %v4356_v8 }
 0x126   : > { %18939 = vmatprep.subr.bf16.mxu1 %v21100_v4  ;;  %v4377_v25 = vshll.u32 %v3597_v11, 16  ;;  %v4391_v7 = vshll.u32 %v3599_v19, 16 }
 0x127   : > { %v4387_v5 = vrot.slane %v4385_v13, 5  ;;  %v4363_v13 = vshll.u32 %v3595_v45, 16 }
 0x128   : > { %18924 = vmatmul.mubr.msk.bf16.gmra.mrb[36].mxu1 %vm1178_vm5, %v16743_v58  ;;  %v4373_v58 = vrot.slane %v4371_v61, 5  ;;  %v4413_v61 = vshll.u32 %v22553_v1, 16 }
 0x129   : > { %18931 = vmatprep.mubr.msk.bf16.mxu1 %vm1178_vm5, %v21096_v21  ;;  %v4347_v21 = vrot.slane %v4346_v55, 4  ;;  %v4427_v55 = vshll.u32 %v22557_v29, 16  ;;  %v22602_v29 = vld [vmem:[%s21516_s20 + $0xd0] sm:$0xf]  ;;  %v4388_v8 = vor.u32 %v4387_v5, %v4384_v24  ;;  %v4365_v24 = vrot.slane %v4363_v13, 5 }
 0x12a   : > { %18796 = vmatmul.mubr.msk.bf16.gmra.mrb[20].mxu0 %vm1178_vm5, %v21997_v16  ;;  %v4398_v16 = vrot.slane %v4396_v15, 4  ;;  %v4338_v15 = vsel %vm21564_vm6, %v4333_v43, %v4337_v30  ;;  %v4374_v37 = vor.u32 %v4373_v58, %v4370_v10  ;;  %v4415_v58 = vrot.slane %v4413_v61, 5  ;;  %v21099_v30 = vld [vmem:[%s22285_s18 + $0x30] ss:$8 sps:$4 sm:$0xff]  }
 0x12b   : > { %18799 = vmatprep.mubr.msk.bf16.mxu0 %vm1178_vm5, %v22003_v56  ;;  %v4410_v56 = vshrl.u32 %v22553_v1, 16  ;;  %v4352_v1 = vsel %vm21564_vm6, %v4347_v21, %v4351_v22  ;;  %v4429_v43 = vrot.slane %v4427_v55, 5  ;;  %v4361_v21 = vrot.slane %v4360_v26, 4 }
 0x12c   : > { %v16760_v22 = vcombine.low %v4338_v15, %v4352_v1  ;;  %v4375_v45 = vrot.slane %v4374_v37, 4  ;;  %v4379_v5 = vrot.slane %v4377_v25, 5  ;;  %v4389_v11 = vrot.slane %v4388_v8, 4 }
 0x12d   : > { %v4412_v10 = vrot.slane %v4410_v56, 4  ;;  %v4393_v56 = vrot.slane %v4391_v7, 5 }
 0x12e   : > { %v4380_v25 = vsel %vm21564_vm6, %v4375_v45, %v4379_v5  ;;  %v3589_v45 = vld [vmem:[%s22165_s25 + $0x40] sm:$0xf]  ;;  %v3011_v5 = vshll.u32 %v22602_v29, 16  ;;  %s17840_s25 = sshll.u32 %s21461_s17, 12  ;;  %s26938_s17 = scalar_lea.sflag [#allocation5], %s518_s27 }
 0x12f   : > { %v4394_v13 = vsel %vm21564_vm6, %v4389_v11, %v4393_v56 }
 0x130   : > { %18932 = vmatmul.mubr.msk.bf16.vlgmr.msra.gmra.mrb[32].mxu1 %vm1178_vm5, %v21097_v44  ;;  %v4405_v44 = vshll.u32 %v3601_v33, 16  ;;  %v3605_v33 = vld [vmem:[%s22515_s2 + $0x3c] sm:$0x1] }
 0x131   : > { %18935 = vmatprep.mubr.msk.bf16.mxu1 %vm1178_vm5, %v21098_v36  ;;  %18940 = vmatpush3.bf16.msra.mxu1 %v21100_v4  ;;  %v4402_v4 = vor.u32 %v4401_v17, %v4398_v16  ;;  %v22607_v36 = vld [vmem:[%s26987_s8 + $0x60] sm:$0xff]   ;;  %v16650_v16 = vcombine.low %v22597_v18, %v22602_v29  ;;  %v3603_v17 = vld [vmem:[%s22515_s2 + $0x34] sm:$0x1]  ;;  %v4433_v26 = vshll.u32 %v3605_v33, 16  ;;  %s26925_s2 = scalar_lea.hbm %s26993_s14, %s17840_s25 }
 0x132   : > { %18800 = vmatmul.mubr.msk.bf16.gmra.mrb[24].mxu0 %vm1178_vm5, %v22012_v28  ;;  %18941 = vmatprep.subr.bf16.mxu1 %v21101_v57  ;;  %v4426_v28 = vrot.slane %v4424_v42, 4  ;;  %v4407_v19 = vrot.slane %v4405_v44, 5  ;;  %v4419_v42 = vshll.u32 %v3603_v17, 16 }
 0x133   : > { %18803 = vmatprep.mubr.msk.bf16.mxu0 %vm1178_vm5, %v22041_v48  ;;  %v4403_v61 = vrot.slane %v4402_v4, 4  ;;  %v4366_v48 = vsel %vm21564_vm6, %v4361_v21, %v4365_v24  ;;  %v22638_v44 = vrot.slane %v4433_v26, 5  ;;  %v21116_v24 = vld [vmem:[%s26987_s8 + $0x88] sm:$0xff]  }
 0x134   : > { %v4430_v55 = vor.u32 %v4429_v43, %v4426_v28  ;;  %v16761_v1 = vcombine.low %v4366_v48, %v4380_v25  ;;  %v22634_v7 = vrot.slane %v4419_v42, 5  ;;  %v3013_v48 = vrot.slane %v3011_v5, 5  ;;  %v22895_v25 = vld [vmem:[%s21516_s20 + $0xd4] sm:$0x1]  ;;  %v27242_v26 = vld [vmem:[#allocation35_spill] sm:$0xff]  ;;  %s26775_s20 = scalar_lea.vmem [#allocation4], %s16468_s21 }
 0x135   : > { %18942 = vmatpush3.bf16.msra.mxu1 %v21101_v57  ;;  %v4416_v57 = vor.u32 %v4415_v58, %v4412_v10  ;;  %v4408_v15 = vsel %vm21564_vm6, %v4403_v61, %v4407_v19  ;;  %v22643_v10 = vld [vmem:[%s26987_s8 + $0x68] sm:$0xff]   ;;  %v21359_v58 = vmov 0   ;;  %v3580_v61 = vld [vmem:[%s22216_s26 + $0x44] sm:$0x1]  ;;  %s21299_s21 = sshll.u32 %s21362_s28, 4  ;;  %s21300_s21 = int_to_ptr.vmem [resolvable:$false] %s21299_s21 }
 0x136   : > { %18951 = vmatprep.subr.bf16.mxu1 %v22607_v36  ;;  %v22632_v8 = vcombine.low %v4394_v13, %v4408_v15  ;;  %v22636_v4 = vrot.slane %v4430_v55, 4  ;;  %609 = vst.msk [vmem:[#allocation3 + $0x18] sm:$0xf] %vm547_vm7, %v21359_v58  ;;  %548 = vst.msk [vmem:[#allocation2] sm:$0xf] %vm547_vm7, %v21359_v58  ;;  %v4762_v55 = vshll.u32 %v3580_v61, 16 }
 0x137   : > { %v22630_v37 = vrot.slane %v4416_v57, 4  ;;  %549 = vst.msk [vmem:[#allocation2 + $0x4] sm:$0xf] %vm547_vm7, %v21359_v58  ;;  %552 = vst.msk [vmem:[#allocation2 + $0xc] sm:$0xf] %vm547_vm7, %v21359_v58  ;;  %v27243_v13 = vld [vmem:[#allocation36_spill] sm:$0xff] }
 0x138   : > { %18936 = vmatmul.mubr.msk.bf16.gmra.mrb[36].mxu1 %vm1178_vm5, %v21099_v30  ;;  %553 = vst.msk [vmem:[#allocation2 + $0x10] sm:$0xf] %vm547_vm7, %v21359_v58  ;;  %555 = vst.msk [vmem:[#allocation2 + $0x18] sm:$0xf] %vm547_vm7, %v21359_v58  ;;  %v4436_v43 = vsel %vm21564_vm6, %v22636_v4, %v22638_v44  ;;  %v21110_v30 = vld [vmem:[%s26987_s8 + $0x70] sm:$0xff]   ;;  %v3021_v15 = vshll.u32 %v22895_v25, 16 }
 0x139   : > { %18943 = vmatprep.mubr.msk.bf16.mxu1 %vm1178_vm5, %v16760_v22  ;;  %556 = vst.msk [vmem:[#allocation2 + $0x1c] sm:$0xf] %vm547_vm7, %v21359_v58  ;;  %558 = vst.msk [vmem:[#allocation2 + $0x24] sm:$0xf] %vm547_vm7, %v21359_v58  ;;  %v4422_v28 = vsel %vm21564_vm6, %v22630_v37, %v22634_v7  ;;  %s21301_s25 = scalar_lea.vmem %s21300_s21, 8192 }
 0x13a   : > { %18804 = vmatmul.mubr.msk.bf16.gmra.mrb[28].mxu0 %vm1178_vm5, %v16650_v16  ;;  %559 = vst.msk [vmem:[#allocation2 + $0x28] sm:$0xf] %vm547_vm7, %v21359_v58  ;;  %561 = vst.msk [vmem:[#allocation2 + $0x30] sm:$0xf] %vm547_vm7, %v21359_v58  ;;  %v16763_v21 = vcombine.low %v4422_v28, %v4436_v43  ;;  %v27241_v16 = vld [vmem:[#allocation17_spill] sm:$0xff]  ;;  %v3023_v44 = vrot.slane %v3021_v15, 5 }
 0x13b   : > { %18811 = vmatprep.mubr.msk.bf16.mxu0 %vm1178_vm5, %v21679_v14  ;;  %562 = vst.msk [vmem:[#allocation2 + $0x34] sm:$0xf] %vm547_vm7, %v21359_v58  ;;  %564 = vst.msk [vmem:[#allocation2 + $0x3c] sm:$0xf] %vm547_vm7, %v21359_v58  ;;  %v21118_v14 = vld [vmem:[%s26984_s5 + $0x88] sm:$0xff]   ;;  %v16783_v17 = vcombine.low %v27241_v16, %v3589_v45  ;;  %v27246_v28 = vld [vmem:[#allocation37_spill] sm:$0xff] }
 0x13c   : > { %565 = vst.msk [vmem:[#allocation2 + $0x40] sm:$0xf] %vm547_vm7, %v21359_v58  ;;  %567 = vst.msk [vmem:[#allocation2 + $0x48] sm:$0xf] %vm547_vm7, %v21359_v58  ;;  %v27247_v43 = vld [vmem:[#allocation16_spill] sm:$0xff]  ;;  %v27257_v45 = vld [vmem:[#allocation23_spill] sm:$0xff] }
 0x13d   : > { %568 = vst.msk [vmem:[#allocation2 + $0x4c] sm:$0xf] %vm547_vm7, %v21359_v58  ;;  %570 = vst.msk [vmem:[#allocation2 + $0x54] sm:$0xf] %vm547_vm7, %v21359_v58  ;;  %v27259_v16 = vld [vmem:[#allocation29_spill] sm:$0xff]  ;;  %v27263_v15 = vld [vmem:[#allocation14_spill] sm:$0xff] }
 0x13e   : > { %571 = vst.msk [vmem:[#allocation2 + $0x58] sm:$0xf] %vm547_vm7, %v21359_v58  ;;  %573 = vst.msk [vmem:[#allocation2 + $0x60] sm:$0xf] %vm547_vm7, %v21359_v58 }
 0x13f   : > { %574 = vst.msk [vmem:[#allocation2 + $0x64] sm:$0xf] %vm547_vm7, %v21359_v58  ;;  %576 = vst.msk [vmem:[#allocation2 + $0x6c] sm:$0xf] %vm547_vm7, %v21359_v58 }
 0x140   : > { %577 = vst.msk [vmem:[#allocation2 + $0x70] sm:$0xf] %vm547_vm7, %v21359_v58  ;;  %579 = vst.msk [vmem:[#allocation2 + $0x78] sm:$0xf] %vm547_vm7, %v21359_v58  ;;  %18944 = vmatmul.mubr.msk.bf16.vlgmr.msra.gmra.mrb[32].mxu1 %vm1178_vm5, %v16761_v1  ;;  %v16792_v1 = vcombine.low %v22500_v52, %v22521_v54 }
 0x141   : > { %580 = vst.msk [vmem:[#allocation2 + $0x7c] sm:$0xf] %vm547_vm7, %v21359_v58  ;;  %582 = vst.msk [vmem:[#allocation2 + $0x84] sm:$0xf] %vm547_vm7, %v21359_v58  ;;  %18947 = vmatprep.mubr.msk.bf16.mxu1 %vm1178_vm5, %v22632_v8  ;;  %18952 = vmatpush3.bf16.msra.mxu1 %v22607_v36  ;;  %v27238_v36 = vcombine.low %v22228_v59, %v22231_v53  ;;  %v16780_v53 = vcombine.low %v22380_v12, %v22389_v9  ;;  %v4764_v8 = vrot.slane %v4762_v55, 5 }
 0x142   : > { %583 = vst.msk [vmem:[#allocation2 + $0x88] sm:$0xf] %vm547_vm7, %v21359_v58  ;;  %585 = vst.msk [vmem:[#allocation2 + $0x90] sm:$0xf] %vm547_vm7, %v21359_v58  ;;  %18812 = vmatmul.mubr.msk.bf16.vlgmr.msra.gmra.mrb[0].mxu0 %vm1178_vm5, %v21703_v31  ;;  %18953 = vmatprep.subr.bf16.mxu1 %v22643_v10  ;;  %v27237_v31 = vcombine.low %v22340_v39, %v22343_v41  ;;  %v3579_v39 = vld [vmem:[%s22216_s26 + $0x40] sm:$0xf]  ;;  %v16782_v12 = vcombine.low %v22394_v20, %v22407_v49 }
 0x143   : > { %586 = vst.msk [vmem:[#allocation2 + $0x94] sm:$0xf] %vm547_vm7, %v21359_v58  ;;  %588 = vst.msk [vmem:[#allocation2 + $0x9c] sm:$0xf] %vm547_vm7, %v21359_v58  ;;  %18815 = vmatprep.mubr.msk.bf16.mxu0 %vm1178_vm5, %v27207_v47  ;;  %18844 = vmatpush3.bf16.msra.mxu0 %v22485_v27  ;;  %v16772_v47 = vcombine.low %v22433_v34, %v22450_v2  ;;  %v21111_v27 = vld [vmem:[%s26987_s8 + $0x78] sm:$0xff]   ;;  %v21115_v2 = vld [vmem:[%s26987_s8 + $0x80] sm:$0xff]  }
 0x144   : > { %589 = vst.msk [vmem:[#allocation2 + $0xa0] sm:$0xf] %vm547_vm7, %v21359_v58  ;;  %591 = vst.msk [vmem:[#allocation2 + $0xa8] sm:$0xf] %vm547_vm7, %v21359_v58  ;;  %18845 = vmatprep.subr.bf16.mxu0 %v21118_v14  ;;  %v4753_v22 = vshrl.u32 %v3579_v39, 16  ;;  %v3002_v49 = vshrl.u32 %v22597_v18, 16 }
 0x145   : > { %592 = vst.msk [vmem:[#allocation2 + $0xac] sm:$0xf] %vm547_vm7, %v21359_v58  ;;  %594 = vst.msk [vmem:[#allocation2 + $0xb4] sm:$0xf] %vm547_vm7, %v21359_v58  ;;  %18954 = vmatpush3.bf16.msra.mxu1 %v22643_v10  ;;  %v3005_v20 = vshll.u32 %v22597_v18, 16  ;;  %v27244_v10 = vld [vmem:[#allocation15_spill] sm:$0xff] }
 0x146   : > { %595 = vst.msk [vmem:[#allocation2 + $0xb8] sm:$0xf] %vm547_vm7, %v21359_v58  ;;  %597 = vst.msk [vmem:[#allocation2 + $0xc0] sm:$0xf] %vm547_vm7, %v21359_v58  ;;  %18963 = vmatprep.subr.bf16.mxu1 %v21110_v30  ;;  %v4755_v11 = vrot.slane %v4753_v22, 4  ;;  %v3004_v19 = vrot.slane %v3002_v49, 4 }
 0x147   : > { %598 = vst.msk [vmem:[#allocation2 + $0xc4] sm:$0xf] %vm547_vm7, %v21359_v58  ;;  %600 = vst.msk [vmem:[#allocation2 + $0xcc] sm:$0xf] %vm547_vm7, %v21359_v58  ;;  %18846 = vmatpush3.bf16.msra.mxu0 %v21118_v14  ;;  %v3007_v33 = vrot.slane %v3005_v20, 5  ;;  %v27256_v22 = vld [vmem:[#allocation43_spill] sm:$0xff] }
 0x148   : > { %601 = vst.msk [vmem:[#allocation2 + $0xd0] sm:$0xf] %vm547_vm7, %v21359_v58  ;;  %603 = vst.msk [vmem:[#allocation3] sm:$0xf] %vm547_vm7, %v21359_v58  ;;  %18948 = vmatmul.mubr.msk.bf16.gmra.mrb[36].mxu1 %vm1178_vm5, %v16763_v21  ;;  %v16688_v55 = vrot.slane %v22597_v18, 9  ;;  %s16354_s26 = sshll.u32 %s26775_s20, 4  ;;  %s26927_s26 = int_to_ptr.vmem [resolvable:$true] %s16354_s26 }
 0x149   : > { %605 = vst.msk [vmem:[#allocation3 + $0x8] sm:$0xf] %vm547_vm7, %v21359_v58  ;;  %607 = vst.msk [vmem:[#allocation3 + $0x10] sm:$0xf] %vm547_vm7, %v21359_v58  ;;  %18955 = vmatprep.mubr.msk.bf16.mxu1 %vm1178_vm5, %v27237_v31  ;;  %v27249_v31 = vld [vmem:[#allocation10_spill] sm:$0xff]  ;;  %s21295_s18 = scalar_lea.vmem %s26927_s26, 4096  ;;  %p21302_p0 = scmp.lt.s32.totalorder %s26927_s26, %s21300_s21 }
 0x14a   : > { %611 = vst.msk [vmem:[#allocation3 + $0x20] sm:$0xf] %vm547_vm7, %v21359_v58  ;;  %613 = vst.msk [vmem:[#allocation3 + $0x28] sm:$0xf] %vm547_vm7, %v21359_v58  ;;  %18816 = vmatmul.mubr.msk.bf16.gmra.mrb[4].mxu0 %vm1178_vm5, %v27209_v40  ;;  %p21296_p11 = scmp.ne.s32.totalorder %s26927_s26, %s21295_s18  ;;  %p21303_p1 = scmp.lt.s32.totalorder %s21301_s25, %s21295_s18 }
 0x14b   : > { %615 = vst.msk [vmem:[#allocation3 + $0x30] sm:$0xf] %vm547_vm7, %v21359_v58  ;;  %617 = vst.msk [vmem:[#allocation3 + $0x38] sm:$0xf] %vm547_vm7, %v21359_v58  ;;  %18819 = vmatprep.mubr.msk.bf16.mxu0 %vm1178_vm5, %v27216_v51  ;;  %v16773_v51 = vcombine.low %v22455_v63, %v3579_v39 }
 0x14c   : > { %619 = vst.msk [vmem:[#allocation3 + $0x40] sm:$0xf] %vm547_vm7, %v21359_v58  ;;  %621 = vst.msk [vmem:[#allocation3 + $0x48] sm:$0xf] %vm547_vm7, %v21359_v58  ;;  %p21297_p12 = pnand %p21296_p11, %p21478_p5  ;;  %p21304_p2 = por %p21303_p1, %p21302_p0 }
 0x14d   : > { %610 = vst.msk [vmem:[#allocation3 + $0x1c] sm:$0x1] %vm550_vm8, %v21359_v58  ;;  %551 = vst.msk [vmem:[#allocation2 + $0x8] sm:$0x1] %vm550_vm8, %v21359_v58 }
 0x14e   : > { %554 = vst.msk [vmem:[#allocation2 + $0x14] sm:$0x1] %vm550_vm8, %v21359_v58  ;;  %557 = vst.msk [vmem:[#allocation2 + $0x20] sm:$0x1] %vm550_vm8, %v21359_v58  ;;  %p21298_p13 = pneg %p21297_p12 }
 0x14f   : > { %560 = vst.msk [vmem:[#allocation2 + $0x2c] sm:$0x1] %vm550_vm8, %v21359_v58  ;;  %563 = vst.msk [vmem:[#allocation2 + $0x38] sm:$0x1] %vm550_vm8, %v21359_v58 }
 0x150   : > { %566 = vst.msk [vmem:[#allocation2 + $0x44] sm:$0x1] %vm550_vm8, %v21359_v58  ;;  %569 = vst.msk [vmem:[#allocation2 + $0x50] sm:$0x1] %vm550_vm8, %v21359_v58  ;;  %18956 = vmatmul.mubr.msk.bf16.vlgmr.msra.gmra.mrb[32].mxu1 %vm1178_vm5, %v27238_v36  ;;  %v27252_v36 = vld [vmem:[#allocation38_spill] sm:$0xff]  ;;  %p21305_p3 = pnand %p21304_p2, %p21298_p13 }
 0x151   : > { %572 = vst.msk [vmem:[#allocation2 + $0x5c] sm:$0x1] %vm550_vm8, %v21359_v58  ;;  %575 = vst.msk [vmem:[#allocation2 + $0x68] sm:$0x1] %vm550_vm8, %v21359_v58  ;;  %18959 = vmatprep.mubr.msk.bf16.mxu1 %vm1178_vm5, %v16772_v47  ;;  %18964 = vmatpush3.bf16.msra.mxu1 %v21110_v30  ;;  %v27250_v47 = vld [vmem:[#allocation11_spill] sm:$0xff] }
 0x152   : > { %578 = vst.msk [vmem:[#allocation2 + $0x74] sm:$0x1] %vm550_vm8, %v21359_v58  ;;  %581 = vst.msk [vmem:[#allocation2 + $0x80] sm:$0x1] %vm550_vm8, %v21359_v58  ;;  %18820 = vmatmul.mubr.msk.bf16.gmra.mrb[8].mxu0 %vm1178_vm5, %v27217_v32  ;;  %18965 = vmatprep.subr.bf16.mxu1 %v21111_v27 }
 0x153   : > { %584 = vst.msk [vmem:[#allocation2 + $0x8c] sm:$0x1] %vm550_vm8, %v21359_v58  ;;  %587 = vst.msk [vmem:[#allocation2 + $0x98] sm:$0x1] %vm550_vm8, %v21359_v58  ;;  %v22843_v40 = vpop.f32.mrb[0].mxu1  ;;  %18823 = vmatprep.mubr.msk.bf16.mxu0 %vm1178_vm5, %v27221_v0 }
 0x154   : > { %590 = vst.msk [vmem:[#allocation2 + $0xa4] sm:$0x1] %vm550_vm8, %v21359_v58  ;;  %593 = vst.msk [vmem:[#allocation2 + $0xb0] sm:$0x1] %vm550_vm8, %v21359_v58  ;;  %v22847_v34 = vpop.f32.mrb[1].mxu1 }
 0x155   : > { %596 = vst.msk [vmem:[#allocation2 + $0xbc] sm:$0x1] %vm550_vm8, %v21359_v58  ;;  %599 = vst.msk [vmem:[#allocation2 + $0xc8] sm:$0x1] %vm550_vm8, %v21359_v58  ;;  %v22850_v59 = vpop.f32.mrb[2].mxu1  ;;  %18966 = vmatpush3.bf16.msra.mxu1 %v21111_v27  ;;  %v27251_v27 = vld [vmem:[#allocation39_spill] sm:$0xff] }
 0x156   : > { %602 = vst.msk [vmem:[#allocation2 + $0xd4] sm:$0x1] %vm550_vm8, %v21359_v58  ;;  %604 = vst.msk [vmem:[#allocation3 + $0x4] sm:$0x1] %vm550_vm8, %v21359_v58  ;;  %v22854_v32 = vpop.f32.mrb[3].mxu1  ;;  %18975 = vmatprep.subr.bf16.mxu1 %v21115_v2 }
 0x157   : > { %606 = vst.msk [vmem:[#allocation3 + $0xc] sm:$0x1] %vm550_vm8, %v21359_v58  ;;  %608 = vst.msk [vmem:[#allocation3 + $0x14] sm:$0x1] %vm550_vm8, %v21359_v58 }
 0x158   : > { %612 = vst.msk [vmem:[#allocation3 + $0x24] sm:$0x1] %vm550_vm8, %v21359_v58  ;;  %614 = vst.msk [vmem:[#allocation3 + $0x2c] sm:$0x1] %vm550_vm8, %v21359_v58  ;;  %18960 = vmatmul.mubr.msk.bf16.gmra.mrb[36].mxu1 %vm1178_vm5, %v16773_v51 }
 0x159   : > { %616 = vst.msk [vmem:[#allocation3 + $0x34] sm:$0x1] %vm550_vm8, %v21359_v58  ;;  %618 = vst.msk [vmem:[#allocation3 + $0x3c] sm:$0x1] %vm550_vm8, %v21359_v58  ;;  %18967 = vmatprep.mubr.msk.bf16.mxu1 %vm1178_vm5, %v16780_v53  ;;  %v27255_v53 = vld [vmem:[#allocation42_spill] sm:$0xff] }
 0x15a   : > { %620 = vst.msk [vmem:[#allocation3 + $0x44] sm:$0x1] %vm550_vm8, %v21359_v58  ;;  %622 = vst.msk [vmem:[#allocation3 + $0x4c] sm:$0x1] %vm550_vm8, %v21359_v58  ;;  %18824 = vmatmul.mubr.msk.bf16.gmra.mrb[12].mxu0 %vm1178_vm5, %v27222_v6  ;;  %v27239_v6 = vcombine.low %v22191_v62, %v22194_v23  ;;  %v3015_v62 = vshrl.u32 %v22602_v29, 16  ;;  %v27240_v23 = vld [vmem:[#allocation34_spill] sm:$0xff]  ;;  %v27245_v58 = vcombine.low %v22259_v60, %v27244_v10 }
 0x15b   : > { %v22860_v0 = vpop.f32.mrb[4].mxu1  ;;  %18827 = vmatprep.mubr.msk.bf16.mxu0 %vm1178_vm5, %v27226_v3  ;;  %v4756_v3 = vshll.u32 %v3579_v39, 16  ;;  %v27248_v60 = vld [vmem:[#allocation18_spill] sm:$0xff]  ;;  %v27253_v39 = vld [vmem:[#allocation40_spill] sm:$0xff] }
 0x15c   : > { %v22864_v63 = vpop.f32.mrb[5].mxu1  ;;  %v3017_v57 = vrot.slane %v3015_v62, 4 }
 0x15d   : > { %v22866_v41 = vpop.f32.mrb[6].mxu1  ;;  %v4758_v56 = vrot.slane %v4756_v3, 5 }
 0x15e   : > { %v22870_v9 = vpop.f32.mrb[7].mxu1 }
 0x15f   : > { %v4759_v42 = vor.u32 %v4758_v56, %v4755_v11 }
 0x160   : > { %18968 = vmatmul.mubr.msk.bf16.vlgmr.msra.gmra.mrb[32].mxu1 %vm1178_vm5, %v27239_v6 }
 0x161   : > { %18971 = vmatprep.mubr.msk.bf16.mxu1 %vm1178_vm5, %v16782_v12  ;;  %18976 = vmatpush3.bf16.msra.mxu1 %v21115_v2  ;;  %v4760_v37 = vrot.slane %v4759_v42, 4  ;;  %v27254_v2 = vld [vmem:[#allocation41_spill] sm:$0xff] }
 0x162   : > { %18828 = vmatmul.mubr.msk.bf16.gmra.mrb[16].mxu0 %vm1178_vm5, %v27227_v46  ;;  %18977 = vmatprep.subr.bf16.mxu1 %v21116_v24  ;;  %v16790_v46 = vcombine.low %v22469_v35, %v22494_v50  ;;  %v3008_v35 = vor.u32 %v3007_v33, %v3004_v19  ;;  %v3018_v50 = vor.u32 %v3017_v57, %v3013_v48  ;;  %v27261_v19 = vld [vmem:[#allocation12_spill] sm:$0xff]  ;;  %v3239_v33 = vrot.slane %v22602_v29, 5 }
 0x163   : > { %18831 = vmatprep.mubr.msk.bf16.mxu0 %vm1178_vm5, %v27240_v23  ;;  %v4765_v14 = vsel %vm21564_vm6, %v4760_v37, %v4764_v8  ;;  %v27258_v23 = vld [vmem:[#allocation25_spill] sm:$0xff] }
 0x164   : > { %v3009_v7 = vrot.slane %v3008_v35, 4  ;;  %v3019_v4 = vrot.slane %v3018_v50, 4  ;;  %v16793_v30 = vcombine.low %v27248_v60, %v4765_v14  ;;  %v27262_v35 = vld [vmem:[#allocation13_spill] sm:$0xff]  ;;  %v21119_v14 = vld [vmem:[%s26990_s11] sm:$0xff]  }
 0x165   : > { %18978 = vmatpush3.bf16.msra.mxu1 %v21116_v24  ;;  %v23030_v60 = vld [vmem:[%s26988_s9] ss:$0 sm:$0xff] }
 0x166   : > { %v3014_v52 = vsel %vm21564_vm6, %v3009_v7, %v3013_v48  ;;  %v3024_v54 = vsel %vm21564_vm6, %v3019_v4, %v3023_v44  ;;  %18987 = vmatprep.subr.bf16.mxu1 %v21119_v14 }
 0x167   : > { %v16669_v21 = vcombine.low %v3014_v52, %v3024_v54  ;;  %v21122_v52 = vld [vmem:[%s26987_s8 + $0xa8] sm:$0xff]   ;;  %v23024_v54 = vld [vmem:[%s26987_s8 + $0x90] sm:$0xff]  }
 0x168   : > { %18972 = vmatmul.mubr.msk.bf16.gmra.mrb[36].mxu1 %vm1178_vm5, %v16783_v17 }
 0x169   : > { %18979 = vmatprep.mubr.msk.bf16.mxu1 %vm1178_vm5, %v16790_v46  ;;  %v27260_v46 = vld [vmem:[#allocation31_spill] sm:$0xff] }
 0x16a   : > { %18832 = vmatmul.mubr.msk.bf16.gmra.mrb[20].mxu0 %vm1178_vm5, %v27242_v26  ;;  %v3241_v26 = vrot.slane %v3239_v33, 4 }
 0x16b   : > { %18835 = vmatprep.mubr.msk.bf16.mxu0 %vm1178_vm5, %v27243_v13  ;;  %v3242_v13 = vrot.slane %v22895_v25, 5 }
 0x16d   : > { %v3243_v37 = vsel %vm21509_vm3, %v3241_v26, %v3242_v13 }
 0x170   : > { %18980 = vmatmul.mubr.msk.bf16.vlgmr.msra.gmra.mrb[32].mxu1 %vm1178_vm5, %v27245_v58 }
 0x171   : > { %18983 = vmatprep.mubr.msk.bf16.mxu1 %vm1178_vm5, %v16792_v1  ;;  %v3240_v1 = vsel %vm21509_vm3, %v16688_v55, %v3239_v33  ;;  %18988 = vmatpush3.bf16.msra.mxu1 %v21119_v14 }
 0x172   : > { %18836 = vmatmul.mubr.msk.bf16.gmra.mrb[24].mxu0 %vm1178_vm5, %v27246_v28  ;;  %v16689_v25 = vcombine.low %v3240_v1, %v3243_v37  ;;  %v21120_v28 = vld [vmem:[%s26990_s11 + $0x8] sm:$0xff]   ;;  %v6203_v1 = vld [vmem:[#allocation3 + $0xc] sm:$0x1] }
 0x173   : > { %18839 = vmatprep.mubr.msk.bf16.mxu0 %vm1178_vm5, %v27247_v43  ;;  %18989 = vmatprep.subr.bf16.mxu1 %v21120_v28  ;;  %v21121_v43 = vld [vmem:[%s26987_s8 + $0xa0] sm:$0xff]  }
 0x174   : > { %19371 = vmatprep.subr.bf16.mxu0 %v21121_v43 }
 0x175   : > { %18990 = vmatpush3.bf16.msra.mxu1 %v21120_v28 }
 0x178   : > { %18984 = vmatmul.mubr.msk.bf16.gmra.mrb[36].mxu1 %vm1178_vm5, %v16793_v30  ;;  %v23035_v30 = vld [vmem:[%s26989_s10] ss:$0 sm:$0xff] }
 0x17a   : > { %18840 = vmatmul.mubr.msk.bf16.gmra.mrb[28].mxu0 %vm1178_vm5, %v16669_v21 }
 0x17b   : > { %18847 = vmatprep.mubr.msk.bf16.mxu0 %vm1178_vm5, %v27249_v31 }
 0x182   : > { %18848 = vmatmul.mubr.msk.bf16.vlgmr.msra.gmra.mrb[0].mxu0 %vm1178_vm5, %v27250_v47 }
 0x183   : > { %18851 = vmatprep.mubr.msk.bf16.mxu0 %vm1178_vm5, %v27251_v27  ;;  %19372 = vmatpush3.bf16.msra.mxu0 %v21121_v43 }
 0x184   : > { %19373 = vmatprep.subr.bf16.mxu0 %v21122_v52 }
 0x187   : > { %19374 = vmatpush3.bf16.msra.mxu0 %v21122_v52 }
 0x188   : > { %19383 = vmatprep.subr.bf16.mxu0 %v23024_v54 }
 0x18a   : > { %18852 = vmatmul.mubr.msk.bf16.gmra.mrb[4].mxu0 %vm1178_vm5, %v27252_v36 }
 0x18b   : > { %18855 = vmatprep.mubr.msk.bf16.mxu0 %vm1178_vm5, %v27253_v39 }
 0x192   : > { %18856 = vmatmul.mubr.msk.bf16.gmra.mrb[8].mxu0 %vm1178_vm5, %v27254_v2 }
 0x193   : > { %v22935_v51 = vpop.f32.mrb[8].mxu1  ;;  %18859 = vmatprep.mubr.msk.bf16.mxu0 %vm1178_vm5, %v27255_v53 }
 0x194   : > { %v22939_v12 = vpop.f32.mrb[9].mxu1 }
 0x195   : > { %v22941_v24 = vpop.f32.mrb[10].mxu1 }
 0x196   : > { %v22943_v6 = vpop.f32.mrb[11].mxu1 }
 0x19a   : > { %18860 = vmatmul.mubr.msk.bf16.gmra.mrb[12].mxu0 %vm1178_vm5, %v27256_v22 }
 0x19b   : > { %v22947_v3 = vpop.f32.mrb[12].mxu1  ;;  %18863 = vmatprep.mubr.msk.bf16.mxu0 %vm1178_vm5, %v27257_v45 }
 0x19c   : > { %v22951_v49 = vpop.f32.mrb[13].mxu1 }
 0x19d   : > { %v22953_v20 = vpop.f32.mrb[14].mxu1 }
 0x19e   : > { %v22955_v62 = vpop.f32.mrb[15].mxu1 }
 0x1a2   : > { %18864 = vmatmul.mubr.msk.bf16.gmra.mrb[16].mxu0 %vm1178_vm5, %v27258_v23 }
 0x1a3   : > { %v22959_v5 = vpop.f32.mrb[16].mxu1  ;;  %18867 = vmatprep.mubr.msk.bf16.mxu0 %vm1178_vm5, %v27259_v16 }
 0x1a4   : > { %v22963_v17 = vpop.f32.mrb[17].mxu1 }
 0x1a5   : > { %v22965_v11 = vpop.f32.mrb[18].mxu1 }
 0x1a6   : > { %v22967_v56 = vpop.f32.mrb[19].mxu1 }
 0x1aa   : > { %18868 = vmatmul.mubr.msk.bf16.gmra.mrb[20].mxu0 %vm1178_vm5, %v27260_v46  ;;  %v23044_v46 = vld [vmem:[#allocation3] sm:$0xf] }
 0x1ab   : > { %v22971_v61 = vpop.f32.mrb[20].mxu1  ;;  %18871 = vmatprep.mubr.msk.bf16.mxu0 %vm1178_vm5, %v27261_v19 }
 0x1ac   : > { %v22976_v48 = vpop.f32.mrb[21].mxu1 }
 0x1ad   : > { %v22978_v57 = vpop.f32.mrb[22].mxu1 }
 0x1ae   : > { %v22980_v42 = vpop.f32.mrb[23].mxu1 }
 0x1b2   : > { %18872 = vmatmul.mubr.msk.bf16.gmra.mrb[24].mxu0 %vm1178_vm5, %v27262_v35 }
 0x1b3   : > { %v22986_v50 = vpop.f32.mrb[24].mxu1  ;;  %18875 = vmatprep.mubr.msk.bf16.mxu0 %vm1178_vm5, %v27263_v15 }
 0x1b4   : > { %v22994_v8 = vpop.f32.mrb[25].mxu1 }
 0x1b5   : > { %v22996_v18 = vpop.f32.mrb[26].mxu1 }
 0x1b6   : > { %27265 = vst [vmem:[#allocation19_spill] sm:$0xff] %v22996_v18  ;;  %v22998_v7 = vpop.f32.mrb[27].mxu1  ;;  %v6209_v18 = vld [vmem:[#allocation3 + $0x14] sm:$0x1] }
 0x1b7   : > { %27266 = vst [vmem:[#allocation20_spill] sm:$0xff] %v22998_v7  ;;  %v6221_v7 = vld [vmem:[#allocation3 + $0x24] sm:$0x1] }
 0x1ba   : > { %18876 = vmatmul.mubr.msk.bf16.gmra.mrb[28].mxu0 %vm1178_vm5, %v16689_v25 }
 0x1bb   : > { %v23001_v4 = vpop.f32.mrb[28].mxu1 }
 0x1bc   : > { %27267 = vst [vmem:[#allocation21_spill] sm:$0xff] %v23001_v4  ;;  %v23003_v44 = vpop.f32.mrb[29].mxu1  ;;  %v6218_v4 = vld [vmem:[#allocation3 + $0x20] sm:$0xf] }
 0x1bd   : > { %27268 = vst [vmem:[#allocation22_spill] sm:$0xff] %v23003_v44  ;;  %v23005_v10 = vpop.f32.mrb[30].mxu1 }
 0x1be   : > { %27269 = vst [vmem:[#allocation24_spill] sm:$0xff] %v23005_v10  ;;  %v23007_v58 = vpop.f32.mrb[31].mxu1 }
 0x1bf   : > { %27270 = vst [vmem:[#allocation26_spill] sm:$0xff] %v23007_v58 }
 0x243   : > { %v18981_v21 = vpop.f32.mrb[32].mxu1 }
 0x244   : > { %v4876_v31 = vmul.f32 %v18981_v21, %v23030_v60  ;;  %v4829_v47 = vpop.f32.mrb[33].mxu1 }
 0x245   : > { %v4874_v27 = vmul.f32 %v23030_v60, %v4829_v47  ;;  %v18982_v36 = vpop.f32.mrb[34].mxu1 }
 0x246   : > { %v4890_v39 = vadd.f32 %v23035_v30, %v4876_v31  ;;  %v4877_v2 = vmul.f32 %v18982_v36, %v23030_v60  ;;  %v4832_v53 = vpop.f32.mrb[35].mxu1 }
 0x247   : > { %v4888_v22 = vadd.f32 %v23035_v30, %v4874_v27  ;;  %v4875_v45 = vmul.f32 %v23030_v60, %v4832_v53  ;;  %v6212_v53 = vld [vmem:[#allocation3 + $0x18] sm:$0xf] }
 0x248   : > { %v4898_v23 = vmax.f32 %v4890_v39, 0.0  ;;  %v4891_v16 = vadd.f32 %v23035_v30, %v4877_v2  ;;  %v27271_v39 = vmov 0 }
 0x249   : > { %v4896_v19 = vmax.f32 %v4888_v22, 0.0  ;;  %v4889_v33 = vadd.f32 %v23035_v30, %v4875_v45  ;;  %v27272_v39 = vsel %vm23051_vm11, 4294967295, %v27271_v39 }
 0x24a   : > { %v17794_v55 = vpack.c.bf16 %v4898_v23, %v4898_v23  ;;  %v4899_v26 = vmax.f32 %v4891_v16, 0.0  ;;  %27273 = vst [vmem:[#allocation27_spill] sm:$0xff] %v27272_v39 }
 0x24b   : > { %v17792_v13 = vpack.c.bf16 %v4896_v19, %v4896_v19  ;;  %v4897_v35 = vmax.f32 %v4889_v33, 0.0  ;;  %v18985_v15 = vpop.f32.mrb[36].mxu1  ;;  %v27274_v33 = vmov 0 }
 0x24c   : > { %v6136_v25 = vshrl.u32 %v17794_v55, 16  ;;  %v6139_v14 = vshll.u32 %v17794_v55, 16  ;;  %v4910_v28 = vpack.c.bf16 %v4899_v26, %v4898_v23  ;;  %v17795_v43 = vpack.c.bf16 %v4899_v26, %v4899_v26  ;;  %v4845_v52 = vpop.f32.mrb[37].mxu1 }
 0x24d   : > { %v6120_v21 = vshrl.u32 %v17792_v13, 16  ;;  %v6123_v31 = vshll.u32 %v17792_v13, 16  ;;  %v4909_v47 = vpack.c.bf16 %v4897_v35, %v4896_v19  ;;  %v17793_v27 = vpack.c.bf16 %v4897_v35, %v4897_v35  ;;  %v18986_v36 = vpop.f32.mrb[38].mxu1  ;;  %v6215_v19 = vld [vmem:[#allocation3 + $0x1c] sm:$0x1] }
 0x24e   : > { %v6138_v2 = vrot.slane %v6136_v25, 7  ;;  %v6144_v22 = vshrl.u32 %v17795_v43, 16  ;;  %v6147_v45 = vshll.u32 %v17795_v43, 16  ;;  %v4880_v16 = vmul.f32 %v18985_v15, %v23030_v60  ;;  %v4848_v23 = vpop.f32.mrb[39].mxu1  ;;  %v6200_v43 = vld [vmem:[#allocation3 + $0x8] sm:$0xf] }
 0x24f   : > { %v27275_v33 = vsel %vm23058_vm12, 4294967295, %v27274_v33  ;;  %v6122_v55 = vrot.slane %v6120_v21, 7  ;;  %v6128_v26 = vshrl.u32 %v17793_v27, 16  ;;  %v6131_v13 = vshll.u32 %v17793_v27, 16  ;;  %18991 = vmatprep.mubr.msk.bf16.mxu1 %vm1178_vm5, %v4909_v47 }
 0x250   : > { %27276 = vst [vmem:[#allocation28_spill] sm:$0xff] %v27275_v33  ;;  %v4878_v35 = vmul.f32 %v23030_v60, %v4845_v52  ;;  %v6141_v25 = vor.u32 %v6139_v14, %v6138_v2  ;;  %v6142_v37 = vrot.slane %v6138_v2, 4  ;;  %v6146_v15 = vrot.slane %v6144_v22, 7  ;;  %18992 = vmatmul.mubr.msk.bf16.vlgmr.msra.gmra.mrb[40].mxu1 %vm1178_vm5, %v4910_v28  ;;  %v6206_v22 = vld [vmem:[#allocation3 + $0x10] sm:$0xf] }
 0x251   : > { %v4894_v58 = vadd.f32 %v23035_v30, %v4880_v16  ;;  %v6125_v10 = vor.u32 %v6123_v31, %v6122_v55  ;;  %v6126_v44 = vrot.slane %v6122_v55, 4  ;;  %v6130_v21 = vrot.slane %v6128_v26, 7 }
 0x252   : > { %v4892_v27 = vadd.f32 %v23035_v30, %v4878_v35  ;;  %v6213_v52 = vsel %vm23051_vm11, %v6141_v25, %v6212_v53  ;;  %v6216_v14 = vsel %vm23058_vm12, %v6142_v37, %v6215_v19  ;;  %v6149_v47 = vor.u32 %v6147_v45, %v6146_v15 }
 0x253   : > { %v6150_v2 = vrot.slane %v6146_v15, 4  ;;  %6214 = vst [vmem:[#allocation3 + $0x18] sm:$0xf] %v6213_v52  ;;  %6217 = vst [vmem:[#allocation3 + $0x1c] sm:$0x1] %v6216_v14  ;;  %v6201_v28 = vsel %vm23051_vm11, %v6125_v10, %v6200_v43  ;;  %v6204_v31 = vsel %vm23058_vm12, %v6126_v44, %v6203_v1  ;;  %v6133_v16 = vor.u32 %v6131_v13, %v6130_v21 }
 0x254   : > { %v6134_v55 = vrot.slane %v6130_v21, 4  ;;  %6202 = vst [vmem:[#allocation3 + $0x8] sm:$0xf] %v6201_v28  ;;  %6205 = vst [vmem:[#allocation3 + $0xc] sm:$0x1] %v6204_v31  ;;  %v6219_v53 = vsel %vm23051_vm11, %v6149_v47, %v6218_v4  ;;  %v4902_v45 = vmax.f32 %v4894_v58, 0.0  ;;  %v4881_v1 = vmul.f32 %v18986_v36, %v23030_v60 }
 0x255   : > { %v6222_v37 = vsel %vm23058_vm12, %v6150_v2, %v6221_v7  ;;  %v4900_v19 = vmax.f32 %v4892_v27, 0.0  ;;  %6220 = vst [vmem:[#allocation3 + $0x20] sm:$0xf] %v6219_v53  ;;  %v6207_v10 = vsel %vm23051_vm11, %v6133_v16, %v6206_v22  ;;  %v4879_v26 = vmul.f32 %v23030_v60, %v4848_v23  ;;  %v18849_v13 = vpop.f32.mrb[0].mxu0  ;;  %v6236_v28 = vld [vmem:[#allocation3 + $0x38] sm:$0xf] }
 0x256   : > { %6223 = vst [vmem:[#allocation3 + $0x24] sm:$0x1] %v6222_v37  ;;  %v6210_v44 = vsel %vm23058_vm12, %v6134_v55, %v6209_v18  ;;  %6208 = vst [vmem:[#allocation3 + $0x10] sm:$0xf] %v6207_v10  ;;  %v17798_v4 = vpack.c.bf16 %v4902_v45, %v4902_v45  ;;  %v23086_v7 = vadd.f32 %v18849_v13, %v22843_v40  ;;  %v3296_v58 = vpop.f32.mrb[1].mxu0  ;;  %v27279_v23 = vshrl.u32 %v23044_v46, 16 }
 0x257   : > { %6211 = vst [vmem:[#allocation3 + $0x14] sm:$0x1] %v6210_v44  ;;  %v17796_v35 = vpack.c.bf16 %v4900_v19, %v4900_v19  ;;  %v4895_v25 = vadd.f32 %v23035_v30, %v4881_v1  ;;  %v4893_v43 = vadd.f32 %v23035_v30, %v4879_v26  ;;  %v23091_v15 = vadd.f32 %v3296_v58, %v22847_v34  ;;  %v18850_v18 = vpop.f32.mrb[2].mxu0  ;;  %v6239_v55 = vld [vmem:[#allocation3 + $0x3c] sm:$0x1] }
 0x258   : > { %27277 = vst [vmem:[#allocation30_spill] sm:$0xff] %v23086_v7  ;;  %v6168_v36 = vshrl.u32 %v17798_v4, 16  ;;  %v3299_v60 = vpop.f32.mrb[3].mxu0  ;;  %v23095_v27 = vrot.slane %v27279_v23, 4  ;;  %v27280_v52 = vshll.u32 %v23044_v46, 16  ;;  %v6171_v14 = vshll.u32 %v17798_v4, 16 }
 0x259   : > { %27278 = vst [vmem:[#allocation32_spill] sm:$0xff] %v23091_v15  ;;  %v6152_v21 = vshrl.u32 %v17796_v35, 16  ;;  %v6155_v47 = vshll.u32 %v17796_v35, 16  ;;  %v4903_v2 = vmax.f32 %v4895_v25, 0.0  ;;  %v4901_v22 = vmax.f32 %v4893_v43, 0.0 }
 0x25a   : > { %v23099_v40 = vrot.slane %v27280_v52, 5  ;;  %v6170_v30 = vrot.slane %v6168_v36, 7  ;;  %v23102_v31 = vadd.f32 %v18850_v18, %v22850_v59  ;;  %v23105_v16 = vadd.f32 %v3299_v60, %v22854_v32  ;;  %v6224_v53 = vld [vmem:[#allocation3 + $0x28] sm:$0xf]  ;;  %v6227_v37 = vld [vmem:[#allocation3 + $0x2c] sm:$0x1] }
 0x25b   : > { %v6154_v34 = vrot.slane %v6152_v21, 7  ;;  %v4912_v10 = vpack.c.bf16 %v4903_v2, %v4902_v45  ;;  %v17799_v44 = vpack.c.bf16 %v4903_v2, %v4903_v2  ;;  %v4911_v1 = vpack.c.bf16 %v4901_v22, %v4900_v19  ;;  %v23108_v18 = vld [vmem:[#allocation3 + $0x8] sm:$0xf]  ;;  %v6242_v21 = vld [vmem:[#allocation3 + $0x40] sm:$0xf] }
 0x25c   : > { %27281 = vst [vmem:[#allocation33_spill] sm:$0xff] %v23102_v31  ;;  %27282 = vst [vmem:[#allocation9_spill] sm:$0xff] %v23105_v16  ;;  %v17797_v26 = vpack.c.bf16 %v4901_v22, %v4901_v22  ;;  %v6173_v13 = vor.u32 %v6171_v14, %v6170_v30  ;;  %v6174_v4 = vrot.slane %v6170_v30, 4  ;;  %v6245_v60 = vld [vmem:[#allocation3 + $0x44] sm:$0x1] }
 0x25d   : > { %v6157_v35 = vor.u32 %v6155_v47, %v6154_v34  ;;  %v6158_v58 = vrot.slane %v6154_v34, 4  ;;  %v6176_v25 = vshrl.u32 %v17799_v44, 16  ;;  %18995 = vmatprep.mubr.msk.bf16.mxu1 %vm1178_vm5, %v4911_v1  ;;  %v18853_v59 = vpop.f32.mrb[4].mxu0  ;;  %v6230_v23 = vld [vmem:[#allocation3 + $0x30] sm:$0xf]  ;;  %v6179_v2 = vshll.u32 %v17799_v44, 16 }
 0x25e   : > { %v6160_v43 = vshrl.u32 %v17797_v26, 16  ;;  %v6237_v32 = vsel %vm23051_vm11, %v6173_v13, %v6236_v28  ;;  %v6240_v45 = vsel %vm23058_vm12, %v6174_v4, %v6239_v55  ;;  %18996 = vmatmul.mubr.msk.bf16.gmra.mrb[44].mxu1 %vm1178_vm5, %v4912_v10  ;;  %v23119_v52 = vld [vmem:[#allocation3 + $0x4] sm:$0x1]  ;;  %v3312_v14 = vpop.f32.mrb[5].mxu0  ;;  %v6163_v30 = vshll.u32 %v17797_v26, 16 }
 0x25f   : > { %v6225_v19 = vsel %vm23051_vm11, %v6157_v35, %v6224_v53  ;;  %v6228_v36 = vsel %vm23058_vm12, %v6158_v58, %v6227_v37  ;;  %6238 = vst [vmem:[#allocation3 + $0x38] sm:$0xf] %v6237_v32  ;;  %6241 = vst [vmem:[#allocation3 + $0x3c] sm:$0x1] %v6240_v45  ;;  %v6178_v47 = vrot.slane %v6176_v25, 7  ;;  %v18854_v28 = vpop.f32.mrb[6].mxu0  ;;  %v23122_v55 = vadd.f32 %v18853_v59, %v22860_v0 }
 0x260   : > { %6226 = vst [vmem:[#allocation3 + $0x28] sm:$0xf] %v6225_v19  ;;  %6229 = vst [vmem:[#allocation3 + $0x2c] sm:$0x1] %v6228_v36  ;;  %v6162_v22 = vrot.slane %v6160_v43, 7  ;;  %v9236_v53 = vor.u32 %v23099_v40, %v23095_v27  ;;  %v9239_v37 = vshll.u32 %v23119_v52, 16  ;;  %v23142_v19 = vadd.f32 %v3312_v14, %v22864_v63 }
 0x261   : > { %v6233_v34 = vld [vmem:[#allocation3 + $0x34] sm:$0x1]  ;;  %27283 = vst [vmem:[#allocation34_spill] sm:$0xff] %v23122_v55  ;;  %v9244_v10 = vshrl.u32 %v23108_v18, 16  ;;  %v3315_v1 = vpop.f32.mrb[7].mxu0  ;;  %v6181_v13 = vor.u32 %v6179_v2, %v6178_v47  ;;  %v6182_v4 = vrot.slane %v6178_v47, 4  ;;  %v23145_v36 = vadd.f32 %v18854_v28, %v22866_v41 }
 0x262   : > { %v6165_v35 = vor.u32 %v6163_v30, %v6162_v22  ;;  %v6166_v58 = vrot.slane %v6162_v22, 4  ;;  %v23136_v40 = vld [vmem:[#allocation3 + $0x10] sm:$0xf]  ;;  %v23138_v25 = vld [vmem:[#allocation3 + $0xc] sm:$0x1]  ;;  %v9237_v43 = vrot.slane %v9236_v53, 4 }
 0x263   : > { %v6243_v44 = vsel %vm23051_vm11, %v6181_v13, %v6242_v21  ;;  %v6246_v26 = vsel %vm23058_vm12, %v6182_v4, %v6245_v60  ;;  %v9241_v59 = vrot.slane %v9239_v37, 5  ;;  %v9246_v32 = vrot.slane %v9244_v10, 4  ;;  %27284 = vst [vmem:[#allocation17_spill] sm:$0xff] %v23142_v19  ;;  %27285 = vst [vmem:[#allocation35_spill] sm:$0xff] %v23145_v36  ;;  %v23147_v60 = vld [vmem:[#allocation3 + $0x18] sm:$0xf] }
 0x264   : > { %v6231_v0 = vsel %vm23051_vm11, %v6165_v35, %v6230_v23  ;;  %v6234_v27 = vsel %vm23058_vm12, %v6166_v58, %v6233_v34  ;;  %6244 = vst [vmem:[#allocation3 + $0x40] sm:$0xf] %v6243_v44  ;;  %6247 = vst [vmem:[#allocation3 + $0x44] sm:$0x1] %v6246_v26  ;;  %v9247_v45 = vshll.u32 %v23108_v18, 16  ;;  %v9258_v23 = vshrl.u32 %v23136_v40, 16 }
 0x265   : > { %6232 = vst [vmem:[#allocation3 + $0x30] sm:$0xf] %v6231_v0  ;;  %6235 = vst [vmem:[#allocation3 + $0x34] sm:$0x1] %v6234_v27  ;;  %v18857_v21 = vpop.f32.mrb[8].mxu0  ;;  %v9261_v47 = vshll.u32 %v23136_v40, 16  ;;  %v9242_v41 = vsel %vm21564_vm6, %v9237_v43, %v9241_v59  ;;  %v23164_v44 = vadd.f32 %v3315_v1, %v22870_v9 }
 0x266   : > { %v3328_v2 = vpop.f32.mrb[9].mxu0  ;;  %v9249_v22 = vrot.slane %v9247_v45, 5  ;;  %v9253_v30 = vshll.u32 %v23138_v25, 16  ;;  %v23152_v34 = vld [vmem:[#allocation3 + $0x14] sm:$0x1]  ;;  %v9260_v63 = vrot.slane %v9258_v23, 4 }
 0x267   : > { %v18858_v53 = vpop.f32.mrb[10].mxu0  ;;  %v23154_v37 = vld [vmem:[#allocation3 + $0x1c] sm:$0x1]  ;;  %v9263_v14 = vrot.slane %v9261_v47, 5  ;;  %v9272_v10 = vshrl.u32 %v23147_v60, 16  ;;  %v9267_v35 = vshll.u32 %v23152_v34, 16 }
 0x268   : > { %v9250_v28 = vor.u32 %v9249_v22, %v9246_v32  ;;  %v23159_v13 = vpop.f32.mrb[11].mxu0  ;;  %v9275_v58 = vshll.u32 %v23147_v60, 16  ;;  %27286 = vst [vmem:[#allocation36_spill] sm:$0xff] %v23164_v44  ;;  %v23166_v26 = vld [vmem:[#allocation3 + $0x20] sm:$0xf]  ;;  %v9255_v27 = vrot.slane %v9253_v30, 5  ;;  %v23176_v22 = vadd.f32 %v18857_v21, %v22935_v51 }
 0x269   : > { %v9264_v4 = vor.u32 %v9263_v14, %v9260_v63  ;;  %v9274_v45 = vrot.slane %v9272_v10, 4  ;;  %v9281_v43 = vshll.u32 %v23154_v37, 16  ;;  %v23169_v23 = vld [vmem:[#allocation3 + $0x24] sm:$0x1]  ;;  %v23178_v9 = vld [vmem:[#allocation3 + $0x28] sm:$0xf]  ;;  %v23246_v15 = vadd.f32 %v23159_v13, %v22943_v6 }
 0x26a   : > { %v9251_v0 = vrot.slane %v9250_v28, 4  ;;  %v9277_v32 = vrot.slane %v9275_v58, 5  ;;  %27287 = vst [vmem:[#allocation15_spill] sm:$0xff] %v23176_v22  ;;  %v9286_v1 = vshrl.u32 %v23166_v26, 16  ;;  %v9289_v30 = vshll.u32 %v23166_v26, 16  ;;  %v21125_v55 = vld [vmem:[%s26987_s8 + $0x98] sm:$0xff]  }
 0x26b   : > { %v9265_v59 = vrot.slane %v9264_v4, 4  ;;  %v9269_v28 = vrot.slane %v9267_v35, 5  ;;  %v23183_v4 = vld [vmem:[#allocation3 + $0x2c] sm:$0x1]  ;;  %v9283_v44 = vrot.slane %v9281_v43, 5  ;;  %v9295_v51 = vshll.u32 %v23169_v23, 16 }
 0x26c   : > { %v23173_v47 = vsel %vm21564_vm6, %v9251_v0, %v9255_v27  ;;  %v9278_v10 = vor.u32 %v9277_v32, %v9274_v45  ;;  %v9288_v0 = vrot.slane %v9286_v1, 4  ;;  %v9291_v27 = vrot.slane %v9289_v30, 5  ;;  %v23194_v1 = vld [vmem:[#allocation3 + $0x30] sm:$0xf] }
 0x26d   : > { %v18861_v63 = vpop.f32.mrb[12].mxu0  ;;  %v17177_v14 = vcombine.low %v9242_v41, %v23173_v47  ;;  %v23189_v22 = vsel %vm21564_vm6, %v9265_v59, %v9269_v28  ;;  %v9300_v41 = vshrl.u32 %v23178_v9, 16  ;;  %v9303_v35 = vshll.u32 %v23178_v9, 16  ;;  %v23203_v28 = vld [vmem:[#allocation3 + $0x38] sm:$0xf] }
 0x26e   : > { %v3344_v58 = vpop.f32.mrb[13].mxu0  ;;  %v9279_v36 = vrot.slane %v9278_v10, 4  ;;  %v9292_v32 = vor.u32 %v9291_v27, %v9288_v0  ;;  %v9309_v43 = vshll.u32 %v23183_v4, 16  ;;  %v23201_v59 = vadd.f32 %v3328_v2, %v22939_v12  ;;  %v23222_v2 = vld [vmem:[#allocation3 + $0x34] sm:$0x1] }
 0x26f   : > { %v18862_v21 = vpop.f32.mrb[14].mxu0  ;;  %19375 = vmatprep.mubr.msk.bf16.mxu0 %vm1178_vm5, %v17177_v14  ;;  %v9302_v14 = vrot.slane %v9300_v41, 4  ;;  %v9305_v19 = vrot.slane %v9303_v35, 5  ;;  %v9297_v27 = vrot.slane %v9295_v51, 5  ;;  %v9317_v51 = vshll.u32 %v23194_v1, 16 }
 0x270   : > { %v3347_v45 = vpop.f32.mrb[15].mxu0  ;;  %v23198_v30 = vsel %vm21564_vm6, %v9279_v36, %v9283_v44  ;;  %27288 = vst [vmem:[#allocation37_spill] sm:$0xff] %v23201_v59  ;;  %v9293_v0 = vrot.slane %v9292_v32, 4  ;;  %v23213_v36 = vadd.f32 %v18858_v53, %v22941_v24  ;;  %v9314_v44 = vshrl.u32 %v23194_v1, 16  ;;  %v21129_v59 = vld [vmem:[%s26987_s8 + $0xb0] sm:$0xff]  }
 0x271   : > { %v23207_v10 = vcombine.low %v23189_v22, %v23198_v30  ;;  %v9306_v16 = vor.u32 %v9305_v19, %v9302_v14  ;;  %v9328_v41 = vshrl.u32 %v23203_v28, 16  ;;  %v9311_v32 = vrot.slane %v9309_v43, 5  ;;  %v23229_v14 = vld [vmem:[#allocation3 + $0x3c] sm:$0x1] }
 0x272   : > { %27289 = vst [vmem:[#allocation16_spill] sm:$0xff] %v23213_v36  ;;  %v23220_v12 = vsel %vm21564_vm6, %v9293_v0, %v9297_v27  ;;  %v9316_v36 = vrot.slane %v9314_v44, 4  ;;  %v9319_v0 = vrot.slane %v9317_v51, 5  ;;  %v9323_v43 = vshll.u32 %v23222_v2, 16 }
 0x273   : > { %19376 = vmatmul.mubr.msk.bf16.vlgmr.msra.gmra.mrb[32].mxu0 %vm1178_vm5, %v23207_v10  ;;  %v9307_v19 = vrot.slane %v9306_v16, 4  ;;  %v9330_v24 = vrot.slane %v9328_v41, 4  ;;  %v9337_v33 = vshll.u32 %v23229_v14, 16  ;;  %v23258_v6 = vadd.f32 %v18862_v21, %v22953_v20 }
 0x274   : > { %19384 = vmatpush3.bf16.msra.mxu0 %v23024_v54  ;;  %v9331_v54 = vshll.u32 %v23203_v28, 16  ;;  %v9320_v51 = vor.u32 %v9319_v0, %v9316_v36  ;;  %v9325_v36 = vrot.slane %v9323_v43, 5  ;;  %v23261_v13 = vadd.f32 %v3347_v45, %v22955_v62 }
 0x275   : > { %v18865_v35 = vpop.f32.mrb[16].mxu0  ;;  %19385 = vmatprep.subr.bf16.mxu0 %v21125_v55  ;;  %v23236_v16 = vsel %vm21564_vm6, %v9307_v19, %v9311_v32  ;;  %v23250_v19 = vadd.f32 %v18861_v63, %v22947_v3  ;;  %v23255_v32 = vadd.f32 %v3344_v58, %v22951_v49 }
 0x276   : > { %v3360_v53 = vpop.f32.mrb[17].mxu0  ;;  %v23242_v44 = vcombine.low %v23220_v12, %v23236_v16  ;;  %v9333_v7 = vrot.slane %v9331_v54, 5  ;;  %v9321_v41 = vrot.slane %v9320_v51, 4  ;;  %v9339_v54 = vrot.slane %v9337_v33, 5 }
 0x277   : > { %v18866_v27 = vpop.f32.mrb[18].mxu0  ;;  %v23268_v49 = vadd.f32 %v18865_v35, %v22959_v5  ;;  %v23275_v20 = vadd.f32 %v3360_v53, %v22963_v17  ;;  %v17187_v33 = vcombine.low %v23044_v46, %v23108_v18  ;;  %v23287_v5 = vld [vmem:[%s26985_s6] ss:$0 sm:$0xff] }
 0x278   : > { %v3363_v31 = vpop.f32.mrb[19].mxu0  ;;  %19386 = vmatpush3.bf16.msra.mxu0 %v21125_v55  ;;  %19379 = vmatprep.mubr.msk.bf16.mxu0 %vm1178_vm5, %v23242_v44  ;;  %v9334_v0 = vor.u32 %v9333_v7, %v9330_v24  ;;  %v23265_v3 = vsel %vm21564_vm6, %v9321_v41, %v9325_v36  ;;  %v20053_v45 = vadd.f32 %v18866_v27, %v22965_v11  ;;  %v23300_v11 = vld [vmem:[%s26986_s7] ss:$0 sm:$0xff] }
 0x279   : > { %19395 = vmatprep.subr.bf16.mxu0 %v21129_v59  ;;  %v23292_v17 = vadd.f32 %v3363_v31, %v22967_v56 }
 0x27a   : > { %v9335_v63 = vrot.slane %v9334_v0, 4  ;;  %v3480_v35 = vmul.f32 %v20053_v45, %v23287_v5  ;;  %v9565_v45 = vrot.slane %v23138_v25, 5  ;;  %v21131_v25 = vld [vmem:[%s26987_s8 + $0xc0] sm:$0xff]  }
 0x27c   : > { %v23272_v7 = vsel %vm21564_vm6, %v9335_v63, %v9339_v54  ;;  %v23307_v56 = vadd.f32 %v23300_v11, %v3480_v35  ;;  %v9561_v63 = vrot.slane %v23119_v52, 5  ;;  %v21130_v54 = vld [vmem:[%s26987_s8 + $0xb8] sm:$0xff]  }
 0x27d   : > { %v18869_v55 = vpop.f32.mrb[20].mxu0  ;;  %v23279_v21 = vcombine.low %v23265_v3, %v23272_v7 }
 0x27e   : > { %v3376_v51 = vpop.f32.mrb[21].mxu0  ;;  %v20055_v24 = vadd.f32 %v18869_v55, %v22971_v61 }
 0x27f   : > { %v18870_v58 = vpop.f32.mrb[22].mxu0  ;;  %19380 = vmatmul.mubr.msk.bf16.gmra.mrb[36].mxu0 %vm1178_vm5, %v23279_v21  ;;  %v23303_v53 = vadd.f32 %v3376_v51, %v22976_v48  ;;  %v23316_v48 = vcombine.low %v23136_v40, %v23147_v60 }
 0x280   : > { %v3379_v62 = vpop.f32.mrb[23].mxu0  ;;  %19387 = vmatprep.mubr.msk.bf16.mxu0 %vm1178_vm5, %v17187_v33  ;;  %v20057_v27 = vadd.f32 %v18870_v58, %v22978_v57  ;;  %v3483_v31 = vmul.f32 %v20055_v24, %v23287_v5  ;;  %v17197_v57 = vrot.slane %v23044_v46, 9  ;;  %v23328_v58 = vcombine.low %v23166_v26, %v23178_v9 }
 0x281   : > { %v17198_v33 = vrot.slane %v23108_v18, 9  ;;  %v20058_v35 = vadd.f32 %v3379_v62, %v22980_v42 }
 0x282   : > { %v3484_v36 = vmul.f32 %v20057_v27, %v23287_v5  ;;  %v23312_v0 = vadd.f32 %v23300_v11, %v3483_v31  ;;  %v9562_v42 = vsel %vm21509_vm3, %v17197_v57, %v9561_v63  ;;  %v27293_v31 = vld [vmem:[#allocation19_spill] sm:$0xff] }
 0x283   : > { %v3482_v46 = vmul.f32 %v20058_v35, %v23287_v5  ;;  %v23347_v62 = vsel %vm21509_vm3, %v17198_v33, %v9565_v45  ;;  %v23357_v35 = vcombine.low %v23194_v1, %v23203_v28 }
 0x284   : > { %27290 = vst [vmem:[#allocation18_spill] sm:$0xff] %v23312_v0  ;;  %v23324_v51 = vadd.f32 %v23300_v11, %v3484_v36  ;;  %v17205_v33 = vcombine.low %v9562_v42, %v23347_v62  ;;  %v17200_v42 = vrot.slane %v23147_v60, 9 }
 0x285   : > { %v18873_v43 = vpop.f32.mrb[24].mxu0 }
 0x286   : > { %v3392_v41 = vpop.f32.mrb[25].mxu0  ;;  %27291 = vst [vmem:[#allocation10_spill] sm:$0xff] %v23324_v51  ;;  %v20059_v52 = vadd.f32 %v18873_v43, %v22986_v50 }
 0x287   : > { %v18874_v61 = vpop.f32.mrb[26].mxu0  ;;  %19388 = vmatmul.mubr.msk.bf16.vlgmr.msra.gmra.mrb[32].mxu0 %vm1178_vm5, %v23316_v48  ;;  %v20060_v24 = vadd.f32 %v3392_v41, %v22994_v8 }
 0x288   : > { %v3395_v55 = vpop.f32.mrb[27].mxu0  ;;  %19391 = vmatprep.mubr.msk.bf16.mxu0 %vm1178_vm5, %v23328_v58  ;;  %19396 = vmatpush3.bf16.msra.mxu0 %v21129_v59  ;;  %v23350_v59 = vadd.f32 %v23300_v11, %v3482_v46  ;;  %v20061_v36 = vadd.f32 %v18874_v61, %v27293_v31  ;;  %v3487_v8 = vmul.f32 %v20059_v52, %v23287_v5  ;;  %v27296_v46 = vld [vmem:[#allocation20_spill] sm:$0xff]  ;;  %v9569_v31 = vrot.slane %v23152_v34, 5 }
 0x289   : > { %19397 = vmatprep.subr.bf16.mxu0 %v21130_v54  ;;  %v3485_v43 = vmul.f32 %v20060_v24, %v23287_v5  ;;  %v20062_v52 = vadd.f32 %v3395_v55, %v27296_v46  ;;  %v17199_v24 = vrot.slane %v23136_v40, 9  ;;  %v9573_v34 = vrot.slane %v23154_v37, 5 }
 0x28a   : > { %27292 = vst [vmem:[#allocation11_spill] sm:$0xff] %v23350_v59  ;;  %v3488_v57 = vmul.f32 %v20061_v36, %v23287_v5  ;;  %v23362_v45 = vadd.f32 %v23300_v11, %v3487_v8  ;;  %v27298_v36 = vld [vmem:[#allocation21_spill] sm:$0xff]  ;;  %v17202_v8 = vrot.slane %v23178_v9, 9 }
 0x28b   : > { %v23365_v61 = vadd.f32 %v23300_v11, %v3485_v43  ;;  %v9581_v43 = vrot.slane %v23183_v4, 5  ;;  %v3486_v55 = vmul.f32 %v20062_v52, %v23287_v5  ;;  %v27301_v4 = vld [vmem:[#allocation26_spill] sm:$0xff] }
 0x28c   : > { %19398 = vmatpush3.bf16.msra.mxu0 %v21130_v54  ;;  %27294 = vst [vmem:[#allocation39_spill] sm:$0xff] %v23362_v45  ;;  %v23371_v54 = vadd.f32 %v23300_v11, %v3488_v57  ;;  %v17201_v57 = vrot.slane %v23166_v26, 9  ;;  %v27300_v45 = vld [vmem:[#allocation24_spill] sm:$0xff] }
 0x28d   : > { %v18877_v27 = vpop.f32.mrb[28].mxu0  ;;  %27295 = vst [vmem:[#allocation38_spill] sm:$0xff] %v23365_v61  ;;  %19407 = vmatprep.subr.bf16.mxu0 %v21131_v25  ;;  %v23387_v61 = vadd.f32 %v23300_v11, %v3486_v55  ;;  %v9589_v55 = vrot.slane %v23229_v14, 5  ;;  %v17215_v14 = vcombine.low %v23108_v18, %v23136_v40  ;;  %v21139_v18 = vld [vmem:[%s26987_s8 + $0xe0] sm:$0xff]   ;;  %v27071_v40 = vmov 0.0  }
 0x28e   : > { %v3408_v50 = vpop.f32.mrb[29].mxu0  ;;  %27297 = vst [vmem:[#allocation40_spill] sm:$0xff] %v23371_v54  ;;  %v20063_v59 = vadd.f32 %v18877_v27, %v27298_v36  ;;  %v27299_v27 = vld [vmem:[#allocation22_spill] sm:$0xff]  ;;  %v9577_v54 = vrot.slane %v23169_v23, 5  ;;  %18999 = vmatprep.subr.bf16.mxu1 %v27071_v40  ;;  %19001 = vmatprep.mubr.msk.bf16.mxu1 %vm21361_vm13, %v27071_v40 }
 0x28f   : > { %v18878_v41 = vpop.f32.mrb[30].mxu0  ;;  %19392 = vmatmul.mubr.msk.bf16.gmra.mrb[36].mxu0 %vm1178_vm5, %v23357_v35  ;;  %v20064_v36 = vadd.f32 %v3408_v50, %v27299_v27  ;;  %v23401_v50 = vsel %vm21509_vm3, %v17202_v8, %v9581_v43  ;;  %v17203_v8 = vrot.slane %v23194_v1, 9  ;;  %v9585_v43 = vrot.slane %v23222_v2, 5  ;;  %v21138_v27 = vld [vmem:[%s26987_s8 + $0xd8] sm:$0xff]  }
 0x290   : > { %v3411_v63 = vpop.f32.mrb[31].mxu0  ;;  %19399 = vmatprep.mubr.msk.bf16.mxu0 %vm1178_vm5, %v17205_v33  ;;  %v3491_v46 = vmul.f32 %v20063_v59, %v23287_v5  ;;  %v20065_v51 = vadd.f32 %v18878_v41, %v27300_v45  ;;  %v23393_v33 = vsel %vm21509_vm3, %v17199_v24, %v9569_v31  ;;  %v23407_v41 = vsel %vm21509_vm3, %v17200_v42, %v9573_v34  ;;  %v21137_v34 = vld [vmem:[%s26987_s8 + $0xd0] sm:$0xff]  }
 0x291   : > { %v20066_v0 = vadd.f32 %v3411_v63, %v27301_v4  ;;  %v3489_v59 = vmul.f32 %v20064_v36, %v23287_v5  ;;  %v23414_v45 = vcombine.low %v23393_v33, %v23407_v41  ;;  %v23418_v24 = vsel %vm21509_vm3, %v17201_v57, %v9577_v54  ;;  %v23466_v4 = vld [vmem:[#allocation3 + $0x40] sm:$0xf] }
 0x292   : > { %v23396_v37 = vadd.f32 %v23300_v11, %v3491_v46  ;;  %v3492_v23 = vmul.f32 %v20065_v51, %v23287_v5  ;;  %v21133_v51 = vld [vmem:[%s26987_s8 + $0xc8] sm:$0xff]   ;;  %v23431_v42 = vcombine.low %v23418_v24, %v23401_v50  ;;  %v17204_v54 = vrot.slane %v23203_v28, 9 }
 0x293   : > { %v3490_v52 = vmul.f32 %v20066_v0, %v23287_v5  ;;  %v23410_v63 = vadd.f32 %v23300_v11, %v3489_v59  ;;  %v9586_v57 = vsel %vm21509_vm3, %v17203_v8, %v9585_v43  ;;  %v17217_v36 = vcombine.low %v23178_v9, %v23194_v1 }
 0x294   : > { %v23424_v0 = vadd.f32 %v23300_v11, %v3492_v23  ;;  %v23448_v2 = vsel %vm21509_vm3, %v17204_v54, %v9589_v55  ;;  %v17218_v9 = vcombine.low %v23203_v28, %v23466_v4  ;;  %v17225_v1 = vcombine.low %v23173_v47, %v23189_v22  ;;  %v21140_v28 = vld [vmem:[%s26987_s8 + $0xe8] sm:$0xff]   ;;  %v21141_v55 = vld [vmem:[%s26987_s8 + $0xf0] sm:$0xff]  }
 0x295   : > { %v23427_v31 = vadd.f32 %v23300_v11, %v3490_v52  ;;  %v23451_v46 = vcombine.low %v9586_v57, %v23448_v2  ;;  %v9185_v52 = vld [vmem:[#allocation3 + $0x44] sm:$0x1]  ;;  %v17227_v47 = vcombine.low %v23236_v16, %v23265_v3  ;;  %v27302_v43 = vcombine.low %v23198_v30, %v23220_v12 }
 0x296   : > { %v9813_v8 = vshll.u32 %v9185_v52, 16  ;;  %v17236_v30 = vcombine.low %v23347_v62, %v23393_v33  ;;  %v17237_v12 = vcombine.low %v23407_v41, %v23418_v24  ;;  %v21142_v3 = vld [vmem:[%s26987_s8 + $0xf8] sm:$0xff]   ;;  %v21144_v62 = vld [vmem:[%s26987_s8 + $0x100] sm:$0xff]  }
 0x297   : > { %19400 = vmatmul.mubr.msk.bf16.vlgmr.msra.gmra.mrb[32].mxu0 %vm1178_vm5, %v23414_v45  ;;  %v9186_v24 = vld [vmem:[#allocation3 + $0x48] sm:$0xf] }
 0x298   : > { %19403 = vmatprep.mubr.msk.bf16.mxu0 %vm1178_vm5, %v23431_v42  ;;  %19408 = vmatpush3.bf16.msra.mxu0 %v21131_v25  ;;  %v17216_v25 = vcombine.low %v23147_v60, %v23166_v26  ;;  %v9804_v60 = vshrl.u32 %v23466_v4, 16  ;;  %v9807_v26 = vshll.u32 %v23466_v4, 16  ;;  %v9815_v54 = vrot.slane %v9813_v8, 5 }
 0x299   : > { %19409 = vmatprep.subr.bf16.mxu0 %v21133_v51 }
 0x29a   : > { %v9806_v59 = vrot.slane %v9804_v60, 4  ;;  %v9809_v23 = vrot.slane %v9807_v26, 5  ;;  %v21147_v26 = vld [vmem:[%s26987_s8 + $0x118] sm:$0xff]  }
 0x29c   : > { %19410 = vmatpush3.bf16.msra.mxu0 %v21133_v51  ;;  %v9810_v51 = vor.u32 %v9809_v23, %v9806_v59  ;;  %v17260_v59 = vrot.slane %v9186_v24, 9 }
 0x29d   : > { %19419 = vmatprep.subr.bf16.mxu0 %v21137_v34 }
 0x29e   : > { %v9811_v22 = vrot.slane %v9810_v51, 4 }
 0x29f   : > { %19404 = vmatmul.mubr.msk.bf16.gmra.mrb[36].mxu0 %vm1178_vm5, %v23451_v46 }
 0x2a0   : > { %19411 = vmatprep.mubr.msk.bf16.mxu0 %vm1178_vm5, %v17215_v14  ;;  %v17238_v14 = vcombine.low %v23401_v50, %v9586_v57  ;;  %v21145_v50 = vld [vmem:[%s26987_s8 + $0x108] sm:$0xff]   ;;  %v21146_v57 = vld [vmem:[%s26987_s8 + $0x110] sm:$0xff]  }
 0x2a7   : > { %19412 = vmatmul.mubr.msk.bf16.vlgmr.msra.gmra.mrb[32].mxu0 %vm1178_vm5, %v17216_v25  ;;  %v17235_v25 = vrot.slane %v23466_v4, 9 }
 0x2a8   : > { %19415 = vmatprep.mubr.msk.bf16.mxu0 %vm1178_vm5, %v17217_v36  ;;  %19420 = vmatpush3.bf16.msra.mxu0 %v21137_v34  ;;  %v9816_v34 = vsel %vm21564_vm6, %v9811_v22, %v9815_v54  ;;  %v21148_v54 = vld [vmem:[%s26992_s13] sm:$0xff]  }
 0x2a9   : > { %19421 = vmatprep.subr.bf16.mxu0 %v21138_v27  ;;  %v17228_v16 = vcombine.low %v23272_v7, %v9816_v34  ;;  %v9922_v7 = vrot.slane %v9185_v52, 5  ;;  %v16802_v52 = vld [vmem:[%s26991_s12] ss:$0 sm:$0xff] }
 0x2ab   : > { %v9923_v33 = vsel %vm21509_vm3, %v17235_v25, %v9922_v7 }
 0x2ac   : > { %19422 = vmatpush3.bf16.msra.mxu0 %v21138_v27  ;;  %v17239_v41 = vcombine.low %v23448_v2, %v9923_v33  ;;  %v10118_v2 = vshrl.u32 %v9186_v24, 16  ;;  %v10121_v27 = vshll.u32 %v9186_v24, 16 }
 0x2ad   : > { %19431 = vmatprep.subr.bf16.mxu0 %v21139_v18 }
 0x2ae   : > { %v10120_v36 = vrot.slane %v10118_v2, 4  ;;  %v21151_v2 = vld [vmem:[%s26992_s13 + $0x18] sm:$0xff]  }
 0x2af   : > { %19416 = vmatmul.mubr.msk.bf16.gmra.mrb[36].mxu0 %vm1178_vm5, %v17218_v9 }
 0x2b0   : > { %19423 = vmatprep.mubr.msk.bf16.mxu0 %vm1178_vm5, %v17225_v1 }
 0x2b7   : > { %19424 = vmatmul.mubr.msk.bf16.vlgmr.msra.gmra.mrb[32].mxu0 %vm1178_vm5, %v27302_v43 }
 0x2b8   : > { %19427 = vmatprep.mubr.msk.bf16.mxu0 %vm1178_vm5, %v17227_v47  ;;  %19432 = vmatpush3.bf16.msra.mxu0 %v21139_v18  ;;  %v10123_v18 = vrot.slane %v10121_v27, 5 }
 0x2b9   : > { %19433 = vmatprep.subr.bf16.mxu0 %v21140_v28 }
 0x2bc   : > { %19434 = vmatpush3.bf16.msra.mxu0 %v21140_v28 }
 0x2bd   : > { %19443 = vmatprep.subr.bf16.mxu0 %v21141_v55 }
 0x2bf   : > { %19428 = vmatmul.mubr.msk.bf16.gmra.mrb[36].mxu0 %vm1178_vm5, %v17228_v16 }
 0x2c0   : > { %19435 = vmatprep.mubr.msk.bf16.mxu0 %vm1178_vm5, %v17236_v30 }
 0x2c7   : > { %19436 = vmatmul.mubr.msk.bf16.vlgmr.msra.gmra.mrb[32].mxu0 %vm1178_vm5, %v17237_v12  ;;  %v21149_v12 = vld [vmem:[%s26992_s13 + $0x8] sm:$0xff]  }
 0x2c8   : > { %19439 = vmatprep.mubr.msk.bf16.mxu0 %vm1178_vm5, %v17238_v14  ;;  %19444 = vmatpush3.bf16.msra.mxu0 %v21141_v55 }
 0x2c9   : > { %19445 = vmatprep.subr.bf16.mxu0 %v21142_v3 }
 0x2cc   : > { %19446 = vmatpush3.bf16.msra.mxu0 %v21142_v3 }
 0x2cd   : > { %19455 = vmatprep.subr.bf16.mxu0 %v21144_v62 }
 0x2cf   : > { %19440 = vmatmul.mubr.msk.bf16.gmra.mrb[36].mxu0 %vm1178_vm5, %v17239_v41  ;;  %v21150_v41 = vld [vmem:[%s26992_s13 + $0x10] sm:$0xff]  }
 0x2d0   : > { %19447 = vmatprep.mubr.msk.bf16.mxu0 %vm1178_vm5, %v23316_v48  ;;  %v17246_v48 = vcombine.low %v23466_v4, %v9186_v24 }
 0x2d7   : > { %19448 = vmatmul.mubr.msk.bf16.vlgmr.msra.gmra.mrb[32].mxu0 %vm1178_vm5, %v23328_v58  ;;  %v9187_v58 = vld [vmem:[#allocation3 + $0x4c] sm:$0x1] }
 0x2d8   : > { %19451 = vmatprep.mubr.msk.bf16.mxu0 %vm1178_vm5, %v23357_v35  ;;  %19456 = vmatpush3.bf16.msra.mxu0 %v21144_v62  ;;  %v10124_v35 = vor.u32 %v10123_v18, %v10120_v36  ;;  %v10127_v60 = vshll.u32 %v9187_v58, 16  ;;  %v10224_v23 = vrot.slane %v9187_v58, 5  ;;  %v21152_v18 = vld [vmem:[%s26992_s13 + $0x20] sm:$0xff]  }
 0x2d9   : > { %19457 = vmatprep.subr.bf16.mxu0 %v21145_v50 }
 0x2da   : > { %v10125_v9 = vrot.slane %v10124_v35, 4  ;;  %v10129_v1 = vrot.slane %v10127_v60, 5 }
 0x2dc   : > { %19458 = vmatpush3.bf16.msra.mxu0 %v21145_v50 }
 0x2dd   : > { %19467 = vmatprep.subr.bf16.mxu0 %v21146_v57 }
 0x2df   : > { %19452 = vmatmul.mubr.msk.bf16.gmra.mrb[36].mxu0 %vm1178_vm5, %v17246_v48 }
 0x2e0   : > { %19459 = vmatprep.mubr.msk.bf16.mxu0 %vm1178_vm5, %v23207_v10  ;;  %v10130_v10 = vsel %vm21564_vm6, %v10125_v9, %v10129_v1 }
 0x2e1   : > { %v17253_v4 = vcombine.low %v9816_v34, %v10130_v10 }
 0x2e7   : > { %19460 = vmatmul.mubr.msk.bf16.vlgmr.msra.gmra.mrb[32].mxu0 %vm1178_vm5, %v23242_v44  ;;  %v10225_v44 = vsel %vm21509_vm3, %v17260_v59, %v10224_v23  ;;  %v21155_v23 = vld [vmem:[%s26992_s13 + $0x38] sm:$0xff]  }
 0x2e8   : > { %19463 = vmatprep.mubr.msk.bf16.mxu0 %vm1178_vm5, %v23279_v21  ;;  %19468 = vmatpush3.bf16.msra.mxu0 %v21146_v57  ;;  %v17261_v21 = vcombine.low %v9923_v33, %v10225_v44  ;;  %v21156_v44 = vld [vmem:[%s26990_s11 + $0x10] sm:$0xff]  }
 0x2e9   : > { %19469 = vmatprep.subr.bf16.mxu0 %v21147_v26 }
 0x2ec   : > { %19470 = vmatpush3.bf16.msra.mxu0 %v21147_v26  ;;  %v21153_v26 = vld [vmem:[%s26992_s13 + $0x28] sm:$0xff]  }
 0x2ed   : > { %19479 = vmatprep.subr.bf16.mxu0 %v21156_v44 }
 0x2ef   : > { %19464 = vmatmul.mubr.msk.bf16.gmra.mrb[36].mxu0 %vm1178_vm5, %v17253_v4  ;;  %v21154_v4 = vld [vmem:[%s26992_s13 + $0x30] sm:$0xff]  }
 0x2f0   : > { %19471 = vmatprep.mubr.msk.bf16.mxu0 %vm1178_vm5, %v23414_v45 }
 0x2f7   : > { %19472 = vmatmul.mubr.msk.bf16.vlgmr.msra.gmra.mrb[32].mxu0 %vm1178_vm5, %v23431_v42 }
 0x2f8   : > { %19475 = vmatprep.mubr.msk.bf16.mxu0 %vm1178_vm5, %v23451_v46  ;;  %19480 = vmatpush3.bf16.msra.mxu0 %v21156_v44 }
 0x2ff   : > { %19476 = vmatmul.mubr.msk.bf16.gmra.mrb[36].mxu0 %vm1178_vm5, %v17261_v21  ;;  %v21157_v21 = vld [vmem:[%s26990_s11 + $0x18] sm:$0xff]  }
 0x300   : > { %19481 = vmatprep.subr.bf16.mxu0 %v21157_v21 }
 0x301   : > { %19482 = vmatpush3.bf16.msra.mxu0 %v21157_v21 }
 0x302   : > { %19491 = vmatprep.subr.bf16.mxu0 %v27071_v40 }
 0x323   : > { %v18993_v51 = vpop.f32.mrb[40].mxu1 }
 0x324   : > { %v4977_v45 = vpop.f32.mrb[41].mxu1  ;;  %v4986_v55 = vadd.f32 %v18993_v51, %v16802_v52  ;;  %v21159_v51 = vld [vmem:[%s26984_s5 + $0xa8] sm:$0xff]  }
 0x325   : > { %v4978_v8 = vadd.f32 %v16802_v52, %v4977_v45  ;;  %v18994_v28 = vpop.f32.mrb[42].mxu1  ;;  %v6248_v45 = vld [vmem:[#allocation2] sm:$0xf] }
 0x326   : > { %v4980_v47 = vpop.f32.mrb[43].mxu1  ;;  %v5010_v16 = vpack.c.bf16 %v4986_v55, %v4986_v55  ;;  %v4989_v62 = vadd.f32 %v18994_v28, %v16802_v52  ;;  %v6250_v28 = vld [vmem:[#allocation2 + $0x8] sm:$0x1] }
 0x327   : > { %v5008_v42 = vpack.c.bf16 %v4978_v8, %v4978_v8  ;;  %v4981_v22 = vadd.f32 %v16802_v52, %v4980_v47  ;;  %v6249_v8 = vld [vmem:[#allocation2 + $0x4] sm:$0xf]  ;;  %v6344_v47 = vshrl.u32 %v6248_v45, 16 }
 0x328   : > { %v5131_v7 = vsel %vm5025_vm14, %v5010_v16, 0  ;;  %v5011_v33 = vpack.c.bf16 %v4989_v62, %v4989_v62 }
 0x329   : > { %v5027_v46 = vsel %vm5025_vm14, %v5008_v42, 0  ;;  %v5009_v43 = vpack.c.bf16 %v4981_v22, %v4981_v22  ;;  %v6347_v42 = vshll.u32 %v6248_v45, 16  ;;  %v6353_v22 = vshll.u32 %v6249_v8, 16 }
 0x32a   : > { %19000 = vmatpush3.bf16.msra.mxu1 %v5027_v46  ;;  %v5183_v50 = vsel %vm5025_vm14, %v5011_v33, 0  ;;  %v6357_v46 = vshrl.u32 %v6249_v8, 16 }
 0x32b   : > { %19005 = vmatprep.subr.bf16.mxu1 %v27071_v40  ;;  %v5079_v34 = vsel %vm5025_vm14, %v5009_v43, 0  ;;  %v6363_v43 = vshll.u32 %v6250_v28, 16  ;;  %v6349_v55 = vrot.slane %v6347_v42, 5 }
 0x32c   : > { %v6359_v16 = vrot.slane %v6357_v46, 4 }
 0x32d   : > { %19002 = vmatmul.mubr.msk.bf16.vlgmr.msra.gmra.mrb[48].mxu1 %vm5021_vm15, %v21148_v54  ;;  %v6346_v54 = vrot.slane %v6344_v47, 4 }
 0x32e   : > { %19006 = vmatpush3.bf16.msra.mxu1 %v5079_v34  ;;  %19007 = vmatprep.mubr.msk.bf16.mxu1 %vm21361_vm13, %v27071_v40  ;;  %v6355_v34 = vrot.slane %v6353_v22, 5 }
 0x32f   : > { %19011 = vmatprep.subr.bf16.mxu1 %v27071_v40 }
 0x331   : > { %v18997_v30 = vpop.f32.mrb[44].mxu1 }
 0x332   : > { %v4993_v3 = vpop.f32.mrb[45].mxu1  ;;  %v5002_v58 = vadd.f32 %v18997_v30, %v16802_v52  ;;  %v6350_v30 = vor.u32 %v6349_v55, %v6346_v54 }
 0x333   : > { %v18998_v14 = vpop.f32.mrb[46].mxu1  ;;  %v4994_v24 = vadd.f32 %v16802_v52, %v4993_v3  ;;  %v6365_v3 = vrot.slane %v6363_v43, 5 }
 0x334   : > { %v4996_v25 = vpop.f32.mrb[47].mxu1  ;;  %v5014_v60 = vpack.c.bf16 %v5002_v58, %v5002_v58  ;;  %v5005_v1 = vadd.f32 %v18998_v14, %v16802_v52  ;;  %v6351_v14 = vrot.slane %v6350_v30, 4 }
 0x335   : > { %19008 = vmatmul.mubr.msk.bf16.vlgmr.msra.gmra.mrb[52].mxu1 %vm5021_vm15, %v21149_v12  ;;  %v5012_v57 = vpack.c.bf16 %v4994_v24, %v4994_v24  ;;  %v4997_v48 = vadd.f32 %v16802_v52, %v4996_v25  ;;  %v21158_v52 = vld [vmem:[%s26984_s5 + $0xa0] sm:$0xff]   ;;  %v6360_v12 = vor.u32 %v6359_v16, %v6355_v34 }
 0x336   : > { %19012 = vmatpush3.bf16.msra.mxu1 %v5131_v7  ;;  %19013 = vmatprep.mubr.msk.bf16.mxu1 %vm21361_vm13, %v27071_v40  ;;  %v5339_v9 = vsel %vm5025_vm14, %v5014_v60, 0  ;;  %v5015_v10 = vpack.c.bf16 %v5005_v1, %v5005_v1  ;;  %v6356_v7 = vsel %vm21564_vm6, %v6351_v14, %v6355_v34 }
 0x337   : > { %19017 = vmatprep.subr.bf16.mxu1 %v27071_v40  ;;  %v5235_v27 = vsel %vm5025_vm14, %v5012_v57, 0  ;;  %v5013_v36 = vpack.c.bf16 %v4997_v48, %v4997_v48  ;;  %v6361_v25 = vrot.slane %v6360_v12, 4 }
 0x338   : > { %v5391_v59 = vsel %vm5025_vm14, %v5015_v10, 0 }
 0x339   : > { %v5287_v35 = vsel %vm5025_vm14, %v5013_v36, 0  ;;  %v6366_v62 = vsel %vm21564_vm6, %v6361_v25, %v6365_v3 }
 0x33a   : > { %v16903_v33 = vcombine.low %v6356_v7, %v6366_v62 }
 0x33d   : > { %19014 = vmatmul.mubr.msk.bf16.vlgmr.msra.gmra.mrb[56].mxu1 %vm5021_vm15, %v21150_v41  ;;  %v23639_v41 = vld [vmem:[%s26988_s9 + $0x1] ss:$0 sm:$0xff] }
 0x33e   : > { %19018 = vmatpush3.bf16.msra.mxu1 %v5183_v50  ;;  %19019 = vmatprep.mubr.msk.bf16.mxu1 %vm21361_vm13, %v27071_v40  ;;  %v23644_v50 = vld [vmem:[%s26989_s10 + $0x1] ss:$0 sm:$0xff] }
 0x33f   : > { %19023 = vmatprep.subr.bf16.mxu1 %v27071_v40 }
 0x345   : > { %19020 = vmatmul.mubr.msk.bf16.vlgmr.msra.gmra.mrb[60].mxu1 %vm5021_vm15, %v21151_v2 }
 0x346   : > { %19024 = vmatpush3.bf16.msra.mxu1 %v5235_v27  ;;  %19025 = vmatprep.mubr.msk.bf16.mxu1 %vm21361_vm13, %v27071_v40 }
 0x347   : > { %19029 = vmatprep.subr.bf16.mxu1 %v27071_v40 }
 0x34d   : > { %19026 = vmatmul.mubr.msk.bf16.vlgmr.msra.gmra.mrb[64].mxu1 %vm5021_vm15, %v21152_v18 }
 0x34e   : > { %19030 = vmatpush3.bf16.msra.mxu1 %v5287_v35  ;;  %19031 = vmatprep.mubr.msk.bf16.mxu1 %vm21361_vm13, %v27071_v40 }
 0x34f   : > { %19035 = vmatprep.subr.bf16.mxu1 %v27071_v40 }
 0x355   : > { %19032 = vmatmul.mubr.msk.bf16.vlgmr.msra.gmra.mrb[68].mxu1 %vm5021_vm15, %v21153_v26 }
 0x356   : > { %19036 = vmatpush3.bf16.msra.mxu1 %v5339_v9  ;;  %19037 = vmatprep.mubr.msk.bf16.mxu1 %vm21361_vm13, %v27071_v40 }
 0x357   : > { %19041 = vmatprep.subr.bf16.mxu1 %v27071_v40 }
 0x35d   : > { %19038 = vmatmul.mubr.msk.bf16.vlgmr.msra.gmra.mrb[72].mxu1 %vm5021_vm15, %v21154_v4 }
 0x35e   : > { %19042 = vmatpush3.bf16.msra.mxu1 %v5391_v59  ;;  %19043 = vmatprep.mubr.msk.bf16.mxu1 %vm21361_vm13, %v27071_v40 }
 0x35f   : > { %19047 = vmatprep.subr.bf16.mxu1 %v21158_v52 }
 0x365   : > { %19044 = vmatmul.mubr.msk.bf16.vlgmr.msra.gmra.mrb[76].mxu1 %vm5021_vm15, %v21155_v23 }
 0x366   : > { %19048 = vmatpush3.bf16.msra.mxu1 %v21158_v52  ;;  %19051 = vmatprep.mubr.msk.bf16.mxu1 %vm1178_vm5, %v16903_v33 }
 0x367   : > { %19049 = vmatprep.subr.bf16.mxu1 %v21159_v51 }
 0x36a   : > { %19050 = vmatpush3.bf16.msra.mxu1 %v21159_v51 }
 0x3ca   : > { %v19473_v24 = vpop.f32.mrb[32].mxu0 }
 0x3cb   : > { %v10324_v57 = vmul.f32 %v19473_v24, %v23639_v41  ;;  %v10277_v2 = vpop.f32.mrb[33].mxu0 }
 0x3cc   : > { %v10322_v27 = vmul.f32 %v23639_v41, %v10277_v2  ;;  %v19474_v48 = vpop.f32.mrb[34].mxu0  ;;  %v11589_v2 = vld [vmem:[#allocation3 + $0x1c] sm:$0x1] }
 0x3cd   : > { %v10338_v36 = vadd.f32 %v23644_v50, %v10324_v57  ;;  %v10325_v18 = vmul.f32 %v19474_v48, %v23639_v41  ;;  %v10280_v58 = vpop.f32.mrb[35].mxu0  ;;  %v11586_v57 = vld [vmem:[#allocation3 + $0x18] sm:$0xf] }
 0x3ce   : > { %v10336_v35 = vadd.f32 %v23644_v50, %v10322_v27  ;;  %v10323_v60 = vmul.f32 %v23639_v41, %v10280_v58 }
 0x3cf   : > { %v10346_v26 = vmax.f32 %v10338_v36, 0.0  ;;  %v10339_v9 = vadd.f32 %v23644_v50, %v10325_v18 }
 0x3d0   : > { %v10344_v1 = vmax.f32 %v10336_v35, 0.0  ;;  %v10337_v10 = vadd.f32 %v23644_v50, %v10323_v60 }
 0x3d1   : > { %v17834_v4 = vpack.c.bf16 %v10346_v26, %v10346_v26  ;;  %v10347_v59 = vmax.f32 %v10339_v9, 0.0  ;;  %v11577_v9 = vld [vmem:[#allocation3 + $0xc] sm:$0x1] }
 0x3d2   : > { %v17832_v23 = vpack.c.bf16 %v10344_v1, %v10344_v1  ;;  %v10345_v44 = vmax.f32 %v10337_v10, 0.0  ;;  %v19477_v21 = vpop.f32.mrb[36].mxu0 }
 0x3d3   : > { %v11511_v52 = vshrl.u32 %v17834_v4, 16  ;;  %v11514_v51 = vshll.u32 %v17834_v4, 16  ;;  %v10360_v45 = vpack.c.bf16 %v10347_v59, %v10346_v26  ;;  %v17835_v8 = vpack.c.bf16 %v10347_v59, %v10347_v59  ;;  %v10293_v28 = vpop.f32.mrb[37].mxu0  ;;  %v11574_v26 = vld [vmem:[#allocation3 + $0x8] sm:$0xf] }
 0x3d4   : > { %v11495_v47 = vshrl.u32 %v17832_v23, 16  ;;  %v11498_v42 = vshll.u32 %v17832_v23, 16  ;;  %v10359_v22 = vpack.c.bf16 %v10345_v44, %v10344_v1  ;;  %v17833_v46 = vpack.c.bf16 %v10345_v44, %v10345_v44  ;;  %v19478_v43 = vpop.f32.mrb[38].mxu0  ;;  %v11592_v23 = vld [vmem:[#allocation3 + $0x20] sm:$0xf] }
 0x3d5   : > { %v11513_v54 = vrot.slane %v11511_v52, 7  ;;  %v11519_v55 = vshrl.u32 %v17835_v8, 16  ;;  %v11522_v34 = vshll.u32 %v17835_v8, 16  ;;  %v10328_v16 = vmul.f32 %v19477_v21, %v23639_v41  ;;  %v10296_v30 = vpop.f32.mrb[39].mxu0  ;;  %v11595_v44 = vld [vmem:[#allocation3 + $0x24] sm:$0x1] }
 0x3d6   : > { %v11497_v12 = vrot.slane %v11495_v47, 7  ;;  %v11503_v3 = vshrl.u32 %v17833_v46, 16  ;;  %v11506_v14 = vshll.u32 %v17833_v46, 16  ;;  %v10326_v25 = vmul.f32 %v23639_v41, %v10293_v28  ;;  %19483 = vmatprep.mubr.msk.bf16.mxu0 %vm1178_vm5, %v10359_v22  ;;  %v11580_v8 = vld [vmem:[#allocation3 + $0x10] sm:$0xf] }
 0x3d7   : > { %v11516_v7 = vor.u32 %v11514_v51, %v11513_v54  ;;  %v11517_v62 = vrot.slane %v11513_v54, 4  ;;  %v11521_v33 = vrot.slane %v11519_v55, 7  ;;  %v10342_v24 = vadd.f32 %v23644_v50, %v10328_v16  ;;  %19484 = vmatmul.mubr.msk.bf16.vlgmr.msra.gmra.mrb[40].mxu0 %vm1178_vm5, %v10360_v45  ;;  %v11583_v28 = vld [vmem:[#allocation3 + $0x14] sm:$0x1] }
 0x3d8   : > { %v11500_v27 = vor.u32 %v11498_v42, %v11497_v12  ;;  %v11501_v48 = vrot.slane %v11497_v12, 4  ;;  %v11505_v36 = vrot.slane %v11503_v3, 7  ;;  %v10340_v18 = vadd.f32 %v23644_v50, %v10326_v25 }
 0x3d9   : > { %v11587_v58 = vsel %vm23051_vm11, %v11516_v7, %v11586_v57  ;;  %v11590_v60 = vsel %vm23058_vm12, %v11517_v62, %v11589_v2  ;;  %v11524_v1 = vor.u32 %v11522_v34, %v11521_v33  ;;  %v11525_v10 = vrot.slane %v11521_v33, 4  ;;  %v23683_v33 = vld [vmem:[%s26984_s5 + $0x90] sm:$0xff]  }
 0x3da   : > { %11588 = vst [vmem:[#allocation3 + $0x18] sm:$0xf] %v11587_v58  ;;  %11591 = vst [vmem:[#allocation3 + $0x1c] sm:$0x1] %v11590_v60  ;;  %v11575_v4 = vsel %vm23051_vm11, %v11500_v27, %v11574_v26  ;;  %v11578_v59 = vsel %vm23058_vm12, %v11501_v48, %v11577_v9  ;;  %v11508_v21 = vor.u32 %v11506_v14, %v11505_v36  ;;  %v11509_v52 = vrot.slane %v11505_v36, 4 }
 0x3db   : > { %11576 = vst [vmem:[#allocation3 + $0x8] sm:$0xf] %v11575_v4  ;;  %11579 = vst [vmem:[#allocation3 + $0xc] sm:$0x1] %v11578_v59  ;;  %v11593_v51 = vsel %vm23051_vm11, %v11524_v1, %v11592_v23  ;;  %v11596_v45 = vsel %vm23058_vm12, %v11525_v10, %v11595_v44  ;;  %v10350_v47 = vmax.f32 %v10342_v24, 0.0  ;;  %v10348_v42 = vmax.f32 %v10340_v18, 0.0  ;;  %19083 = vmatprep.subr.bf16.mxu1 %v23683_v33 }
 0x3dc   : > { %11594 = vst [vmem:[#allocation3 + $0x20] sm:$0xf] %v11593_v51  ;;  %11597 = vst [vmem:[#allocation3 + $0x24] sm:$0x1] %v11596_v45  ;;  %v11581_v22 = vsel %vm23051_vm11, %v11508_v21, %v11580_v8  ;;  %v11584_v46 = vsel %vm23058_vm12, %v11509_v52, %v11583_v28  ;;  %v10329_v54 = vmul.f32 %v19478_v43, %v23639_v41  ;;  %v11610_v18 = vld [vmem:[#allocation3 + $0x38] sm:$0xf] }
 0x3dd   : > { %v10327_v55 = vmul.f32 %v23639_v41, %v10296_v30  ;;  %11582 = vst [vmem:[#allocation3 + $0x10] sm:$0xf] %v11581_v22  ;;  %11585 = vst [vmem:[#allocation3 + $0x14] sm:$0x1] %v11584_v46  ;;  %v17838_v34 = vpack.c.bf16 %v10350_v47, %v10350_v47  ;;  %v17836_v16 = vpack.c.bf16 %v10348_v42, %v10348_v42  ;;  %v11613_v58 = vld [vmem:[#allocation3 + $0x3c] sm:$0x1] }
 0x3de   : > { %v10343_v12 = vadd.f32 %v23644_v50, %v10329_v54  ;;  %v11598_v9 = vld [vmem:[#allocation3 + $0x28] sm:$0xf]  ;;  %v11601_v1 = vld [vmem:[#allocation3 + $0x2c] sm:$0x1]  ;;  %v11619_v54 = vld [vmem:[#allocation3 + $0x44] sm:$0x1] }
 0x3df   : > { %v10341_v3 = vadd.f32 %v23644_v50, %v10327_v55  ;;  %v11543_v14 = vshrl.u32 %v17838_v34, 16  ;;  %v11527_v25 = vshrl.u32 %v17836_v16, 16  ;;  %v11546_v24 = vshll.u32 %v17838_v34, 16  ;;  %v11604_v55 = vld [vmem:[#allocation3 + $0x30] sm:$0xf] }
 0x3e0   : > { %v10351_v7 = vmax.f32 %v10343_v12, 0.0  ;;  %v11530_v30 = vshll.u32 %v17836_v16, 16  ;;  %v11607_v34 = vld [vmem:[#allocation3 + $0x34] sm:$0x1] }
 0x3e1   : > { %v10349_v62 = vmax.f32 %v10341_v3, 0.0  ;;  %v11545_v43 = vrot.slane %v11543_v14, 7  ;;  %v11529_v41 = vrot.slane %v11527_v25, 7  ;;  %v27304_v25 = vld [vmem:[#allocation30_spill] sm:$0xff] }
 0x3e2   : > { %v10362_v57 = vpack.c.bf16 %v10351_v7, %v10350_v47  ;;  %v17839_v2 = vpack.c.bf16 %v10351_v7, %v10351_v7  ;;  %v3463_v7 = vmul.f32 %v27304_v25, %v23287_v5 }
 0x3e3   : > { %v10361_v27 = vpack.c.bf16 %v10349_v62, %v10348_v42  ;;  %v17837_v48 = vpack.c.bf16 %v10349_v62, %v10349_v62  ;;  %v11548_v50 = vor.u32 %v11546_v24, %v11545_v43  ;;  %v11549_v36 = vrot.slane %v11545_v43, 4  ;;  %v11616_v42 = vld [vmem:[#allocation3 + $0x40] sm:$0xf]  ;;  %v27305_v62 = vld [vmem:[#allocation32_spill] sm:$0xff] }
 0x3e4   : > { %v11532_v60 = vor.u32 %v11530_v30, %v11529_v41  ;;  %v11533_v26 = vrot.slane %v11529_v41, 4  ;;  %v11551_v10 = vshrl.u32 %v17839_v2, 16  ;;  %v11554_v51 = vshll.u32 %v17839_v2, 16  ;;  %v27306_v24 = vld [vmem:[#allocation33_spill] sm:$0xff] }
 0x3e5   : > { %v11535_v4 = vshrl.u32 %v17837_v48, 16  ;;  %19487 = vmatprep.mubr.msk.bf16.mxu0 %vm1178_vm5, %v10361_v27  ;;  %v11611_v59 = vsel %vm23051_vm11, %v11548_v50, %v11610_v18  ;;  %v11614_v23 = vsel %vm23058_vm12, %v11549_v36, %v11613_v58  ;;  %v11538_v8 = vshll.u32 %v17837_v48, 16  ;;  %v27307_v30 = vld [vmem:[#allocation9_spill] sm:$0xff]  ;;  %v27308_v36 = vld [vmem:[#allocation34_spill] sm:$0xff] }
 0x3e6   : > { %v11599_v44 = vsel %vm23051_vm11, %v11532_v60, %v11598_v9  ;;  %v11602_v21 = vsel %vm23058_vm12, %v11533_v26, %v11601_v1  ;;  %19488 = vmatmul.mubr.msk.bf16.gmra.mrb[44].mxu0 %vm1178_vm5, %v10362_v57  ;;  %11612 = vst [vmem:[#allocation3 + $0x38] sm:$0xf] %v11611_v59  ;;  %11615 = vst [vmem:[#allocation3 + $0x3c] sm:$0x1] %v11614_v23  ;;  %v11553_v52 = vrot.slane %v11551_v10, 7  ;;  %v27309_v60 = vld [vmem:[#allocation17_spill] sm:$0xff] }
 0x3e7   : > { %11600 = vst [vmem:[#allocation3 + $0x28] sm:$0xf] %v11599_v44  ;;  %11603 = vst [vmem:[#allocation3 + $0x2c] sm:$0x1] %v11602_v21  ;;  %v11537_v45 = vrot.slane %v11535_v4, 7  ;;  %19493 = vmatprep.mubr.msk.bf16.mxu0 %vm21361_vm13, %v27071_v40  ;;  %v3461_v43 = vmul.f32 %v27305_v62, %v23287_v5  ;;  %v3464_v41 = vmul.f32 %v27306_v24, %v23287_v5  ;;  %v27310_v9 = vld [vmem:[#allocation35_spill] sm:$0xff] }
 0x3e8   : > { %v11556_v28 = vor.u32 %v11554_v51, %v11553_v52  ;;  %v11557_v47 = vrot.slane %v11553_v52, 4  ;;  %v3462_v57 = vmul.f32 %v27307_v30, %v23287_v5  ;;  %v23715_v2 = vadd.f32 %v23300_v11, %v3463_v7  ;;  %v27311_v59 = vld [vmem:[#allocation36_spill] sm:$0xff]  ;;  %v27312_v44 = vld [vmem:[#allocation15_spill] sm:$0xff] }
 0x3e9   : > { %v11540_v22 = vor.u32 %v11538_v8, %v11537_v45  ;;  %v11541_v46 = vrot.slane %v11537_v45, 4  ;;  %v3499_v27 = vadd.f32 %v23300_v11, %v3461_v43  ;;  %v23719_v48 = vadd.f32 %v23300_v11, %v3464_v41  ;;  %v27313_v45 = vld [vmem:[#allocation37_spill] sm:$0xff]  ;;  %v27318_v40 = vld [vmem:[#allocation39_spill] sm:$0xff] }
 0x3ea   : > { %v11617_v16 = vsel %vm23051_vm11, %v11556_v28, %v11616_v42  ;;  %v11620_v12 = vsel %vm23058_vm12, %v11557_v47, %v11619_v54  ;;  %v3500_v50 = vadd.f32 %v23300_v11, %v3462_v57  ;;  %v3467_v18 = vmul.f32 %v27308_v36, %v23287_v5  ;;  %v27314_v28 = vld [vmem:[#allocation16_spill] sm:$0xff] }
 0x3eb   : > { %v11605_v3 = vsel %vm23051_vm11, %v11540_v22, %v11604_v55  ;;  %v11608_v14 = vsel %vm23058_vm12, %v11541_v46, %v11607_v34  ;;  %11618 = vst [vmem:[#allocation3 + $0x40] sm:$0xf] %v11617_v16  ;;  %11621 = vst [vmem:[#allocation3 + $0x44] sm:$0x1] %v11620_v12  ;;  %v3533_v58 = vmax.f32 %v23715_v2, 0.0  ;;  %v3465_v26 = vmul.f32 %v27309_v60, %v23287_v5 }
 0x3ec   : > { %11606 = vst [vmem:[#allocation3 + $0x30] sm:$0xf] %v11605_v3  ;;  %11609 = vst [vmem:[#allocation3 + $0x34] sm:$0x1] %v11608_v14  ;;  %v3468_v1 = vmul.f32 %v27310_v9, %v23287_v5  ;;  %v3531_v10 = vmax.f32 %v3499_v27, 0.0  ;;  %v3534_v4 = vmax.f32 %v23719_v48, 0.0  ;;  %v3466_v23 = vmul.f32 %v27311_v59, %v23287_v5 }
 0x3ed   : > { %v3471_v21 = vmul.f32 %v27312_v44, %v23287_v5  ;;  %v3532_v52 = vmax.f32 %v3500_v50, 0.0  ;;  %v23735_v51 = vadd.f32 %v23300_v11, %v3467_v18  ;;  %v3469_v8 = vmul.f32 %v27313_v45, %v23287_v5  ;;  %v27320_v45 = vld [vmem:[#allocation40_spill] sm:$0xff] }
 0x3ee   : > { %v3472_v47 = vmul.f32 %v27314_v28, %v23287_v5  ;;  %v3470_v42 = vmul.f32 %v23246_v15, %v23287_v5  ;;  %v3475_v22 = vmul.f32 %v23250_v19, %v23287_v5  ;;  %v3473_v46 = vmul.f32 %v23255_v32, %v23287_v5 }
 0x3ef   : > { %v3476_v54 = vmul.f32 %v23258_v6, %v23287_v5  ;;  %v23750_v55 = vadd.f32 %v23300_v11, %v3465_v26  ;;  %v23753_v34 = vadd.f32 %v23300_v11, %v3468_v1  ;;  %v3474_v16 = vmul.f32 %v23261_v13, %v23287_v5 }
 0x3f0   : > { %v3479_v15 = vmul.f32 %v23268_v49, %v23287_v5  ;;  %v23760_v19 = vadd.f32 %v23300_v11, %v3466_v23  ;;  %v23763_v32 = vadd.f32 %v23300_v11, %v3471_v21  ;;  %v3477_v6 = vmul.f32 %v23275_v20, %v23287_v5 }
 0x3f1   : > { %v3478_v12 = vmul.f32 %v23292_v17, %v23287_v5  ;;  %v23771_v14 = vadd.f32 %v23300_v11, %v3469_v8  ;;  %v23774_v13 = vadd.f32 %v23300_v11, %v3472_v47  ;;  %v3481_v49 = vmul.f32 %v23303_v53, %v23287_v5 }
 0x3f2   : > { %v23779_v25 = vadd.f32 %v23300_v11, %v3470_v42  ;;  %v23782_v7 = vadd.f32 %v23300_v11, %v3475_v22  ;;  %v23785_v20 = vadd.f32 %v23300_v11, %v3473_v46  ;;  %v23788_v17 = vadd.f32 %v23300_v11, %v3476_v54  ;;  %v27315_v22 = vld [vmem:[#allocation18_spill] sm:$0xff] }
 0x3f3   : > { %v3535_v62 = vmax.f32 %v23750_v55, 0.0  ;;  %v23793_v24 = vadd.f32 %v23300_v11, %v3474_v16  ;;  %v23796_v5 = vadd.f32 %v23300_v11, %v3479_v15  ;;  %v23801_v30 = vadd.f32 %v23300_v11, %v3477_v6  ;;  %v27316_v16 = vld [vmem:[#allocation10_spill] sm:$0xff]  ;;  %v5979_v15 = vld [vmem:[#allocation2 + $0x14] sm:$0x1] }
 0x3f4   : > { %v23804_v57 = vadd.f32 %v23300_v11, %v3478_v12  ;;  %v23809_v18 = vadd.f32 %v23300_v11, %v3481_v49  ;;  %v27317_v49 = vld [vmem:[#allocation11_spill] sm:$0xff] }
 0x3f5   : > { %v5973_v11 = vld [vmem:[#allocation2 + $0xc] sm:$0xf] }
 0x400   : > { %v5063_v27 = vpop.f32.mrb[48].mxu1 }
 0x401   : > { %v5518_v60 = vadd.f32 %v5063_v27, %v3531_v10  ;;  %v19003_v26 = vpop.f32.mrb[49].mxu1  ;;  %v5434_v54 = vmul.f32 0.53333336, %v5063_v27  ;;  %v5440_v21 = vmul.f32 0.06666667, %v5063_v27 }
 0x402   : > { %v5066_v44 = vpop.f32.mrb[50].mxu1 }
 0x403   : > { %v17760_v8 = vpack.c.bf16 %v5518_v60, %v5518_v60  ;;  %v5519_v28 = vadd.f32 %v5066_v44, %v3532_v52  ;;  %v19004_v47 = vpop.f32.mrb[51].mxu1  ;;  %v27319_v52 = vld [vmem:[#allocation38_spill] sm:$0xff]  ;;  %v5435_v23 = vmul.f32 0.53333336, %v5066_v44 }
 0x405   : > { %v5650_v6 = vshrl.u32 %v17760_v8, 16  ;;  %v17761_v12 = vpack.c.bf16 %v5519_v28, %v5519_v28  ;;  %v5653_v1 = vshll.u32 %v17760_v8, 16  ;;  %v27321_v8 = vmov 0 }
 0x406   : > { %v27322_v8 = vsel %vm23831_vm1, 4294967295, %v27321_v8 }
 0x407   : > { %v5652_v10 = vrot.slane %v5650_v6, 7  ;;  %v5658_v42 = vshrl.u32 %v17761_v12, 16  ;;  %v5661_v26 = vshll.u32 %v17761_v12, 16  ;;  %27323 = vst [vmem:[#allocation41_spill] sm:$0xff] %v27322_v8 }
 0x408   : > { %v5115_v36 = vpop.f32.mrb[52].mxu1 }
 0x409   : > { %v5655_v28 = vor.u32 %v5653_v1, %v5652_v10  ;;  %v5660_v59 = vrot.slane %v5658_v42, 7  ;;  %v5436_v41 = vmul.f32 0.46666667, %v5115_v36  ;;  %v19009_v60 = vpop.f32.mrb[53].mxu1  ;;  %v5656_v9 = vrot.slane %v5652_v10, 4 }
 0x40a   : > { %v5442_v6 = vmul.f32 0.93333334, %v5115_v36  ;;  %v5118_v12 = vpop.f32.mrb[54].mxu1  ;;  %v5441_v60 = vmul.f32 0.06666667, %v5066_v44 }
 0x40b   : > { %v5974_v27 = vsel %vm23051_vm11, %v5655_v28, %v5973_v11  ;;  %v5663_v46 = vor.u32 %v5661_v26, %v5660_v59  ;;  %v5665_v1 = vrot.slane %v5660_v59, 4  ;;  %v5438_v42 = vadd.f32 %v5436_v41, %v5434_v54  ;;  %v19010_v26 = vpop.f32.mrb[55].mxu1  ;;  %v5989_v41 = vld [vmem:[#allocation2 + $0x24] sm:$0xf] }
 0x40c   : > { %5975 = vst [vmem:[#allocation2 + $0xc] sm:$0xf] %v5974_v27  ;;  %v5444_v43 = vadd.f32 %v5442_v6, %v5440_v21  ;;  %v5437_v47 = vmul.f32 0.46666667, %v5118_v12  ;;  %v5443_v10 = vmul.f32 0.93333334, %v5118_v12 }
 0x40d   : > { %v5664_v3 = vsel %vm23831_vm1, %v5656_v9, %v5663_v46  ;;  %v5980_v53 = vsel %vm23058_vm12, %v5665_v1, %v5979_v15  ;;  %v5520_v11 = vadd.f32 %v5438_v42, %v3533_v58  ;;  %v5446_v54 = vmul.f32 0.6, %v5115_v36 }
 0x40e   : > { %5976 = vst.msk [vmem:[#allocation2 + $0x10] sm:$0xf] %vm547_vm7, %v5664_v3  ;;  %5981 = vst [vmem:[#allocation2 + $0x14] sm:$0x1] %v5980_v53  ;;  %v5522_v59 = vadd.f32 %v5444_v43, %v3535_v62  ;;  %v5439_v44 = vadd.f32 %v5437_v47, %v5435_v23  ;;  %v5445_v21 = vadd.f32 %v5443_v10, %v5441_v60  ;;  %v5452_v28 = vmul.f32 0.13333334, %v5115_v36 }
 0x40f   : > { %v17762_v9 = vpack.c.bf16 %v5520_v11, %v5520_v11  ;;  %v5447_v46 = vmul.f32 0.6, %v5118_v12  ;;  %v23848_v15 = vmul.f32 0.13333334, %v5118_v12  ;;  %v27324_v58 = vmax.f32 %v23760_v19, 0.0 }
 0x410   : > { %v17764_v6 = vpack.c.bf16 %v5522_v59, %v5522_v59  ;;  %v5521_v2 = vadd.f32 %v5439_v44, %v3534_v4  ;;  %v5167_v3 = vpop.f32.mrb[56].mxu1  ;;  %v5982_v10 = vld [vmem:[#allocation2 + $0x18] sm:$0xf] }
 0x411   : > { %v5523_v27 = vadd.f32 %v5445_v21, %v27324_v58  ;;  %v5667_v55 = vshrl.u32 %v17762_v9, 16  ;;  %v5448_v62 = vmul.f32 0.4, %v5167_v3  ;;  %v5454_v43 = vmul.f32 0.8666667, %v5167_v3  ;;  %v19015_v42 = vpop.f32.mrb[57].mxu1 }
 0x412   : > { %v5670_v23 = vshll.u32 %v17762_v9, 16  ;;  %v5684_v47 = vshrl.u32 %v17764_v6, 16  ;;  %v17763_v36 = vpack.c.bf16 %v5521_v2, %v5521_v2  ;;  %v5687_v12 = vshll.u32 %v17764_v6, 16  ;;  %v5170_v4 = vpop.f32.mrb[58].mxu1 }
 0x413   : > { %v17765_v1 = vpack.c.bf16 %v5523_v27, %v5523_v27  ;;  %v5669_v60 = vrot.slane %v5667_v55, 7  ;;  %v5450_v11 = vadd.f32 %v5448_v62, %v5446_v54  ;;  %v5456_v48 = vadd.f32 %v5454_v43, %v5452_v28  ;;  %v19016_v21 = vpop.f32.mrb[59].mxu1  ;;  %v5986_v28 = vld [vmem:[#allocation2 + $0x20] sm:$0x1] }
 0x414   : > { %v5686_v26 = vrot.slane %v5684_v47, 7  ;;  %v5675_v19 = vshrl.u32 %v17763_v36, 16  ;;  %v23855_v44 = vmul.f32 0.6666667, %v5167_v3  ;;  %v5678_v9 = vshll.u32 %v17763_v36, 16 }
 0x415   : > { %v5692_v59 = vshrl.u32 %v17765_v1, 16  ;;  %v5672_v58 = vor.u32 %v5670_v23, %v5669_v60  ;;  %v5673_v53 = vrot.slane %v5669_v60, 4  ;;  %v5695_v50 = vshll.u32 %v17765_v1, 16 }
 0x416   : > { %v5689_v2 = vor.u32 %v5687_v12, %v5686_v26  ;;  %v5690_v27 = vrot.slane %v5686_v26, 4  ;;  %v5677_v42 = vrot.slane %v5675_v19, 7  ;;  %v27325_v6 = vmax.f32 %v23735_v51, 0.0  ;;  %v5993_v12 = vld [vmem:[#allocation2 + $0x2c] sm:$0x1] }
 0x417   : > { %v5694_v55 = vrot.slane %v5692_v59, 7  ;;  %v5983_v54 = vsel %vm23051_vm11, %v5672_v58, %v5982_v10  ;;  %v27326_v43 = vmax.f32 %v23771_v14, 0.0  ;;  %v5449_v21 = vmul.f32 0.4, %v5170_v4 }
 0x418   : > { %v5524_v62 = vadd.f32 %v5450_v11, %v27325_v6  ;;  %5984 = vst [vmem:[#allocation2 + $0x18] sm:$0xf] %v5983_v54  ;;  %v5990_v23 = vsel %vm23051_vm11, %v5689_v2, %v5989_v41  ;;  %v5680_v36 = vor.u32 %v5678_v9, %v5677_v42  ;;  %v5682_v1 = vrot.slane %v5677_v42, 4  ;;  %v5219_v26 = vpop.f32.mrb[60].mxu1  ;;  %v5996_v54 = vld [vmem:[#allocation2 + $0x30] sm:$0xf] }
 0x419   : > { %v5526_v47 = vadd.f32 %v5456_v48, %v27326_v43  ;;  %v5697_v60 = vor.u32 %v5695_v50, %v5694_v55  ;;  %5991 = vst [vmem:[#allocation2 + $0x24] sm:$0xf] %v5990_v23  ;;  %v5699_v19 = vrot.slane %v5694_v55, 4  ;;  %v5451_v58 = vadd.f32 %v5449_v21, %v5447_v46  ;;  %v19021_v51 = vpop.f32.mrb[61].mxu1 }
 0x41a   : > { %v17766_v10 = vpack.c.bf16 %v5524_v62, %v5524_v62  ;;  %v5681_v14 = vsel %vm23831_vm1, %v5673_v53, %v5680_v36  ;;  %v5987_v41 = vsel %vm23058_vm12, %v5682_v1, %v5986_v28  ;;  %v5455_v48 = vmul.f32 0.8666667, %v5170_v4  ;;  %v23871_v9 = vpop.f32.mrb[62].mxu1 }
 0x41b   : > { %v17768_v59 = vpack.c.bf16 %v5526_v47, %v5526_v47  ;;  %v5698_v11 = vsel %vm23831_vm1, %v5690_v27, %v5697_v60  ;;  %5985 = vst.msk [vmem:[#allocation2 + $0x1c] sm:$0xf] %vm547_vm7, %v5681_v14  ;;  %5988 = vst [vmem:[#allocation2 + $0x20] sm:$0x1] %v5987_v41  ;;  %v5994_v50 = vsel %vm23058_vm12, %v5699_v19, %v5993_v12  ;;  %v5464_v46 = vmul.f32 0.2, %v5167_v3 }
 0x41c   : > { %5992 = vst.msk [vmem:[#allocation2 + $0x28] sm:$0xf] %vm547_vm7, %v5698_v11  ;;  %v5701_v2 = vshrl.u32 %v17766_v10, 16  ;;  %v19022_v42 = vpop.f32.mrb[63].mxu1  ;;  %5995 = vst [vmem:[#allocation2 + $0x2c] sm:$0x1] %v5994_v50  ;;  %v5457_v28 = vadd.f32 %v5455_v48, %v23848_v15 }
 0x41d   : > { %v5718_v53 = vshrl.u32 %v17768_v59, 16  ;;  %v5704_v27 = vshll.u32 %v17766_v10, 16  ;;  %v5721_v55 = vshll.u32 %v17768_v59, 16  ;;  %v5459_v6 = vmul.f32 0.6666667, %v5170_v4 }
 0x41e   : > { %v5703_v62 = vrot.slane %v5701_v2, 7  ;;  %v6003_v47 = vld [vmem:[#allocation2 + $0x3c] sm:$0xf]  ;;  %v27327_v21 = vmax.f32 %v23753_v34, 0.0  ;;  %v5460_v36 = vmul.f32 0.33333334, %v5219_v26 }
 0x41f   : > { %v5720_v43 = vrot.slane %v5718_v53, 7  ;;  %v5465_v1 = vmul.f32 0.2, %v5170_v4  ;;  %v27328_v3 = vmax.f32 %v23779_v25, 0.0  ;;  %v5466_v12 = vmul.f32 0.8, %v5219_v26 }
 0x420   : > { %v5525_v23 = vadd.f32 %v5451_v58, %v27327_v21  ;;  %v23882_v19 = vmul.f32 0.73333335, %v5219_v26  ;;  %v5706_v10 = vor.u32 %v5704_v27, %v5703_v62  ;;  %v5707_v59 = vrot.slane %v5703_v62, 4  ;;  %v23887_v34 = vpop.f32.mrb[64].mxu1 }
 0x421   : > { %v5527_v60 = vadd.f32 %v5457_v28, %v27328_v3  ;;  %v5723_v51 = vor.u32 %v5721_v55, %v5720_v43  ;;  %v23884_v14 = vmul.f32 0.26666668, %v5219_v26  ;;  %v5462_v41 = vadd.f32 %v5460_v36, %v23855_v44  ;;  %v19027_v2 = vpop.f32.mrb[65].mxu1 }
 0x422   : > { %v17767_v15 = vpack.c.bf16 %v5525_v23, %v5525_v23  ;;  %v5468_v48 = vadd.f32 %v5466_v12, %v5464_v46  ;;  %v5997_v4 = vsel %vm23051_vm11, %v5706_v10, %v5996_v54  ;;  %v5461_v58 = vmul.f32 0.33333334, %v23871_v9  ;;  %v23895_v46 = vpop.f32.mrb[66].mxu1  ;;  %v6007_v12 = vld [vmem:[#allocation2 + $0x44] sm:$0x1] }
 0x423   : > { %v17769_v11 = vpack.c.bf16 %v5527_v60, %v5527_v60  ;;  %v6004_v25 = vsel %vm23051_vm11, %v5723_v51, %v6003_v47  ;;  %v5467_v50 = vmul.f32 0.8, %v23871_v9  ;;  %v5724_v26 = vrot.slane %v5720_v43, 4  ;;  %5998 = vst [vmem:[#allocation2 + $0x30] sm:$0xf] %v5997_v4  ;;  %v19028_v21 = vpop.f32.mrb[67].mxu1 }
 0x424   : > { %6005 = vst [vmem:[#allocation2 + $0x3c] sm:$0xf] %v6004_v25  ;;  %v5709_v53 = vshrl.u32 %v17767_v15, 16  ;;  %v5712_v42 = vshll.u32 %v17767_v15, 16  ;;  %v27329_v27 = vmax.f32 %v23763_v32, 0.0  ;;  %v27330_v54 = vmax.f32 %v23785_v20, 0.0 }
 0x425   : > { %v5726_v44 = vshrl.u32 %v17769_v11, 16  ;;  %v5463_v62 = vadd.f32 %v5461_v58, %v5459_v6  ;;  %v5469_v47 = vadd.f32 %v5467_v50, %v5465_v1  ;;  %v5729_v3 = vshll.u32 %v17769_v11, 16  ;;  %v6000_v60 = vld [vmem:[#allocation2 + $0x38] sm:$0x1] }
 0x426   : > { %v5528_v55 = vadd.f32 %v5462_v41, %v27329_v27  ;;  %v5530_v28 = vadd.f32 %v5468_v48, %v27330_v54  ;;  %v5711_v23 = vrot.slane %v5709_v53, 7  ;;  %v23902_v43 = vmul.f32 0.73333335, %v23871_v9 }
 0x427   : > { %v5728_v36 = vrot.slane %v5726_v44, 7  ;;  %v27331_v15 = vmax.f32 %v23774_v13, 0.0  ;;  %v27332_v41 = vmax.f32 %v23793_v24, 0.0  ;;  %v6017_v44 = vld [vmem:[#allocation2 + $0x54] sm:$0xf] }
 0x428   : > { %v17770_v10 = vpack.c.bf16 %v5528_v55, %v5528_v55  ;;  %v17772_v51 = vpack.c.bf16 %v5530_v28, %v5530_v28  ;;  %v5714_v48 = vor.u32 %v5712_v42, %v5711_v23  ;;  %v5716_v6 = vrot.slane %v5711_v23, 4  ;;  %v6010_v42 = vld [vmem:[#allocation2 + $0x48] sm:$0xf]  ;;  %v23916_v27 = vpop.f32.mrb[68].mxu1  ;;  %v6251_v28 = vld [vmem:[#allocation2 + $0xc] sm:$0xf] }
 0x429   : > { %v5529_v32 = vadd.f32 %v5463_v62, %v27331_v15  ;;  %v5531_v20 = vadd.f32 %v5469_v47, %v27332_v41  ;;  %v5731_v1 = vor.u32 %v5729_v3, %v5728_v36  ;;  %v5733_v4 = vrot.slane %v5728_v36, 4  ;;  %v19033_v62 = vpop.f32.mrb[69].mxu1 }
 0x42a   : > { %v5735_v25 = vshrl.u32 %v17770_v10, 16  ;;  %v5738_v58 = vshll.u32 %v17770_v10, 16  ;;  %v5752_v11 = vshrl.u32 %v17772_v51, 16  ;;  %v5755_v50 = vshll.u32 %v17772_v51, 16  ;;  %v6252_v10 = vld [vmem:[#allocation2 + $0x10] sm:$0xf] }
 0x42b   : > { %v5715_v2 = vsel %vm23831_vm1, %v5707_v59, %v5714_v48  ;;  %v5732_v53 = vsel %vm23831_vm1, %v5724_v26, %v5731_v1  ;;  %v6001_v13 = vsel %vm23058_vm12, %v5716_v6, %v6000_v60  ;;  %v6008_v24 = vsel %vm23058_vm12, %v5733_v4, %v6007_v12  ;;  %v23928_v51 = vpop.f32.mrb[70].mxu1 }
 0x42c   : > { %5999 = vst.msk [vmem:[#allocation2 + $0x34] sm:$0xf] %vm547_vm7, %v5715_v2  ;;  %6002 = vst [vmem:[#allocation2 + $0x38] sm:$0x1] %v6001_v13  ;;  %v5737_v59 = vrot.slane %v5735_v25, 7  ;;  %v5754_v55 = vrot.slane %v5752_v11, 7  ;;  %v17771_v54 = vpack.c.bf16 %v5529_v32, %v5529_v32  ;;  %v17773_v26 = vpack.c.bf16 %v5531_v20, %v5531_v20 }
 0x42d   : > { %6006 = vst.msk [vmem:[#allocation2 + $0x40] sm:$0xf] %vm547_vm7, %v5732_v53  ;;  %6009 = vst [vmem:[#allocation2 + $0x44] sm:$0x1] %v6008_v24  ;;  %v23921_v47 = vmul.f32 0.26666668, %v23871_v9 }
 0x42e   : > { %v5472_v21 = vmul.f32 0.26666668, %v23887_v34  ;;  %v5478_v23 = vmul.f32 0.73333335, %v23887_v34  ;;  %v5740_v36 = vor.u32 %v5738_v58, %v5737_v59  ;;  %v5741_v3 = vrot.slane %v5737_v59, 4  ;;  %v19034_v48 = vpop.f32.mrb[71].mxu1 }
 0x42f   : > { %v5757_v60 = vor.u32 %v5755_v50, %v5754_v55  ;;  %v23926_v12 = vmul.f32 0.8, %v23887_v34  ;;  %v5758_v15 = vrot.slane %v5754_v55, 4  ;;  %v5743_v32 = vshrl.u32 %v17771_v54, 16  ;;  %v6014_v2 = vld [vmem:[#allocation2 + $0x50] sm:$0x1] }
 0x430   : > { %v5746_v41 = vshll.u32 %v17771_v54, 16  ;;  %v5760_v20 = vshrl.u32 %v17773_v26, 16  ;;  %v6011_v9 = vsel %vm23051_vm11, %v5740_v36, %v6010_v42  ;;  %v5474_v1 = vadd.f32 %v5472_v21, %v23882_v19  ;;  %v6021_v53 = vld [vmem:[#allocation2 + $0x5c] sm:$0x1]  ;;  %v23940_v21 = vpop.f32.mrb[72].mxu1 }
 0x431   : > { %v6018_v6 = vsel %vm23051_vm11, %v5757_v60, %v6017_v44  ;;  %v5480_v4 = vadd.f32 %v5478_v23, %v23884_v14  ;;  %6012 = vst [vmem:[#allocation2 + $0x48] sm:$0xf] %v6011_v9  ;;  %v5745_v25 = vrot.slane %v5743_v32, 7  ;;  %v5763_v11 = vshll.u32 %v17773_v26, 16  ;;  %v6253_v26 = vld [vmem:[#allocation2 + $0x14] sm:$0x1] }
 0x432   : > { %6019 = vst [vmem:[#allocation2 + $0x54] sm:$0xf] %v6018_v6  ;;  %v5762_v58 = vrot.slane %v5760_v20, 7  ;;  %v6368_v50 = vshrl.u32 %v6251_v28, 16  ;;  %v27333_v13 = vmax.f32 %v23782_v7, 0.0  ;;  %v27334_v42 = vmax.f32 %v23801_v30, 0.0 }
 0x433   : > { %v6371_v55 = vshll.u32 %v6251_v28, 16  ;;  %v6377_v44 = vshll.u32 %v6252_v10, 16  ;;  %v5748_v54 = vor.u32 %v5746_v41, %v5745_v25  ;;  %v5750_v19 = vrot.slane %v5745_v25, 4  ;;  %v19039_v20 = vpop.f32.mrb[73].mxu1  ;;  %v6031_v25 = vld [vmem:[#allocation2 + $0x6c] sm:$0xf] }
 0x434   : > { %v5532_v24 = vadd.f32 %v5474_v1, %v27333_v13  ;;  %v5534_v59 = vadd.f32 %v5480_v4, %v27334_v42  ;;  %v5765_v62 = vor.u32 %v5763_v11, %v5762_v58  ;;  %v5767_v14 = vrot.slane %v5762_v58, 4  ;;  %v23950_v48 = vpop.f32.mrb[74].mxu1  ;;  %v6024_v4 = vld [vmem:[#allocation2 + $0x60] sm:$0xf] }
 0x435   : > { %v6370_v60 = vrot.slane %v6368_v50, 4  ;;  %v6373_v32 = vrot.slane %v6371_v55, 5  ;;  %v5749_v7 = vsel %vm23831_vm1, %v5741_v3, %v5748_v54  ;;  %v6015_v28 = vsel %vm23058_vm12, %v5750_v19, %v6014_v2 }
 0x436   : > { %v17774_v23 = vpack.c.bf16 %v5532_v24, %v5532_v24  ;;  %v17776_v36 = vpack.c.bf16 %v5534_v59, %v5534_v59  ;;  %v5766_v30 = vsel %vm23831_vm1, %v5758_v15, %v5765_v62  ;;  %v6022_v41 = vsel %vm23058_vm12, %v5767_v14, %v6021_v53  ;;  %6013 = vst.msk [vmem:[#allocation2 + $0x4c] sm:$0xf] %vm547_vm7, %v5749_v7  ;;  %v19040_v15 = vpop.f32.mrb[75].mxu1 }
 0x437   : > { %6016 = vst [vmem:[#allocation2 + $0x50] sm:$0x1] %v6015_v28  ;;  %6020 = vst.msk [vmem:[#allocation2 + $0x58] sm:$0xf] %vm547_vm7, %v5766_v30  ;;  %v5488_v9 = vmul.f32 0.33333334, %v23887_v34  ;;  %v6374_v58 = vor.u32 %v6373_v32, %v6370_v60 }
 0x438   : > { %6023 = vst [vmem:[#allocation2 + $0x5c] sm:$0x1] %v6022_v41  ;;  %v5769_v3 = vshrl.u32 %v17774_v23, 16  ;;  %v5772_v6 = vshll.u32 %v17774_v23, 16  ;;  %v5786_v1 = vshrl.u32 %v17776_v36, 16  ;;  %v6379_v11 = vrot.slane %v6377_v44, 5 }
 0x439   : > { %v6381_v50 = vshrl.u32 %v6252_v10, 16  ;;  %v6387_v2 = vshll.u32 %v6253_v26, 16  ;;  %v5789_v24 = vshll.u32 %v17776_v36, 16  ;;  %v5473_v42 = vmul.f32 0.26666668, %v23895_v46  ;;  %v23969_v60 = vpop.f32.mrb[76].mxu1 }
 0x43a   : > { %v23955_v53 = vrot.slane %v5769_v3, 7  ;;  %v23957_v13 = vrot.slane %v5786_v1, 7  ;;  %v6375_v59 = vrot.slane %v6374_v58, 4  ;;  %v5479_v54 = vmul.f32 0.73333335, %v23895_v46  ;;  %v19045_v28 = vpop.f32.mrb[77].mxu1 }
 0x43b   : > { %v6383_v55 = vrot.slane %v6381_v50, 4  ;;  %v6389_v34 = vrot.slane %v6387_v2, 5  ;;  %v5475_v36 = vadd.f32 %v5473_v42, %v23902_v43  ;;  %v5483_v7 = vmul.f32 0.8, %v23895_v46  ;;  %v23982_v15 = vpop.f32.mrb[78].mxu1 }
 0x43c   : > { %v5774_v19 = vor.u32 %v5772_v6, %v23955_v53  ;;  %v5775_v62 = vrot.slane %v23955_v53, 4  ;;  %v5791_v44 = vor.u32 %v5789_v24, %v23957_v13  ;;  %v5792_v10 = vrot.slane %v23957_v13, 4 }
 0x43d   : > { %v6380_v14 = vsel %vm21564_vm6, %v6375_v59, %v6379_v11  ;;  %v6384_v23 = vor.u32 %v6383_v55, %v6379_v11  ;;  %v5481_v26 = vadd.f32 %v5479_v54, %v23921_v47  ;;  %v5489_v30 = vmul.f32 0.33333334, %v23895_v46  ;;  %v19046_v55 = vpop.f32.mrb[79].mxu1 }
 0x43e   : > { %v6025_v32 = vsel %vm23051_vm11, %v5774_v19, %v6024_v4  ;;  %v6032_v20 = vsel %vm23051_vm11, %v5791_v44, %v6031_v25  ;;  %v27335_v43 = vmax.f32 %v23788_v17, 0.0  ;;  %v27336_v47 = vmax.f32 %v23804_v57, 0.0 }
 0x43f   : > { %6026 = vst [vmem:[#allocation2 + $0x60] sm:$0xf] %v6025_v32  ;;  %6033 = vst [vmem:[#allocation2 + $0x6c] sm:$0xf] %v6032_v20  ;;  %v6385_v41 = vrot.slane %v6384_v23, 4  ;;  %v27337_v58 = vmax.f32 %v23396_v37, 0.0 }
 0x440   : > { %v5533_v3 = vadd.f32 %v5475_v36, %v27335_v43  ;;  %v5535_v6 = vadd.f32 %v5481_v26, %v27336_v47  ;;  %v5484_v1 = vmul.f32 0.2, %v23916_v27  ;;  %v5490_v4 = vmul.f32 0.6666667, %v23916_v27  ;;  %v21161_v37 = vld [vmem:[%s26984_s5 + $0x98] sm:$0xff]  }
 0x441   : > { %v23986_v25 = vmul.f32 0.8666667, %v23916_v27  ;;  %v23989_v46 = vmul.f32 0.4, %v23916_v27  ;;  %v23994_v17 = vadd.f32 %v23969_v60, %v27337_v58  ;;  %v6390_v57 = vsel %vm21564_vm6, %v6385_v41, %v6389_v34  ;;  %v6028_v43 = vld [vmem:[#allocation2 + $0x68] sm:$0x1] }
 0x442   : > { %v17775_v11 = vpack.c.bf16 %v5533_v3, %v5533_v3  ;;  %v17777_v50 = vpack.c.bf16 %v5535_v6, %v5535_v6  ;;  %v5486_v2 = vadd.f32 %v5484_v1, %v23926_v12  ;;  %v23999_v24 = vcombine.low %v6380_v14, %v6390_v57  ;;  %v6035_v3 = vld [vmem:[#allocation2 + $0x74] sm:$0x1]  ;;  %v24028_v57 = vld [vmem:[#allocation2 + $0x18] sm:$0xf] }
 0x443   : > { %v5492_v42 = vadd.f32 %v5490_v4, %v5488_v9  ;;  %v5485_v59 = vmul.f32 0.2, %v23928_v51  ;;  %v5491_v27 = vmul.f32 0.6666667, %v23928_v51  ;;  %v27339_v12 = vmax.f32 %v23796_v5, 0.0  ;;  %v24026_v1 = vld [vmem:[%s26984_s5 + $0xb0] sm:$0xff]  }
 0x444   : > { %27338 = vst [vmem:[#allocation42_spill] sm:$0xff] %v23999_v24  ;;  %v5777_v54 = vshrl.u32 %v17775_v11, 16  ;;  %v5780_v19 = vshll.u32 %v17775_v11, 16  ;;  %v5794_v44 = vshrl.u32 %v17777_v50, 16  ;;  %v5797_v34 = vshll.u32 %v17777_v50, 16  ;;  %19052 = vmatmul.mubr.msk.bf16.vlgmr.msra.gmra.mrb[80].mxu1 %vm1178_vm5, %v23999_v24 }
 0x445   : > { %v5536_v14 = vadd.f32 %v5486_v2, %v27339_v12  ;;  %v27340_v9 = vmax.f32 %v23809_v18, 0.0  ;;  %v5487_v36 = vadd.f32 %v5485_v59, %v5483_v7  ;;  %v5493_v26 = vadd.f32 %v5491_v27, %v5489_v30  ;;  %19084 = vmatpush3.bf16.msra.mxu1 %v23683_v33 }
 0x446   : > { %v5779_v32 = vrot.slane %v5777_v54, 7  ;;  %v5796_v20 = vrot.slane %v5794_v44, 7  ;;  %v24013_v28 = vmul.f32 0.8666667, %v23928_v51  ;;  %v24016_v41 = vmul.f32 0.4, %v23928_v51  ;;  %19085 = vmatprep.subr.bf16.mxu1 %v21161_v37 }
 0x447   : > { %v5538_v23 = vadd.f32 %v5492_v42, %v27340_v9  ;;  %v17778_v47 = vpack.c.bf16 %v5536_v14, %v5536_v14  ;;  %v27341_v6 = vmax.f32 %v23307_v56, 0.0  ;;  %v27342_v7 = vmax.f32 %v27317_v49, 0.0  ;;  %v24030_v42 = vld [vmem:[#allocation2 + $0x1c] sm:$0xf]  ;;  %v6038_v54 = vld [vmem:[#allocation2 + $0x78] sm:$0xf] }
 0x448   : > { %v5782_v51 = vor.u32 %v5780_v19, %v5779_v32  ;;  %v5784_v4 = vrot.slane %v5779_v32, 4  ;;  %v5799_v58 = vor.u32 %v5797_v34, %v5796_v20  ;;  %v5801_v33 = vrot.slane %v5796_v20, 4 }
 0x449   : > { %v17780_v5 = vpack.c.bf16 %v5538_v23, %v5538_v23  ;;  %v5537_v18 = vadd.f32 %v5487_v36, %v27341_v6  ;;  %v5539_v30 = vadd.f32 %v5493_v26, %v27342_v7  ;;  %v5803_v11 = vshrl.u32 %v17778_v47, 16  ;;  %19086 = vmatpush3.bf16.msra.mxu1 %v21161_v37  ;;  %v24051_v26 = vld [vmem:[#allocation2 + $0x24] sm:$0xf] }
 0x44a   : > { %v5806_v50 = vshll.u32 %v17778_v47, 16  ;;  %v5783_v49 = vsel %vm23831_vm1, %v5775_v62, %v5782_v51  ;;  %v5800_v59 = vsel %vm23831_vm1, %v5792_v10, %v5799_v58  ;;  %v6029_v27 = vsel %vm23058_vm12, %v5784_v4, %v6028_v43  ;;  %19119 = vmatprep.subr.bf16.mxu1 %v24026_v1  ;;  %v6045_v10 = vld [vmem:[#allocation2 + $0x84] sm:$0xf]  ;;  %v6256_v47 = vld [vmem:[#allocation2 + $0x20] sm:$0x1] }
 0x44b   : > { %v5820_v2 = vshrl.u32 %v17780_v5, 16  ;;  %v5823_v56 = vshll.u32 %v17780_v5, 16  ;;  %v6036_v55 = vsel %vm23058_vm12, %v5801_v33, %v6035_v3  ;;  %6027 = vst.msk [vmem:[#allocation2 + $0x64] sm:$0xf] %vm547_vm7, %v5783_v49  ;;  %6030 = vst [vmem:[#allocation2 + $0x68] sm:$0x1] %v6029_v27  ;;  %v17779_v13 = vpack.c.bf16 %v5537_v18, %v5537_v18 }
 0x44c   : > { %6034 = vst.msk [vmem:[#allocation2 + $0x70] sm:$0xf] %vm547_vm7, %v5800_v59  ;;  %6037 = vst [vmem:[#allocation2 + $0x74] sm:$0x1] %v6036_v55  ;;  %v5805_v53 = vrot.slane %v5803_v11, 7  ;;  %v17781_v19 = vpack.c.bf16 %v5539_v30, %v5539_v30  ;;  %v6392_v44 = vshrl.u32 %v24028_v57, 16 }
 0x44d   : > { %v5822_v62 = vrot.slane %v5820_v2, 7  ;;  %v6395_v34 = vshll.u32 %v24028_v57, 16  ;;  %v6401_v37 = vshll.u32 %v24030_v42, 16  ;;  %v6405_v12 = vshrl.u32 %v24030_v42, 16  ;;  %v6042_v4 = vld [vmem:[#allocation2 + $0x80] sm:$0x1] }
 0x44e   : > { %v5808_v14 = vor.u32 %v5806_v50, %v5805_v53  ;;  %v5809_v9 = vrot.slane %v5805_v53, 4  ;;  %v5811_v32 = vshrl.u32 %v17779_v13, 16  ;;  %v5814_v20 = vshll.u32 %v17779_v13, 16  ;;  %v6049_v11 = vld [vmem:[#allocation2 + $0x8c] sm:$0x1] }
 0x44f   : > { %v5825_v23 = vor.u32 %v5823_v56, %v5822_v62  ;;  %v5826_v36 = vrot.slane %v5822_v62, 4  ;;  %v5828_v43 = vshrl.u32 %v17781_v19, 16  ;;  %v5831_v3 = vshll.u32 %v17781_v19, 16  ;;  %v24059_v62 = vld [vmem:[#allocation2 + $0x28] sm:$0xf] }
 0x450   : > { %v6039_v5 = vsel %vm23051_vm11, %v5808_v14, %v6038_v54  ;;  %v6394_v18 = vrot.slane %v6392_v44, 4  ;;  %v6397_v7 = vrot.slane %v6395_v34, 5  ;;  %v5813_v30 = vrot.slane %v5811_v32, 7 }
 0x451   : > { %v6046_v6 = vsel %vm23051_vm11, %v5825_v23, %v6045_v10  ;;  %6040 = vst [vmem:[#allocation2 + $0x78] sm:$0xf] %v6039_v5  ;;  %v5830_v51 = vrot.slane %v5828_v43, 7  ;;  %v6403_v58 = vrot.slane %v6401_v37, 5  ;;  %v6407_v33 = vrot.slane %v6405_v12, 4 }
 0x452   : > { %6047 = vst [vmem:[#allocation2 + $0x84] sm:$0xf] %v6046_v6  ;;  %v6398_v50 = vor.u32 %v6397_v7, %v6394_v18  ;;  %v6411_v2 = vshll.u32 %v6256_v47, 16  ;;  %v6416_v56 = vshrl.u32 %v24051_v26, 16  ;;  %v6419_v49 = vshll.u32 %v24051_v26, 16 }
 0x453   : > { %v5816_v59 = vor.u32 %v5814_v20, %v5813_v30  ;;  %v5818_v27 = vrot.slane %v5813_v30, 4  ;;  %v5833_v55 = vor.u32 %v5831_v3, %v5830_v51  ;;  %v5835_v53 = vrot.slane %v5830_v51, 4  ;;  %v6259_v10 = vld [vmem:[#allocation2 + $0x2c] sm:$0x1] }
 0x454   : > { %v6399_v54 = vrot.slane %v6398_v50, 4  ;;  %v6408_v13 = vor.u32 %v6407_v33, %v6403_v58  ;;  %v6413_v19 = vrot.slane %v6411_v2, 5  ;;  %v6418_v44 = vrot.slane %v6416_v56, 4  ;;  %v24085_v33 = vld [vmem:[#allocation2 + $0x30] sm:$0xf] }
 0x455   : > { %v5817_v34 = vsel %vm23831_vm1, %v5809_v9, %v5816_v59  ;;  %v5834_v37 = vsel %vm23831_vm1, %v5826_v36, %v5833_v55  ;;  %v6043_v12 = vsel %vm23058_vm12, %v5818_v27, %v6042_v4  ;;  %v6050_v14 = vsel %vm23058_vm12, %v5835_v53, %v6049_v11  ;;  %v24100_v53 = vld [vmem:[#allocation2 + $0x34] sm:$0xf] }
 0x456   : > { %6041 = vst.msk [vmem:[#allocation2 + $0x7c] sm:$0xf] %vm547_vm7, %v5817_v34  ;;  %6044 = vst [vmem:[#allocation2 + $0x80] sm:$0x1] %v6043_v12  ;;  %v6404_v23 = vsel %vm21564_vm6, %v6399_v54, %v6403_v58  ;;  %v6409_v32 = vrot.slane %v6408_v13, 4  ;;  %v6421_v9 = vrot.slane %v6419_v49, 5 }
 0x457   : > { %6048 = vst.msk [vmem:[#allocation2 + $0x88] sm:$0xf] %vm547_vm7, %v5834_v37  ;;  %6051 = vst [vmem:[#allocation2 + $0x8c] sm:$0x1] %v6050_v14  ;;  %v6425_v20 = vshll.u32 %v24059_v62, 16  ;;  %v6429_v36 = vshrl.u32 %v24059_v62, 16 }
 0x458   : > { %v6435_v43 = vshll.u32 %v6259_v10, 16  ;;  %v5496_v3 = vmul.f32 0.13333334, %v23940_v21  ;;  %v5502_v47 = vmul.f32 0.6, %v23940_v21  ;;  %v6414_v5 = vsel %vm21564_vm6, %v6409_v32, %v6413_v19 }
 0x459   : > { %v6422_v6 = vor.u32 %v6421_v9, %v6418_v44  ;;  %v6427_v18 = vrot.slane %v6425_v20, 5  ;;  %v24080_v7 = vmul.f32 0.93333334, %v23940_v21  ;;  %v24082_v30 = vcombine.low %v6404_v23, %v6414_v5 }
 0x45a   : > { %v6431_v51 = vrot.slane %v6429_v36, 4  ;;  %v6437_v4 = vrot.slane %v6435_v43, 5  ;;  %v5498_v58 = vadd.f32 %v5496_v3, %v23986_v25  ;;  %v5504_v50 = vadd.f32 %v5502_v47, %v23989_v46 }
 0x45b   : > { %27343 = vst [vmem:[#allocation43_spill] sm:$0xff] %v24082_v30  ;;  %v6423_v11 = vrot.slane %v6422_v6, 4  ;;  %v24089_v2 = vmul.f32 0.46666667, %v23940_v21  ;;  %v5497_v56 = vmul.f32 0.13333334, %v23950_v48  ;;  %19055 = vmatprep.mubr.msk.bf16.mxu1 %vm1178_vm5, %v24082_v30 }
 0x45c   : > { %v6432_v49 = vor.u32 %v6431_v51, %v6427_v18  ;;  %v27344_v59 = vmax.f32 %v27315_v22, 0.0  ;;  %v5503_v55 = vmul.f32 0.6, %v23950_v48  ;;  %v24098_v25 = vmul.f32 0.93333334, %v23950_v48 }
 0x45d   : > { %v6428_v21 = vsel %vm21564_vm6, %v6423_v11, %v6427_v18  ;;  %v27345_v46 = vmax.f32 %v27319_v52, 0.0  ;;  %v5499_v13 = vadd.f32 %v5497_v56, %v24013_v28  ;;  %v24108_v19 = vmul.f32 0.46666667, %v23950_v48  ;;  %v24124_v11 = vld [vmem:[#allocation2 + $0x38] sm:$0x1] }
 0x45e   : > { %v5540_v27 = vadd.f32 %v5498_v58, %v27344_v59  ;;  %v6433_v22 = vrot.slane %v6432_v49, 4  ;;  %v5505_v44 = vadd.f32 %v5503_v55, %v24016_v41  ;;  %v6440_v34 = vshrl.u32 %v24085_v33, 16  ;;  %v6059_v49 = vld [vmem:[#allocation2 + $0x9c] sm:$0xf] }
 0x45f   : > { %v5542_v54 = vadd.f32 %v5504_v50, %v27345_v46  ;;  %v27346_v12 = vmax.f32 %v27316_v16, 0.0  ;;  %v6443_v23 = vshll.u32 %v24085_v33, 16  ;;  %v6449_v52 = vshll.u32 %v24100_v53, 16  ;;  %v6052_v16 = vld [vmem:[#allocation2 + $0x90] sm:$0xf] }
 0x460   : > { %v17782_v10 = vpack.c.bf16 %v5540_v27, %v5540_v27  ;;  %v6438_v28 = vsel %vm21564_vm6, %v6433_v22, %v6437_v4  ;;  %v27347_v9 = vmax.f32 %v23387_v61, 0.0  ;;  %v6442_v6 = vrot.slane %v6440_v34, 4 }
 0x461   : > { %v17784_v37 = vpack.c.bf16 %v5542_v54, %v5542_v54  ;;  %v5541_v14 = vadd.f32 %v5499_v13, %v27346_v12  ;;  %v24120_v36 = vcombine.low %v6428_v21, %v6438_v28  ;;  %v6445_v18 = vrot.slane %v6443_v23, 5  ;;  %v6056_v54 = vld [vmem:[#allocation2 + $0x98] sm:$0x1] }
 0x462   : > { %v5837_v32 = vshrl.u32 %v17782_v10, 16  ;;  %v5840_v48 = vshll.u32 %v17782_v10, 16  ;;  %v5543_v20 = vadd.f32 %v5505_v44, %v27347_v9  ;;  %v6451_v61 = vrot.slane %v6449_v52, 5  ;;  %v6063_v52 = vld [vmem:[#allocation2 + $0xa4] sm:$0x1] }
 0x463   : > { %27348 = vst [vmem:[#allocation23_spill] sm:$0xff] %v24120_v36  ;;  %v5854_v41 = vshrl.u32 %v17784_v37, 16  ;;  %v5857_v43 = vshll.u32 %v17784_v37, 16  ;;  %v17783_v3 = vpack.c.bf16 %v5541_v14, %v5541_v14  ;;  %19056 = vmatmul.mubr.msk.bf16.gmra.mrb[84].mxu1 %vm1178_vm5, %v24120_v36  ;;  %v6446_v13 = vor.u32 %v6445_v18, %v6442_v6  ;;  %v24130_v37 = vld [vmem:[#allocation2 + $0x3c] sm:$0xf] }
 0x464   : > { %v5839_v47 = vrot.slane %v5837_v32, 7  ;;  %v17785_v5 = vpack.c.bf16 %v5543_v20, %v5543_v20  ;;  %v6453_v44 = vshrl.u32 %v24100_v53, 16  ;;  %v6459_v34 = vshll.u32 %v24124_v11, 16  ;;  %v24134_v32 = vld [vmem:[#allocation2 + $0x40] sm:$0xf] }
 0x465   : > { %v5856_v51 = vrot.slane %v5854_v41, 7  ;;  %v5845_v4 = vshrl.u32 %v17783_v3, 16  ;;  %v5848_v58 = vshll.u32 %v17783_v3, 16  ;;  %v6447_v28 = vrot.slane %v6446_v13, 4 }
 0x466   : > { %v5842_v50 = vor.u32 %v5840_v48, %v5839_v47  ;;  %v5843_v56 = vrot.slane %v5839_v47, 4  ;;  %v5862_v59 = vshrl.u32 %v17785_v5, 16  ;;  %v5865_v27 = vshll.u32 %v17785_v5, 16 }
 0x467   : > { %v5859_v55 = vor.u32 %v5857_v43, %v5856_v51  ;;  %v5860_v21 = vrot.slane %v5856_v51, 4  ;;  %v5847_v46 = vrot.slane %v5845_v4, 7  ;;  %v6455_v20 = vrot.slane %v6453_v44, 4  ;;  %v24136_v43 = vld [vmem:[#allocation2 + $0x44] sm:$0x1] }
 0x468   : > { %v6053_v22 = vsel %vm23051_vm11, %v5842_v50, %v6052_v16  ;;  %v5864_v10 = vrot.slane %v5862_v59, 7  ;;  %v6461_v41 = vrot.slane %v6459_v34, 5  ;;  %v6452_v16 = vsel %vm21564_vm6, %v6447_v28, %v6451_v61 }
 0x469   : > { %6054 = vst [vmem:[#allocation2 + $0x90] sm:$0xf] %v6053_v22  ;;  %v6060_v12 = vsel %vm23051_vm11, %v5859_v55, %v6059_v49  ;;  %v5850_v14 = vor.u32 %v5848_v58, %v5847_v46  ;;  %v5852_v23 = vrot.slane %v5847_v46, 4  ;;  %v6464_v5 = vshrl.u32 %v24130_v37, 16 }
 0x46a   : > { %6061 = vst [vmem:[#allocation2 + $0x9c] sm:$0xf] %v6060_v12  ;;  %v5867_v48 = vor.u32 %v5865_v27, %v5864_v10  ;;  %v5869_v9 = vrot.slane %v5864_v10, 4  ;;  %v6456_v51 = vor.u32 %v6455_v20, %v6451_v61  ;;  %v6467_v4 = vshll.u32 %v24130_v37, 16 }
 0x46b   : > { %v5851_v3 = vsel %vm23831_vm1, %v5843_v56, %v5850_v14  ;;  %v6057_v47 = vsel %vm23058_vm12, %v5852_v23, %v6056_v54  ;;  %v6466_v58 = vrot.slane %v6464_v5, 4  ;;  %v6473_v50 = vshll.u32 %v24134_v32, 16  ;;  %v6080_v5 = vld [vmem:[#allocation2 + $0xc0] sm:$0xf] }
 0x46c   : > { %v5868_v6 = vsel %vm23831_vm1, %v5860_v21, %v5867_v48  ;;  %6055 = vst.msk [vmem:[#allocation2 + $0x94] sm:$0xf] %vm547_vm7, %v5851_v3  ;;  %6058 = vst [vmem:[#allocation2 + $0x98] sm:$0x1] %v6057_v47  ;;  %v6064_v18 = vsel %vm23058_vm12, %v5869_v9, %v6063_v52  ;;  %v6477_v56 = vshrl.u32 %v24134_v32, 16  ;;  %v6483_v49 = vshll.u32 %v24136_v43, 16 }
 0x46d   : > { %6062 = vst.msk [vmem:[#allocation2 + $0xa0] sm:$0xf] %vm547_vm7, %v5868_v6  ;;  %6065 = vst [vmem:[#allocation2 + $0xa4] sm:$0x1] %v6064_v18  ;;  %v6457_v59 = vrot.slane %v6456_v51, 4  ;;  %v6469_v27 = vrot.slane %v6467_v4, 5  ;;  %v17790_v13 = vpack.c.bf16 %v23994_v17, %v23994_v17 }
 0x46e   : > { %v5508_v55 = vmul.f32 0.06666667, %v23969_v60  ;;  %v5514_v21 = vmul.f32 0.53333336, %v23969_v60  ;;  %v6475_v46 = vrot.slane %v6473_v50, 5  ;;  %v6479_v61 = vrot.slane %v6477_v56, 4 }
 0x46f   : > { %v6485_v54 = vrot.slane %v6483_v49, 5  ;;  %v6462_v22 = vsel %vm21564_vm6, %v6457_v59, %v6461_v41  ;;  %v6470_v10 = vor.u32 %v6469_v27, %v6466_v58  ;;  %v5905_v23 = vshrl.u32 %v17790_v13, 16  ;;  %v24190_v59 = vld [vmem:[#allocation2 + $0x4c] sm:$0xf] }
 0x470   : > { %v5510_v44 = vadd.f32 %v5508_v55, %v24080_v7  ;;  %v5516_v34 = vadd.f32 %v5514_v21, %v24089_v2  ;;  %v24163_v12 = vcombine.low %v6452_v16, %v6462_v22  ;;  %v6480_v14 = vor.u32 %v6479_v61, %v6475_v46 }
 0x471   : > { %v5908_v52 = vshll.u32 %v17790_v13, 16  ;;  %v6471_v60 = vrot.slane %v6470_v10, 4  ;;  %v27350_v28 = vmax.f32 %v27318_v40, 0.0  ;;  %v27351_v9 = vmax.f32 %v23410_v63, 0.0  ;;  %v6066_v10 = vld [vmem:[#allocation2 + $0xa8] sm:$0xf] }
 0x472   : > { %27349 = vst [vmem:[#allocation25_spill] sm:$0xff] %v24163_v12  ;;  %v5509_v20 = vmul.f32 0.06666667, %v23982_v15  ;;  %19059 = vmatprep.mubr.msk.bf16.mxu1 %vm1178_vm5, %v24163_v12  ;;  %v6481_v7 = vrot.slane %v6480_v14, 4  ;;  %v24172_v41 = vrot.slane %v5905_v23, 7  ;;  %v27352_v3 = vmax.f32 %v23424_v0, 0.0 }
 0x473   : > { %v5544_v48 = vadd.f32 %v5510_v44, %v27350_v28  ;;  %v5546_v17 = vadd.f32 %v5516_v34, %v27351_v9  ;;  %v5515_v2 = vmul.f32 0.53333336, %v23982_v15  ;;  %v6476_v40 = vsel %vm21564_vm6, %v6471_v60, %v6475_v46  ;;  %v24186_v0 = vld [vmem:[#allocation2 + $0x48] sm:$0xf]  ;;  %v6073_v44 = vld [vmem:[#allocation2 + $0xb4] sm:$0xf] }
 0x474   : > { %v5549_v47 = vadd.f32 %v23982_v15, %v27352_v3  ;;  %v5511_v6 = vadd.f32 %v5509_v20, %v24098_v25  ;;  %v6486_v18 = vsel %vm21564_vm6, %v6481_v7, %v6485_v54  ;;  %v5910_v51 = vor.u32 %v5908_v52, %v24172_v41  ;;  %v24203_v7 = vld [vmem:[#allocation2 + $0x50] sm:$0x1] }
 0x475   : > { %v17786_v16 = vpack.c.bf16 %v5544_v48, %v5544_v48  ;;  %v17788_v63 = vpack.c.bf16 %v5546_v17, %v5546_v17  ;;  %v5911_v4 = vrot.slane %v24172_v41, 4  ;;  %v5517_v58 = vadd.f32 %v5515_v2, %v24108_v19 }
 0x476   : > { %v24188_v15 = vcombine.low %v6476_v40, %v6486_v18  ;;  %v6081_v25 = vsel %vm23051_vm11, %v5910_v51, %v6080_v5  ;;  %v27354_v55 = vmax.f32 %v27320_v45, 0.0  ;;  %v27355_v46 = vmax.f32 %v23427_v31, 0.0  ;;  %v6070_v5 = vld [vmem:[#allocation2 + $0xb0] sm:$0x1] }
 0x477   : > { %v5871_v50 = vshrl.u32 %v17786_v16, 16  ;;  %v5874_v56 = vshll.u32 %v17786_v16, 16  ;;  %v5888_v49 = vshrl.u32 %v17788_v63, 16  ;;  %v5891_v27 = vshll.u32 %v17788_v63, 16  ;;  %6082 = vst [vmem:[#allocation2 + $0xc0] sm:$0xf] %v6081_v25 }
 0x478   : > { %27353 = vst [vmem:[#allocation29_spill] sm:$0xff] %v24188_v15  ;;  %v5545_v21 = vadd.f32 %v5511_v6, %v27354_v55  ;;  %v5547_v61 = vadd.f32 %v5517_v58, %v27355_v46  ;;  %19060 = vmatmul.mubr.msk.bf16.gmra.mrb[88].mxu1 %vm1178_vm5, %v24188_v15  ;;  %v17791_v13 = vpack.c.bf16 %v5549_v47, %v5549_v47  ;;  %v6488_v22 = vshrl.u32 %v24186_v0, 16  ;;  %v6077_v58 = vld [vmem:[#allocation2 + $0xbc] sm:$0x1]  ;;  %v6084_v46 = vld [vmem:[#allocation2 + $0xc8] sm:$0x1] }
 0x479   : > { %v5873_v19 = vrot.slane %v5871_v50, 7  ;;  %v5890_v54 = vrot.slane %v5888_v49, 7  ;;  %v6491_v23 = vshll.u32 %v24186_v0, 16  ;;  %v6497_v45 = vshll.u32 %v24190_v59, 16 }
 0x47a   : > { %v17787_v34 = vpack.c.bf16 %v5545_v21, %v5545_v21  ;;  %v17789_v14 = vpack.c.bf16 %v5547_v61, %v5547_v61  ;;  %v5913_v47 = vshrl.u32 %v17791_v13, 16  ;;  %v5916_v40 = vshll.u32 %v17791_v13, 16 }
 0x47b   : > { %v5876_v52 = vor.u32 %v5874_v56, %v5873_v19  ;;  %v5877_v31 = vrot.slane %v5873_v19, 4  ;;  %v5893_v60 = vor.u32 %v5891_v27, %v5890_v54  ;;  %v5894_v28 = vrot.slane %v5890_v54, 4 }
 0x47c   : > { %v5879_v48 = vshrl.u32 %v17787_v34, 16  ;;  %v5882_v9 = vshll.u32 %v17787_v34, 16  ;;  %v5896_v17 = vshrl.u32 %v17789_v14, 16  ;;  %v5899_v20 = vshll.u32 %v17789_v14, 16 }
 0x47d   : > { %v6067_v2 = vsel %vm23051_vm11, %v5876_v52, %v6066_v10  ;;  %v6074_v3 = vsel %vm23051_vm11, %v5893_v60, %v6073_v44  ;;  %v6490_v6 = vrot.slane %v6488_v22, 4  ;;  %v6493_v18 = vrot.slane %v6491_v23, 5  ;;  %v24211_v10 = vld [vmem:[#allocation2 + $0x54] sm:$0xf]  ;;  %v24213_v22 = vld [vmem:[#allocation2 + $0x58] sm:$0xf] }
 0x47e   : > { %6068 = vst [vmem:[#allocation2 + $0xa8] sm:$0xf] %v6067_v2  ;;  %6075 = vst [vmem:[#allocation2 + $0xb4] sm:$0xf] %v6074_v3  ;;  %v5881_v16 = vrot.slane %v5879_v48, 7  ;;  %v5898_v63 = vrot.slane %v5896_v17, 7 }
 0x47f   : > { %v5915_v51 = vrot.slane %v5913_v47, 7  ;;  %v6499_v50 = vrot.slane %v6497_v45, 5  ;;  %v6501_v56 = vshrl.u32 %v24190_v59, 16  ;;  %v6507_v49 = vshll.u32 %v24203_v7, 16  ;;  %v24223_v45 = vld [vmem:[#allocation2 + $0x5c] sm:$0x1] }
 0x480   : > { %v5884_v27 = vor.u32 %v5882_v9, %v5881_v16  ;;  %v5886_v25 = vrot.slane %v5881_v16, 4  ;;  %v5901_v55 = vor.u32 %v5899_v20, %v5898_v63  ;;  %v5903_v21 = vrot.slane %v5898_v63, 4  ;;  %v24233_v48 = vld [vmem:[#allocation2 + $0x60] sm:$0xf] }
 0x481   : > { %v5918_v61 = vor.u32 %v5916_v40, %v5915_v51  ;;  %v5920_v19 = vrot.slane %v5915_v51, 4  ;;  %v6494_v54 = vor.u32 %v6493_v18, %v6490_v6  ;;  %v6503_v13 = vrot.slane %v6501_v56, 4  ;;  %v24243_v40 = vld [vmem:[#allocation2 + $0x64] sm:$0xf]  ;;  %v24245_v6 = vld [vmem:[#allocation2 + $0x68] sm:$0x1] }
 0x482   : > { %v5885_v44 = vsel %vm23831_vm1, %v5877_v31, %v5884_v27  ;;  %v5902_v34 = vsel %vm23831_vm1, %v5894_v28, %v5901_v55  ;;  %v6071_v14 = vsel %vm23058_vm12, %v5886_v25, %v6070_v5  ;;  %v6078_v23 = vsel %vm23058_vm12, %v5903_v21, %v6077_v58 }
 0x483   : > { %v5919_v52 = vsel %vm23831_vm1, %v5911_v4, %v5918_v61  ;;  %6069 = vst.msk [vmem:[#allocation2 + $0xac] sm:$0xf] %vm547_vm7, %v5885_v44  ;;  %6072 = vst [vmem:[#allocation2 + $0xb0] sm:$0x1] %v6071_v14  ;;  %v6085_v31 = vsel %vm23058_vm12, %v5920_v19, %v6084_v46  ;;  %v6495_v60 = vrot.slane %v6494_v54, 4  ;;  %v6504_v28 = vor.u32 %v6503_v13, %v6499_v50 }
 0x484   : > { %6076 = vst.msk [vmem:[#allocation2 + $0xb8] sm:$0xf] %vm547_vm7, %v5902_v34  ;;  %6079 = vst [vmem:[#allocation2 + $0xbc] sm:$0x1] %v6078_v23  ;;  %v6509_v41 = vrot.slane %v6507_v49, 5  ;;  %v6512_v9 = vshrl.u32 %v24211_v10, 16 }
 0x485   : > { %6083 = vst.msk [vmem:[#allocation2 + $0xc4] sm:$0xf] %vm547_vm7, %v5919_v52  ;;  %6086 = vst [vmem:[#allocation2 + $0xc8] sm:$0x1] %v6085_v31  ;;  %v6515_v4 = vshll.u32 %v24211_v10, 16  ;;  %v6521_v17 = vshll.u32 %v24213_v22, 16  ;;  %v6500_v20 = vsel %vm21564_vm6, %v6495_v60, %v6499_v50 }
 0x486   : > { %v6505_v2 = vrot.slane %v6504_v28, 4  ;;  %v6525_v3 = vshrl.u32 %v24213_v22, 16  ;;  %v6531_v47 = vshll.u32 %v24223_v45, 16  ;;  %v6514_v16 = vrot.slane %v6512_v9, 4  ;;  %v24251_v49 = vld [vmem:[#allocation2 + $0x6c] sm:$0xf] }
 0x487   : > { %v6517_v63 = vrot.slane %v6515_v4, 5  ;;  %v6523_v5 = vrot.slane %v6521_v17, 5  ;;  %v6536_v18 = vshrl.u32 %v24233_v48, 16  ;;  %v6539_v50 = vshll.u32 %v24233_v48, 16  ;;  %v24258_v13 = vld [vmem:[#allocation2 + $0x70] sm:$0xf] }
 0x488   : > { %v6510_v51 = vsel %vm21564_vm6, %v6505_v2, %v6509_v41  ;;  %v6527_v58 = vrot.slane %v6525_v3, 4  ;;  %v6533_v56 = vrot.slane %v6531_v47, 5  ;;  %v6545_v21 = vshll.u32 %v24243_v40, 16  ;;  %v24264_v41 = vld [vmem:[#allocation2 + $0x74] sm:$0x1] }
 0x489   : > { %v24253_v27 = vcombine.low %v6500_v20, %v6510_v51  ;;  %v6518_v25 = vor.u32 %v6517_v63, %v6514_v16  ;;  %v6538_v55 = vrot.slane %v6536_v18, 4  ;;  %v6541_v61 = vrot.slane %v6539_v50, 5  ;;  %v24269_v2 = vld [vmem:[#allocation2 + $0x78] sm:$0xf]  ;;  %v24274_v18 = vld [vmem:[#allocation2 + $0x7c] sm:$0xf] }
 0x48a   : > { %v6528_v46 = vor.u32 %v6527_v58, %v6523_v5  ;;  %v6549_v19 = vshrl.u32 %v24243_v40, 16  ;;  %v6555_v54 = vshll.u32 %v24245_v6, 16  ;;  %v6547_v34 = vrot.slane %v6545_v21, 5 }
 0x48b   : > { %27356 = vst [vmem:[#allocation31_spill] sm:$0xff] %v24253_v27  ;;  %19063 = vmatprep.mubr.msk.bf16.mxu1 %vm1178_vm5, %v24253_v27  ;;  %v6519_v44 = vrot.slane %v6518_v25, 4  ;;  %v6560_v14 = vshrl.u32 %v24251_v49, 16  ;;  %v6563_v23 = vshll.u32 %v24251_v49, 16  ;;  %v6542_v31 = vor.u32 %v6541_v61, %v6538_v55  ;;  %v24369_v30 = vld [vmem:[#allocation2 + $0xb8] sm:$0xf] }
 0x48c   : > { %v6529_v52 = vrot.slane %v6528_v46, 4  ;;  %v6551_v60 = vrot.slane %v6549_v19, 4  ;;  %v6557_v28 = vrot.slane %v6555_v54, 5  ;;  %v6569_v20 = vshll.u32 %v24258_v13, 16  ;;  %v24286_v54 = vld [vmem:[#allocation2 + $0x80] sm:$0x1] }
 0x48d   : > { %v6524_v9 = vsel %vm21564_vm6, %v6519_v44, %v6523_v5  ;;  %v6562_v4 = vrot.slane %v6560_v14, 4  ;;  %v6565_v17 = vrot.slane %v6563_v23, 5  ;;  %v6543_v47 = vrot.slane %v6542_v31, 4 }
 0x48e   : > { %v6534_v3 = vsel %vm21564_vm6, %v6529_v52, %v6533_v56  ;;  %v6552_v16 = vor.u32 %v6551_v60, %v6547_v34  ;;  %v6573_v63 = vshrl.u32 %v24258_v13, 16  ;;  %v6571_v50 = vrot.slane %v6569_v20, 5  ;;  %v24282_v56 = vld [vmem:[#allocation2 + $0x84] sm:$0xf]  ;;  %v24293_v60 = vld [vmem:[#allocation2 + $0x88] sm:$0xf] }
 0x48f   : > { %v24276_v51 = vcombine.low %v6524_v9, %v6534_v3  ;;  %v6566_v58 = vor.u32 %v6565_v17, %v6562_v4  ;;  %v6579_v5 = vshll.u32 %v24264_v41, 16  ;;  %v6548_v25 = vsel %vm21564_vm6, %v6543_v47, %v6547_v34 }
 0x490   : > { %v6553_v55 = vrot.slane %v6552_v16, 4  ;;  %v6575_v21 = vrot.slane %v6573_v63, 4  ;;  %v6584_v46 = vshrl.u32 %v24269_v2, 16  ;;  %v6587_v44 = vshll.u32 %v24269_v2, 16  ;;  %v24300_v63 = vld [vmem:[#allocation2 + $0x8c] sm:$0x1] }
 0x491   : > { %27357 = vst [vmem:[#allocation12_spill] sm:$0xff] %v24276_v51  ;;  %19064 = vmatmul.mubr.msk.bf16.gmra.mrb[92].mxu1 %vm1178_vm5, %v24276_v51  ;;  %v6567_v61 = vrot.slane %v6566_v58, 4  ;;  %v6581_v19 = vrot.slane %v6579_v5, 5  ;;  %v6593_v14 = vshll.u32 %v24274_v18, 16  ;;  %v6597_v31 = vshrl.u32 %v24274_v18, 16 }
 0x492   : > { %v6558_v34 = vsel %vm21564_vm6, %v6553_v55, %v6557_v28  ;;  %v6576_v23 = vor.u32 %v6575_v21, %v6571_v50  ;;  %v6586_v52 = vrot.slane %v6584_v46, 4  ;;  %v6589_v17 = vrot.slane %v6587_v44, 5  ;;  %v24308_v55 = vld [vmem:[#allocation2 + $0x90] sm:$0xf] }
 0x493   : > { %v24295_v9 = vcombine.low %v6548_v25, %v6558_v34  ;;  %v6572_v4 = vsel %vm21564_vm6, %v6567_v61, %v6571_v50  ;;  %v6595_v20 = vrot.slane %v6593_v14, 5  ;;  %v6599_v47 = vrot.slane %v6597_v31, 4  ;;  %v24312_v14 = vld [vmem:[#allocation2 + $0x94] sm:$0xf] }
 0x494   : > { %v6577_v3 = vrot.slane %v6576_v23, 4  ;;  %v6603_v16 = vshll.u32 %v24286_v54, 16  ;;  %v6608_v28 = vshrl.u32 %v24282_v56, 16  ;;  %v6590_v58 = vor.u32 %v6589_v17, %v6586_v52 }
 0x495   : > { %27358 = vst [vmem:[#allocation13_spill] sm:$0xff] %v24295_v9  ;;  %19067 = vmatprep.mubr.msk.bf16.mxu1 %vm1178_vm5, %v24295_v9  ;;  %v6611_v5 = vshll.u32 %v24282_v56, 16  ;;  %v6617_v25 = vshll.u32 %v24293_v60, 16  ;;  %v6621_v50 = vshrl.u32 %v24293_v60, 16  ;;  %v6600_v46 = vor.u32 %v6599_v47, %v6595_v20 }
 0x496   : > { %v6582_v21 = vsel %vm21564_vm6, %v6577_v3, %v6581_v19  ;;  %v6605_v61 = vrot.slane %v6603_v16, 5  ;;  %v6610_v44 = vrot.slane %v6608_v28, 4  ;;  %v6591_v23 = vrot.slane %v6590_v58, 4  ;;  %v24322_v16 = vld [vmem:[#allocation2 + $0x9c] sm:$0xf] }
 0x497   : > { %v24314_v34 = vcombine.low %v6572_v4, %v6582_v21  ;;  %v6613_v52 = vrot.slane %v6611_v5, 5  ;;  %v6619_v31 = vrot.slane %v6617_v25, 5  ;;  %v6601_v17 = vrot.slane %v6600_v46, 4  ;;  %v24328_v5 = vld [vmem:[#allocation2 + $0x98] sm:$0x1] }
 0x498   : > { %v6623_v35 = vrot.slane %v6621_v50, 4  ;;  %v6627_v8 = vshll.u32 %v24300_v63, 16  ;;  %v6632_v39 = vshrl.u32 %v24308_v55, 16  ;;  %v6635_v3 = vshll.u32 %v24308_v55, 16  ;;  %v24330_v50 = vld [vmem:[#allocation2 + $0xa0] sm:$0xf] }
 0x499   : > { %27359 = vst [vmem:[#allocation14_spill] sm:$0xff] %v24314_v34  ;;  %19068 = vmatmul.mubr.msk.bf16.gmra.mrb[96].mxu1 %vm1178_vm5, %v24314_v34  ;;  %v6614_v19 = vor.u32 %v6613_v52, %v6610_v44  ;;  %v6641_v47 = vshll.u32 %v24312_v14, 16  ;;  %v6596_v4 = vsel %vm21564_vm6, %v6591_v23, %v6595_v20  ;;  %v6606_v28 = vsel %vm21564_vm6, %v6601_v17, %v6605_v61  ;;  %v24341_v17 = vld [vmem:[#allocation2 + $0xa8] sm:$0xf] }
 0x49a   : > { %v6624_v58 = vor.u32 %v6623_v35, %v6619_v31  ;;  %v6634_v25 = vrot.slane %v6632_v39, 4  ;;  %v24332_v21 = vcombine.low %v6596_v4, %v6606_v28  ;;  %v6629_v44 = vrot.slane %v6627_v8, 5  ;;  %v24347_v4 = vld [vmem:[#allocation2 + $0xac] sm:$0xf] }
 0x49b   : > { %v6615_v46 = vrot.slane %v6614_v19, 4  ;;  %v6637_v52 = vrot.slane %v6635_v3, 5  ;;  %v6643_v9 = vrot.slane %v6641_v47, 5  ;;  %v6645_v51 = vshrl.u32 %v24312_v14, 16 }
 0x49c   : > { %27360 = vst [vmem:[#allocation19_spill] sm:$0xff] %v24332_v21  ;;  %v6625_v34 = vrot.slane %v6624_v58, 4  ;;  %v6656_v20 = vshrl.u32 %v24322_v16, 16  ;;  %19071 = vmatprep.mubr.msk.bf16.mxu1 %vm1178_vm5, %v24332_v21  ;;  %v6651_v61 = vshll.u32 %v24328_v5, 16  ;;  %v6659_v39 = vshll.u32 %v24322_v16, 16 }
 0x49d   : > { %v6638_v35 = vor.u32 %v6637_v52, %v6634_v25  ;;  %v6665_v23 = vshll.u32 %v24330_v50, 16  ;;  %v6620_v8 = vsel %vm21564_vm6, %v6615_v46, %v6619_v31  ;;  %v6647_v3 = vrot.slane %v6645_v51, 4  ;;  %v24351_v25 = vld [vmem:[#allocation2 + $0xa4] sm:$0x1] }
 0x49e   : > { %v6630_v19 = vsel %vm21564_vm6, %v6625_v34, %v6629_v44  ;;  %v6658_v47 = vrot.slane %v6656_v20, 4  ;;  %27362 = vst [vmem:[#allocation21_spill] sm:$0xff] %v24351_v25  ;;  %v6661_v52 = vrot.slane %v6659_v39, 5  ;;  %v6669_v15 = vshrl.u32 %v24330_v50, 16  ;;  %v24359_v44 = vld [vmem:[#allocation2 + $0xb4] sm:$0xf] }
 0x49f   : > { %v24349_v28 = vcombine.low %v6620_v8, %v6630_v19  ;;  %v6639_v58 = vrot.slane %v6638_v35, 4  ;;  %v6648_v21 = vor.u32 %v6647_v3, %v6643_v9  ;;  %v6667_v27 = vrot.slane %v6665_v23, 5  ;;  %v24362_v23 = vld [vmem:[#allocation2 + $0xb0] sm:$0x1] }
 0x4a0   : > { %v6680_v12 = vshrl.u32 %v24341_v17, 16  ;;  %v6653_v34 = vrot.slane %v6651_v61, 5  ;;  %v6662_v51 = vor.u32 %v6661_v52, %v6658_v47  ;;  %v6683_v31 = vshll.u32 %v24341_v17, 16  ;;  %27363 = vst [vmem:[#allocation22_spill] sm:$0xff] %v24362_v23 }
 0x4a1   : > { %27361 = vst [vmem:[#allocation20_spill] sm:$0xff] %v24349_v28  ;;  %19072 = vmatmul.mubr.msk.bf16.gmra.mrb[100].mxu1 %vm1178_vm5, %v24349_v28  ;;  %v6689_v46 = vshll.u32 %v24347_v4, 16  ;;  %v6649_v20 = vrot.slane %v6648_v21, 4  ;;  %v6671_v35 = vrot.slane %v6669_v15, 4  ;;  %v6675_v39 = vshll.u32 %v24351_v25, 16 }
 0x4a2   : > { %v6682_v8 = vrot.slane %v6680_v12, 4  ;;  %v6644_v19 = vsel %vm21564_vm6, %v6639_v58, %v6643_v9  ;;  %v6685_v3 = vrot.slane %v6683_v31, 5  ;;  %v6693_v61 = vshrl.u32 %v24347_v4, 16 }
 0x4a3   : > { %v6691_v28 = vrot.slane %v6689_v46, 5  ;;  %v6654_v47 = vsel %vm21564_vm6, %v6649_v20, %v6653_v34  ;;  %v6663_v52 = vrot.slane %v6662_v51, 4  ;;  %v6672_v36 = vor.u32 %v6671_v35, %v6667_v27  ;;  %v24378_v20 = vld [vmem:[#allocation2 + $0xbc] sm:$0x1] }
 0x4a4   : > { %v6704_v15 = vshrl.u32 %v24359_v44, 16  ;;  %v24372_v21 = vcombine.low %v6644_v19, %v6654_v47  ;;  %v6686_v24 = vor.u32 %v6685_v3, %v6682_v8  ;;  %v6695_v12 = vrot.slane %v6693_v61, 4 }
 0x4a5   : > { %v6699_v25 = vshll.u32 %v24362_v23, 16  ;;  %v6673_v9 = vrot.slane %v6672_v36, 4  ;;  %v6677_v58 = vrot.slane %v6675_v39, 5  ;;  %v6707_v46 = vshll.u32 %v24359_v44, 16 }
 0x4a6   : > { %27364 = vst [vmem:[#allocation24_spill] sm:$0xff] %v24372_v21  ;;  %v6706_v31 = vrot.slane %v6704_v15, 4  ;;  %19075 = vmatprep.mubr.msk.bf16.mxu1 %vm1178_vm5, %v24372_v21  ;;  %v6687_v34 = vrot.slane %v6686_v24, 4  ;;  %v6696_v51 = vor.u32 %v6695_v12, %v6691_v28  ;;  %v6713_v35 = vshll.u32 %v24369_v30, 16 }
 0x4a7   : > { %v6717_v19 = vshrl.u32 %v24369_v30, 16  ;;  %v6668_v8 = vsel %vm21564_vm6, %v6663_v52, %v6667_v27  ;;  %v6678_v36 = vsel %vm21564_vm6, %v6673_v9, %v6677_v58  ;;  %v6709_v39 = vrot.slane %v6707_v46, 5 }
 0x4a8   : > { %v24386_v3 = vcombine.low %v6668_v8, %v6678_v36  ;;  %v6697_v61 = vrot.slane %v6696_v51, 4  ;;  %v6701_v47 = vrot.slane %v6699_v25, 5  ;;  %v6715_v15 = vrot.slane %v6713_v35, 5  ;;  %v24403_v35 = vld [vmem:[#allocation2] sm:$0xf]  ;;  %v21170_v36 = vld [vmem:[%s26984_s5 + $0xb8] sm:$0xff]  }
 0x4a9   : > { %v6710_v24 = vor.u32 %v6709_v39, %v6706_v31  ;;  %v6719_v12 = vrot.slane %v6717_v19, 4  ;;  %v6723_v21 = vshll.u32 %v24378_v20, 16  ;;  %v6692_v23 = vsel %vm21564_vm6, %v6687_v34, %v6691_v28  ;;  %v24405_v28 = vld [vmem:[#allocation2 + $0x4] sm:$0xf]  ;;  %v24416_v19 = vld [vmem:[#allocation2 + $0x10] sm:$0xf] }
 0x4aa   : > { %27365 = vst [vmem:[#allocation26_spill] sm:$0xff] %v24386_v3  ;;  %19076 = vmatmul.mubr.msk.bf16.gmra.mrb[104].mxu1 %vm1178_vm5, %v24386_v3  ;;  %v6702_v27 = vsel %vm21564_vm6, %v6697_v61, %v6701_v47  ;;  %v24428_v39 = vld [vmem:[%s26991_s12 + $0x1] ss:$0 sm:$0xff]  ;;  %v24432_v61 = vcombine.low %v24028_v57, %v24030_v42  ;;  %v19485_v47 = vpop.f32.mrb[40].mxu0 }
 0x4ab   : > { %v24395_v52 = vcombine.low %v6692_v23, %v6702_v27  ;;  %v6711_v9 = vrot.slane %v6710_v24, 4  ;;  %v6720_v58 = vor.u32 %v6719_v12, %v6715_v15  ;;  %v6725_v31 = vrot.slane %v6723_v21, 5  ;;  %v24414_v21 = vld [vmem:[#allocation2 + $0xc] sm:$0xf]  ;;  %v24443_v57 = vld [vmem:[%s26984_s5 + $0xc0] sm:$0xff]  }
 0x4ac   : > { %v16937_v23 = vcombine.low %v24403_v35, %v24405_v28  ;;  %v24420_v8 = vcombine.low %v24414_v21, %v24416_v19 }
 0x4ad   : > { %27366 = vst [vmem:[#allocation30_spill] sm:$0xff] %v24395_v52  ;;  %19079 = vmatprep.mubr.msk.bf16.mxu1 %vm1178_vm5, %v24395_v52  ;;  %v6721_v25 = vrot.slane %v6720_v58, 4  ;;  %v6716_v46 = vsel %vm21564_vm6, %v6711_v9, %v6715_v15  ;;  %v10427_v15 = vpop.f32.mrb[41].mxu0  ;;  %v21257_v52 = vld [vmem:[#allocation2 + $0x8] sm:$0x1] }
 0x4ae   : > { %v10428_v24 = vadd.f32 %v24428_v39, %v10427_v15  ;;  %v19486_v12 = vpop.f32.mrb[42].mxu0  ;;  %v24476_v15 = vcombine.low %v24186_v0, %v24190_v59  ;;  %v7318_v3 = vrot.slane %v21257_v52, 5 }
 0x4af   : > { %v6726_v51 = vsel %vm21564_vm6, %v6721_v25, %v6725_v31  ;;  %v10430_v27 = vpop.f32.mrb[43].mxu0  ;;  %v24454_v31 = vcombine.low %v24085_v33, %v24100_v53 }
 0x4b0   : > { %v24409_v34 = vcombine.low %v6716_v46, %v6726_v51  ;;  %v10458_v42 = vpack.c.bf16 %v10428_v24, %v10428_v24  ;;  %v10431_v9 = vadd.f32 %v24428_v39, %v10430_v27  ;;  %v27368_v46 = vmov 0.0  }
 0x4b1   : > { %v10436_v51 = vadd.f32 %v19485_v47, %v24428_v39 }
 0x4b2   : > { %27367 = vst [vmem:[#allocation32_spill] sm:$0xff] %v24409_v34  ;;  %19080 = vmatmul.mubr.msk.bf16.gmra.mrb[108].mxu1 %vm1178_vm5, %v24409_v34  ;;  %v10467_v58 = vsel %vm5025_vm14, %v10458_v42, 0  ;;  %v10459_v25 = vpack.c.bf16 %v10431_v9, %v10431_v9  ;;  %v10439_v9 = vadd.f32 %v19486_v12, %v24428_v39  ;;  %v24497_v12 = vcombine.low %v24233_v48, %v24243_v40 }
 0x4b3   : > { %19087 = vmatprep.mubr.msk.bf16.mxu1 %vm1178_vm5, %v16937_v23  ;;  %19492 = vmatpush3.bf16.msra.mxu0 %v10467_v58  ;;  %v10460_v33 = vpack.c.bf16 %v10436_v51, %v10436_v51  ;;  %v21253_v58 = vld [vmem:[%s26992_s13 + $0x8] sm:$0xff]   ;;  %v24493_v51 = vcombine.low %v24211_v10, %v24213_v22 }
 0x4b4   : > { %19497 = vmatprep.subr.bf16.mxu0 %v27368_v46 }
 0x4b5   : > { %v10555_v42 = vsel %vm5025_vm14, %v10460_v33, 0  ;;  %v21254_v33 = vld [vmem:[%s26992_s13 + $0x10] sm:$0xff]  }
 0x4b9   : > { %v19489_v23 = vpop.f32.mrb[44].mxu0 }
 0x4ba   : > { %19088 = vmatmul.mubr.msk.bf16.vlgmr.msra.gmra.mrb[80].mxu1 %vm1178_vm5, %v24420_v8  ;;  %v10443_v47 = vpop.f32.mrb[45].mxu0 }
 0x4bb   : > { %19091 = vmatprep.mubr.msk.bf16.mxu1 %vm1178_vm5, %v24432_v61  ;;  %19120 = vmatpush3.bf16.msra.mxu1 %v24026_v1  ;;  %v24449_v1 = vcombine.low %v24051_v26, %v24059_v62  ;;  %v10511_v26 = vsel %vm5025_vm14, %v10459_v25, 0  ;;  %v21252_v62 = vld [vmem:[%s26992_s13] sm:$0xff]   ;;  %v19490_v24 = vpop.f32.mrb[46].mxu0  ;;  %v10461_v25 = vpack.c.bf16 %v10439_v9, %v10439_v9  ;;  %v24514_v9 = vcombine.low %v24251_v49, %v24258_v13 }
 0x4bc   : > { %19121 = vmatprep.subr.bf16.mxu1 %v21170_v36  ;;  %19494 = vmatmul.mubr.msk.bf16.vlgmr.msra.gmra.mrb[48].mxu0 %vm5021_vm15, %v21252_v62  ;;  %v10446_v27 = vpop.f32.mrb[47].mxu0  ;;  %v10444_v62 = vadd.f32 %v24428_v39, %v10443_v47  ;;  %v24518_v47 = vcombine.low %v24269_v2, %v24274_v18 }
 0x4bd   : > { %19498 = vmatpush3.bf16.msra.mxu0 %v10511_v26  ;;  %19499 = vmatprep.mubr.msk.bf16.mxu0 %vm21361_vm13, %v27368_v46  ;;  %v10599_v26 = vsel %vm5025_vm14, %v10461_v25, 0  ;;  %v10447_v25 = vadd.f32 %v24428_v39, %v10446_v27  ;;  %v24539_v27 = vcombine.low %v24308_v55, %v24312_v14 }
 0x4be   : > { %19503 = vmatprep.subr.bf16.mxu0 %v27368_v46 }
 0x4bf   : > { %19122 = vmatpush3.bf16.msra.mxu1 %v21170_v36  ;;  %v24472_v36 = vcombine.low %v24130_v37, %v24134_v32  ;;  %27369 = vst [vmem:[#allocation33_spill] sm:$0xff] %v24539_v27 }
 0x4c0   : > { %19155 = vmatprep.subr.bf16.mxu1 %v24443_v57 }
 0x4c2   : > { %19092 = vmatmul.mubr.msk.bf16.gmra.mrb[84].mxu1 %vm1178_vm5, %v24449_v1 }
 0x4c3   : > { %19095 = vmatprep.mubr.msk.bf16.mxu1 %vm1178_vm5, %v24454_v31 }
 0x4c4   : > { %19500 = vmatmul.mubr.msk.bf16.vlgmr.msra.gmra.mrb[52].mxu0 %vm5021_vm15, %v21253_v58 }
 0x4c5   : > { %19504 = vmatpush3.bf16.msra.mxu0 %v10555_v42  ;;  %19505 = vmatprep.mubr.msk.bf16.mxu0 %vm21361_vm13, %v27368_v46  ;;  %v10462_v42 = vpack.c.bf16 %v10444_v62, %v10444_v62  ;;  %v10463_v62 = vpack.c.bf16 %v10447_v25, %v10447_v25  ;;  %v21256_v25 = vld [vmem:[%s26992_s13 + $0x20] sm:$0xff]  }
 0x4c6   : > { %19509 = vmatprep.subr.bf16.mxu0 %v27368_v46 }
 0x4c7   : > { %v10643_v58 = vsel %vm5025_vm14, %v10462_v42, 0  ;;  %v10452_v42 = vadd.f32 %v19489_v23, %v24428_v39  ;;  %v24557_v23 = vcombine.low %v24322_v16, %v24330_v50 }
 0x4c9   : > { %v10464_v38 = vpack.c.bf16 %v10452_v42, %v10452_v42  ;;  %27370 = vst [vmem:[#allocation9_spill] sm:$0xff] %v24557_v23  ;;  %v10455_v42 = vadd.f32 %v19490_v24, %v24428_v39  ;;  %v21259_v39 = vld [vmem:[#allocation2 + $0x1c] sm:$0xf] }
 0x4ca   : > { %19096 = vmatmul.mubr.msk.bf16.gmra.mrb[88].mxu1 %vm1178_vm5, %v24472_v36  ;;  %v7329_v24 = vrot.slane %v21259_v39, 5 }
 0x4cb   : > { %19099 = vmatprep.mubr.msk.bf16.mxu1 %vm1178_vm5, %v24476_v15 }
 0x4cc   : > { %19506 = vmatmul.mubr.msk.bf16.vlgmr.msra.gmra.mrb[56].mxu0 %vm5021_vm15, %v21254_v33  ;;  %v24535_v33 = vcombine.low %v24282_v56, %v24293_v60 }
 0x4cd   : > { %19510 = vmatpush3.bf16.msra.mxu0 %v10599_v26  ;;  %19511 = vmatprep.mubr.msk.bf16.mxu0 %vm21361_vm13, %v27368_v46  ;;  %v21255_v26 = vld [vmem:[%s26992_s13 + $0x18] sm:$0xff]  }
 0x4ce   : > { %19515 = vmatprep.subr.bf16.mxu0 %v27368_v46 }
 0x4d2   : > { %19100 = vmatmul.mubr.msk.bf16.gmra.mrb[92].mxu1 %vm1178_vm5, %v24493_v51 }
 0x4d3   : > { %19103 = vmatprep.mubr.msk.bf16.mxu1 %vm1178_vm5, %v24497_v12 }
 0x4d4   : > { %19512 = vmatmul.mubr.msk.bf16.vlgmr.msra.gmra.mrb[60].mxu0 %vm5021_vm15, %v21255_v26  ;;  %v7315_v26 = vrot.slane %v24405_v28, 5  ;;  %v10731_v28 = vsel %vm5025_vm14, %v10464_v38, 0  ;;  %v7322_v38 = vrot.slane %v24416_v19, 5 }
 0x4d5   : > { %19516 = vmatpush3.bf16.msra.mxu0 %v10643_v58  ;;  %19517 = vmatprep.mubr.msk.bf16.mxu0 %vm21361_vm13, %v27368_v46  ;;  %v10687_v58 = vsel %vm5025_vm14, %v10463_v62, 0  ;;  %v16971_v62 = vrot.slane %v24403_v35, 9  ;;  %v21258_v35 = vld [vmem:[%s26992_s13 + $0x28] sm:$0xff]  }
 0x4d6   : > { %19521 = vmatprep.subr.bf16.mxu0 %v27368_v46  ;;  %v7317_v34 = vrot.slane %v7315_v26, 4 }
 0x4d7   : > { %v7316_v52 = vsel %vm21509_vm3, %v16971_v62, %v7315_v26  ;;  %v7324_v26 = vrot.slane %v7322_v38, 4 }
 0x4da   : > { %19104 = vmatmul.mubr.msk.bf16.gmra.mrb[96].mxu1 %vm1178_vm5, %v24514_v9 }
 0x4db   : > { %19107 = vmatprep.mubr.msk.bf16.mxu1 %vm1178_vm5, %v24518_v47 }
 0x4dc   : > { %19518 = vmatmul.mubr.msk.bf16.vlgmr.msra.gmra.mrb[64].mxu0 %vm5021_vm15, %v21256_v25  ;;  %v24562_v25 = vcombine.low %v24341_v17, %v24347_v4 }
 0x4dd   : > { %19522 = vmatpush3.bf16.msra.mxu0 %v10687_v58  ;;  %19523 = vmatprep.mubr.msk.bf16.mxu0 %vm21361_vm13, %v27368_v46  ;;  %v7319_v58 = vsel %vm21509_vm3, %v7317_v34, %v7318_v3  ;;  %v7331_v3 = vrot.slane %v7329_v24, 4  ;;  %v21260_v34 = vld [vmem:[#allocation2 + $0x14] sm:$0x1] }
 0x4de   : > { %19527 = vmatprep.subr.bf16.mxu0 %v27368_v46  ;;  %27371 = vst [vmem:[#allocation34_spill] sm:$0xff] %v24562_v25  ;;  %v7325_v62 = vrot.slane %v21260_v34, 5 }
 0x4e0   : > { %v7326_v39 = vsel %vm21509_vm3, %v7324_v26, %v7325_v62  ;;  %v21175_v26 = vld [vmem:[%s26984_s5 + $0xc8] sm:$0xff]  }
 0x4e2   : > { %19108 = vmatmul.mubr.msk.bf16.gmra.mrb[100].mxu1 %vm1178_vm5, %v24535_v33 }
 0x4e3   : > { %19111 = vmatprep.mubr.msk.bf16.mxu1 %vm1178_vm5, %v24539_v27 }
 0x4e4   : > { %19524 = vmatmul.mubr.msk.bf16.vlgmr.msra.gmra.mrb[68].mxu0 %vm5021_vm15, %v21258_v35  ;;  %v24584_v35 = vcombine.low %v24359_v44, %v24369_v30 }
 0x4e5   : > { %19528 = vmatpush3.bf16.msra.mxu0 %v10731_v28  ;;  %19529 = vmatprep.mubr.msk.bf16.mxu0 %vm21361_vm13, %v27368_v46  ;;  %v21261_v28 = vld [vmem:[%s26992_s13 + $0x30] sm:$0xff]  }
 0x4e6   : > { %19533 = vmatprep.subr.bf16.mxu0 %v27368_v46  ;;  %27372 = vst [vmem:[#allocation17_spill] sm:$0xff] %v24584_v35 }
 0x4ea   : > { %19112 = vmatmul.mubr.msk.bf16.gmra.mrb[104].mxu1 %vm1178_vm5, %v24557_v23  ;;  %v10465_v23 = vpack.c.bf16 %v10455_v42, %v10455_v42  ;;  %v21262_v42 = vld [vmem:[#allocation2 + $0x20] sm:$0x1] }
 0x4eb   : > { %19115 = vmatprep.mubr.msk.bf16.mxu1 %vm1178_vm5, %v24562_v25  ;;  %v16987_v25 = vcombine.low %v7316_v52, %v7319_v58  ;;  %v7332_v52 = vrot.slane %v21262_v42, 5  ;;  %v16972_v58 = vrot.slane %v24414_v21, 9 }
 0x4ec   : > { %v10775_v19 = vsel %vm5025_vm14, %v10465_v23, 0  ;;  %19530 = vmatmul.mubr.msk.bf16.vlgmr.msra.gmra.mrb[72].mxu0 %vm5021_vm15, %v21261_v28  ;;  %v21264_v23 = vld [vmem:[#allocation2 + $0x18] sm:$0xf]  ;;  %v7343_v28 = vrot.slane %v24100_v53, 5  ;;  %v21265_v53 = vld [vmem:[#allocation2 + $0x2c] sm:$0x1] }
 0x4ed   : > { %19534 = vmatpush3.bf16.msra.mxu0 %v10775_v19  ;;  %19535 = vmatprep.mubr.msk.bf16.mxu0 %vm21361_vm13, %v27368_v46  ;;  %v7333_v27 = vsel %vm21509_vm3, %v7331_v3, %v7332_v52  ;;  %v7323_v19 = vsel %vm21509_vm3, %v16972_v58, %v7322_v38  ;;  %v7339_v38 = vrot.slane %v21265_v53, 5  ;;  %v21267_v52 = vld [vmem:[#allocation2 + $0x24] sm:$0xf] }
 0x4ee   : > { %v24604_v42 = vcombine.low %v7323_v19, %v7326_v39  ;;  %v7345_v3 = vrot.slane %v7343_v28, 4  ;;  %v16974_v58 = vrot.slane %v21267_v52, 9 }
 0x4f2   : > { %19116 = vmatmul.mubr.msk.bf16.gmra.mrb[108].mxu1 %vm1178_vm5, %v24584_v35  ;;  %v16973_v35 = vrot.slane %v21264_v23, 9 }
 0x4f3   : > { %19123 = vmatprep.mubr.msk.bf16.mxu1 %vm1178_vm5, %v16987_v25  ;;  %v21263_v25 = vld [vmem:[#allocation2 + $0x28] sm:$0xf] }
 0x4f4   : > { %v7336_v34 = vrot.slane %v21263_v25, 5  ;;  %v7330_v21 = vsel %vm21509_vm3, %v16973_v35, %v7329_v24  ;;  %v7346_v24 = vrot.slane %v24124_v11, 5  ;;  %v21266_v35 = vld [vmem:[%s26992_s13 + $0x38] sm:$0xff]   ;;  %v21268_v11 = vld [vmem:[#allocation2 + $0x30] sm:$0xf] }
 0x4f5   : > { %v24611_v62 = vcombine.low %v7330_v21, %v7333_v27  ;;  %v24622_v27 = vld [vmem:[%s26984_s5 + $0xd0] sm:$0xff]   ;;  %19536 = vmatmul.mubr.msk.bf16.vlgmr.msra.gmra.mrb[76].mxu0 %vm5021_vm15, %v21266_v35  ;;  %v16975_v23 = vrot.slane %v21268_v11, 9  ;;  %v7357_v21 = vrot.slane %v24190_v59, 5  ;;  %v7353_v59 = vrot.slane %v24136_v43, 5 }
 0x4f6   : > { %v7338_v25 = vrot.slane %v7336_v34, 4  ;;  %v7347_v19 = vsel %vm21509_vm3, %v7345_v3, %v7346_v24  ;;  %v7337_v53 = vsel %vm21509_vm3, %v16974_v58, %v7336_v34  ;;  %v7360_v34 = vrot.slane %v24203_v7, 5 }
 0x4f7   : > { %v7344_v35 = vsel %vm21509_vm3, %v16975_v23, %v7343_v28  ;;  %v7359_v3 = vrot.slane %v7357_v21, 4  ;;  %v16977_v24 = vrot.slane %v24186_v0, 9  ;;  %v7371_v58 = vrot.slane %v24243_v40, 5 }
 0x4f8   : > { %v7340_v39 = vsel %vm21509_vm3, %v7338_v25, %v7339_v38  ;;  %v24641_v25 = vcombine.low %v7344_v35, %v7347_v19  ;;  %v7364_v38 = vrot.slane %v24213_v22, 5  ;;  %v7367_v22 = vrot.slane %v24223_v45, 5 }
 0x4f9   : > { %v24636_v46 = vcombine.low %v7337_v53, %v7340_v39  ;;  %v7361_v52 = vsel %vm21509_vm3, %v7359_v3, %v7360_v34  ;;  %v7373_v0 = vrot.slane %v7371_v58, 4  ;;  %v7374_v40 = vrot.slane %v24245_v6, 5 }
 0x4fa   : > { %19124 = vmatmul.mubr.msk.bf16.vlgmr.msra.gmra.mrb[80].mxu1 %vm1178_vm5, %v24604_v42  ;;  %v7366_v11 = vrot.slane %v7364_v38, 4  ;;  %v7378_v19 = vrot.slane %v24258_v13, 5  ;;  %v7385_v35 = vrot.slane %v24274_v18, 5  ;;  %v7381_v13 = vrot.slane %v24264_v41, 5 }
 0x4fb   : > { %19127 = vmatprep.mubr.msk.bf16.mxu1 %vm1178_vm5, %v24611_v62  ;;  %19156 = vmatpush3.bf16.msra.mxu1 %v24443_v57  ;;  %v7350_v57 = vrot.slane %v24134_v32, 5  ;;  %v7375_v53 = vsel %vm21509_vm3, %v7373_v0, %v7374_v40  ;;  %v7388_v18 = vrot.slane %v24286_v54, 5  ;;  %v16983_v0 = vrot.slane %v24308_v55, 9 }
 0x4fc   : > { %19157 = vmatprep.subr.bf16.mxu1 %v21175_v26  ;;  %v7368_v23 = vsel %vm21509_vm3, %v7366_v11, %v7367_v22  ;;  %v7380_v3 = vrot.slane %v7378_v19, 4  ;;  %v7406_v11 = vrot.slane %v24330_v50, 5  ;;  %v7413_v40 = vrot.slane %v24347_v4, 5  ;;  %v27373_v50 = vld [vmem:[#allocation21_spill] sm:$0xff] }
 0x4fd   : > { %v7352_v32 = vrot.slane %v7350_v57, 4  ;;  %v7409_v4 = vrot.slane %v27373_v50, 5 }
 0x4fe   : > { %v7382_v34 = vsel %vm21509_vm3, %v7380_v3, %v7381_v13  ;;  %v7415_v55 = vrot.slane %v7413_v40, 4 }
 0x4ff   : > { %19158 = vmatpush3.bf16.msra.mxu1 %v21175_v26  ;;  %v16976_v26 = vrot.slane %v24130_v37, 9  ;;  %v7354_v28 = vsel %vm21509_vm3, %v7352_v32, %v7353_v59  ;;  %v7358_v37 = vsel %vm21509_vm3, %v16977_v24, %v7357_v21  ;;  %v16979_v21 = vrot.slane %v24233_v48, 9 }
 0x500   : > { %19191 = vmatprep.subr.bf16.mxu1 %v24622_v27  ;;  %v24663_v7 = vcombine.low %v7358_v37, %v7361_v52  ;;  %v7387_v48 = vrot.slane %v7385_v35, 4  ;;  %v16980_v59 = vrot.slane %v24251_v49, 9  ;;  %v7399_v24 = vrot.slane %v24312_v14, 5 }
 0x501   : > { %v7351_v39 = vsel %vm21509_vm3, %v16976_v26, %v7350_v57  ;;  %v16978_v57 = vrot.slane %v24211_v10, 9  ;;  %v7372_v10 = vsel %vm21509_vm3, %v16979_v21, %v7371_v58  ;;  %v7392_v26 = vrot.slane %v24293_v60, 5 }
 0x502   : > { %19128 = vmatmul.mubr.msk.bf16.gmra.mrb[84].mxu1 %vm1178_vm5, %v24636_v46  ;;  %v24659_v43 = vcombine.low %v7351_v39, %v7354_v28  ;;  %v24685_v6 = vcombine.low %v7372_v10, %v7375_v53  ;;  %v16981_v28 = vrot.slane %v24269_v2, 9  ;;  %v7379_v52 = vsel %vm21509_vm3, %v16980_v59, %v7378_v19  ;;  %v27374_v19 = vld [vmem:[#allocation22_spill] sm:$0xff] }
 0x503   : > { %19131 = vmatprep.mubr.msk.bf16.mxu1 %vm1178_vm5, %v24641_v25  ;;  %v7365_v32 = vsel %vm21509_vm3, %v16978_v57, %v7364_v38  ;;  %v7389_v38 = vsel %vm21509_vm3, %v7387_v48, %v7388_v18  ;;  %v24703_v41 = vcombine.low %v7379_v52, %v7382_v34  ;;  %v7394_v58 = vrot.slane %v7392_v26, 4  ;;  %v24803_v52 = vld [vmem:[#allocation2 + $0xc4] sm:$0xf] }
 0x504   : > { %v24681_v45 = vcombine.low %v7365_v32, %v7368_v23  ;;  %v7386_v49 = vsel %vm21509_vm3, %v16981_v28, %v7385_v35  ;;  %v7401_v2 = vrot.slane %v7399_v24, 4  ;;  %v7395_v60 = vrot.slane %v24300_v63, 5 }
 0x505   : > { %v24707_v54 = vcombine.low %v7386_v49, %v7389_v38  ;;  %v7402_v14 = vrot.slane %v24328_v5, 5  ;;  %v16982_v39 = vrot.slane %v24282_v56, 9  ;;  %v7400_v56 = vsel %vm21509_vm3, %v16983_v0, %v7399_v24  ;;  %v27377_v38 = vld [vmem:[#allocation34_spill] sm:$0xff]  ;;  %v27378_v24 = vld [vmem:[#allocation17_spill] sm:$0xff] }
 0x506   : > { %v7396_v37 = vsel %vm21509_vm3, %v7394_v58, %v7395_v60  ;;  %v7408_v23 = vrot.slane %v7406_v11, 4  ;;  %v7416_v21 = vrot.slane %v27374_v19, 5  ;;  %v16984_v53 = vrot.slane %v24322_v16, 9  ;;  %v24805_v49 = vld [vmem:[#allocation2 + $0xc0] sm:$0xf]  ;;  %v21180_v60 = vld [vmem:[%s26984_s5 + $0xe8] sm:$0xff]  }
 0x507   : > { %v7403_v22 = vsel %vm21509_vm3, %v7401_v2, %v7402_v14  ;;  %v7393_v57 = vsel %vm21509_vm3, %v16982_v39, %v7392_v26  ;;  %v7420_v32 = vrot.slane %v24369_v30, 5  ;;  %v16985_v10 = vrot.slane %v24341_v17, 9  ;;  %v27379_v2 = vld [vmem:[#allocation42_spill] sm:$0xff]  ;;  %v27380_v14 = vld [vmem:[#allocation43_spill] sm:$0xff]  ;;  %v27383_v0 = vld [vmem:[#allocation29_spill] sm:$0xff] }
 0x508   : > { %v24725_v63 = vcombine.low %v7393_v57, %v7396_v37  ;;  %v24729_v5 = vcombine.low %v7400_v56, %v7403_v22  ;;  %v7410_v35 = vsel %vm21509_vm3, %v7408_v23, %v7409_v4  ;;  %v7417_v3 = vsel %vm21509_vm3, %v7415_v55, %v7416_v21  ;;  %v27381_v39 = vld [vmem:[#allocation23_spill] sm:$0xff]  ;;  %v21181_v37 = vld [vmem:[%s26984_s5 + $0xf0] sm:$0xff]   ;;  %v27386_v57 = vld [vmem:[#allocation13_spill] sm:$0xff] }
 0x509   : > { %v7407_v48 = vsel %vm21509_vm3, %v16984_v53, %v7406_v11  ;;  %v7414_v18 = vsel %vm21509_vm3, %v16985_v10, %v7413_v40  ;;  %v7422_v16 = vrot.slane %v7420_v32, 4  ;;  %v7423_v30 = vrot.slane %v24378_v20, 5  ;;  %v21177_v20 = vld [vmem:[%s26984_s5 + $0xd8] sm:$0xff]   ;;  %v27384_v22 = vld [vmem:[#allocation31_spill] sm:$0xff]  ;;  %v27385_v40 = vld [vmem:[#allocation12_spill] sm:$0xff] }
 0x50a   : > { %19132 = vmatmul.mubr.msk.bf16.gmra.mrb[88].mxu1 %vm1178_vm5, %v24659_v43  ;;  %v24746_v13 = vcombine.low %v7407_v48, %v7410_v35  ;;  %v24750_v59 = vcombine.low %v7414_v18, %v7417_v3  ;;  %v16986_v17 = vrot.slane %v24359_v44, 9  ;;  %v21179_v44 = vld [vmem:[%s26984_s5 + $0xe0] sm:$0xff]   ;;  %v24809_v58 = vcombine.low %v24805_v49, %v24803_v52  ;;  %v27382_v11 = vld [vmem:[#allocation25_spill] sm:$0xff]  ;;  %v27388_v23 = vld [vmem:[#allocation19_spill] sm:$0xff] }
 0x50b   : > { %19135 = vmatprep.mubr.msk.bf16.mxu1 %vm1178_vm5, %v24663_v7  ;;  %v7424_v34 = vsel %vm21509_vm3, %v7422_v16, %v7423_v30  ;;  %v27387_v56 = vld [vmem:[#allocation14_spill] sm:$0xff]  ;;  %v27389_v55 = vld [vmem:[#allocation20_spill] sm:$0xff]  ;;  %v7949_v50 = vshll.u32 %v24803_v52, 16  ;;  %v7953_v4 = vshrl.u32 %v24803_v52, 16  ;;  %v7940_v19 = vshrl.u32 %v24805_v49, 16 }
 0x50c   : > { %v7421_v26 = vsel %vm21509_vm3, %v16986_v17, %v7420_v32  ;;  %v7943_v21 = vshll.u32 %v24805_v49, 16  ;;  %v27390_v32 = vld [vmem:[#allocation24_spill] sm:$0xff]  ;;  %v27391_v10 = vld [vmem:[#allocation26_spill] sm:$0xff]  ;;  %v6298_v18 = vld [vmem:[#allocation2 + $0xc8] sm:$0x1] }
 0x50d   : > { %v24762_v28 = vcombine.low %v7421_v26, %v7424_v34  ;;  %v7951_v53 = vrot.slane %v7949_v50, 5  ;;  %v7955_v35 = vrot.slane %v7953_v4, 4  ;;  %v7942_v3 = vrot.slane %v7940_v19, 4  ;;  %v27392_v26 = vld [vmem:[#allocation30_spill] sm:$0xff] }
 0x50e   : > { %v7945_v48 = vrot.slane %v7943_v21, 5  ;;  %v7959_v17 = vshll.u32 %v6298_v18, 16  ;;  %v21182_v21 = vld [vmem:[%s26984_s5 + $0xf8] sm:$0xff]  }
 0x50f   : > { %v7956_v16 = vor.u32 %v7955_v35, %v7951_v53  ;;  %v8180_v35 = vrot.slane %v6298_v18, 5  ;;  %v25046_v18 = vld [vmem:[#allocation3 + $0x28] sm:$0xf] }
 0x510   : > { %v7946_v30 = vor.u32 %v7945_v48, %v7942_v3  ;;  %v17059_v3 = vrot.slane %v24805_v49, 9  ;;  %v21186_v49 = vld [vmem:[%s26984_s5 + $0x110] sm:$0xff]  }
 0x511   : > { %v7957_v34 = vrot.slane %v7956_v16, 4 }
 0x512   : > { %19136 = vmatmul.mubr.msk.bf16.gmra.mrb[92].mxu1 %vm1178_vm5, %v24681_v45 }
 0x513   : > { %19139 = vmatprep.mubr.msk.bf16.mxu1 %vm1178_vm5, %v24685_v6 }
 0x51a   : > { %19140 = vmatmul.mubr.msk.bf16.gmra.mrb[96].mxu1 %vm1178_vm5, %v24703_v41 }
 0x51b   : > { %19143 = vmatprep.mubr.msk.bf16.mxu1 %vm1178_vm5, %v24707_v54 }
 0x522   : > { %19144 = vmatmul.mubr.msk.bf16.gmra.mrb[100].mxu1 %vm1178_vm5, %v24725_v63 }
 0x523   : > { %19147 = vmatprep.mubr.msk.bf16.mxu1 %vm1178_vm5, %v24729_v5 }
 0x52a   : > { %19148 = vmatmul.mubr.msk.bf16.gmra.mrb[104].mxu1 %vm1178_vm5, %v24746_v13 }
 0x52b   : > { %19151 = vmatprep.mubr.msk.bf16.mxu1 %vm1178_vm5, %v24750_v59 }
 0x532   : > { %19152 = vmatmul.mubr.msk.bf16.gmra.mrb[108].mxu1 %vm1178_vm5, %v24762_v28 }
 0x533   : > { %19159 = vmatprep.mubr.msk.bf16.mxu1 %vm1178_vm5, %v24420_v8  ;;  %v27375_v8 = vld [vmem:[#allocation33_spill] sm:$0xff] }
 0x53a   : > { %19160 = vmatmul.mubr.msk.bf16.vlgmr.msra.gmra.mrb[80].mxu1 %vm1178_vm5, %v24432_v61 }
 0x53b   : > { %19163 = vmatprep.mubr.msk.bf16.mxu1 %vm1178_vm5, %v24449_v1  ;;  %19192 = vmatpush3.bf16.msra.mxu1 %v24622_v27  ;;  %v27376_v27 = vld [vmem:[#allocation9_spill] sm:$0xff] }
 0x53c   : > { %19193 = vmatprep.subr.bf16.mxu1 %v21177_v20 }
 0x53f   : > { %19194 = vmatpush3.bf16.msra.mxu1 %v21177_v20  ;;  %v27393_v20 = vld [vmem:[#allocation32_spill] sm:$0xff] }
 0x540   : > { %19227 = vmatprep.subr.bf16.mxu1 %v21179_v44 }
 0x542   : > { %19164 = vmatmul.mubr.msk.bf16.gmra.mrb[84].mxu1 %vm1178_vm5, %v24454_v31 }
 0x543   : > { %19167 = vmatprep.mubr.msk.bf16.mxu1 %vm1178_vm5, %v24472_v36 }
 0x54a   : > { %19168 = vmatmul.mubr.msk.bf16.gmra.mrb[88].mxu1 %vm1178_vm5, %v24476_v15 }
 0x54b   : > { %19171 = vmatprep.mubr.msk.bf16.mxu1 %vm1178_vm5, %v24493_v51 }
 0x552   : > { %19172 = vmatmul.mubr.msk.bf16.gmra.mrb[92].mxu1 %vm1178_vm5, %v24497_v12 }
 0x553   : > { %19175 = vmatprep.mubr.msk.bf16.mxu1 %vm1178_vm5, %v24514_v9 }
 0x55a   : > { %19176 = vmatmul.mubr.msk.bf16.gmra.mrb[96].mxu1 %vm1178_vm5, %v24518_v47 }
 0x55b   : > { %19179 = vmatprep.mubr.msk.bf16.mxu1 %vm1178_vm5, %v24535_v33 }
 0x562   : > { %19180 = vmatmul.mubr.msk.bf16.gmra.mrb[100].mxu1 %vm1178_vm5, %v27375_v8 }
 0x563   : > { %19183 = vmatprep.mubr.msk.bf16.mxu1 %vm1178_vm5, %v27376_v27 }
 0x56a   : > { %19184 = vmatmul.mubr.msk.bf16.gmra.mrb[104].mxu1 %vm1178_vm5, %v27377_v38 }
 0x56b   : > { %19187 = vmatprep.mubr.msk.bf16.mxu1 %vm1178_vm5, %v27378_v24 }
 0x572   : > { %19188 = vmatmul.mubr.msk.bf16.gmra.mrb[108].mxu1 %vm1178_vm5, %v24809_v58 }
 0x573   : > { %19195 = vmatprep.mubr.msk.bf16.mxu1 %vm1178_vm5, %v27379_v2  ;;  %v7961_v2 = vrot.slane %v7959_v17, 5  ;;  %v25048_v17 = vld [vmem:[#allocation3 + $0x4] sm:$0x1] }
 0x575   : > { %v7962_v50 = vsel %vm21564_vm6, %v7957_v34, %v7961_v2  ;;  %v25050_v34 = vld [vmem:[#allocation3 + $0xc] sm:$0x1]  ;;  %v25055_v2 = vld [vmem:[#allocation3 + $0x20] sm:$0xf] }
 0x57a   : > { %19196 = vmatmul.mubr.msk.bf16.vlgmr.msra.gmra.mrb[80].mxu1 %vm1178_vm5, %v27380_v14 }
 0x57b   : > { %19199 = vmatprep.mubr.msk.bf16.mxu1 %vm1178_vm5, %v27381_v39  ;;  %19228 = vmatpush3.bf16.msra.mxu1 %v21179_v44  ;;  %v7947_v44 = vrot.slane %v7946_v30, 4 }
 0x57c   : > { %19229 = vmatprep.subr.bf16.mxu1 %v21180_v60 }
 0x57d   : > { %v7952_v4 = vsel %vm21564_vm6, %v7947_v44, %v7951_v53  ;;  %v21183_v53 = vld [vmem:[%s26984_s5 + $0x100] sm:$0xff]  }
 0x57e   : > { %v24857_v19 = vcombine.low %v7952_v4, %v7962_v50  ;;  %v14674_v4 = vshrl.u32 %v25046_v18, 16 }
 0x57f   : > { %19230 = vmatpush3.bf16.msra.mxu1 %v21180_v60 }
 0x580   : > { %19263 = vmatprep.subr.bf16.mxu1 %v21181_v37 }
 0x582   : > { %19200 = vmatmul.mubr.msk.bf16.gmra.mrb[84].mxu1 %vm1178_vm5, %v27382_v11 }
 0x583   : > { %19203 = vmatprep.mubr.msk.bf16.mxu1 %vm1178_vm5, %v27383_v0 }
 0x58a   : > { %19204 = vmatmul.mubr.msk.bf16.gmra.mrb[88].mxu1 %vm1178_vm5, %v27384_v22 }
 0x58b   : > { %19207 = vmatprep.mubr.msk.bf16.mxu1 %vm1178_vm5, %v27385_v40 }
 0x592   : > { %19208 = vmatmul.mubr.msk.bf16.gmra.mrb[92].mxu1 %vm1178_vm5, %v27386_v57 }
 0x593   : > { %19211 = vmatprep.mubr.msk.bf16.mxu1 %vm1178_vm5, %v27387_v56 }
 0x59a   : > { %19212 = vmatmul.mubr.msk.bf16.gmra.mrb[96].mxu1 %vm1178_vm5, %v27388_v23 }
 0x59b   : > { %19215 = vmatprep.mubr.msk.bf16.mxu1 %vm1178_vm5, %v27389_v55 }
 0x5a2   : > { %19216 = vmatmul.mubr.msk.bf16.gmra.mrb[100].mxu1 %vm1178_vm5, %v27390_v32 }
 0x5a3   : > { %19219 = vmatprep.mubr.msk.bf16.mxu1 %vm1178_vm5, %v27391_v10 }
 0x5aa   : > { %19220 = vmatmul.mubr.msk.bf16.gmra.mrb[104].mxu1 %vm1178_vm5, %v27392_v26 }
 0x5ab   : > { %19223 = vmatprep.mubr.msk.bf16.mxu1 %vm1178_vm5, %v27393_v20 }
 0x5b2   : > { %19224 = vmatmul.mubr.msk.bf16.gmra.mrb[108].mxu1 %vm1178_vm5, %v24857_v19 }
 0x5b3   : > { %19231 = vmatprep.mubr.msk.bf16.mxu1 %vm1178_vm5, %v24604_v42  ;;  %v8177_v42 = vrot.slane %v24803_v52, 5  ;;  %v21184_v52 = vld [vmem:[%s26984_s5 + $0x108] sm:$0xff]  }
 0x5b5   : > { %v8178_v16 = vsel %vm21509_vm3, %v17059_v3, %v8177_v42  ;;  %v14660_v3 = vshrl.u32 %v25055_v2, 16 }
 0x5ba   : > { %19232 = vmatmul.mubr.msk.bf16.vlgmr.msra.gmra.mrb[80].mxu1 %vm1178_vm5, %v24611_v62 }
 0x5bb   : > { %19235 = vmatprep.mubr.msk.bf16.mxu1 %vm1178_vm5, %v24636_v46  ;;  %19264 = vmatpush3.bf16.msra.mxu1 %v21181_v37  ;;  %v8179_v37 = vrot.slane %v8177_v42, 4 }
 0x5bc   : > { %19265 = vmatprep.subr.bf16.mxu1 %v21182_v21 }
 0x5bd   : > { %v8181_v48 = vsel %vm21509_vm3, %v8179_v37, %v8180_v35  ;;  %v14627_v35 = vshll.u32 %v25050_v34, 16 }
 0x5be   : > { %v24903_v30 = vcombine.low %v8178_v16, %v8181_v48  ;;  %v14663_v48 = vshll.u32 %v25055_v2, 16 }
 0x5bf   : > { %19266 = vmatpush3.bf16.msra.mxu1 %v21182_v21 }
 0x5c0   : > { %19299 = vmatprep.subr.bf16.mxu1 %v21183_v53 }
 0x5c2   : > { %19236 = vmatmul.mubr.msk.bf16.gmra.mrb[84].mxu1 %vm1178_vm5, %v24641_v25 }
 0x5c3   : > { %19239 = vmatprep.mubr.msk.bf16.mxu1 %vm1178_vm5, %v24659_v43 }
 0x5ca   : > { %19240 = vmatmul.mubr.msk.bf16.gmra.mrb[88].mxu1 %vm1178_vm5, %v24663_v7 }
 0x5cb   : > { %19243 = vmatprep.mubr.msk.bf16.mxu1 %vm1178_vm5, %v24681_v45 }
 0x5d2   : > { %19244 = vmatmul.mubr.msk.bf16.gmra.mrb[92].mxu1 %vm1178_vm5, %v24685_v6 }
 0x5d3   : > { %19247 = vmatprep.mubr.msk.bf16.mxu1 %vm1178_vm5, %v24703_v41 }
 0x5da   : > { %19248 = vmatmul.mubr.msk.bf16.gmra.mrb[96].mxu1 %vm1178_vm5, %v24707_v54 }
 0x5db   : > { %19251 = vmatprep.mubr.msk.bf16.mxu1 %vm1178_vm5, %v24725_v63 }
 0x5e2   : > { %19252 = vmatmul.mubr.msk.bf16.gmra.mrb[100].mxu1 %vm1178_vm5, %v24729_v5 }
 0x5e3   : > { %19255 = vmatprep.mubr.msk.bf16.mxu1 %vm1178_vm5, %v24746_v13 }
 0x5ea   : > { %19256 = vmatmul.mubr.msk.bf16.gmra.mrb[104].mxu1 %vm1178_vm5, %v24750_v59 }
 0x5eb   : > { %19259 = vmatprep.mubr.msk.bf16.mxu1 %vm1178_vm5, %v24762_v28 }
 0x5f2   : > { %19260 = vmatmul.mubr.msk.bf16.gmra.mrb[108].mxu1 %vm1178_vm5, %v24903_v30 }
 0x5f3   : > { %19267 = vmatprep.mubr.msk.bf16.mxu1 %vm1178_vm5, %v24432_v61  ;;  %v24943_v61 = vld [vmem:[#allocation2 + $0xcc] sm:$0xf] }
 0x5f4   : > { %v17117_v21 = vrot.slane %v24943_v61, 9 }
 0x5fa   : > { %19268 = vmatmul.mubr.msk.bf16.vlgmr.msra.gmra.mrb[80].mxu1 %vm1178_vm5, %v24449_v1  ;;  %v24945_v1 = vld [vmem:[#allocation2 + $0xd0] sm:$0xf] }
 0x5fb   : > { %19271 = vmatprep.mubr.msk.bf16.mxu1 %vm1178_vm5, %v24454_v31  ;;  %19300 = vmatpush3.bf16.msra.mxu1 %v21183_v53  ;;  %v17079_v31 = vcombine.low %v24943_v61, %v24945_v1 }
 0x5fc   : > { %19301 = vmatprep.subr.bf16.mxu1 %v21184_v52 }
 0x5ff   : > { %19302 = vmatpush3.bf16.msra.mxu1 %v21184_v52 }
 0x600   : > { %19335 = vmatprep.subr.bf16.mxu1 %v21186_v49 }
 0x602   : > { %19272 = vmatmul.mubr.msk.bf16.gmra.mrb[84].mxu1 %vm1178_vm5, %v24472_v36  ;;  %v21187_v36 = vld [vmem:[%s26984_s5 + $0x118] sm:$0xff]  }
 0x603   : > { %19275 = vmatprep.mubr.msk.bf16.mxu1 %vm1178_vm5, %v24476_v15  ;;  %v21188_v15 = vld [vmem:[%s26987_s8 + $0x130] sm:$0xff]  }
 0x60a   : > { %19276 = vmatmul.mubr.msk.bf16.gmra.mrb[88].mxu1 %vm1178_vm5, %v24493_v51  ;;  %v8607_v51 = vshrl.u32 %v24943_v61, 16 }
 0x60b   : > { %19279 = vmatprep.mubr.msk.bf16.mxu1 %vm1178_vm5, %v24497_v12  ;;  %v8610_v12 = vshll.u32 %v24943_v61, 16  ;;  %v14676_v61 = vrot.slane %v14674_v4, 4 }
 0x612   : > { %19280 = vmatmul.mubr.msk.bf16.gmra.mrb[92].mxu1 %vm1178_vm5, %v24514_v9  ;;  %v8620_v9 = vshrl.u32 %v24945_v1, 16 }
 0x613   : > { %19283 = vmatprep.mubr.msk.bf16.mxu1 %vm1178_vm5, %v24518_v47  ;;  %v8616_v47 = vshll.u32 %v24945_v1, 16 }
 0x61a   : > { %19284 = vmatmul.mubr.msk.bf16.gmra.mrb[96].mxu1 %vm1178_vm5, %v24535_v33  ;;  %v8609_v33 = vrot.slane %v8607_v51, 4 }
 0x61b   : > { %19287 = vmatprep.mubr.msk.bf16.mxu1 %vm1178_vm5, %v27375_v8  ;;  %v8612_v8 = vrot.slane %v8610_v12, 5 }
 0x622   : > { %19288 = vmatmul.mubr.msk.bf16.gmra.mrb[100].mxu1 %vm1178_vm5, %v27376_v27  ;;  %v8618_v27 = vrot.slane %v8616_v47, 5 }
 0x623   : > { %19291 = vmatprep.mubr.msk.bf16.mxu1 %vm1178_vm5, %v27377_v38  ;;  %v8622_v38 = vrot.slane %v8620_v9, 4  ;;  %v25076_v9 = vld [vmem:[#allocation3 + $0x14] sm:$0x1] }
 0x62a   : > { %19292 = vmatmul.mubr.msk.bf16.gmra.mrb[104].mxu1 %vm1178_vm5, %v27378_v24  ;;  %v24982_v24 = vld [vmem:[#allocation2 + $0xd4] sm:$0x1] }
 0x62b   : > { %19295 = vmatprep.mubr.msk.bf16.mxu1 %vm1178_vm5, %v24809_v58  ;;  %v8613_v58 = vor.u32 %v8612_v8, %v8609_v33  ;;  %v8847_v42 = vrot.slane %v24982_v24, 5  ;;  %v14662_v8 = vrot.slane %v14660_v3, 4 }
 0x632   : > { %19296 = vmatmul.mubr.msk.bf16.gmra.mrb[108].mxu1 %vm1178_vm5, %v17079_v31 }
 0x633   : > { %19303 = vmatprep.mubr.msk.bf16.mxu1 %vm1178_vm5, %v27380_v14  ;;  %v8623_v14 = vor.u32 %v8622_v38, %v8618_v27  ;;  %v25078_v38 = vld [vmem:[#allocation3 + $0x38] sm:$0xf] }
 0x63a   : > { %19304 = vmatmul.mubr.msk.bf16.vlgmr.msra.gmra.mrb[80].mxu1 %vm1178_vm5, %v27381_v39  ;;  %v8626_v39 = vshll.u32 %v24982_v24, 16  ;;  %v25080_v24 = vld [vmem:[#allocation3 + $0x1c] sm:$0x1] }
 0x63b   : > { %19307 = vmatprep.mubr.msk.bf16.mxu1 %vm1178_vm5, %v27382_v11  ;;  %19336 = vmatpush3.bf16.msra.mxu1 %v21186_v49  ;;  %v8614_v11 = vrot.slane %v8613_v58, 4 }
 0x63c   : > { %19337 = vmatprep.subr.bf16.mxu1 %v21187_v36 }
 0x63f   : > { %19338 = vmatpush3.bf16.msra.mxu1 %v21187_v36 }
 0x640   : > { %19863 = vmatprep.subr.bf16.mxu1 %v21188_v15 }
 0x642   : > { %19308 = vmatmul.mubr.msk.bf16.gmra.mrb[84].mxu1 %vm1178_vm5, %v27383_v0  ;;  %v8624_v0 = vrot.slane %v8623_v14, 4  ;;  %v25082_v14 = vld [vmem:[#allocation3 + $0x2c] sm:$0x1] }
 0x643   : > { %19311 = vmatprep.mubr.msk.bf16.mxu1 %vm1178_vm5, %v27384_v22  ;;  %v8628_v22 = vrot.slane %v8626_v39, 5 }
 0x64a   : > { %19312 = vmatmul.mubr.msk.bf16.gmra.mrb[88].mxu1 %vm1178_vm5, %v27385_v40  ;;  %v8619_v40 = vsel %vm21564_vm6, %v8614_v11, %v8618_v27  ;;  %v14665_v27 = vrot.slane %v14663_v48, 5  ;;  %v25113_v48 = vld [vmem:[#allocation3 + $0x3c] sm:$0x1] }
 0x64b   : > { %19315 = vmatprep.mubr.msk.bf16.mxu1 %vm1178_vm5, %v27386_v57  ;;  %v8629_v57 = vsel %vm21564_vm6, %v8624_v0, %v8628_v22 }
 0x652   : > { %19316 = vmatmul.mubr.msk.bf16.gmra.mrb[92].mxu1 %vm1178_vm5, %v27387_v56  ;;  %v17098_v56 = vcombine.low %v8619_v40, %v8629_v57  ;;  %v14641_v57 = vshll.u32 %v25076_v9, 16 }
 0x653   : > { %19319 = vmatprep.mubr.msk.bf16.mxu1 %vm1178_vm5, %v27388_v23  ;;  %v21189_v23 = vld [vmem:[%s26987_s8 + $0x138] sm:$0xff]  }
 0x65a   : > { %19320 = vmatmul.mubr.msk.bf16.gmra.mrb[96].mxu1 %vm1178_vm5, %v27389_v55  ;;  %v25010_v55 = vld [vmem:[%s26987_s8 + $0x120] sm:$0xff]  }
 0x65b   : > { %19323 = vmatprep.mubr.msk.bf16.mxu1 %vm1178_vm5, %v27390_v32  ;;  %v25039_v32 = vld [vmem:[#allocation3 + $0x10] sm:$0xf] }
 0x65c   : > { %v14635_v44 = vshll.u32 %v25039_v32, 16 }
 0x65e   : > { %v14637_v49 = vrot.slane %v14635_v44, 5 }
 0x662   : > { %19324 = vmatmul.mubr.msk.bf16.gmra.mrb[100].mxu1 %vm1178_vm5, %v27391_v10  ;;  %v25044_v10 = vld [vmem:[#allocation3 + $0x18] sm:$0xf] }
 0x663   : > { %19327 = vmatprep.mubr.msk.bf16.mxu1 %vm1178_vm5, %v27392_v26  ;;  %v14646_v50 = vshrl.u32 %v25044_v10, 16  ;;  %v14649_v37 = vshll.u32 %v25044_v10, 16 }
 0x665   : > { %v14648_v47 = vrot.slane %v14646_v50, 4  ;;  %v14651_v33 = vrot.slane %v14649_v37, 5 }
 0x66a   : > { %19328 = vmatmul.mubr.msk.bf16.gmra.mrb[104].mxu1 %vm1178_vm5, %v27393_v20  ;;  %v14632_v20 = vshrl.u32 %v25039_v32, 16 }
 0x66b   : > { %19331 = vmatprep.mubr.msk.bf16.mxu1 %vm1178_vm5, %v24857_v19  ;;  %v14677_v19 = vshll.u32 %v25046_v18, 16 }
 0x66c   : > { %v14634_v52 = vrot.slane %v14632_v20, 4  ;;  %v14643_v20 = vrot.slane %v14641_v57, 5  ;;  %v25172_v57 = vcombine.low %v25055_v2, %v25046_v18 }
 0x66d   : > { %v14679_v36 = vrot.slane %v14677_v19, 5 }
 0x66e   : > { %v14638_v58 = vor.u32 %v14637_v49, %v14634_v52 }
 0x66f   : > { %v14680_v40 = vor.u32 %v14679_v36, %v14676_v61  ;;  %v21192_v61 = vld [vmem:[%s26987_s8 + $0x128] sm:$0xff]  }
 0x672   : > { %19332 = vmatmul.mubr.msk.bf16.gmra.mrb[108].mxu1 %vm1178_vm5, %v17098_v56  ;;  %v14652_v56 = vor.u32 %v14651_v33, %v14648_v47 }
 0x673   : > { %19339 = vmatprep.mubr.msk.bf16.mxu1 %vm1178_vm5, %v24611_v62  ;;  %v25031_v62 = vld [vmem:[#allocation3 + $0x8] sm:$0xf] }
 0x674   : > { %v14653_v44 = vrot.slane %v14652_v56, 4 }
 0x67a   : > { %19340 = vmatmul.mubr.msk.bf16.vlgmr.msra.gmra.mrb[80].mxu1 %vm1178_vm5, %v24636_v46  ;;  %v25027_v46 = vld [vmem:[#allocation3] sm:$0xf] }
 0x67b   : > { %19343 = vmatprep.mubr.msk.bf16.mxu1 %vm1178_vm5, %v24641_v25  ;;  %19864 = vmatpush3.bf16.msra.mxu1 %v21188_v15  ;;  %v14604_v25 = vshrl.u32 %v25027_v46, 16  ;;  %v25068_v15 = vld [vmem:[#allocation3 + $0x30] sm:$0xf]  ;;  %v17662_v56 = vrot.slane %v25027_v46, 9 }
 0x67c   : > { %19865 = vmatprep.subr.bf16.mxu1 %v21189_v23  ;;  %v14691_v39 = vshll.u32 %v25068_v15, 16 }
 0x67f   : > { %19866 = vmatpush3.bf16.msra.mxu1 %v21189_v23  ;;  %v25093_v23 = vld [vmem:[#allocation3 + $0x24] sm:$0x1] }
 0x680   : > { %19875 = vmatprep.subr.bf16.mxu1 %v25010_v55 }
 0x682   : > { %19344 = vmatmul.mubr.msk.bf16.gmra.mrb[84].mxu1 %vm1178_vm5, %v24659_v43  ;;  %v14607_v43 = vshll.u32 %v25027_v46, 16 }
 0x683   : > { %19347 = vmatprep.mubr.msk.bf16.mxu1 %vm1178_vm5, %v24663_v7  ;;  %v14618_v7 = vshrl.u32 %v25031_v62, 16 }
 0x68a   : > { %19348 = vmatmul.mubr.msk.bf16.gmra.mrb[88].mxu1 %vm1178_vm5, %v24681_v45  ;;  %v14621_v45 = vshll.u32 %v25031_v62, 16 }
 0x68b   : > { %19351 = vmatprep.mubr.msk.bf16.mxu1 %vm1178_vm5, %v24685_v6  ;;  %v14606_v6 = vrot.slane %v14604_v25, 4  ;;  %v14702_v25 = vshrl.u32 %v25078_v38, 16 }
 0x692   : > { %19352 = vmatmul.mubr.msk.bf16.gmra.mrb[92].mxu1 %vm1178_vm5, %v24703_v41  ;;  %v14609_v41 = vrot.slane %v14607_v43, 5  ;;  %v14705_v43 = vshll.u32 %v25078_v38, 16 }
 0x693   : > { %19355 = vmatprep.mubr.msk.bf16.mxu1 %vm1178_vm5, %v24707_v54  ;;  %v14620_v54 = vrot.slane %v14618_v7, 4  ;;  %v14655_v7 = vshll.u32 %v25080_v24, 16 }
 0x694   : > { %v14610_v26 = vor.u32 %v14609_v41, %v14606_v6  ;;  %v14683_v6 = vshll.u32 %v25082_v14, 16  ;;  %v14707_v50 = vrot.slane %v14705_v43, 5  ;;  %v17663_v43 = vrot.slane %v25031_v62, 9 }
 0x696   : > { %v14685_v19 = vrot.slane %v14683_v6, 5 }
 0x69a   : > { %19356 = vmatmul.mubr.msk.bf16.gmra.mrb[96].mxu1 %vm1178_vm5, %v24725_v63  ;;  %v14623_v63 = vrot.slane %v14621_v45, 5  ;;  %v14666_v45 = vor.u32 %v14665_v27, %v14662_v8 }
 0x69b   : > { %19359 = vmatprep.mubr.msk.bf16.mxu1 %vm1178_vm5, %v24729_v5  ;;  %v8844_v5 = vrot.slane %v24945_v1, 5  ;;  %v14611_v1 = vrot.slane %v14610_v26, 4  ;;  %v14669_v26 = vshll.u32 %v25093_v23, 16 }
 0x69c   : > { %v14667_v4 = vrot.slane %v14666_v45, 4  ;;  %v21198_v45 = vld [vmem:[%s26987_s8 + $0x150] sm:$0xff]  }
 0x69d   : > { %v8846_v53 = vrot.slane %v8844_v5, 4  ;;  %v8845_v51 = vsel %vm21509_vm3, %v17117_v21, %v8844_v5  ;;  %v14693_v5 = vrot.slane %v14691_v39, 5  ;;  %v25103_v21 = vld [vmem:[#allocation3 + $0x34] sm:$0x1]  ;;  %v25160_v39 = vpop.f32.mrb[48].mxu0 }
 0x69e   : > { %v14697_v52 = vshll.u32 %v25103_v21, 16 }
 0x69f   : > { %v8848_v12 = vsel %vm21509_vm3, %v8846_v53, %v8847_v42  ;;  %v14657_v42 = vrot.slane %v14655_v7, 5  ;;  %v14939_v7 = vrot.slane %v25050_v34, 5 }
 0x6a0   : > { %v17118_v11 = vcombine.low %v8845_v51, %v8848_v12  ;;  %v14711_v12 = vshll.u32 %v25113_v48, 16  ;;  %v14699_v47 = vrot.slane %v14697_v52, 5  ;;  %v17669_v52 = vrot.slane %v25078_v38, 9 }
 0x6a2   : > { %19360 = vmatmul.mubr.msk.bf16.gmra.mrb[100].mxu1 %vm1178_vm5, %v24746_v13  ;;  %v14613_v13 = vshll.u32 %v25048_v17, 16  ;;  %v14713_v27 = vrot.slane %v14711_v12, 5  ;;  %v10818_v12 = vmul.f32 0.53333336, %v25160_v39 }
 0x6a3   : > { %19363 = vmatprep.mubr.msk.bf16.mxu1 %vm1178_vm5, %v24750_v59  ;;  %v14624_v59 = vor.u32 %v14623_v63, %v14620_v54  ;;  %v14639_v54 = vrot.slane %v14638_v58, 4 }
 0x6a4   : > { %v14615_v16 = vrot.slane %v14613_v13, 5  ;;  %v14681_v13 = vrot.slane %v14680_v40, 4  ;;  %v21197_v40 = vld [vmem:[%s26987_s8 + $0x148] sm:$0xff]  }
 0x6a5   : > { %v14625_v31 = vrot.slane %v14624_v59, 4  ;;  %v14704_v59 = vrot.slane %v14702_v25, 4  ;;  %v25107_v53 = vsel %vm21564_vm6, %v14639_v54, %v14643_v20  ;;  %v14935_v25 = vrot.slane %v25048_v17, 5 }
 0x6a6   : > { %v14616_v0 = vsel %vm21564_vm6, %v14611_v1, %v14615_v16  ;;  %v25111_v3 = vsel %vm21564_vm6, %v14681_v13, %v14685_v19  ;;  %v25117_v16 = vsel %vm21564_vm6, %v14653_v44, %v14657_v42  ;;  %v25193_v17 = vcombine.low %v25068_v15, %v25078_v38 }
 0x6a7   : > { %v14708_v49 = vor.u32 %v14707_v50, %v14704_v59  ;;  %v25122_v1 = vcombine.low %v25107_v53, %v25117_v16  ;;  %v14936_v6 = vsel %vm21509_vm3, %v17662_v56, %v14935_v25  ;;  %v14943_v54 = vrot.slane %v25076_v9, 5 }
 0x6a8   : > { %v17665_v13 = vrot.slane %v25044_v10, 9  ;;  %v14947_v20 = vrot.slane %v25080_v24, 5  ;;  %v17666_v59 = vrot.slane %v25055_v2, 9  ;;  %v14951_v9 = vrot.slane %v25093_v23, 5  ;;  %v21200_v23 = vld [vmem:[%s26987_s8 + $0x158] sm:$0xff]  }
 0x6a9   : > { %v14709_v33 = vrot.slane %v14708_v49, 4  ;;  %v14963_v49 = vrot.slane %v25113_v48, 5 }
 0x6aa   : > { %19364 = vmatmul.mubr.msk.bf16.gmra.mrb[104].mxu1 %vm1178_vm5, %v24762_v28  ;;  %v14629_v28 = vrot.slane %v14627_v35, 5  ;;  %v14671_v35 = vrot.slane %v14669_v26, 5  ;;  %v25227_v19 = vsel %vm21509_vm3, %v17666_v59, %v14951_v9 }
 0x6ab   : > { %19367 = vmatprep.mubr.msk.bf16.mxu1 %vm1178_vm5, %v24903_v30  ;;  %v14688_v30 = vshrl.u32 %v25068_v15, 16  ;;  %v25150_v58 = vsel %vm21564_vm6, %v14709_v33, %v14713_v27 }
 0x6ac   : > { %v25090_v22 = vsel %vm21564_vm6, %v14625_v31, %v14629_v28  ;;  %v25126_v31 = vsel %vm21564_vm6, %v14667_v4, %v14671_v35  ;;  %v21196_v28 = vld [vmem:[%s26987_s8 + $0x140] sm:$0xff]   ;;  %v25219_v4 = vsel %vm21509_vm3, %v17665_v13, %v14947_v20  ;;  %v14959_v35 = vrot.slane %v25103_v21, 5  ;;  %v25282_v20 = vld [vmem:[#allocation3 + $0x40] sm:$0xf] }
 0x6ad   : > { %v17642_v41 = vcombine.low %v14616_v0, %v25090_v22  ;;  %v14690_v63 = vrot.slane %v14688_v30, 4  ;;  %v25133_v36 = vcombine.low %v25126_v31, %v25111_v3  ;;  %v25165_v0 = vcombine.low %v25039_v32, %v25044_v10 }
 0x6ae   : > { %v25253_v21 = vsel %vm21509_vm3, %v17669_v52, %v14963_v49 }
 0x6af   : > { %v14694_v37 = vor.u32 %v14693_v5, %v14690_v63  ;;  %v17667_v63 = vrot.slane %v25046_v18, 9  ;;  %v14955_v5 = vrot.slane %v25082_v14, 5 }
 0x6b1   : > { %v14695_v51 = vrot.slane %v14694_v37, 4  ;;  %v25215_v14 = vsel %vm21509_vm3, %v17667_v63, %v14955_v5  ;;  %v17668_v37 = vrot.slane %v25068_v15, 9  ;;  %v17682_v5 = vcombine.low %v25046_v18, %v25068_v15 }
 0x6b2   : > { %19368 = vmatmul.mubr.msk.bf16.gmra.mrb[108].mxu1 %vm1178_vm5, %v17118_v11  ;;  %v19495_v11 = vpop.f32.mrb[49].mxu0  ;;  %v25234_v42 = vcombine.low %v25227_v19, %v25215_v14  ;;  %v15178_v18 = vshrl.u32 %v25282_v20, 16  ;;  %v15181_v15 = vshll.u32 %v25282_v20, 16 }
 0x6b3   : > { %19867 = vmatprep.mubr.msk.bf16.mxu1 %vm1178_vm5, %v17642_v41  ;;  %v25146_v8 = vsel %vm21564_vm6, %v14695_v51, %v14699_v47  ;;  %v17664_v41 = vrot.slane %v25039_v32, 9  ;;  %v25202_v26 = vpop.f32.mrb[50].mxu0  ;;  %v25249_v51 = vsel %vm21509_vm3, %v17668_v37, %v14959_v35  ;;  %v10824_v47 = vmul.f32 0.06666667, %v25160_v39 }
 0x6b4   : > { %v25154_v30 = vcombine.low %v25146_v8, %v25150_v58  ;;  %v19496_v44 = vpop.f32.mrb[51].mxu0  ;;  %v25259_v48 = vcombine.low %v25249_v51, %v25253_v21  ;;  %v10819_v11 = vmul.f32 0.53333336, %v25202_v26  ;;  %v17683_v37 = vcombine.low %v25078_v38, %v25282_v20 }
 0x6b5   : > { %v25211_v50 = vsel %vm21509_vm3, %v17664_v41, %v14943_v54  ;;  %v10547_v33 = vpop.f32.mrb[52].mxu0  ;;  %v17681_v41 = vcombine.low %v25044_v10, %v25055_v2  ;;  %v21205_v54 = vld [vmem:[%s26987_s8 + $0x168] sm:$0xff]   ;;  %v21206_v2 = vld [vmem:[%s26987_s8 + $0x170] sm:$0xff]   ;;  %v17690_v35 = vcombine.low %v25090_v22, %v25107_v53  ;;  %v15180_v52 = vrot.slane %v15178_v18, 4 }
 0x6b6   : > { %v25223_v24 = vcombine.low %v25211_v50, %v25219_v4  ;;  %v10820_v27 = vmul.f32 0.46666667, %v10547_v33  ;;  %v10836_v9 = vmul.f32 0.13333334, %v10547_v33  ;;  %v15183_v49 = vrot.slane %v15181_v15, 5 }
 0x6b8   : > { %v25267_v56 = vadd.f32 %v10820_v27, %v10818_v12  ;;  %v15184_v38 = vor.u32 %v15183_v49, %v15180_v52 }
 0x6ba   : > { %19868 = vmatmul.mubr.msk.bf16.vlgmr.msra.gmra.mrb[112].mxu1 %vm1178_vm5, %v25122_v1 }
 0x6bb   : > { %19871 = vmatprep.mubr.msk.bf16.mxu1 %vm1178_vm5, %v25133_v36  ;;  %19876 = vmatpush3.bf16.msra.mxu1 %v25010_v55  ;;  %v17652_v55 = vcombine.low %v25027_v46, %v25031_v62  ;;  %v25189_v46 = vsel %vm21509_vm3, %v17663_v43, %v14939_v7 }
 0x6bc   : > { %19877 = vmatprep.subr.bf16.mxu1 %v21192_v61  ;;  %v17670_v34 = vcombine.low %v14936_v6, %v25189_v46 }
 0x6bf   : > { %19878 = vmatpush3.bf16.msra.mxu1 %v21192_v61  ;;  %v21204_v61 = vld [vmem:[%s26987_s8 + $0x160] sm:$0xff]  }
 0x6c0   : > { %19887 = vmatprep.subr.bf16.mxu1 %v21196_v28 }
 0x6c2   : > { %19872 = vmatmul.mubr.msk.bf16.gmra.mrb[116].mxu1 %vm1178_vm5, %v25154_v30 }
 0x6c3   : > { %19879 = vmatprep.mubr.msk.bf16.mxu1 %vm1178_vm5, %v17652_v55  ;;  %v10826_v55 = vmul.f32 0.93333334, %v10547_v33 }
 0x6c5   : > { %v25269_v43 = vadd.f32 %v10826_v55, %v10824_v47 }
 0x6ca   : > { %19880 = vmatmul.mubr.msk.bf16.vlgmr.msra.gmra.mrb[112].mxu1 %vm1178_vm5, %v25165_v0 }
 0x6cb   : > { %19883 = vmatprep.mubr.msk.bf16.mxu1 %vm1178_vm5, %v25172_v57  ;;  %19888 = vmatpush3.bf16.msra.mxu1 %v21196_v28  ;;  %v17680_v28 = vcombine.low %v25031_v62, %v25039_v32  ;;  %v10825_v62 = vmul.f32 0.06666667, %v25202_v26  ;;  %v10830_v32 = vmul.f32 0.6, %v10547_v33  ;;  %v25302_v33 = vld [vmem:[#allocation3 + $0x44] sm:$0x1] }
 0x6cc   : > { %19889 = vmatprep.subr.bf16.mxu1 %v21197_v40 }
 0x6cf   : > { %19890 = vmatpush3.bf16.msra.mxu1 %v21197_v40  ;;  %v19501_v40 = vpop.f32.mrb[53].mxu0 }
 0x6d0   : > { %19899 = vmatprep.subr.bf16.mxu1 %v21198_v45  ;;  %v10550_v25 = vpop.f32.mrb[54].mxu0 }
 0x6d1   : > { %v10821_v7 = vmul.f32 0.46666667, %v10550_v25  ;;  %v10837_v12 = vmul.f32 0.13333334, %v10550_v25 }
 0x6d2   : > { %19884 = vmatmul.mubr.msk.bf16.gmra.mrb[116].mxu1 %vm1178_vm5, %v25193_v17 }
 0x6d3   : > { %19891 = vmatprep.mubr.msk.bf16.mxu1 %vm1178_vm5, %v17670_v34  ;;  %v25271_v6 = vadd.f32 %v10821_v7, %v10819_v11  ;;  %v10827_v34 = vmul.f32 0.93333334, %v10550_v25 }
 0x6d5   : > { %v25287_v10 = vadd.f32 %v10827_v34, %v10825_v62  ;;  %v17691_v34 = vcombine.low %v25117_v16, %v25126_v31 }
 0x6da   : > { %19892 = vmatmul.mubr.msk.bf16.vlgmr.msra.gmra.mrb[112].mxu1 %vm1178_vm5, %v25223_v24 }
 0x6db   : > { %19895 = vmatprep.mubr.msk.bf16.mxu1 %vm1178_vm5, %v25234_v42  ;;  %19900 = vmatpush3.bf16.msra.mxu1 %v21198_v45  ;;  %v19502_v45 = vpop.f32.mrb[55].mxu0 }
 0x6dc   : > { %19901 = vmatprep.subr.bf16.mxu1 %v21200_v23  ;;  %v10591_v63 = vpop.f32.mrb[56].mxu0 }
 0x6dd   : > { %v10832_v13 = vmul.f32 0.4, %v10591_v63  ;;  %v19507_v44 = vpop.f32.mrb[57].mxu0  ;;  %v10842_v11 = vmul.f32 0.6666667, %v10591_v63 }
 0x6de   : > { %v10594_v47 = vpop.f32.mrb[58].mxu0  ;;  %v10848_v40 = vmul.f32 0.2, %v10591_v63 }
 0x6df   : > { %19902 = vmatpush3.bf16.msra.mxu1 %v21200_v23  ;;  %v25285_v59 = vadd.f32 %v10832_v13, %v10830_v32  ;;  %v10838_v23 = vmul.f32 0.8666667, %v10591_v63  ;;  %v10833_v27 = vmul.f32 0.4, %v10594_v47  ;;  %v10839_v55 = vmul.f32 0.8666667, %v10594_v47 }
 0x6e0   : > { %19911 = vmatprep.subr.bf16.mxu1 %v21204_v61  ;;  %v19508_v7 = vpop.f32.mrb[59].mxu0  ;;  %v17692_v63 = vcombine.low %v25111_v3, %v25146_v8  ;;  %v15185_v13 = vrot.slane %v15184_v38, 4 }
 0x6e1   : > { %v10635_v53 = vpop.f32.mrb[60].mxu0  ;;  %v25306_v45 = vadd.f32 %v10839_v55, %v10837_v12 }
 0x6e2   : > { %19896 = vmatmul.mubr.msk.bf16.gmra.mrb[116].mxu1 %vm1178_vm5, %v25259_v48  ;;  %v10844_v62 = vmul.f32 0.33333334, %v10635_v53  ;;  %v10850_v32 = vmul.f32 0.8, %v10635_v53  ;;  %v10854_v49 = vmul.f32 0.73333335, %v10635_v53 }
 0x6e3   : > { %19903 = vmatprep.mubr.msk.bf16.mxu1 %vm1178_vm5, %v17680_v28  ;;  %v25300_v28 = vadd.f32 %v10838_v23, %v10836_v9  ;;  %v21208_v23 = vld [vmem:[%s26987_s8 + $0x180] sm:$0xff]  }
 0x6e4   : > { %v25316_v44 = vadd.f32 %v10844_v62, %v10842_v11  ;;  %v25318_v15 = vadd.f32 %v10850_v32, %v10848_v40  ;;  %v17702_v62 = vcombine.low %v25219_v4, %v25227_v19  ;;  %v21209_v32 = vld [vmem:[%s26987_s8 + $0x188] sm:$0xff]  }
 0x6ea   : > { %19904 = vmatmul.mubr.msk.bf16.vlgmr.msra.gmra.mrb[112].mxu1 %vm1178_vm5, %v17681_v41  ;;  %v21207_v41 = vld [vmem:[%s26987_s8 + $0x178] sm:$0xff]  }
 0x6eb   : > { %19907 = vmatprep.mubr.msk.bf16.mxu1 %vm1178_vm5, %v17682_v5  ;;  %19912 = vmatpush3.bf16.msra.mxu1 %v21204_v61  ;;  %v10831_v61 = vmul.f32 0.6, %v10550_v25  ;;  %v15187_v25 = vshll.u32 %v25302_v33, 16  ;;  %v19513_v5 = vpop.f32.mrb[61].mxu0 }
 0x6ec   : > { %19913 = vmatprep.subr.bf16.mxu1 %v21205_v54  ;;  %v10638_v18 = vpop.f32.mrb[62].mxu0  ;;  %v15296_v5 = vrot.slane %v25302_v33, 5 }
 0x6ed   : > { %v25304_v22 = vadd.f32 %v10833_v27, %v10831_v61  ;;  %v10845_v9 = vmul.f32 0.33333334, %v10638_v18  ;;  %v15189_v16 = vrot.slane %v15187_v25, 5  ;;  %v19514_v31 = vpop.f32.mrb[63].mxu0  ;;  %v10860_v61 = vmul.f32 0.26666668, %v10635_v53 }
 0x6ee   : > { %v10679_v12 = vpop.f32.mrb[64].mxu0  ;;  %v10861_v7 = vmul.f32 0.26666668, %v10638_v18 }
 0x6ef   : > { %19914 = vmatpush3.bf16.msra.mxu1 %v21205_v54  ;;  %v10843_v54 = vmul.f32 0.6666667, %v10594_v47  ;;  %v25329_v8 = vsel %vm21564_vm6, %v15185_v13, %v15189_v16  ;;  %v10856_v55 = vmul.f32 0.26666668, %v10679_v12  ;;  %v10862_v38 = vmul.f32 0.73333335, %v10679_v12 }
 0x6f0   : > { %19923 = vmatprep.subr.bf16.mxu1 %v21206_v2  ;;  %v17693_v52 = vcombine.low %v25150_v58, %v25329_v8  ;;  %v19519_v11 = vpop.f32.mrb[65].mxu0  ;;  %v10866_v13 = vmul.f32 0.8, %v10679_v12  ;;  %v10872_v31 = vmul.f32 0.33333334, %v10679_v12 }
 0x6f1   : > { %v25325_v3 = vadd.f32 %v10845_v9, %v10843_v54  ;;  %v25339_v40 = vadd.f32 %v10856_v55, %v10854_v49  ;;  %v25341_v58 = vpop.f32.mrb[66].mxu0  ;;  %v17700_v54 = vrot.slane %v25282_v20, 9  ;;  %v11623_v49 = vld [vmem:[#allocation2 + $0x4] sm:$0xf] }
 0x6f2   : > { %19908 = vmatmul.mubr.msk.bf16.gmra.mrb[116].mxu1 %vm1178_vm5, %v17683_v37  ;;  %v10849_v37 = vmul.f32 0.2, %v10594_v47  ;;  %v10855_v47 = vmul.f32 0.73333335, %v10638_v18  ;;  %v10857_v53 = vmul.f32 0.26666668, %v25341_v58 }
 0x6f3   : > { %19915 = vmatprep.mubr.msk.bf16.mxu1 %vm1178_vm5, %v17690_v35  ;;  %v10851_v35 = vmul.f32 0.8, %v10638_v18  ;;  %v10863_v25 = vmul.f32 0.73333335, %v25341_v58  ;;  %v25373_v33 = vsel %vm21509_vm3, %v17700_v54, %v15296_v5  ;;  %v11727_v12 = vshll.u32 %v11623_v49, 16 }
 0x6f4   : > { %v17704_v16 = vcombine.low %v25253_v21, %v25373_v33 }
 0x6f5   : > { %v25337_v27 = vadd.f32 %v10851_v35, %v10849_v37  ;;  %v25365_v19 = vadd.f32 %v10863_v25, %v10861_v7  ;;  %v21212_v7 = vld [vmem:[%s26987_s8 + $0x198] sm:$0xff]  }
 0x6fa   : > { %19916 = vmatmul.mubr.msk.bf16.vlgmr.msra.gmra.mrb[112].mxu1 %vm1178_vm5, %v17691_v34  ;;  %v19520_v34 = vpop.f32.mrb[67].mxu0 }
 0x6fb   : > { %19919 = vmatprep.mubr.msk.bf16.mxu1 %vm1178_vm5, %v17692_v63  ;;  %19924 = vmatpush3.bf16.msra.mxu1 %v21206_v2  ;;  %v17701_v2 = vcombine.low %v25189_v46, %v25211_v50  ;;  %v21215_v46 = vld [vmem:[%s26984_s5 + $0x130] sm:$0xff]   ;;  %v25346_v50 = vadd.f32 %v10862_v38, %v10860_v61  ;;  %v25359_v63 = vadd.f32 %v10857_v53, %v10855_v47  ;;  %v25363_v4 = vpop.f32.mrb[68].mxu0  ;;  %v11624_v61 = vld [vmem:[#allocation2 + $0x8] sm:$0x1]  ;;  %v11731_v47 = vshrl.u32 %v11623_v49, 16 }
 0x6fc   : > { %19925 = vmatprep.subr.bf16.mxu1 %v21207_v41  ;;  %19539 = vmatprep.subr.bf16.mxu0 %v21215_v46  ;;  %v19525_v18 = vpop.f32.mrb[69].mxu0  ;;  %v10874_v37 = vmul.f32 0.6666667, %v25363_v4  ;;  %v11737_v11 = vshll.u32 %v11624_v61, 16  ;;  %v11729_v34 = vrot.slane %v11727_v12, 5 }
 0x6fd   : > { %19540 = vmatpush3.bf16.msra.mxu0 %v21215_v46  ;;  %v25384_v35 = vpop.f32.mrb[70].mxu0  ;;  %v21213_v18 = vld [vmem:[%s26987_s8 + $0x1a0] sm:$0xff]  }
 0x6fe   : > { %v10869_v21 = vmul.f32 0.2, %v25384_v35  ;;  %v19526_v46 = vpop.f32.mrb[71].mxu0 }
 0x6ff   : > { %19926 = vmatpush3.bf16.msra.mxu1 %v21207_v41  ;;  %v17703_v41 = vcombine.low %v25215_v14, %v25249_v51  ;;  %v21211_v14 = vld [vmem:[%s26987_s8 + $0x190] sm:$0xff]   ;;  %v10868_v51 = vmul.f32 0.2, %v25363_v4 }
 0x700   : > { %19935 = vmatprep.subr.bf16.mxu1 %v21208_v23 }
 0x701   : > { %v25375_v9 = vadd.f32 %v10868_v51, %v10866_v13  ;;  %v11739_v13 = vrot.slane %v11737_v11, 5  ;;  %v14561_v11 = vld [vmem:[#allocation3 + $0x4c] sm:$0x1] }
 0x702   : > { %19920 = vmatmul.mubr.msk.bf16.gmra.mrb[116].mxu1 %vm1178_vm5, %v17693_v52  ;;  %v21216_v52 = vld [vmem:[%s26984_s5 + $0x138] sm:$0xff]  }
 0x703   : > { %19927 = vmatprep.mubr.msk.bf16.mxu1 %vm1178_vm5, %v17701_v2  ;;  %v11622_v2 = vld [vmem:[#allocation2] sm:$0xf]  ;;  %19541 = vmatprep.subr.bf16.mxu0 %v21216_v52 }
 0x704   : > { %v11718_v55 = vshrl.u32 %v11622_v2, 16  ;;  %v11721_v38 = vshll.u32 %v11622_v2, 16  ;;  %19542 = vmatpush3.bf16.msra.mxu0 %v21216_v52  ;;  %v10767_v2 = vpop.f32.mrb[72].mxu0 }
 0x705   : > { %v10880_v61 = vmul.f32 0.13333334, %v10767_v2  ;;  %v19531_v12 = vpop.f32.mrb[73].mxu0 }
 0x706   : > { %v11720_v53 = vrot.slane %v11718_v55, 4  ;;  %v11723_v25 = vrot.slane %v11721_v38, 5 }
 0x708   : > { %v11724_v54 = vor.u32 %v11723_v25, %v11720_v53  ;;  %v10886_v53 = vmul.f32 0.6, %v10767_v2  ;;  %v10879_v25 = vmul.f32 0.8666667, %v25384_v35 }
 0x70a   : > { %19928 = vmatmul.mubr.msk.bf16.vlgmr.msra.gmra.mrb[112].mxu1 %vm1178_vm5, %v17702_v62  ;;  %v25395_v62 = vadd.f32 %v10874_v37, %v10872_v31 }
 0x70b   : > { %19931 = vmatprep.mubr.msk.bf16.mxu1 %vm1178_vm5, %v17703_v41  ;;  %19936 = vmatpush3.bf16.msra.mxu1 %v21208_v23  ;;  %v10867_v23 = vmul.f32 0.8, %v25341_v58  ;;  %v11733_v41 = vrot.slane %v11731_v47, 4 }
 0x70c   : > { %19937 = vmatprep.subr.bf16.mxu1 %v21209_v32 }
 0x70d   : > { %v11734_v5 = vor.u32 %v11733_v41, %v11729_v34  ;;  %v10770_v41 = vpop.f32.mrb[74].mxu0 }
 0x70f   : > { %19938 = vmatpush3.bf16.msra.mxu1 %v21209_v32  ;;  %v25397_v32 = vld [vmem:[#allocation3 + $0x48] sm:$0xf]  ;;  %v11735_v37 = vrot.slane %v11734_v5, 4 }
 0x710   : > { %19947 = vmatprep.subr.bf16.mxu1 %v21211_v14  ;;  %v15492_v51 = vshrl.u32 %v25397_v32, 16  ;;  %v15495_v31 = vshll.u32 %v25397_v32, 16  ;;  %v17711_v49 = vcombine.low %v25282_v20, %v25397_v32  ;;  %v15501_v20 = vshll.u32 %v14561_v11, 16 }
 0x711   : > { %v11740_v52 = vsel %vm21564_vm6, %v11735_v37, %v11739_v13  ;;  %v10881_v13 = vmul.f32 0.13333334, %v10770_v41  ;;  %v10896_v37 = vmul.f32 0.46666667, %v10767_v2 }
 0x712   : > { %19932 = vmatmul.mubr.msk.bf16.gmra.mrb[116].mxu1 %vm1178_vm5, %v17704_v16  ;;  %v11725_v16 = vrot.slane %v11724_v54, 4  ;;  %v15497_v55 = vrot.slane %v15495_v31, 5  ;;  %v15503_v5 = vrot.slane %v15501_v20, 5  ;;  %v25481_v20 = vld [vmem:[%s26985_s6 + $0x1] ss:$0 sm:$0xff] }
 0x713   : > { %19939 = vmatprep.mubr.msk.bf16.mxu1 %vm1178_vm5, %v25165_v0  ;;  %v25390_v0 = vadd.f32 %v10869_v21, %v10867_v23  ;;  %v10873_v23 = vmul.f32 0.33333334, %v25341_v58  ;;  %v15494_v58 = vrot.slane %v15492_v51, 4 }
 0x715   : > { %v15498_v46 = vor.u32 %v15497_v55, %v15494_v58  ;;  %v25465_v58 = vld [vmem:[%s26984_s5 + $0x120] sm:$0xff]  }
 0x716   : > { %19575 = vmatprep.subr.bf16.mxu0 %v25465_v58 }
 0x717   : > { %v15499_v54 = vrot.slane %v15498_v46, 4 }
 0x71a   : > { %19940 = vmatmul.mubr.msk.bf16.vlgmr.msra.gmra.mrb[112].mxu1 %vm1178_vm5, %v25172_v57  ;;  %v10875_v57 = vmul.f32 0.6666667, %v25384_v35 }
 0x71b   : > { %19943 = vmatprep.mubr.msk.bf16.mxu1 %vm1178_vm5, %v25193_v17  ;;  %19948 = vmatpush3.bf16.msra.mxu1 %v21211_v14  ;;  %v10878_v17 = vmul.f32 0.8666667, %v25363_v4  ;;  %v11730_v14 = vsel %vm21564_vm6, %v11725_v16, %v11729_v34  ;;  %v21214_v34 = vld [vmem:[%s26987_s8 + $0x1a8] sm:$0xff]   ;;  %v15504_v16 = vsel %vm21564_vm6, %v15499_v54, %v15503_v5 }
 0x71c   : > { %19949 = vmatprep.subr.bf16.mxu1 %v21212_v7  ;;  %v17368_v21 = vcombine.low %v11730_v14, %v11740_v52  ;;  %v25417_v38 = vadd.f32 %v10875_v57, %v10873_v23  ;;  %v17718_v31 = vcombine.low %v25329_v8, %v15504_v16  ;;  %v10885_v23 = vmul.f32 0.4, %v25384_v35 }
 0x71d   : > { %v25421_v47 = vadd.f32 %v10880_v61, %v10878_v17  ;;  %v10887_v57 = vmul.f32 0.6, %v10770_v41 }
 0x71e   : > { %19543 = vmatprep.mubr.msk.bf16.mxu0 %vm1178_vm5, %v17368_v21  ;;  %v15598_v21 = vrot.slane %v14561_v11, 5 }
 0x71f   : > { %19950 = vmatpush3.bf16.msra.mxu1 %v21212_v7  ;;  %v10884_v7 = vmul.f32 0.4, %v25363_v4  ;;  %v25436_v4 = vadd.f32 %v10881_v13, %v10879_v25  ;;  %v25449_v14 = vadd.f32 %v10887_v57, %v10885_v23 }
 0x720   : > { %19959 = vmatprep.subr.bf16.mxu1 %v21213_v18 }
 0x721   : > { %v25430_v51 = vadd.f32 %v10886_v53, %v10884_v7  ;;  %v25486_v7 = vld [vmem:[%s26986_s7 + $0x1] ss:$0 sm:$0xff] }
 0x722   : > { %19944 = vmatmul.mubr.msk.bf16.gmra.mrb[116].mxu1 %vm1178_vm5, %v17711_v49  ;;  %v17725_v49 = vrot.slane %v25397_v32, 9 }
 0x723   : > { %19951 = vmatprep.mubr.msk.bf16.mxu1 %vm1178_vm5, %v25122_v1  ;;  %v19532_v1 = vpop.f32.mrb[75].mxu0 }
 0x72a   : > { %19952 = vmatmul.mubr.msk.bf16.vlgmr.msra.gmra.mrb[112].mxu1 %vm1178_vm5, %v25133_v36  ;;  %v10890_v36 = vmul.f32 0.93333334, %v10767_v2  ;;  %v10897_v2 = vmul.f32 0.46666667, %v10770_v41 }
 0x72b   : > { %19955 = vmatprep.mubr.msk.bf16.mxu1 %vm1178_vm5, %v25154_v30  ;;  %19960 = vmatpush3.bf16.msra.mxu1 %v21213_v18  ;;  %v25445_v30 = vpop.f32.mrb[76].mxu0 }
 0x72c   : > { %19961 = vmatprep.subr.bf16.mxu1 %v21214_v34  ;;  %v10892_v18 = vmul.f32 0.06666667, %v25445_v30  ;;  %v10898_v17 = vmul.f32 0.53333336, %v25445_v30  ;;  %v19537_v52 = vpop.f32.mrb[77].mxu0 }
 0x72d   : > { %v25460_v61 = vpop.f32.mrb[78].mxu0 }
 0x72e   : > { %v25451_v8 = vadd.f32 %v10892_v18, %v10890_v36  ;;  %v25453_v35 = vadd.f32 %v10898_v17, %v10896_v37  ;;  %v10893_v55 = vmul.f32 0.06666667, %v25460_v61  ;;  %v10899_v32 = vmul.f32 0.53333336, %v25460_v61  ;;  %v19538_v12 = vpop.f32.mrb[79].mxu0 }
 0x72f   : > { %19962 = vmatpush3.bf16.msra.mxu1 %v21214_v34 }
 0x732   : > { %19956 = vmatmul.mubr.msk.bf16.gmra.mrb[116].mxu1 %vm1178_vm5, %v17718_v31 }
 0x733   : > { %19963 = vmatprep.mubr.msk.bf16.mxu1 %vm1178_vm5, %v25223_v24  ;;  %v10891_v24 = vmul.f32 0.93333334, %v10770_v41 }
 0x735   : > { %v25472_v11 = vadd.f32 %v10893_v55, %v10891_v24 }
 0x73a   : > { %19964 = vmatmul.mubr.msk.bf16.vlgmr.msra.gmra.mrb[112].mxu1 %vm1178_vm5, %v25234_v42  ;;  %v15599_v42 = vsel %vm21509_vm3, %v17725_v49, %v15598_v21 }
 0x73b   : > { %19967 = vmatprep.mubr.msk.bf16.mxu1 %vm1178_vm5, %v25259_v48  ;;  %v25474_v48 = vadd.f32 %v10899_v32, %v10897_v2  ;;  %v17726_v46 = vcombine.low %v25373_v33, %v15599_v42 }
 0x742   : > { %19968 = vmatmul.mubr.msk.bf16.gmra.mrb[116].mxu1 %vm1178_vm5, %v17726_v46 }
 0x74d   : > { %v19341_v53 = vpop.f32.mrb[80].mxu1 }
 0x74e   : > { %v9068_v25 = vmul.f32 %v19341_v53, %v25481_v20  ;;  %v8901_v34 = vpop.f32.mrb[81].mxu1 }
 0x74f   : > { %v9066_v41 = vmul.f32 %v25481_v20, %v8901_v34  ;;  %v19342_v54 = vpop.f32.mrb[82].mxu1 }
 0x750   : > { %v9106_v33 = vadd.f32 %v25486_v7, %v9068_v25  ;;  %v9069_v5 = vmul.f32 %v19342_v54, %v25481_v20  ;;  %v8904_v13 = vpop.f32.mrb[83].mxu1 }
 0x751   : > { %v9104_v1 = vadd.f32 %v25486_v7, %v9066_v41  ;;  %v9067_v16 = vmul.f32 %v25481_v20, %v8904_v13 }
 0x752   : > { %v9138_v31 = vmax.f32 %v9106_v33, 0.0  ;;  %v9107_v23 = vadd.f32 %v25486_v7, %v9069_v5 }
 0x753   : > { %v9136_v57 = vmax.f32 %v9104_v1, 0.0  ;;  %v9105_v36 = vadd.f32 %v25486_v7, %v9067_v16 }
 0x754   : > { %v9139_v37 = vmax.f32 %v9107_v23, 0.0  ;;  %v10904_v18 = vadd.f32 %v25267_v56, %v9138_v31 }
 0x755   : > { %v10902_v17 = vadd.f32 %v25160_v39, %v9136_v57  ;;  %v9137_v52 = vmax.f32 %v9105_v36, 0.0  ;;  %v19345_v49 = vpop.f32.mrb[84].mxu1 }
 0x756   : > { %v17802_v21 = vpack.c.bf16 %v10904_v18, %v10904_v18  ;;  %v10905_v24 = vadd.f32 %v25271_v6, %v9139_v37  ;;  %v9072_v2 = vmul.f32 %v19345_v49, %v25481_v20  ;;  %v8917_v55 = vpop.f32.mrb[85].mxu1 }
 0x757   : > { %v17800_v32 = vpack.c.bf16 %v10902_v17, %v10902_v17  ;;  %v10903_v12 = vadd.f32 %v25202_v26, %v9137_v52  ;;  %v9070_v42 = vmul.f32 %v25481_v20, %v8917_v55  ;;  %v19346_v46 = vpop.f32.mrb[86].mxu1 }
 0x758   : > { %v11048_v53 = vshrl.u32 %v17802_v21, 16  ;;  %v11051_v25 = vshll.u32 %v17802_v21, 16  ;;  %v17803_v34 = vpack.c.bf16 %v10905_v24, %v10905_v24  ;;  %v9110_v56 = vadd.f32 %v25486_v7, %v9072_v2  ;;  %v8920_v39 = vpop.f32.mrb[87].mxu1  ;;  %v11357_v21 = vld [vmem:[#allocation2 + $0x18] sm:$0xf] }
 0x759   : > { %v11031_v41 = vshrl.u32 %v17800_v32, 16  ;;  %v11034_v54 = vshll.u32 %v17800_v32, 16  ;;  %v17801_v33 = vpack.c.bf16 %v10903_v12, %v10903_v12  ;;  %v9108_v6 = vadd.f32 %v25486_v7, %v9070_v42  ;;  %v11350_v32 = vld [vmem:[#allocation2 + $0xc] sm:$0xf] }
 0x75a   : > { %v11050_v5 = vrot.slane %v11048_v53, 7  ;;  %v11056_v13 = vshrl.u32 %v17803_v34, 16  ;;  %v11059_v1 = vshll.u32 %v17803_v34, 16  ;;  %v9142_v16 = vmax.f32 %v9110_v56, 0.0 }
 0x75b   : > { %v11033_v31 = vrot.slane %v11031_v41, 7  ;;  %v11039_v26 = vshrl.u32 %v17801_v33, 16  ;;  %v11042_v23 = vshll.u32 %v17801_v33, 16  ;;  %v9140_v57 = vmax.f32 %v9108_v6, 0.0  ;;  %v11361_v33 = vld [vmem:[#allocation2 + $0x20] sm:$0x1] }
 0x75c   : > { %v11053_v36 = vor.u32 %v11051_v25, %v11050_v5  ;;  %v11054_v37 = vrot.slane %v11050_v5, 4  ;;  %v11058_v18 = vrot.slane %v11056_v13, 7  ;;  %v9073_v17 = vmul.f32 %v19346_v46, %v25481_v20 }
 0x75d   : > { %v11036_v52 = vor.u32 %v11034_v54, %v11033_v31  ;;  %v11037_v49 = vrot.slane %v11033_v31, 4  ;;  %v11041_v24 = vrot.slane %v11039_v26, 7  ;;  %v10906_v2 = vadd.f32 %v25269_v43, %v9140_v57  ;;  %v19349_v55 = vpop.f32.mrb[88].mxu1  ;;  %v11354_v43 = vld [vmem:[#allocation2 + $0x14] sm:$0x1] }
 0x75e   : > { %v11358_v42 = vsel %vm23051_vm11, %v11053_v36, %v11357_v21  ;;  %v11061_v53 = vor.u32 %v11059_v1, %v11058_v18  ;;  %v11063_v34 = vrot.slane %v11058_v18, 4  ;;  %v9111_v56 = vadd.f32 %v25486_v7, %v9073_v17  ;;  %v8933_v25 = vpop.f32.mrb[89].mxu1 }
 0x75f   : > { %v11351_v41 = vsel %vm23051_vm11, %v11036_v52, %v11350_v32  ;;  %11359 = vst [vmem:[#allocation2 + $0x18] sm:$0xf] %v11358_v42  ;;  %v11044_v46 = vor.u32 %v11042_v23, %v11041_v24  ;;  %v11046_v54 = vrot.slane %v11041_v24, 4  ;;  %v17804_v6 = vpack.c.bf16 %v10906_v2, %v10906_v2  ;;  %v19350_v5 = vpop.f32.mrb[90].mxu1 }
 0x760   : > { %11352 = vst [vmem:[#allocation2 + $0xc] sm:$0xf] %v11351_v41  ;;  %v11062_v31 = vsel %vm23831_vm1, %v11054_v37, %v11061_v53  ;;  %v11362_v1 = vsel %vm23058_vm12, %v11063_v34, %v11361_v33  ;;  %v9143_v57 = vmax.f32 %v9111_v56, 0.0  ;;  %v10908_v36 = vadd.f32 %v25285_v59, %v9142_v16  ;;  %v8936_v18 = vpop.f32.mrb[91].mxu1 }
 0x761   : > { %v11045_v17 = vsel %vm23831_vm1, %v11037_v49, %v11044_v46  ;;  %v11355_v23 = vsel %vm23058_vm12, %v11046_v54, %v11354_v43  ;;  %11360 = vst.msk [vmem:[#allocation2 + $0x1c] sm:$0xf] %vm547_vm7, %v11062_v31  ;;  %11363 = vst [vmem:[#allocation2 + $0x20] sm:$0x1] %v11362_v1  ;;  %v11065_v52 = vshrl.u32 %v17804_v6, 16  ;;  %v11068_v21 = vshll.u32 %v17804_v6, 16 }
 0x762   : > { %11353 = vst.msk [vmem:[#allocation2 + $0x10] sm:$0xf] %vm547_vm7, %v11045_v17  ;;  %11356 = vst [vmem:[#allocation2 + $0x14] sm:$0x1] %v11355_v23  ;;  %v17806_v37 = vpack.c.bf16 %v10908_v36, %v10908_v36  ;;  %v9071_v24 = vmul.f32 %v25481_v20, %v8920_v39  ;;  %v10909_v59 = vadd.f32 %v25304_v22, %v9143_v57  ;;  %v11364_v22 = vld [vmem:[#allocation2 + $0x24] sm:$0xf] }
 0x763   : > { %v9076_v16 = vmul.f32 %v19349_v55, %v25481_v20  ;;  %v25525_v2 = vrot.slane %v11065_v52, 7  ;;  %v9074_v49 = vmul.f32 %v25481_v20, %v8933_v25  ;;  %v9077_v32 = vmul.f32 %v19350_v5, %v25481_v20 }
 0x764   : > { %v9075_v42 = vmul.f32 %v25481_v20, %v8936_v18  ;;  %v11082_v53 = vshrl.u32 %v17806_v37, 16  ;;  %v11085_v34 = vshll.u32 %v17806_v37, 16  ;;  %v9109_v56 = vadd.f32 %v25486_v7, %v9071_v24 }
 0x765   : > { %v17807_v41 = vpack.c.bf16 %v10909_v59, %v10909_v59  ;;  %v11070_v46 = vor.u32 %v11068_v21, %v25525_v2  ;;  %v11071_v39 = vrot.slane %v25525_v2, 4  ;;  %v9114_v55 = vadd.f32 %v25486_v7, %v9076_v16  ;;  %v19353_v33 = vpop.f32.mrb[92].mxu1  ;;  %v11371_v59 = vld [vmem:[#allocation2 + $0x30] sm:$0xf] }
 0x766   : > { %v9112_v54 = vadd.f32 %v25486_v7, %v9074_v49  ;;  %v11084_v25 = vrot.slane %v11082_v53, 7  ;;  %v9141_v6 = vmax.f32 %v9109_v56, 0.0  ;;  %v8949_v31 = vpop.f32.mrb[93].mxu1  ;;  %v9115_v18 = vadd.f32 %v25486_v7, %v9077_v32 }
 0x767   : > { %v11090_v5 = vshrl.u32 %v17807_v41, 16  ;;  %v11093_v43 = vshll.u32 %v17807_v41, 16  ;;  %v11365_v1 = vsel %vm23051_vm11, %v11070_v46, %v11364_v22  ;;  %v9146_v57 = vmax.f32 %v9114_v55, 0.0  ;;  %v19354_v17 = vpop.f32.mrb[94].mxu1  ;;  %v11375_v22 = vld [vmem:[#allocation2 + $0x38] sm:$0x1] }
 0x768   : > { %v9144_v36 = vmax.f32 %v9112_v54, 0.0  ;;  %11366 = vst [vmem:[#allocation2 + $0x24] sm:$0xf] %v11365_v1  ;;  %v11087_v23 = vor.u32 %v11085_v34, %v11084_v25  ;;  %v11088_v52 = vrot.slane %v11084_v25, 4  ;;  %v10907_v21 = vadd.f32 %v25287_v10, %v9141_v6  ;;  %v25539_v24 = vpop.f32.mrb[95].mxu1 }
 0x769   : > { %v11092_v37 = vrot.slane %v11090_v5, 7  ;;  %v9147_v49 = vmax.f32 %v9115_v18, 0.0  ;;  %v10912_v53 = vadd.f32 %v25316_v44, %v9146_v57  ;;  %v9113_v56 = vadd.f32 %v25486_v7, %v9075_v42 }
 0x76a   : > { %v10910_v16 = vadd.f32 %v25300_v28, %v9144_v36  ;;  %v11372_v32 = vsel %vm23051_vm11, %v11087_v23, %v11371_v59  ;;  %v17805_v41 = vpack.c.bf16 %v10907_v21, %v10907_v21  ;;  %v9080_v21 = vmul.f32 %v19353_v33, %v25481_v20 }
 0x76b   : > { %v11095_v46 = vor.u32 %v11093_v43, %v11092_v37  ;;  %v11097_v34 = vrot.slane %v11092_v37, 4  ;;  %11373 = vst [vmem:[#allocation2 + $0x30] sm:$0xf] %v11372_v32  ;;  %v17810_v55 = vpack.c.bf16 %v10912_v53, %v10912_v53  ;;  %v9145_v54 = vmax.f32 %v9113_v56, 0.0 }
 0x76c   : > { %v17808_v10 = vpack.c.bf16 %v10910_v16, %v10910_v16  ;;  %v10913_v25 = vadd.f32 %v25325_v3, %v9147_v49  ;;  %v11073_v6 = vshrl.u32 %v17805_v41, 16  ;;  %v11076_v28 = vshll.u32 %v17805_v41, 16 }
 0x76d   : > { %v11096_v44 = vsel %vm23831_vm1, %v11088_v52, %v11095_v46  ;;  %v11376_v42 = vsel %vm23058_vm12, %v11097_v34, %v11375_v22  ;;  %v11116_v1 = vshrl.u32 %v17810_v55, 16  ;;  %v11119_v57 = vshll.u32 %v17810_v55, 16  ;;  %v19357_v36 = vpop.f32.mrb[96].mxu1  ;;  %v11368_v22 = vld [vmem:[#allocation2 + $0x2c] sm:$0x1] }
 0x76e   : > { %11374 = vst.msk [vmem:[#allocation2 + $0x34] sm:$0xf] %vm547_vm7, %v11096_v44  ;;  %11377 = vst [vmem:[#allocation2 + $0x38] sm:$0x1] %v11376_v42  ;;  %v11099_v5 = vshrl.u32 %v17808_v10, 16  ;;  %v11102_v43 = vshll.u32 %v17808_v10, 16  ;;  %v10911_v23 = vadd.f32 %v25306_v45, %v9145_v54  ;;  %v17811_v3 = vpack.c.bf16 %v10913_v25, %v10913_v25 }
 0x76f   : > { %v11075_v18 = vrot.slane %v11073_v6, 7  ;;  %v25554_v37 = vpop.f32.mrb[97].mxu1  ;;  %v11118_v59 = vrot.slane %v11116_v1, 7  ;;  %v9078_v16 = vmul.f32 %v25481_v20, %v8949_v31  ;;  %v9081_v49 = vmul.f32 %v19354_v17, %v25481_v20  ;;  %v11378_v17 = vld [vmem:[#allocation2 + $0x3c] sm:$0xf] }
 0x770   : > { %v11101_v52 = vrot.slane %v11099_v5, 7  ;;  %v19358_v53 = vpop.f32.mrb[98].mxu1  ;;  %v17809_v41 = vpack.c.bf16 %v10911_v23, %v10911_v23  ;;  %v11124_v46 = vshrl.u32 %v17811_v3, 16  ;;  %v11385_v25 = vld [vmem:[#allocation2 + $0x48] sm:$0xf]  ;;  %v11127_v5 = vshll.u32 %v17811_v3, 16 }
 0x771   : > { %v11078_v56 = vor.u32 %v11076_v28, %v11075_v18  ;;  %v11080_v32 = vrot.slane %v11075_v18, 4  ;;  %v8968_v34 = vpop.f32.mrb[99].mxu1  ;;  %v11121_v55 = vor.u32 %v11119_v57, %v11118_v59  ;;  %v11122_v54 = vrot.slane %v11118_v59, 4 }
 0x772   : > { %v11104_v10 = vor.u32 %v11102_v43, %v11101_v52  ;;  %v11105_v45 = vrot.slane %v11101_v52, 4  ;;  %v11107_v6 = vshrl.u32 %v17809_v41, 16  ;;  %v11110_v28 = vshll.u32 %v17809_v41, 16  ;;  %v11389_v41 = vld [vmem:[#allocation2 + $0x50] sm:$0x1] }
 0x773   : > { %v11079_v33 = vsel %vm23831_vm1, %v11071_v39, %v11078_v56  ;;  %v11369_v31 = vsel %vm23058_vm12, %v11080_v32, %v11368_v22  ;;  %v11386_v42 = vsel %vm23051_vm11, %v11121_v55, %v11385_v25  ;;  %v11126_v2 = vrot.slane %v11124_v46, 7 }
 0x774   : > { %11367 = vst.msk [vmem:[#allocation2 + $0x28] sm:$0xf] %vm547_vm7, %v11079_v33  ;;  %11370 = vst [vmem:[#allocation2 + $0x2c] sm:$0x1] %v11369_v31  ;;  %v11379_v44 = vsel %vm23051_vm11, %v11104_v10, %v11378_v17  ;;  %v11109_v39 = vrot.slane %v11107_v6, 7  ;;  %v9118_v43 = vadd.f32 %v25486_v7, %v9080_v21  ;;  %v9116_v1 = vadd.f32 %v25486_v7, %v9078_v16 }
 0x775   : > { %11380 = vst [vmem:[#allocation2 + $0x3c] sm:$0xf] %v11379_v44  ;;  %11387 = vst [vmem:[#allocation2 + $0x48] sm:$0xf] %v11386_v42  ;;  %v9119_v57 = vadd.f32 %v25486_v7, %v9081_v49  ;;  %v11129_v18 = vor.u32 %v11127_v5, %v11126_v2  ;;  %v11131_v23 = vrot.slane %v11126_v2, 4  ;;  %v9079_v52 = vmul.f32 %v25481_v20, %v25539_v24  ;;  %v25575_v56 = vpop.f32.mrb[100].mxu1 }
 0x776   : > { %v9084_v59 = vmul.f32 %v19357_v36, %v25481_v20  ;;  %v11112_v32 = vor.u32 %v11110_v28, %v11109_v39  ;;  %v11114_v3 = vrot.slane %v11109_v39, 4  ;;  %v9150_v46 = vmax.f32 %v9118_v43, 0.0  ;;  %v25577_v10 = vpop.f32.mrb[101].mxu1  ;;  %v11382_v21 = vld [vmem:[#allocation2 + $0x44] sm:$0x1] }
 0x777   : > { %v9148_v22 = vmax.f32 %v9116_v1, 0.0  ;;  %v11130_v16 = vsel %vm23831_vm1, %v11122_v54, %v11129_v18  ;;  %v11390_v49 = vsel %vm23058_vm12, %v11131_v23, %v11389_v41  ;;  %v9151_v55 = vmax.f32 %v9119_v57, 0.0  ;;  %v25584_v36 = vpop.f32.mrb[102].mxu1 }
 0x778   : > { %v9117_v24 = vadd.f32 %v25486_v7, %v9079_v52  ;;  %v11113_v33 = vsel %vm23831_vm1, %v11105_v45, %v11112_v32  ;;  %v11383_v31 = vsel %vm23058_vm12, %v11114_v3, %v11382_v21  ;;  %11388 = vst.msk [vmem:[#allocation2 + $0x4c] sm:$0xf] %vm547_vm7, %v11130_v16  ;;  %11391 = vst [vmem:[#allocation2 + $0x50] sm:$0x1] %v11390_v49  ;;  %v25593_v25 = vpop.f32.mrb[103].mxu1 }
 0x779   : > { %v10914_v17 = vadd.f32 %v25318_v15, %v9148_v22  ;;  %v10916_v54 = vadd.f32 %v25339_v40, %v9150_v46  ;;  %11381 = vst.msk [vmem:[#allocation2 + $0x40] sm:$0xf] %vm547_vm7, %v11113_v33  ;;  %11384 = vst [vmem:[#allocation2 + $0x44] sm:$0x1] %v11383_v31  ;;  %v10917_v28 = vadd.f32 %v25359_v63, %v9151_v55 }
 0x77a   : > { %v9149_v6 = vmax.f32 %v9117_v24, 0.0  ;;  %v9122_v45 = vadd.f32 %v25486_v7, %v9084_v59  ;;  %v9082_v44 = vmul.f32 %v25481_v20, %v25554_v37  ;;  %v9085_v5 = vmul.f32 %v19358_v53, %v25481_v20 }
 0x77b   : > { %v17812_v42 = vpack.c.bf16 %v10914_v17, %v10914_v17  ;;  %v17814_v2 = vpack.c.bf16 %v10916_v54, %v10916_v54  ;;  %v9083_v15 = vmul.f32 %v25481_v20, %v8968_v34  ;;  %v17815_v39 = vpack.c.bf16 %v10917_v28, %v10917_v28  ;;  %v11399_v28 = vld [vmem:[#allocation2 + $0x60] sm:$0xf] }
 0x77c   : > { %v10915_v40 = vadd.f32 %v25337_v27, %v9149_v6  ;;  %v9154_v43 = vmax.f32 %v9122_v45, 0.0  ;;  %v9120_v1 = vadd.f32 %v25486_v7, %v9082_v44  ;;  %v9123_v34 = vadd.f32 %v25486_v7, %v9085_v5  ;;  %v11392_v6 = vld [vmem:[#allocation2 + $0x54] sm:$0xf]  ;;  %v11403_v5 = vld [vmem:[#allocation2 + $0x68] sm:$0x1] }
 0x77d   : > { %v11133_v57 = vshrl.u32 %v17812_v42, 16  ;;  %v11136_v18 = vshll.u32 %v17812_v42, 16  ;;  %v11150_v63 = vshrl.u32 %v17814_v2, 16  ;;  %v11153_v23 = vshll.u32 %v17814_v2, 16  ;;  %v25604_v3 = vpop.f32.mrb[104].mxu1 }
 0x77e   : > { %v17813_v52 = vpack.c.bf16 %v10915_v40, %v10915_v40  ;;  %v11158_v59 = vshrl.u32 %v17815_v39, 16  ;;  %v11161_v32 = vshll.u32 %v17815_v39, 16  ;;  %v9152_v37 = vmax.f32 %v9120_v1, 0.0  ;;  %v25608_v46 = vpop.f32.mrb[105].mxu1 }
 0x77f   : > { %v11135_v41 = vrot.slane %v11133_v57, 7  ;;  %v11152_v53 = vrot.slane %v11150_v63, 7  ;;  %v10920_v27 = vadd.f32 %v25375_v9, %v9154_v43  ;;  %v25611_v55 = vpop.f32.mrb[106].mxu1  ;;  %v9155_v40 = vmax.f32 %v9123_v34, 0.0  ;;  %v11625_v63 = vld [vmem:[#allocation2 + $0xc] sm:$0xf] }
 0x780   : > { %v11141_v22 = vshrl.u32 %v17813_v52, 16  ;;  %v11144_v21 = vshll.u32 %v17813_v52, 16  ;;  %v11160_v16 = vrot.slane %v11158_v59, 7  ;;  %v10918_v49 = vadd.f32 %v25346_v50, %v9152_v37  ;;  %v25613_v54 = vpop.f32.mrb[107].mxu1 }
 0x781   : > { %v11138_v24 = vor.u32 %v11136_v18, %v11135_v41  ;;  %v11139_v33 = vrot.slane %v11135_v41, 4  ;;  %v11155_v31 = vor.u32 %v11153_v23, %v11152_v53  ;;  %v11156_v17 = vrot.slane %v11152_v53, 4  ;;  %v11396_v23 = vld [vmem:[#allocation2 + $0x5c] sm:$0x1] }
 0x782   : > { %v11143_v45 = vrot.slane %v11141_v22, 7  ;;  %v11163_v44 = vor.u32 %v11161_v32, %v11160_v16  ;;  %v11165_v9 = vrot.slane %v11160_v16, 4  ;;  %v17816_v42 = vpack.c.bf16 %v10918_v49, %v10918_v49  ;;  %v11626_v22 = vld [vmem:[#allocation2 + $0x10] sm:$0xf] }
 0x783   : > { %v11393_v2 = vsel %vm23051_vm11, %v11138_v24, %v11392_v6  ;;  %v11400_v50 = vsel %vm23051_vm11, %v11155_v31, %v11399_v28  ;;  %v17818_v39 = vpack.c.bf16 %v10920_v27, %v10920_v27  ;;  %v9121_v34 = vadd.f32 %v25486_v7, %v9083_v15 }
 0x784   : > { %11394 = vst [vmem:[#allocation2 + $0x54] sm:$0xf] %v11393_v2  ;;  %11401 = vst [vmem:[#allocation2 + $0x60] sm:$0xf] %v11400_v50  ;;  %v11146_v43 = vor.u32 %v11144_v21, %v11143_v45  ;;  %v11148_v1 = vrot.slane %v11143_v45, 4  ;;  %v11164_v57 = vsel %vm23831_vm1, %v11156_v17, %v11163_v44  ;;  %v11404_v18 = vsel %vm23058_vm12, %v11165_v9, %v11403_v5 }
 0x785   : > { %11402 = vst.msk [vmem:[#allocation2 + $0x64] sm:$0xf] %vm547_vm7, %v11164_v57  ;;  %11405 = vst [vmem:[#allocation2 + $0x68] sm:$0x1] %v11404_v18  ;;  %v11167_v52 = vshrl.u32 %v17816_v42, 16  ;;  %v11170_v59 = vshll.u32 %v17816_v42, 16  ;;  %v10921_v27 = vadd.f32 %v25390_v0, %v9155_v40  ;;  %v9088_v24 = vmul.f32 %v25575_v56, %v25481_v20 }
 0x786   : > { %v11184_v32 = vshrl.u32 %v17818_v39, 16  ;;  %v11187_v37 = vshll.u32 %v17818_v39, 16  ;;  %v11147_v41 = vsel %vm23831_vm1, %v11139_v33, %v11146_v43  ;;  %v11397_v53 = vsel %vm23058_vm12, %v11148_v1, %v11396_v23  ;;  %v25630_v21 = vpop.f32.mrb[108].mxu1  ;;  %v11406_v44 = vld [vmem:[#allocation2 + $0x6c] sm:$0xf] }
 0x787   : > { %11395 = vst.msk [vmem:[#allocation2 + $0x58] sm:$0xf] %vm547_vm7, %v11147_v41  ;;  %11398 = vst [vmem:[#allocation2 + $0x5c] sm:$0x1] %v11397_v53  ;;  %v25633_v16 = vrot.slane %v11167_v52, 7  ;;  %v11742_v33 = vshrl.u32 %v11625_v63, 16  ;;  %v17819_v6 = vpack.c.bf16 %v10921_v27, %v10921_v27  ;;  %v9126_v39 = vadd.f32 %v25486_v7, %v9088_v24 }
 0x788   : > { %v11186_v49 = vrot.slane %v11184_v32, 7  ;;  %v25637_v31 = vpop.f32.mrb[109].mxu1  ;;  %v9153_v17 = vmax.f32 %v9121_v34, 0.0  ;;  %v11745_v15 = vshll.u32 %v11625_v63, 16  ;;  %v11751_v42 = vshll.u32 %v11626_v22, 16 }
 0x789   : > { %v25639_v28 = vpop.f32.mrb[110].mxu1  ;;  %v11172_v0 = vor.u32 %v11170_v59, %v25633_v16  ;;  %v11173_v45 = vrot.slane %v25633_v16, 4  ;;  %v11413_v5 = vld [vmem:[#allocation2 + $0x78] sm:$0xf]  ;;  %v11192_v40 = vshrl.u32 %v17819_v6, 16  ;;  %v11744_v18 = vrot.slane %v11742_v33, 4 }
 0x78a   : > { %v11189_v9 = vor.u32 %v11187_v37, %v11186_v49  ;;  %v25643_v2 = vpop.f32.mrb[111].mxu1  ;;  %v11190_v50 = vrot.slane %v11186_v49, 4  ;;  %v10919_v56 = vadd.f32 %v25365_v19, %v9153_v17  ;;  %v11627_v43 = vld [vmem:[#allocation2 + $0x14] sm:$0x1]  ;;  %v11747_v63 = vrot.slane %v11745_v15, 5 }
 0x78b   : > { %v11407_v1 = vsel %vm23051_vm11, %v11172_v0, %v11406_v44  ;;  %v11194_v52 = vrot.slane %v11192_v40, 7  ;;  %v11195_v59 = vshll.u32 %v17819_v6, 16  ;;  %v9158_v32 = vmax.f32 %v9126_v39, 0.0  ;;  %v25651_v34 = vld [vmem:[#allocation2 + $0x18] sm:$0xf] }
 0x78c   : > { %v11414_v57 = vsel %vm23051_vm11, %v11189_v9, %v11413_v5  ;;  %11408 = vst [vmem:[#allocation2 + $0x6c] sm:$0xf] %v11407_v1  ;;  %v17817_v23 = vpack.c.bf16 %v10919_v56, %v10919_v56  ;;  %v11748_v37 = vor.u32 %v11747_v63, %v11744_v18  ;;  %v11753_v19 = vrot.slane %v11751_v42, 5  ;;  %v11417_v17 = vld [vmem:[#allocation2 + $0x80] sm:$0x1] }
 0x78d   : > { %11415 = vst [vmem:[#allocation2 + $0x78] sm:$0xf] %v11414_v57  ;;  %v11755_v41 = vshrl.u32 %v11626_v22, 16  ;;  %v11761_v53 = vshll.u32 %v11627_v43, 16  ;;  %v11197_v49 = vor.u32 %v11195_v59, %v11194_v52  ;;  %v11199_v24 = vrot.slane %v11194_v52, 4 }
 0x78e   : > { %v11175_v27 = vshrl.u32 %v17817_v23, 16  ;;  %v11178_v16 = vshll.u32 %v17817_v23, 16  ;;  %v11749_v0 = vrot.slane %v11748_v37, 4  ;;  %v9086_v44 = vmul.f32 %v25481_v20, %v25577_v10  ;;  %v25655_v9 = vld [vmem:[#allocation2 + $0x1c] sm:$0xf] }
 0x78f   : > { %v11757_v33 = vrot.slane %v11755_v41, 4  ;;  %v11763_v15 = vrot.slane %v11761_v53, 5  ;;  %v11198_v22 = vsel %vm23831_vm1, %v11190_v50, %v11197_v49  ;;  %v11418_v42 = vsel %vm23058_vm12, %v11199_v24, %v11417_v17  ;;  %v11630_v39 = vld [vmem:[#allocation2 + $0x20] sm:$0x1]  ;;  %v11410_v63 = vld [vmem:[#allocation2 + $0x74] sm:$0x1] }
 0x790   : > { %v11177_v6 = vrot.slane %v11175_v27, 7  ;;  %v11766_v5 = vshrl.u32 %v25651_v34, 16  ;;  %11416 = vst.msk [vmem:[#allocation2 + $0x7c] sm:$0xf] %vm547_vm7, %v11198_v22  ;;  %11419 = vst [vmem:[#allocation2 + $0x80] sm:$0x1] %v11418_v42  ;;  %v11754_v56 = vsel %vm21564_vm6, %v11749_v0, %v11753_v19  ;;  %v9124_v10 = vadd.f32 %v25486_v7, %v9086_v44 }
 0x791   : > { %v11758_v40 = vor.u32 %v11757_v33, %v11753_v19  ;;  %v11769_v43 = vshll.u32 %v25651_v34, 16  ;;  %v11775_v18 = vshll.u32 %v25655_v9, 16  ;;  %v11779_v37 = vshrl.u32 %v25655_v9, 16  ;;  %v25677_v0 = vld [vmem:[#allocation2 + $0x24] sm:$0xf]  ;;  %v21218_v22 = vld [vmem:[%s26984_s5 + $0x128] sm:$0xff]  }
 0x792   : > { %v11180_v1 = vor.u32 %v11178_v16, %v11177_v6  ;;  %v11182_v57 = vrot.slane %v11177_v6, 4  ;;  %v11768_v50 = vrot.slane %v11766_v5, 4  ;;  %v9156_v52 = vmax.f32 %v9124_v10, 0.0 }
 0x793   : > { %v11759_v23 = vrot.slane %v11758_v40, 4  ;;  %v11771_v59 = vrot.slane %v11769_v43, 5  ;;  %v11777_v53 = vrot.slane %v11775_v18, 5  ;;  %v11785_v27 = vshll.u32 %v11630_v39, 16 }
 0x794   : > { %v11181_v41 = vsel %vm23831_vm1, %v11173_v45, %v11180_v1  ;;  %v11411_v19 = vsel %vm23058_vm12, %v11182_v57, %v11410_v63  ;;  %v10922_v49 = vadd.f32 %v25395_v62, %v9156_v52  ;;  %v11781_v17 = vrot.slane %v11779_v37, 4 }
 0x795   : > { %11409 = vst.msk [vmem:[#allocation2 + $0x70] sm:$0xf] %vm547_vm7, %v11181_v41  ;;  %11412 = vst [vmem:[#allocation2 + $0x74] sm:$0x1] %v11411_v19  ;;  %v11764_v16 = vsel %vm21564_vm6, %v11759_v23, %v11763_v15  ;;  %v11772_v24 = vor.u32 %v11771_v59, %v11768_v50  ;;  %v11787_v45 = vrot.slane %v11785_v27, 5  ;;  %v9089_v44 = vmul.f32 %v25584_v36, %v25481_v20 }
 0x796   : > { %v25679_v33 = vcombine.low %v11754_v56, %v11764_v16  ;;  %v10924_v6 = vadd.f32 %v25421_v47, %v9158_v32  ;;  %v17820_v42 = vpack.c.bf16 %v10922_v49, %v10922_v49  ;;  %v11782_v5 = vor.u32 %v11781_v17, %v11777_v53  ;;  %v25714_v19 = vld [vmem:[#allocation2 + $0x28] sm:$0xf] }
 0x797   : > { %v11773_v15 = vrot.slane %v11772_v24, 4  ;;  %v9087_v62 = vmul.f32 %v25481_v20, %v25593_v25  ;;  %v9127_v56 = vadd.f32 %v25486_v7, %v9089_v44  ;;  %v9092_v36 = vmul.f32 %v25604_v3, %v25481_v20  ;;  %v25702_v3 = vld [vmem:[%s26984_s5 + $0x140] sm:$0xff]  }
 0x798   : > { %27398 = vst [vmem:[#allocation35_spill] sm:$0xff] %v25679_v33  ;;  %19544 = vmatmul.mubr.msk.bf16.vlgmr.msra.gmra.mrb[80].mxu0 %vm1178_vm5, %v25679_v33  ;;  %v17822_v40 = vpack.c.bf16 %v10924_v6, %v10924_v6  ;;  %v11790_v47 = vshrl.u32 %v25677_v0, 16  ;;  %v11201_v32 = vshrl.u32 %v17820_v42, 16  ;;  %v11204_v10 = vshll.u32 %v17820_v42, 16  ;;  %v11420_v24 = vld [vmem:[#allocation2 + $0x84] sm:$0xf] }
 0x799   : > { %v11778_v39 = vsel %vm21564_vm6, %v11773_v15, %v11777_v53  ;;  %v11783_v43 = vrot.slane %v11782_v5, 4  ;;  %19576 = vmatpush3.bf16.msra.mxu0 %v25465_v58  ;;  %v9159_v25 = vmax.f32 %v9127_v56, 0.0  ;;  %v9125_v50 = vadd.f32 %v25486_v7, %v9087_v62  ;;  %v11633_v6 = vld [vmem:[#allocation2 + $0x2c] sm:$0x1]  ;;  %v11427_v15 = vld [vmem:[#allocation2 + $0x90] sm:$0xf] }
 0x79a   : > { %v11218_v1 = vshrl.u32 %v17822_v40, 16  ;;  %v11221_v57 = vshll.u32 %v17822_v40, 16  ;;  %19577 = vmatprep.subr.bf16.mxu0 %v21218_v22  ;;  %v25704_v18 = vrot.slane %v11201_v32, 7  ;;  %v25709_v23 = vadd.f32 %v25486_v7, %v9092_v36 }
 0x79b   : > { %v11788_v63 = vsel %vm21564_vm6, %v11783_v43, %v11787_v45  ;;  %v11792_v58 = vrot.slane %v11790_v47, 4  ;;  %v9157_v37 = vmax.f32 %v9125_v50, 0.0  ;;  %v10925_v41 = vadd.f32 %v25436_v4, %v9159_v25  ;;  %v25730_v47 = vld [vmem:[#allocation2 + $0x30] sm:$0xf] }
 0x79c   : > { %v25711_v52 = vcombine.low %v11778_v39, %v11788_v63  ;;  %v11220_v59 = vrot.slane %v11218_v1, 7  ;;  %v11206_v53 = vor.u32 %v11204_v10, %v25704_v18  ;;  %v11207_v27 = vrot.slane %v25704_v18, 4 }
 0x79d   : > { %v9162_v16 = vmax.f32 %v25709_v23, 0.0  ;;  %v11793_v49 = vshll.u32 %v25677_v0, 16  ;;  %19578 = vmatpush3.bf16.msra.mxu0 %v21218_v22  ;;  %v10923_v44 = vadd.f32 %v25417_v38, %v9157_v37  ;;  %v17823_v4 = vpack.c.bf16 %v10925_v41, %v10925_v41 }
 0x79e   : > { %27399 = vst [vmem:[#allocation36_spill] sm:$0xff] %v25711_v52  ;;  %19547 = vmatprep.mubr.msk.bf16.mxu0 %vm1178_vm5, %v25711_v52  ;;  %v11223_v17 = vor.u32 %v11221_v57, %v11220_v59  ;;  %v11224_v45 = vrot.slane %v11220_v59, 4  ;;  %19611 = vmatprep.subr.bf16.mxu0 %v25702_v3  ;;  %v11421_v42 = vsel %vm23051_vm11, %v11206_v53, %v11420_v24  ;;  %v11799_v62 = vshll.u32 %v25714_v19, 16 }
 0x79f   : > { %v11795_v5 = vrot.slane %v11793_v49, 5  ;;  %v11803_v22 = vshrl.u32 %v25714_v19, 16  ;;  %11422 = vst [vmem:[#allocation2 + $0x84] sm:$0xf] %v11421_v42  ;;  %v17821_v40 = vpack.c.bf16 %v10923_v44, %v10923_v44  ;;  %v11226_v36 = vshrl.u32 %v17823_v4, 16 }
 0x7a0   : > { %v11428_v56 = vsel %vm23051_vm11, %v11223_v17, %v11427_v15  ;;  %v11229_v38 = vshll.u32 %v17823_v4, 16  ;;  %v11801_v10 = vrot.slane %v11799_v62, 5  ;;  %v11809_v43 = vshll.u32 %v11633_v6, 16  ;;  %v11431_v17 = vld [vmem:[#allocation2 + $0x98] sm:$0x1] }
 0x7a1   : > { %11429 = vst [vmem:[#allocation2 + $0x90] sm:$0xf] %v11428_v56  ;;  %v11796_v32 = vor.u32 %v11795_v5, %v11792_v58  ;;  %v11805_v39 = vrot.slane %v11803_v22, 4  ;;  %v11209_v25 = vshrl.u32 %v17821_v40, 16  ;;  %v11212_v1 = vshll.u32 %v17821_v40, 16 }
 0x7a2   : > { %v11228_v57 = vrot.slane %v11226_v36, 7  ;;  %v9090_v50 = vmul.f32 %v25481_v20, %v25608_v46  ;;  %v11811_v59 = vrot.slane %v11809_v43, 5  ;;  %v11814_v37 = vshrl.u32 %v25730_v47, 16  ;;  %v25736_v58 = vld [vmem:[#allocation2 + $0x34] sm:$0xf] }
 0x7a3   : > { %v11797_v18 = vrot.slane %v11796_v32, 4  ;;  %v11806_v63 = vor.u32 %v11805_v39, %v11801_v10  ;;  %v11211_v41 = vrot.slane %v11209_v25, 7  ;;  %v11817_v46 = vshll.u32 %v25730_v47, 16  ;;  %v11636_v22 = vld [vmem:[#allocation2 + $0x38] sm:$0x1] }
 0x7a4   : > { %v11231_v53 = vor.u32 %v11229_v38, %v11228_v57  ;;  %v11233_v49 = vrot.slane %v11228_v57, 4  ;;  %v9128_v24 = vadd.f32 %v25486_v7, %v9090_v50  ;;  %v11816_v6 = vrot.slane %v11814_v37, 4  ;;  %v11424_v56 = vld [vmem:[#allocation2 + $0x8c] sm:$0x1] }
 0x7a5   : > { %v11802_v44 = vsel %vm21564_vm6, %v11797_v18, %v11801_v10  ;;  %v11807_v4 = vrot.slane %v11806_v63, 4  ;;  %v11214_v42 = vor.u32 %v11212_v1, %v11211_v41  ;;  %v11216_v15 = vrot.slane %v11211_v41, 4 }
 0x7a6   : > { %v11232_v5 = vsel %vm23831_vm1, %v11224_v45, %v11231_v53  ;;  %v11432_v62 = vsel %vm23058_vm12, %v11233_v49, %v11431_v17  ;;  %v9160_v36 = vmax.f32 %v9128_v24, 0.0  ;;  %v11819_v38 = vrot.slane %v11817_v46, 5 }
 0x7a7   : > { %11430 = vst.msk [vmem:[#allocation2 + $0x94] sm:$0xf] %vm547_vm7, %v11232_v5  ;;  %11433 = vst [vmem:[#allocation2 + $0x98] sm:$0x1] %v11432_v62  ;;  %v11812_v40 = vsel %vm21564_vm6, %v11807_v4, %v11811_v59  ;;  %v11823_v32 = vshll.u32 %v25736_v58, 16  ;;  %v11215_v10 = vsel %vm23831_vm1, %v11207_v27, %v11214_v42  ;;  %v11425_v45 = vsel %vm23058_vm12, %v11216_v15, %v11424_v56 }
 0x7a8   : > { %v25753_v39 = vcombine.low %v11802_v44, %v11812_v40  ;;  %v11827_v43 = vshrl.u32 %v25736_v58, 16  ;;  %11423 = vst.msk [vmem:[#allocation2 + $0x88] sm:$0xf] %vm547_vm7, %v11215_v10  ;;  %11426 = vst [vmem:[#allocation2 + $0x8c] sm:$0x1] %v11425_v45  ;;  %v10926_v25 = vadd.f32 %v25430_v51, %v9160_v36  ;;  %v11820_v1 = vor.u32 %v11819_v38, %v11816_v6 }
 0x7a9   : > { %v11825_v57 = vrot.slane %v11823_v32, 5  ;;  %v11833_v50 = vshll.u32 %v11636_v22, 16  ;;  %v9093_v27 = vmul.f32 %v25611_v55, %v25481_v20  ;;  %v10928_v63 = vadd.f32 %v25451_v8, %v9162_v16  ;;  %v25771_v55 = vld [vmem:[#allocation2 + $0x3c] sm:$0xf] }
 0x7aa   : > { %27400 = vst [vmem:[#allocation15_spill] sm:$0xff] %v25753_v39  ;;  %19548 = vmatmul.mubr.msk.bf16.gmra.mrb[84].mxu0 %vm1178_vm5, %v25753_v39  ;;  %v11829_v18 = vrot.slane %v11827_v43, 4  ;;  %v9091_v59 = vmul.f32 %v25481_v20, %v25613_v54  ;;  %v17824_v37 = vpack.c.bf16 %v10926_v25, %v10926_v25  ;;  %v11821_v41 = vrot.slane %v11820_v1, 4  ;;  %v11434_v10 = vld [vmem:[#allocation2 + $0x9c] sm:$0xf] }
 0x7ab   : > { %v11835_v51 = vrot.slane %v11833_v50, 5  ;;  %v9096_v53 = vmul.f32 %v25630_v21, %v25481_v20  ;;  %v9131_v24 = vadd.f32 %v25486_v7, %v9093_v27  ;;  %v17826_v17 = vpack.c.bf16 %v10928_v63, %v10928_v63 }
 0x7ac   : > { %v11830_v49 = vor.u32 %v11829_v18, %v11825_v57  ;;  %v9129_v44 = vadd.f32 %v25486_v7, %v9091_v59  ;;  %v11235_v23 = vshrl.u32 %v17824_v37, 16  ;;  %v11238_v4 = vshll.u32 %v17824_v37, 16 }
 0x7ad   : > { %v11826_v8 = vsel %vm21564_vm6, %v11821_v41, %v11825_v57  ;;  %v9134_v54 = vadd.f32 %v25486_v7, %v9096_v53  ;;  %v9163_v6 = vmax.f32 %v9131_v24, 0.0  ;;  %v11252_v46 = vshrl.u32 %v17826_v17, 16  ;;  %v25785_v57 = vld [vmem:[#allocation2 + $0x40] sm:$0xf] }
 0x7ae   : > { %v11831_v16 = vrot.slane %v11830_v49, 4  ;;  %v11255_v42 = vshll.u32 %v17826_v17, 16  ;;  %v11237_v20 = vrot.slane %v11235_v23, 7  ;;  %v9161_v21 = vmax.f32 %v9129_v44, 0.0 }
 0x7af   : > { %v9166_v15 = vmax.f32 %v9134_v54, 0.0  ;;  %v11838_v5 = vshrl.u32 %v25771_v55, 16  ;;  %v11254_v22 = vrot.slane %v11252_v46, 7  ;;  %v10929_v56 = vadd.f32 %v25472_v11, %v9163_v6  ;;  %v11441_v11 = vld [vmem:[#allocation2 + $0xa8] sm:$0xf] }
 0x7b0   : > { %v11836_v62 = vsel %vm21564_vm6, %v11831_v16, %v11835_v51  ;;  %v11841_v40 = vshll.u32 %v25771_v55, 16  ;;  %v11240_v36 = vor.u32 %v11238_v4, %v11237_v20  ;;  %v11241_v38 = vrot.slane %v11237_v20, 4  ;;  %v11445_v20 = vld [vmem:[#allocation2 + $0xb0] sm:$0x1] }
 0x7b1   : > { %v25781_v7 = vcombine.low %v11826_v8, %v11836_v62  ;;  %v10927_v32 = vadd.f32 %v25449_v14, %v9161_v21  ;;  %v11257_v45 = vor.u32 %v11255_v42, %v11254_v22  ;;  %v11258_v43 = vrot.slane %v11254_v22, 4 }
 0x7b2   : > { %v17827_v25 = vpack.c.bf16 %v10929_v56, %v10929_v56  ;;  %v10932_v1 = vadd.f32 %v25445_v30, %v9166_v15  ;;  %v11435_v50 = vsel %vm23051_vm11, %v11240_v36, %v11434_v10  ;;  %v11840_v27 = vrot.slane %v11838_v5, 4  ;;  %v25793_v30 = vld [vmem:[#allocation2 + $0x44] sm:$0x1]  ;;  %v25804_v36 = vld [vmem:[#allocation2 + $0x4c] sm:$0xf] }
 0x7b3   : > { %27401 = vst [vmem:[#allocation37_spill] sm:$0xff] %v25781_v7  ;;  %19551 = vmatprep.mubr.msk.bf16.mxu0 %vm1178_vm5, %v25781_v7  ;;  %v17825_v18 = vpack.c.bf16 %v10927_v32, %v10927_v32  ;;  %v11843_v63 = vrot.slane %v11841_v40, 5  ;;  %11436 = vst [vmem:[#allocation2 + $0x9c] sm:$0xf] %v11435_v50  ;;  %v11442_v14 = vsel %vm23051_vm11, %v11257_v45, %v11441_v11  ;;  %v11847_v24 = vshll.u32 %v25785_v57, 16 }
 0x7b4   : > { %v11260_v59 = vshrl.u32 %v17827_v25, 16  ;;  %v11263_v37 = vshll.u32 %v17827_v25, 16  ;;  %v17830_v41 = vpack.c.bf16 %v10932_v1, %v10932_v1  ;;  %27402 = vst [vmem:[#allocation16_spill] sm:$0xff] %v25793_v30  ;;  %11443 = vst [vmem:[#allocation2 + $0xa8] sm:$0xf] %v11442_v14  ;;  %v11851_v4 = vshrl.u32 %v25785_v57, 16 }
 0x7b5   : > { %v11243_v51 = vshrl.u32 %v17825_v18, 16  ;;  %v11246_v53 = vshll.u32 %v17825_v18, 16  ;;  %v11844_v49 = vor.u32 %v11843_v63, %v11840_v27  ;;  %v11849_v16 = vrot.slane %v11847_v24, 5  ;;  %v25802_v40 = vld [vmem:[#allocation2 + $0x48] sm:$0xf] }
 0x7b6   : > { %v11262_v17 = vrot.slane %v11260_v59, 7  ;;  %v11286_v44 = vshrl.u32 %v17830_v41, 16  ;;  %v11289_v23 = vshll.u32 %v17830_v41, 16  ;;  %v11857_v6 = vshll.u32 %v25793_v30, 16  ;;  %v11438_v32 = vld [vmem:[#allocation2 + $0xa4] sm:$0x1] }
 0x7b7   : > { %v11245_v8 = vrot.slane %v11243_v51, 7  ;;  %v11845_v54 = vrot.slane %v11844_v49, 4  ;;  %v11853_v15 = vrot.slane %v11851_v4, 4  ;;  %v25812_v50 = vld [vmem:[#allocation2 + $0x50] sm:$0x1]  ;;  %v11862_v59 = vshrl.u32 %v25802_v40, 16 }
 0x7b8   : > { %v11265_v46 = vor.u32 %v11263_v37, %v11262_v17  ;;  %v11267_v42 = vrot.slane %v11262_v17, 4  ;;  %v25798_v21 = vrot.slane %v11286_v44, 7  ;;  %v11859_v56 = vrot.slane %v11857_v6, 5  ;;  %v11455_v27 = vld [vmem:[#allocation2 + $0xc0] sm:$0xf] }
 0x7b9   : > { %v11248_v5 = vor.u32 %v11246_v53, %v11245_v8  ;;  %v11250_v62 = vrot.slane %v11245_v8, 4  ;;  %v11850_v22 = vsel %vm21564_vm6, %v11845_v54, %v11849_v16  ;;  %v21269_v63 = vld [vmem:[%s26985_s6 + $0x1] ss:$0 sm:$0xff]  ;;  %v11865_v37 = vshll.u32 %v25802_v40, 16  ;;  %v25835_v8 = vld [vmem:[#allocation2 + $0x54] sm:$0xf] }
 0x7ba   : > { %v11266_v10 = vsel %vm23831_vm1, %v11258_v43, %v11265_v46  ;;  %v11446_v45 = vsel %vm23058_vm12, %v11267_v42, %v11445_v20  ;;  %v11291_v25 = vor.u32 %v11289_v23, %v25798_v21  ;;  %v11292_v1 = vrot.slane %v25798_v21, 4  ;;  %v21270_v53 = vld [vmem:[%s26986_s7 + $0x1] ss:$0 sm:$0xff]  ;;  %v25839_v42 = vld [vmem:[#allocation2 + $0x58] sm:$0xf] }
 0x7bb   : > { %v11249_v11 = vsel %vm23831_vm1, %v11241_v38, %v11248_v5  ;;  %v11439_v18 = vsel %vm23058_vm12, %v11250_v62, %v11438_v32  ;;  %11444 = vst.msk [vmem:[#allocation2 + $0xac] sm:$0xf] %vm547_vm7, %v11266_v10  ;;  %11447 = vst [vmem:[#allocation2 + $0xb0] sm:$0x1] %v11446_v45  ;;  %v11854_v43 = vor.u32 %v11853_v15, %v11849_v16  ;;  %v11871_v41 = vshll.u32 %v25804_v36, 16 }
 0x7bc   : > { %v9094_v14 = vmul.f32 %v21269_v63, %v25637_v31  ;;  %11437 = vst.msk [vmem:[#allocation2 + $0xa0] sm:$0xf] %vm547_vm7, %v11249_v11  ;;  %11440 = vst [vmem:[#allocation2 + $0xa4] sm:$0x1] %v11439_v18  ;;  %v11456_v38 = vsel %vm23051_vm11, %v11291_v25, %v11455_v27  ;;  %v11875_v31 = vshrl.u32 %v25804_v36, 16  ;;  %v11881_v24 = vshll.u32 %v25812_v50, 16 }
 0x7bd   : > { %11457 = vst [vmem:[#allocation2 + $0xc0] sm:$0xf] %v11456_v38  ;;  %v11855_v51 = vrot.slane %v11854_v43, 4  ;;  %v11864_v17 = vrot.slane %v11862_v59, 4  ;;  %v11867_v44 = vrot.slane %v11865_v37, 5  ;;  %v11873_v23 = vrot.slane %v11871_v41, 5 }
 0x7be   : > { %v9132_v49 = vadd.f32 %v21270_v53, %v9094_v14  ;;  %v9097_v4 = vmul.f32 %v21269_v63, %v25639_v28  ;;  %v11877_v6 = vrot.slane %v11875_v31, 4  ;;  %v11883_v46 = vrot.slane %v11881_v24, 5  ;;  %v25853_v38 = vld [vmem:[#allocation2 + $0x5c] sm:$0x1]  ;;  %v25855_v37 = vld [vmem:[#allocation2 + $0x60] sm:$0xf] }
 0x7bf   : > { %v11860_v54 = vsel %vm21564_vm6, %v11855_v51, %v11859_v56  ;;  %v11868_v15 = vor.u32 %v11867_v44, %v11864_v17  ;;  %v9095_v62 = vmul.f32 %v21269_v63, %v25643_v2  ;;  %v11886_v28 = vshrl.u32 %v25835_v8, 16 }
 0x7c0   : > { %v9164_v16 = vmax.f32 %v9132_v49, 0.0  ;;  %v25841_v20 = vcombine.low %v11850_v22, %v11860_v54  ;;  %v9135_v5 = vadd.f32 %v21270_v53, %v9097_v4  ;;  %v11878_v10 = vor.u32 %v11877_v6, %v11873_v23 }
 0x7c1   : > { %v11889_v45 = vshll.u32 %v25835_v8, 16  ;;  %v11869_v56 = vrot.slane %v11868_v15, 4  ;;  %v9133_v11 = vadd.f32 %v21270_v53, %v9095_v62  ;;  %v11895_v22 = vshll.u32 %v25839_v42, 16 }
 0x7c2   : > { %27403 = vst [vmem:[#allocation18_spill] sm:$0xff] %v25841_v20  ;;  %v10930_v32 = vadd.f32 %v25453_v35, %v9164_v16  ;;  %19552 = vmatmul.mubr.msk.bf16.gmra.mrb[88].mxu0 %vm1178_vm5, %v25841_v20  ;;  %v9167_v25 = vmax.f32 %v9135_v5, 0.0  ;;  %v11879_v27 = vrot.slane %v11878_v10, 4  ;;  %v11888_v43 = vrot.slane %v11886_v28, 4  ;;  %v25867_v5 = vld [vmem:[#allocation2 + $0x64] sm:$0xf] }
 0x7c3   : > { %v11891_v14 = vrot.slane %v11889_v45, 5  ;;  %v11874_v35 = vsel %vm21564_vm6, %v11869_v56, %v11873_v23  ;;  %v9165_v63 = vmax.f32 %v9133_v11, 0.0  ;;  %v11897_v59 = vrot.slane %v11895_v22, 5  ;;  %v25871_v22 = vld [vmem:[#allocation2 + $0x68] sm:$0x1] }
 0x7c4   : > { %v17828_v18 = vpack.c.bf16 %v10930_v32, %v10930_v32  ;;  %v10933_v2 = vadd.f32 %v25460_v61, %v9167_v25  ;;  %v11884_v53 = vsel %vm21564_vm6, %v11879_v27, %v11883_v46  ;;  %v11899_v44 = vshrl.u32 %v25839_v42, 16 }
 0x7c5   : > { %v11892_v49 = vor.u32 %v11891_v14, %v11888_v43  ;;  %v25859_v31 = vcombine.low %v11874_v35, %v11884_v53  ;;  %v10931_v17 = vadd.f32 %v25474_v48, %v9165_v63  ;;  %v11905_v4 = vshll.u32 %v25853_v38, 16  ;;  %v11448_v48 = vld [vmem:[#allocation2 + $0xb4] sm:$0xf]  ;;  %v11459_v63 = vld [vmem:[#allocation2 + $0xc8] sm:$0x1] }
 0x7c6   : > { %v11269_v41 = vshrl.u32 %v17828_v18, 16  ;;  %v11272_v51 = vshll.u32 %v17828_v18, 16  ;;  %v17831_v24 = vpack.c.bf16 %v10933_v2, %v10933_v2  ;;  %v11910_v54 = vshrl.u32 %v25855_v37, 16 }
 0x7c7   : > { %27404 = vst [vmem:[#allocation10_spill] sm:$0xff] %v25859_v31  ;;  %v11893_v23 = vrot.slane %v11892_v49, 4  ;;  %19555 = vmatprep.mubr.msk.bf16.mxu0 %vm1178_vm5, %v25859_v31  ;;  %v17829_v46 = vpack.c.bf16 %v10931_v17, %v10931_v17  ;;  %v11901_v15 = vrot.slane %v11899_v44, 4  ;;  %v11907_v28 = vrot.slane %v11905_v4, 5  ;;  %v25879_v17 = vld [vmem:[#allocation2 + $0x6c] sm:$0xf] }
 0x7c8   : > { %v11271_v61 = vrot.slane %v11269_v41, 7  ;;  %v11294_v16 = vshrl.u32 %v17831_v24, 16  ;;  %v11297_v6 = vshll.u32 %v17831_v24, 16  ;;  %v11912_v27 = vrot.slane %v11910_v54, 4  ;;  %v11452_v4 = vld [vmem:[#allocation2 + $0xbc] sm:$0x1] }
 0x7c9   : > { %v11898_v10 = vsel %vm21564_vm6, %v11893_v23, %v11897_v59  ;;  %v11277_v56 = vshrl.u32 %v17829_v46, 16  ;;  %v11280_v25 = vshll.u32 %v17829_v46, 16  ;;  %v11902_v11 = vor.u32 %v11901_v15, %v11897_v59  ;;  %v25887_v54 = vld [vmem:[#allocation2 + $0x70] sm:$0xf]  ;;  %v25892_v15 = vld [vmem:[#allocation2 + $0x74] sm:$0x1] }
 0x7ca   : > { %v11274_v62 = vor.u32 %v11272_v51, %v11271_v61  ;;  %v11275_v32 = vrot.slane %v11271_v61, 4  ;;  %v11296_v45 = vrot.slane %v11294_v16, 7  ;;  %v11913_v43 = vshll.u32 %v25855_v37, 16 }
 0x7cb   : > { %v11919_v14 = vshll.u32 %v25867_v5, 16  ;;  %v11279_v41 = vrot.slane %v11277_v56, 7  ;;  %v11903_v51 = vrot.slane %v11902_v11, 4  ;;  %v11923_v59 = vshrl.u32 %v25867_v5, 16 }
 0x7cc   : > { %v11449_v18 = vsel %vm23051_vm11, %v11274_v62, %v11448_v48  ;;  %v11299_v35 = vor.u32 %v11297_v6, %v11296_v45  ;;  %v11301_v2 = vrot.slane %v11296_v45, 4  ;;  %v11915_v53 = vrot.slane %v11913_v43, 5 }
 0x7cd   : > { %11450 = vst [vmem:[#allocation2 + $0xb4] sm:$0xf] %v11449_v18  ;;  %v11921_v49 = vrot.slane %v11919_v14, 5  ;;  %v11929_v24 = vshll.u32 %v25871_v22, 16  ;;  %v11282_v61 = vor.u32 %v11280_v25, %v11279_v41  ;;  %v11284_v23 = vrot.slane %v11279_v41, 4 }
 0x7ce   : > { %v11300_v12 = vsel %vm23831_vm1, %v11292_v1, %v11299_v35  ;;  %v11460_v44 = vsel %vm23058_vm12, %v11301_v2, %v11459_v63  ;;  %v11908_v16 = vsel %vm21564_vm6, %v11903_v51, %v11907_v28  ;;  %v11916_v6 = vor.u32 %v11915_v53, %v11912_v27  ;;  %v25894_v1 = vld [vmem:[#allocation2 + $0x78] sm:$0xf]  ;;  %v25915_v63 = vld [vmem:[#allocation2 + $0x80] sm:$0x1] }
 0x7cf   : > { %11458 = vst.msk [vmem:[#allocation2 + $0xc4] sm:$0xf] %vm547_vm7, %v11300_v12  ;;  %11461 = vst [vmem:[#allocation2 + $0xc8] sm:$0x1] %v11460_v44  ;;  %v11925_v46 = vrot.slane %v11923_v59, 4  ;;  %v11931_v21 = vrot.slane %v11929_v24, 5  ;;  %v11283_v62 = vsel %vm23831_vm1, %v11275_v32, %v11282_v61  ;;  %v11453_v48 = vsel %vm23058_vm12, %v11284_v23, %v11452_v4 }
 0x7d0   : > { %v25900_v45 = vcombine.low %v11898_v10, %v11908_v16  ;;  %v11934_v56 = vshrl.u32 %v25879_v17, 16  ;;  %11451 = vst.msk [vmem:[#allocation2 + $0xb8] sm:$0xf] %vm547_vm7, %v11283_v62  ;;  %11454 = vst [vmem:[#allocation2 + $0xbc] sm:$0x1] %v11453_v48  ;;  %v11917_v28 = vrot.slane %v11916_v6, 4 }
 0x7d1   : > { %v11926_v25 = vor.u32 %v11925_v46, %v11921_v49  ;;  %v11937_v11 = vshll.u32 %v25879_v17, 16  ;;  %v11943_v18 = vshll.u32 %v25887_v54, 16  ;;  %v11947_v26 = vshrl.u32 %v25887_v54, 16  ;;  %v25910_v10 = vld [vmem:[#allocation2 + $0x7c] sm:$0xf]  ;;  %v21231_v62 = vld [vmem:[%s26990_s11 + $0x20] sm:$0xff]  }
 0x7d2   : > { %27405 = vst [vmem:[#allocation11_spill] sm:$0xff] %v25900_v45  ;;  %19556 = vmatmul.mubr.msk.bf16.gmra.mrb[92].mxu0 %vm1178_vm5, %v25900_v45  ;;  %v11936_v13 = vrot.slane %v11934_v56, 4  ;;  %v11953_v32 = vshll.u32 %v25892_v15, 16  ;;  %v11958_v27 = vshrl.u32 %v25894_v1, 16  ;;  %v11922_v43 = vsel %vm21564_vm6, %v11917_v28, %v11921_v49  ;;  %v25918_v24 = vld [vmem:[#allocation2 + $0x84] sm:$0xf]  ;;  %19971 = vmatprep.subr.bf16.mxu1 %v21231_v62 }
 0x7d3   : > { %v11927_v14 = vrot.slane %v11926_v25, 4  ;;  %v11939_v35 = vrot.slane %v11937_v11, 5  ;;  %v11945_v2 = vrot.slane %v11943_v18, 5  ;;  %v11949_v41 = vrot.slane %v11947_v26, 4  ;;  %v25927_v46 = vld [vmem:[#allocation2 + $0x88] sm:$0xf]  ;;  %19972 = vmatpush3.bf16.msra.mxu1 %v21231_v62 }
 0x7d4   : > { %v11955_v51 = vrot.slane %v11953_v32, 5  ;;  %v11960_v53 = vrot.slane %v11958_v27, 4  ;;  %v11961_v59 = vshll.u32 %v25894_v1, 16  ;;  %v11967_v61 = vshll.u32 %v25910_v10, 16  ;;  %v25987_v45 = vld [vmem:[#allocation2 + $0xac] sm:$0xf] }
 0x7d5   : > { %v11932_v12 = vsel %vm21564_vm6, %v11927_v14, %v11931_v21  ;;  %v11940_v44 = vor.u32 %v11939_v35, %v11936_v13  ;;  %v11971_v49 = vshrl.u32 %v25910_v10, 16  ;;  %v11950_v4 = vor.u32 %v11949_v41, %v11945_v2  ;;  %v25935_v13 = vld [vmem:[#allocation2 + $0x8c] sm:$0x1]  ;;  %v25941_v35 = vld [vmem:[#allocation2 + $0x90] sm:$0xf] }
 0x7d6   : > { %v25924_v23 = vcombine.low %v11922_v43, %v11932_v12  ;;  %v11963_v16 = vrot.slane %v11961_v59, 5  ;;  %v11977_v6 = vshll.u32 %v25915_v63, 16  ;;  %v11969_v56 = vrot.slane %v11967_v61, 5 }
 0x7d7   : > { %v11941_v48 = vrot.slane %v11940_v44, 4  ;;  %v11973_v21 = vrot.slane %v11971_v49, 4  ;;  %v11982_v28 = vshrl.u32 %v25918_v24, 16  ;;  %v11951_v25 = vrot.slane %v11950_v4, 4  ;;  %v25946_v44 = vld [vmem:[#allocation2 + $0x94] sm:$0xf] }
 0x7d8   : > { %27406 = vst [vmem:[#allocation39_spill] sm:$0xff] %v25924_v23  ;;  %19559 = vmatprep.mubr.msk.bf16.mxu0 %vm1178_vm5, %v25924_v23  ;;  %v11964_v11 = vor.u32 %v11963_v16, %v11960_v53  ;;  %v11979_v18 = vrot.slane %v11977_v6, 5  ;;  %v11985_v26 = vshll.u32 %v25918_v24, 16  ;;  %v11991_v14 = vshll.u32 %v25927_v46, 16 }
 0x7d9   : > { %v11946_v32 = vsel %vm21564_vm6, %v11941_v48, %v11945_v2  ;;  %v11974_v27 = vor.u32 %v11973_v21, %v11969_v56  ;;  %v11984_v43 = vrot.slane %v11982_v28, 4  ;;  %v11956_v41 = vsel %vm21564_vm6, %v11951_v25, %v11955_v51  ;;  %v25958_v21 = vld [vmem:[#allocation2 + $0x98] sm:$0x1] }
 0x7da   : > { %v11965_v53 = vrot.slane %v11964_v11, 4  ;;  %v11987_v59 = vrot.slane %v11985_v26, 5  ;;  %v11995_v12 = vshrl.u32 %v25927_v46, 16  ;;  %v25948_v61 = vcombine.low %v11946_v32, %v11956_v41  ;;  %v25962_v11 = vld [vmem:[#allocation2 + $0x9c] sm:$0xf] }
 0x7db   : > { %v11975_v49 = vrot.slane %v11974_v27, 4  ;;  %v11993_v2 = vrot.slane %v11991_v14, 5  ;;  %v12001_v4 = vshll.u32 %v25935_v13, 16  ;;  %v12006_v48 = vshrl.u32 %v25941_v35, 16  ;;  %v25966_v14 = vld [vmem:[#allocation2 + $0xa0] sm:$0xf] }
 0x7dc   : > { %27407 = vst [vmem:[#allocation38_spill] sm:$0xff] %v25948_v61  ;;  %v11988_v16 = vor.u32 %v11987_v59, %v11984_v43  ;;  %v11997_v6 = vrot.slane %v11995_v12, 4  ;;  %19560 = vmatmul.mubr.msk.bf16.gmra.mrb[96].mxu0 %vm1178_vm5, %v25948_v61  ;;  %v11970_v51 = vsel %vm21564_vm6, %v11965_v53, %v11969_v56  ;;  %v12009_v28 = vshll.u32 %v25941_v35, 16  ;;  %v21232_v56 = vld [vmem:[%s26990_s11 + $0x28] sm:$0xff]  }
 0x7dd   : > { %v11980_v62 = vsel %vm21564_vm6, %v11975_v49, %v11979_v18  ;;  %v12015_v25 = vshll.u32 %v25946_v44, 16  ;;  %v12008_v43 = vrot.slane %v12006_v48, 4  ;;  %v12003_v18 = vrot.slane %v12001_v4, 5  ;;  %19973 = vmatprep.subr.bf16.mxu1 %v21232_v56 }
 0x7de   : > { %v25964_v26 = vcombine.low %v11970_v51, %v11980_v62  ;;  %v11989_v32 = vrot.slane %v11988_v16, 4  ;;  %v11998_v27 = vor.u32 %v11997_v6, %v11993_v2  ;;  %v12011_v41 = vrot.slane %v12009_v28, 5  ;;  %v25979_v62 = vld [vmem:[#allocation2 + $0xa4] sm:$0x1]  ;;  %19974 = vmatpush3.bf16.msra.mxu1 %v21232_v56 }
 0x7df   : > { %v12017_v53 = vrot.slane %v12015_v25, 5  ;;  %v12019_v59 = vshrl.u32 %v25946_v44, 16  ;;  %v12025_v49 = vshll.u32 %v25958_v21, 16  ;;  %v12030_v16 = vshrl.u32 %v25962_v11, 16  ;;  %v25982_v25 = vld [vmem:[#allocation2 + $0xa8] sm:$0xf] }
 0x7e0   : > { %27408 = vst [vmem:[#allocation40_spill] sm:$0xff] %v25964_v26  ;;  %19563 = vmatprep.mubr.msk.bf16.mxu0 %vm1178_vm5, %v25964_v26  ;;  %v11999_v12 = vrot.slane %v11998_v27, 4  ;;  %v12033_v6 = vshll.u32 %v25962_v11, 16  ;;  %v11994_v48 = vsel %vm21564_vm6, %v11989_v32, %v11993_v2  ;;  %v12012_v51 = vor.u32 %v12011_v41, %v12008_v43 }
 0x7e1   : > { %v12021_v4 = vrot.slane %v12019_v59, 4  ;;  %v12039_v28 = vshll.u32 %v25966_v14, 16  ;;  %v12032_v26 = vrot.slane %v12030_v16, 4  ;;  %v12043_v23 = vshrl.u32 %v25966_v14, 16  ;;  %v25996_v16 = vld [vmem:[#allocation2 + $0xb0] sm:$0x1] }
 0x7e2   : > { %v12004_v27 = vsel %vm21564_vm6, %v11999_v12, %v12003_v18  ;;  %v12035_v61 = vrot.slane %v12033_v6, 5  ;;  %v27409_v31 = vmov 0.0   ;;  %v12013_v32 = vrot.slane %v12012_v51, 4 }
 0x7e3   : > { %19983 = vmatprep.subr.bf16.mxu1 %v27409_v31  ;;  %v25990_v2 = vcombine.low %v11994_v48, %v12004_v27  ;;  %v12022_v43 = vor.u32 %v12021_v4, %v12017_v53  ;;  %v12041_v41 = vrot.slane %v12039_v28, 5  ;;  %v12045_v20 = vrot.slane %v12043_v23, 4  ;;  %v26002_v4 = vld [vmem:[#allocation2 + $0xb4] sm:$0xf] }
 0x7e4   : > { %v12036_v59 = vor.u32 %v12035_v61, %v12032_v26  ;;  %v12049_v56 = vshll.u32 %v25979_v62, 16  ;;  %v12054_v7 = vshrl.u32 %v25982_v25, 16  ;;  %v12027_v12 = vrot.slane %v12025_v49, 5 }
 0x7e5   : > { %27410 = vst [vmem:[#allocation21_spill] sm:$0xff] %v25990_v2  ;;  %19564 = vmatmul.mubr.msk.bf16.gmra.mrb[100].mxu0 %vm1178_vm5, %v25990_v2  ;;  %v12023_v18 = vrot.slane %v12022_v43, 4  ;;  %v12057_v6 = vshll.u32 %v25982_v25, 16  ;;  %v12063_v48 = vshll.u32 %v25987_v45, 16  ;;  %v12018_v51 = vsel %vm21564_vm6, %v12013_v32, %v12017_v53  ;;  %v26007_v2 = vld [vmem:[#allocation2 + $0xb8] sm:$0xf] }
 0x7e6   : > { %v12037_v61 = vrot.slane %v12036_v59, 4  ;;  %v12046_v23 = vor.u32 %v12045_v20, %v12041_v41  ;;  %v12056_v26 = vrot.slane %v12054_v7, 4  ;;  %v12067_v49 = vshrl.u32 %v25987_v45, 16  ;;  %v26012_v7 = vld [vmem:[#allocation2 + $0xbc] sm:$0x1] }
 0x7e7   : > { %v12028_v28 = vsel %vm21564_vm6, %v12023_v18, %v12027_v12  ;;  %v12059_v27 = vrot.slane %v12057_v6, 5  ;;  %v12065_v43 = vrot.slane %v12063_v48, 5  ;;  %v12051_v33 = vrot.slane %v12049_v56, 5 }
 0x7e8   : > { %v26009_v39 = vcombine.low %v12018_v51, %v12028_v28  ;;  %v12047_v52 = vrot.slane %v12046_v23, 4  ;;  %v12073_v53 = vshll.u32 %v25996_v16, 16  ;;  %v12069_v20 = vrot.slane %v12067_v49, 4 }
 0x7e9   : > { %v12060_v32 = vor.u32 %v12059_v27, %v12056_v26  ;;  %v12078_v59 = vshrl.u32 %v26002_v4, 16  ;;  %v12081_v18 = vshll.u32 %v26002_v4, 16  ;;  %v12042_v12 = vsel %vm21564_vm6, %v12037_v61, %v12041_v41 }
 0x7ea   : > { %27411 = vst [vmem:[#allocation22_spill] sm:$0xff] %v26009_v39  ;;  %19567 = vmatprep.mubr.msk.bf16.mxu0 %vm1178_vm5, %v26009_v39  ;;  %v12052_v6 = vsel %vm21564_vm6, %v12047_v52, %v12051_v33  ;;  %v12087_v56 = vshll.u32 %v26007_v2, 16  ;;  %v12091_v48 = vshrl.u32 %v26007_v2, 16  ;;  %v12070_v26 = vor.u32 %v12069_v20, %v12065_v43  ;;  %v26033_v20 = vld [vmem:[#allocation2] sm:$0xf] }
 0x7eb   : > { %v26024_v51 = vcombine.low %v12042_v12, %v12052_v6  ;;  %v12061_v23 = vrot.slane %v12060_v32, 4  ;;  %v12080_v28 = vrot.slane %v12078_v59, 4  ;;  %v12083_v27 = vrot.slane %v12081_v18, 5  ;;  %v26035_v59 = vld [vmem:[#allocation2 + $0x4] sm:$0xf] }
 0x7ec   : > { %v12089_v49 = vrot.slane %v12087_v56, 5  ;;  %v12093_v30 = vrot.slane %v12091_v48, 4  ;;  %v12097_v39 = vshll.u32 %v26012_v7, 16  ;;  %v12071_v41 = vrot.slane %v12070_v26, 4 }
 0x7ed   : > { %19568 = vmatmul.mubr.msk.bf16.gmra.mrb[104].mxu0 %vm1178_vm5, %v26024_v51  ;;  %v12075_v61 = vrot.slane %v12073_v53, 5  ;;  %v12084_v33 = vor.u32 %v12083_v27, %v12080_v28  ;;  %v12066_v31 = vsel %vm21564_vm6, %v12061_v23, %v12065_v43  ;;  %v17402_v18 = vcombine.low %v26033_v20, %v26035_v59 }
 0x7ee   : > { %v12094_v52 = vor.u32 %v12093_v30, %v12089_v49  ;;  %v12099_v53 = vrot.slane %v12097_v39, 5  ;;  %v26043_v30 = vcombine.low %v25835_v8, %v25839_v42  ;;  %v26047_v43 = vcombine.low %v25855_v37, %v25867_v5 }
 0x7ef   : > { %v12076_v32 = vsel %vm21564_vm6, %v12071_v41, %v12075_v61  ;;  %v12085_v6 = vrot.slane %v12084_v33, 4  ;;  %v26051_v48 = vcombine.low %v25879_v17, %v25887_v54  ;;  %v26055_v23 = vcombine.low %v25894_v1, %v25910_v10  ;;  %v26088_v33 = vld [vmem:[#allocation2 + $0xc] sm:$0xf] }
 0x7f0   : > { %v26039_v12 = vcombine.low %v12066_v31, %v12076_v32  ;;  %v12095_v56 = vrot.slane %v12094_v52, 4  ;;  %v26065_v26 = vcombine.low %v25918_v24, %v25927_v46  ;;  %v26069_v28 = vcombine.low %v25941_v35, %v25946_v44  ;;  %v26090_v52 = vld [vmem:[#allocation2 + $0x10] sm:$0xf] }
 0x7f1   : > { %v12090_v39 = vsel %vm21564_vm6, %v12085_v6, %v12089_v49  ;;  %v26075_v41 = vcombine.low %v25962_v11, %v25966_v14  ;;  %v26079_v49 = vcombine.low %v25982_v25, %v25987_v45  ;;  %v26083_v61 = vcombine.low %v26002_v4, %v26007_v2  ;;  %v21226_v6 = vld [vmem:[%s26984_s5 + $0x148] sm:$0xff]  }
 0x7f2   : > { %27412 = vst [vmem:[#allocation33_spill] sm:$0xff] %v26039_v12  ;;  %19571 = vmatprep.mubr.msk.bf16.mxu0 %vm1178_vm5, %v26039_v12  ;;  %v12100_v31 = vsel %vm21564_vm6, %v12095_v56, %v12099_v53  ;;  %v26094_v32 = vcombine.low %v26088_v33, %v26090_v52  ;;  %v26101_v56 = vcombine.low %v25651_v34, %v25655_v9  ;;  %v12731_v53 = vrot.slane %v25804_v36, 5 }
 0x7f3   : > { %v26071_v27 = vcombine.low %v12090_v39, %v12100_v31  ;;  %v26114_v39 = vcombine.low %v25730_v47, %v25736_v58  ;;  %v17442_v34 = vrot.slane %v25802_v40, 9  ;;  %v17443_v9 = vrot.slane %v25835_v8, 9  ;;  %v26131_v47 = vld [vmem:[%s26984_s5 + $0x150] sm:$0xff]  }
 0x7f4   : > { %v12738_v31 = vrot.slane %v25839_v42, 5  ;;  %v12734_v58 = vrot.slane %v25812_v50, 5  ;;  %v12741_v60 = vrot.slane %v25853_v38, 5  ;;  %v12748_v12 = vrot.slane %v25871_v22, 5 }
 0x7f5   : > { %27413 = vst [vmem:[#allocation9_spill] sm:$0xff] %v26071_v27  ;;  %19572 = vmatmul.mubr.msk.bf16.gmra.mrb[108].mxu0 %vm1178_vm5, %v26071_v27  ;;  %v12732_v8 = vsel %vm21509_vm3, %v17442_v34, %v12731_v53  ;;  %v12745_v27 = vrot.slane %v25867_v5, 5  ;;  %v17445_v34 = vrot.slane %v25879_v17, 9  ;;  %v12755_v22 = vrot.slane %v25892_v15, 5 }
 0x7f6   : > { %19579 = vmatprep.mubr.msk.bf16.mxu0 %vm1178_vm5, %v17402_v18  ;;  %v26107_v18 = vcombine.low %v25677_v0, %v25714_v19  ;;  %v26122_v0 = vcombine.low %v25771_v55, %v25785_v57  ;;  %v26126_v19 = vcombine.low %v25802_v40, %v25804_v36  ;;  %v12739_v55 = vsel %vm21509_vm3, %v17443_v9, %v12738_v31 }
 0x7f7   : > { %v12740_v42 = vrot.slane %v12738_v31, 4  ;;  %v17444_v36 = vrot.slane %v25855_v37, 9  ;;  %v12752_v9 = vrot.slane %v25887_v54, 5  ;;  %v12747_v5 = vrot.slane %v12745_v27, 4 }
 0x7f8   : > { %v12759_v17 = vrot.slane %v25910_v10, 5  ;;  %v12766_v15 = vrot.slane %v25927_v46, 5  ;;  %v12769_v46 = vrot.slane %v25935_v13, 5 }
 0x7f9   : > { %v12746_v37 = vsel %vm21509_vm3, %v17444_v36, %v12745_v27  ;;  %v12754_v31 = vrot.slane %v12752_v9, 4  ;;  %v12749_v54 = vsel %vm21509_vm3, %v12747_v5, %v12748_v12  ;;  %v17447_v27 = vrot.slane %v25918_v24, 9 }
 0x7fa   : > { %v12768_v24 = vrot.slane %v12766_v15, 4  ;;  %v12776_v36 = vrot.slane %v25958_v21, 5 }
 0x7fd   : > { %19580 = vmatmul.mubr.msk.bf16.vlgmr.msra.gmra.mrb[80].mxu0 %vm1178_vm5, %v26094_v32 }
 0x7fe   : > { %19583 = vmatprep.mubr.msk.bf16.mxu0 %vm1178_vm5, %v26101_v56  ;;  %19612 = vmatpush3.bf16.msra.mxu0 %v25702_v3  ;;  %v12733_v3 = vrot.slane %v12731_v53, 4  ;;  %v12742_v53 = vsel %vm21509_vm3, %v12740_v42, %v12741_v60  ;;  %v17446_v60 = vrot.slane %v25894_v1, 9  ;;  %v12756_v1 = vsel %vm21509_vm3, %v12754_v31, %v12755_v22 }
 0x7ff   : > { %19613 = vmatprep.subr.bf16.mxu0 %v21226_v6  ;;  %v26151_v38 = vcombine.low %v12739_v55, %v12742_v53  ;;  %v17448_v42 = vrot.slane %v25941_v35, 9  ;;  %v12783_v35 = vrot.slane %v25979_v62, 5  ;;  %v12787_v31 = vrot.slane %v25987_v45, 5 }
 0x800   : > { %v12735_v40 = vsel %vm21509_vm3, %v12733_v3, %v12734_v58  ;;  %v12762_v3 = vrot.slane %v25915_v63, 5  ;;  %v26169_v58 = vcombine.low %v12746_v37, %v12749_v54  ;;  %v12760_v10 = vsel %vm21509_vm3, %v17446_v60, %v12759_v17 }
 0x801   : > { %v26144_v50 = vcombine.low %v12732_v8, %v12735_v40  ;;  %v12761_v8 = vrot.slane %v12759_v17, 4  ;;  %v12767_v63 = vsel %vm21509_vm3, %v17447_v27, %v12766_v15  ;;  %v12773_v40 = vrot.slane %v25946_v44, 5 }
 0x802   : > { %19614 = vmatpush3.bf16.msra.mxu0 %v21226_v6  ;;  %v12753_v6 = vsel %vm21509_vm3, %v17445_v34, %v12752_v9  ;;  %v12770_v34 = vsel %vm21509_vm3, %v12768_v24, %v12769_v46  ;;  %v17449_v9 = vrot.slane %v25962_v11, 9  ;;  %v12780_v37 = vrot.slane %v25966_v14, 5  ;;  %v17733_v11 = vld [vmem:[%s26988_s9 + $0x2] ss:$0 sm:$0xff] }
 0x803   : > { %19647 = vmatprep.subr.bf16.mxu0 %v26131_v47  ;;  %v26175_v55 = vcombine.low %v12753_v6, %v12756_v1  ;;  %v12763_v12 = vsel %vm21509_vm3, %v12761_v8, %v12762_v3  ;;  %v26191_v5 = vcombine.low %v12767_v63, %v12770_v34  ;;  %v12774_v13 = vsel %vm21509_vm3, %v17448_v42, %v12773_v40 }
 0x804   : > { %v26185_v53 = vcombine.low %v12760_v10, %v12763_v12  ;;  %v12775_v22 = vrot.slane %v12773_v40, 4  ;;  %v12781_v44 = vsel %vm21509_vm3, %v17449_v9, %v12780_v37  ;;  %v12782_v21 = vrot.slane %v12780_v37, 4 }
 0x805   : > { %19584 = vmatmul.mubr.msk.bf16.gmra.mrb[84].mxu0 %vm1178_vm5, %v26107_v18  ;;  %v17450_v6 = vrot.slane %v25982_v25, 9  ;;  %v12790_v60 = vrot.slane %v25996_v16, 5  ;;  %v17451_v17 = vrot.slane %v26002_v4, 9  ;;  %v12794_v62 = vrot.slane %v26007_v2, 5  ;;  %v17734_v16 = vld [vmem:[%s26989_s10 + $0x2] ss:$0 sm:$0xff] }
 0x806   : > { %19587 = vmatprep.mubr.msk.bf16.mxu0 %vm1178_vm5, %v26114_v39  ;;  %v12777_v14 = vsel %vm21509_vm3, %v12775_v22, %v12776_v36  ;;  %v12784_v45 = vsel %vm21509_vm3, %v12782_v21, %v12783_v35  ;;  %v12789_v3 = vrot.slane %v12787_v31, 4  ;;  %v12797_v1 = vrot.slane %v26012_v7, 5  ;;  %v26234_v7 = vld [vmem:[#allocation2 + $0xc0] sm:$0xf]  ;;  %v26236_v22 = vld [vmem:[#allocation2 + $0xc4] sm:$0xf] }
 0x807   : > { %v26210_v54 = vcombine.low %v12774_v13, %v12777_v14  ;;  %v12788_v25 = vsel %vm21509_vm3, %v17450_v6, %v12787_v31  ;;  %v26221_v4 = vcombine.low %v12781_v44, %v12784_v45  ;;  %v12795_v27 = vsel %vm21509_vm3, %v17451_v17, %v12794_v62  ;;  %v26238_v44 = vld [vmem:[#allocation2 + $0xc8] sm:$0x1] }
 0x808   : > { %v12796_v15 = vrot.slane %v12794_v62, 4  ;;  %v12791_v63 = vsel %vm21509_vm3, %v12789_v3, %v12790_v60  ;;  %v17524_v14 = vrot.slane %v26234_v7, 9  ;;  %v13551_v60 = vrot.slane %v26236_v22, 5 }
 0x809   : > { %v26228_v12 = vcombine.low %v12788_v25, %v12791_v63  ;;  %v13554_v25 = vrot.slane %v26238_v44, 5 }
 0x80a   : > { %v12798_v42 = vsel %vm21509_vm3, %v12796_v15, %v12797_v1  ;;  %v13552_v15 = vsel %vm21509_vm3, %v17524_v14, %v13551_v60  ;;  %v13553_v1 = vrot.slane %v13551_v60, 4 }
 0x80b   : > { %v26232_v9 = vcombine.low %v12795_v27, %v12798_v42 }
 0x80d   : > { %19588 = vmatmul.mubr.msk.bf16.gmra.mrb[88].mxu0 %vm1178_vm5, %v26122_v0  ;;  %v19965_v2 = vpop.f32.mrb[112].mxu1 }
 0x80e   : > { %19591 = vmatprep.mubr.msk.bf16.mxu0 %vm1178_vm5, %v26126_v19  ;;  %v15698_v10 = vmul.f32 %v19965_v2, %v17733_v11  ;;  %v15651_v8 = vpop.f32.mrb[113].mxu1 }
 0x80f   : > { %v15696_v24 = vmul.f32 %v17733_v11, %v15651_v8  ;;  %v19966_v46 = vpop.f32.mrb[114].mxu1 }
 0x810   : > { %v15712_v40 = vadd.f32 %v17734_v16, %v15698_v10  ;;  %v15699_v36 = vmul.f32 %v19966_v46, %v17733_v11  ;;  %v15654_v34 = vpop.f32.mrb[115].mxu1 }
 0x811   : > { %v15710_v37 = vadd.f32 %v17734_v16, %v15696_v24  ;;  %v15697_v13 = vmul.f32 %v17733_v11, %v15654_v34 }
 0x812   : > { %v15713_v35 = vadd.f32 %v17734_v16, %v15699_v36  ;;  %v15720_v6 = vmax.f32 %v15712_v40, 0.0  ;;  %v13555_v40 = vsel %vm21509_vm3, %v13553_v1, %v13554_v25  ;;  %v21275_v25 = vld [vmem:[#allocation2 + $0x8] sm:$0x1] }
 0x813   : > { %v15711_v21 = vadd.f32 %v17734_v16, %v15697_v13  ;;  %v15718_v17 = vmax.f32 %v15710_v37, 0.0  ;;  %v26252_v37 = vcombine.low %v13552_v15, %v13555_v40  ;;  %v12696_v15 = vrot.slane %v26090_v52, 5  ;;  %v21279_v52 = vld [vmem:[#allocation2 + $0x28] sm:$0xf] }
 0x814   : > { %v15721_v31 = vmax.f32 %v15713_v35, 0.0  ;;  %v17437_v40 = vrot.slane %v26088_v33, 9 }
 0x815   : > { %19592 = vmatmul.mubr.msk.bf16.gmra.mrb[92].mxu0 %vm1178_vm5, %v26043_v30  ;;  %v15719_v62 = vmax.f32 %v15711_v21, 0.0  ;;  %v19969_v45 = vpop.f32.mrb[116].mxu1 }
 0x816   : > { %19595 = vmatprep.mubr.msk.bf16.mxu0 %vm1178_vm5, %v26047_v43  ;;  %v15734_v3 = vpack.c.bf16 %v15721_v31, %v15720_v6  ;;  %v15702_v2 = vmul.f32 %v19969_v45, %v17733_v11  ;;  %v15667_v27 = vpop.f32.mrb[117].mxu1 }
 0x817   : > { %v15733_v10 = vpack.c.bf16 %v15719_v62, %v15718_v17  ;;  %v15700_v8 = vmul.f32 %v17733_v11, %v15667_v27  ;;  %v19970_v63 = vpop.f32.mrb[118].mxu1  ;;  %v27414_v17 = vmov 0.0   ;;  %v17436_v62 = vrot.slane %v26033_v20, 9 }
 0x818   : > { %v15716_v24 = vadd.f32 %v17734_v16, %v15702_v2  ;;  %v15703_v46 = vmul.f32 %v19970_v63, %v17733_v11  ;;  %v15670_v42 = vpop.f32.mrb[119].mxu1  ;;  %v21277_v63 = vld [vmem:[#allocation2 + $0x14] sm:$0x1] }
 0x819   : > { %v15714_v36 = vadd.f32 %v17734_v16, %v15700_v8  ;;  %v15701_v34 = vmul.f32 %v17733_v11, %v15670_v42  ;;  %19975 = vmatprep.mubr.msk.bf16.mxu1 %vm1178_vm5, %v15733_v10  ;;  %v12698_v10 = vrot.slane %v12696_v15, 4 }
 0x81a   : > { %v15717_v13 = vadd.f32 %v17734_v16, %v15703_v46  ;;  %19976 = vmatmul.mubr.msk.bf16.vlgmr.msra.gmra.mrb[120].mxu1 %vm1178_vm5, %v15734_v3  ;;  %v15724_v21 = vmax.f32 %v15716_v24, 0.0  ;;  %v12692_v3 = vrot.slane %v21275_v25, 5  ;;  %v12699_v24 = vrot.slane %v21277_v63, 5  ;;  %v21278_v46 = vld [vmem:[#allocation2 + $0x20] sm:$0x1] }
 0x81b   : > { %v15715_v35 = vadd.f32 %v17734_v16, %v15701_v34  ;;  %v15722_v31 = vmax.f32 %v15714_v36, 0.0  ;;  %v12689_v16 = vrot.slane %v26035_v59, 5  ;;  %v21276_v59 = vld [vmem:[#allocation2 + $0x1c] sm:$0xf]  ;;  %v12706_v42 = vrot.slane %v21278_v46, 5 }
 0x81c   : > { %v15725_v6 = vmax.f32 %v15717_v13, 0.0  ;;  %v12703_v1 = vrot.slane %v21276_v59, 5  ;;  %v12700_v36 = vsel %vm21509_vm3, %v12698_v10, %v12699_v24  ;;  %v12710_v34 = vrot.slane %v21279_v52, 5  ;;  %v21280_v13 = vld [vmem:[#allocation2 + $0x18] sm:$0xf] }
 0x81d   : > { %19596 = vmatmul.mubr.msk.bf16.gmra.mrb[96].mxu0 %vm1178_vm5, %v26051_v48  ;;  %v15723_v14 = vmax.f32 %v15715_v35, 0.0  ;;  %v12691_v45 = vrot.slane %v12689_v16, 4  ;;  %v12690_v2 = vsel %vm21509_vm3, %v17436_v62, %v12689_v16  ;;  %v17438_v35 = vrot.slane %v21280_v13, 9  ;;  %v21282_v25 = vld [vmem:[#allocation2 + $0x2c] sm:$0x1] }
 0x81e   : > { %19599 = vmatprep.mubr.msk.bf16.mxu0 %vm1178_vm5, %v26055_v23  ;;  %v15736_v60 = vpack.c.bf16 %v15725_v6, %v15724_v21  ;;  %v12705_v8 = vrot.slane %v12703_v1, 4  ;;  %v21281_v6 = vld [vmem:[#allocation2 + $0x34] sm:$0xf]  ;;  %v12712_v62 = vrot.slane %v12710_v34, 4  ;;  %v21284_v59 = vld [vmem:[#allocation2 + $0x24] sm:$0xf] }
 0x81f   : > { %v15735_v11 = vpack.c.bf16 %v15723_v14, %v15722_v31  ;;  %v12693_v27 = vsel %vm21509_vm3, %v12691_v45, %v12692_v3  ;;  %v12717_v31 = vrot.slane %v21281_v6, 5  ;;  %v12697_v14 = vsel %vm21509_vm3, %v17437_v40, %v12696_v15  ;;  %v21234_v15 = vld [vmem:[%s26984_s5 + $0x160] sm:$0xff]   ;;  %v21286_v13 = vld [vmem:[#allocation2 + $0x3c] sm:$0xf] }
 0x820   : > { %v17452_v20 = vcombine.low %v12690_v2, %v12693_v27  ;;  %v12707_v21 = vsel %vm21509_vm3, %v12705_v8, %v12706_v42  ;;  %v12704_v33 = vsel %vm21509_vm3, %v17438_v35, %v12703_v1  ;;  %v12713_v3 = vrot.slane %v21282_v25, 5  ;;  %v21283_v2 = vld [vmem:[#allocation2 + $0x38] sm:$0x1]  ;;  %v21285_v8 = vld [vmem:[#allocation2 + $0x30] sm:$0xf]  ;;  %v21239_v25 = vld [vmem:[%s26984_s5 + $0x180] sm:$0xff]  }
 0x821   : > { %19979 = vmatprep.mubr.msk.bf16.mxu1 %vm1178_vm5, %v15735_v11  ;;  %v21233_v11 = vld [vmem:[%s26984_s5 + $0x158] sm:$0xff]   ;;  %v26295_v16 = vcombine.low %v12704_v33, %v12707_v21  ;;  %v12719_v45 = vrot.slane %v12717_v31, 4  ;;  %v12720_v27 = vrot.slane %v21283_v2, 5  ;;  %v17439_v1 = vrot.slane %v21284_v59, 9  ;;  %v27416_v33 = vld [vmem:[#allocation35_spill] sm:$0xff]  ;;  %v27420_v2 = vld [vmem:[#allocation18_spill] sm:$0xff] }
 0x822   : > { %19980 = vmatmul.mubr.msk.bf16.gmra.mrb[124].mxu1 %vm1178_vm5, %v15736_v60  ;;  %v26288_v60 = vcombine.low %v12697_v14, %v12700_v36  ;;  %v12724_v10 = vrot.slane %v25785_v57, 5  ;;  %v17440_v63 = vrot.slane %v21285_v8, 9  ;;  %v27415_v57 = vld [vmem:[#allocation16_spill] sm:$0xff]  ;;  %v27423_v59 = vld [vmem:[#allocation39_spill] sm:$0xff]  ;;  %v13327_v8 = vshrl.u32 %v26236_v22, 16 }
 0x823   : > { %19985 = vmatprep.mubr.msk.bf16.mxu1 %vm21361_vm13, %v27414_v17  ;;  %v12721_v24 = vsel %vm21509_vm3, %v12719_v45, %v12720_v27  ;;  %v12727_v52 = vrot.slane %v27415_v57, 5  ;;  %v21237_v14 = vld [vmem:[%s26984_s5 + $0x170] sm:$0xff]   ;;  %v27418_v45 = vld [vmem:[#allocation15_spill] sm:$0xff]  ;;  %v27421_v27 = vld [vmem:[#allocation10_spill] sm:$0xff] }
 0x824   : > { %v12718_v42 = vsel %vm21509_vm3, %v17440_v63, %v12717_v31  ;;  %v12726_v36 = vrot.slane %v12724_v10, 4  ;;  %v21235_v31 = vld [vmem:[%s26984_s5 + $0x168] sm:$0xff]   ;;  %v13323_v63 = vshll.u32 %v26236_v22, 16  ;;  %v27427_v57 = vld [vmem:[#allocation22_spill] sm:$0xff] }
 0x825   : > { %19600 = vmatmul.mubr.msk.bf16.gmra.mrb[100].mxu0 %vm1178_vm5, %v26065_v26  ;;  %v26316_v40 = vcombine.low %v12718_v42, %v12721_v24  ;;  %v13314_v24 = vshrl.u32 %v26234_v7, 16 }
 0x826   : > { %19603 = vmatprep.mubr.msk.bf16.mxu0 %vm1178_vm5, %v26069_v28  ;;  %v12728_v35 = vsel %vm21509_vm3, %v12726_v36, %v12727_v52  ;;  %v13325_v42 = vrot.slane %v13323_v63, 5  ;;  %v13329_v36 = vrot.slane %v13327_v8, 4 }
 0x827   : > { %v13316_v52 = vrot.slane %v13314_v24, 4 }
 0x82d   : > { %19604 = vmatmul.mubr.msk.bf16.gmra.mrb[104].mxu0 %vm1178_vm5, %v26075_v41 }
 0x82e   : > { %19607 = vmatprep.mubr.msk.bf16.mxu0 %vm1178_vm5, %v26079_v49 }
 0x835   : > { %19608 = vmatmul.mubr.msk.bf16.gmra.mrb[108].mxu0 %vm1178_vm5, %v26083_v61 }
 0x836   : > { %19615 = vmatprep.mubr.msk.bf16.mxu0 %vm1178_vm5, %v17452_v20  ;;  %v12714_v20 = vsel %vm21509_vm3, %v12712_v62, %v12713_v3  ;;  %v27417_v62 = vld [vmem:[#allocation36_spill] sm:$0xff]  ;;  %v27419_v3 = vld [vmem:[#allocation37_spill] sm:$0xff] }
 0x83d   : > { %19616 = vmatmul.mubr.msk.bf16.vlgmr.msra.gmra.mrb[80].mxu0 %vm1178_vm5, %v26288_v60 }
 0x83e   : > { %19619 = vmatprep.mubr.msk.bf16.mxu0 %vm1178_vm5, %v26295_v16  ;;  %19648 = vmatpush3.bf16.msra.mxu0 %v26131_v47  ;;  %v12711_v47 = vsel %vm21509_vm3, %v17439_v1, %v12710_v34  ;;  %v17441_v34 = vrot.slane %v21286_v13, 9  ;;  %v27424_v1 = vld [vmem:[#allocation38_spill] sm:$0xff] }
 0x83f   : > { %19649 = vmatprep.subr.bf16.mxu0 %v21233_v11  ;;  %v26312_v46 = vcombine.low %v12711_v47, %v12714_v20  ;;  %v27425_v20 = vld [vmem:[#allocation40_spill] sm:$0xff]  ;;  %v13317_v47 = vshll.u32 %v26234_v7, 16 }
 0x840   : > { %v12725_v21 = vsel %vm21509_vm3, %v17441_v34, %v12724_v10  ;;  %v27426_v10 = vld [vmem:[#allocation21_spill] sm:$0xff]  ;;  %v13330_v34 = vor.u32 %v13329_v36, %v13325_v42 }
 0x841   : > { %v26327_v6 = vcombine.low %v12725_v21, %v12728_v35  ;;  %v13319_v13 = vrot.slane %v13317_v47, 5  ;;  %v13333_v21 = vshll.u32 %v26238_v44, 16 }
 0x842   : > { %19650 = vmatpush3.bf16.msra.mxu0 %v21233_v11  ;;  %v21238_v11 = vld [vmem:[%s26984_s5 + $0x178] sm:$0xff]  }
 0x843   : > { %19683 = vmatprep.subr.bf16.mxu0 %v21234_v15  ;;  %v13320_v35 = vor.u32 %v13319_v13, %v13316_v52 }
 0x845   : > { %19620 = vmatmul.mubr.msk.bf16.gmra.mrb[84].mxu0 %vm1178_vm5, %v26312_v46 }
 0x846   : > { %19623 = vmatprep.mubr.msk.bf16.mxu0 %vm1178_vm5, %v26316_v40 }
 0x84d   : > { %19624 = vmatmul.mubr.msk.bf16.gmra.mrb[88].mxu0 %vm1178_vm5, %v26327_v6 }
 0x84e   : > { %19627 = vmatprep.mubr.msk.bf16.mxu0 %vm1178_vm5, %v26144_v50 }
 0x855   : > { %19628 = vmatmul.mubr.msk.bf16.gmra.mrb[92].mxu0 %vm1178_vm5, %v26151_v38 }
 0x856   : > { %19631 = vmatprep.mubr.msk.bf16.mxu0 %vm1178_vm5, %v26169_v58 }
 0x85d   : > { %19632 = vmatmul.mubr.msk.bf16.gmra.mrb[96].mxu0 %vm1178_vm5, %v26175_v55 }
 0x85e   : > { %19635 = vmatprep.mubr.msk.bf16.mxu0 %vm1178_vm5, %v26185_v53 }
 0x865   : > { %19636 = vmatmul.mubr.msk.bf16.gmra.mrb[100].mxu0 %vm1178_vm5, %v26191_v5 }
 0x866   : > { %19639 = vmatprep.mubr.msk.bf16.mxu0 %vm1178_vm5, %v26210_v54 }
 0x86d   : > { %19640 = vmatmul.mubr.msk.bf16.gmra.mrb[104].mxu0 %vm1178_vm5, %v26221_v4 }
 0x86e   : > { %19643 = vmatprep.mubr.msk.bf16.mxu0 %vm1178_vm5, %v26228_v12 }
 0x875   : > { %19644 = vmatmul.mubr.msk.bf16.gmra.mrb[108].mxu0 %vm1178_vm5, %v26232_v9 }
 0x876   : > { %19651 = vmatprep.mubr.msk.bf16.mxu0 %vm1178_vm5, %v26094_v32  ;;  %v26389_v32 = vcombine.low %v26234_v7, %v26236_v22  ;;  %v27428_v22 = vld [vmem:[#allocation33_spill] sm:$0xff]  ;;  %v26435_v7 = vld [vmem:[%s26991_s12 + $0x2] ss:$0 sm:$0xff] }
 0x87d   : > { %19652 = vmatmul.mubr.msk.bf16.vlgmr.msra.gmra.mrb[80].mxu0 %vm1178_vm5, %v26101_v56 }
 0x87e   : > { %19655 = vmatprep.mubr.msk.bf16.mxu0 %vm1178_vm5, %v26107_v18  ;;  %19684 = vmatpush3.bf16.msra.mxu0 %v21234_v15  ;;  %v27422_v15 = vld [vmem:[#allocation11_spill] sm:$0xff] }
 0x87f   : > { %19685 = vmatprep.subr.bf16.mxu0 %v21235_v31 }
 0x882   : > { %19686 = vmatpush3.bf16.msra.mxu0 %v21235_v31  ;;  %v13331_v31 = vrot.slane %v13330_v34, 4 }
 0x883   : > { %19719 = vmatprep.subr.bf16.mxu0 %v21237_v14 }
 0x885   : > { %19656 = vmatmul.mubr.msk.bf16.gmra.mrb[84].mxu0 %vm1178_vm5, %v26114_v39 }
 0x886   : > { %19659 = vmatprep.mubr.msk.bf16.mxu0 %vm1178_vm5, %v26122_v0 }
 0x88d   : > { %19660 = vmatmul.mubr.msk.bf16.gmra.mrb[88].mxu0 %vm1178_vm5, %v26126_v19 }
 0x88e   : > { %19663 = vmatprep.mubr.msk.bf16.mxu0 %vm1178_vm5, %v26043_v30 }
 0x895   : > { %19664 = vmatmul.mubr.msk.bf16.gmra.mrb[92].mxu0 %vm1178_vm5, %v26047_v43 }
 0x896   : > { %19667 = vmatprep.mubr.msk.bf16.mxu0 %vm1178_vm5, %v26051_v48 }
 0x89d   : > { %19668 = vmatmul.mubr.msk.bf16.gmra.mrb[96].mxu0 %vm1178_vm5, %v26055_v23 }
 0x89e   : > { %19671 = vmatprep.mubr.msk.bf16.mxu0 %vm1178_vm5, %v26065_v26 }
 0x8a5   : > { %19672 = vmatmul.mubr.msk.bf16.gmra.mrb[100].mxu0 %vm1178_vm5, %v26069_v28 }
 0x8a6   : > { %19675 = vmatprep.mubr.msk.bf16.mxu0 %vm1178_vm5, %v26075_v41 }
 0x8ad   : > { %19676 = vmatmul.mubr.msk.bf16.gmra.mrb[104].mxu0 %vm1178_vm5, %v26079_v49 }
 0x8ae   : > { %19679 = vmatprep.mubr.msk.bf16.mxu0 %vm1178_vm5, %v26083_v61 }
 0x8b5   : > { %19680 = vmatmul.mubr.msk.bf16.gmra.mrb[108].mxu0 %vm1178_vm5, %v26389_v32 }
 0x8b6   : > { %19687 = vmatprep.mubr.msk.bf16.mxu0 %vm1178_vm5, %v27416_v33  ;;  %v13321_v33 = vrot.slane %v13320_v35, 4 }
 0x8b8   : > { %v13326_v13 = vsel %vm21564_vm6, %v13321_v33, %v13325_v42 }
 0x8bd   : > { %19688 = vmatmul.mubr.msk.bf16.vlgmr.msra.gmra.mrb[80].mxu0 %vm1178_vm5, %v27417_v62 }
 0x8be   : > { %19691 = vmatprep.mubr.msk.bf16.mxu0 %vm1178_vm5, %v27418_v45  ;;  %19720 = vmatpush3.bf16.msra.mxu0 %v21237_v14  ;;  %v27429_v14 = vld [vmem:[#allocation9_spill] sm:$0xff] }
 0x8bf   : > { %19721 = vmatprep.subr.bf16.mxu0 %v21238_v11 }
 0x8c2   : > { %19722 = vmatpush3.bf16.msra.mxu0 %v21238_v11  ;;  %v13335_v11 = vrot.slane %v13333_v21, 5 }
 0x8c3   : > { %19755 = vmatprep.subr.bf16.mxu0 %v21239_v25 }
 0x8c4   : > { %v13336_v47 = vsel %vm21564_vm6, %v13331_v31, %v13335_v11 }
 0x8c5   : > { %19692 = vmatmul.mubr.msk.bf16.gmra.mrb[84].mxu0 %vm1178_vm5, %v27419_v3 }
 0x8c6   : > { %19695 = vmatprep.mubr.msk.bf16.mxu0 %vm1178_vm5, %v27420_v2 }
 0x8cd   : > { %19696 = vmatmul.mubr.msk.bf16.gmra.mrb[88].mxu0 %vm1178_vm5, %v27421_v27 }
 0x8ce   : > { %19699 = vmatprep.mubr.msk.bf16.mxu0 %vm1178_vm5, %v27422_v15 }
 0x8d5   : > { %19700 = vmatmul.mubr.msk.bf16.gmra.mrb[92].mxu0 %vm1178_vm5, %v27423_v59 }
 0x8d6   : > { %19703 = vmatprep.mubr.msk.bf16.mxu0 %vm1178_vm5, %v27424_v1 }
 0x8dd   : > { %19704 = vmatmul.mubr.msk.bf16.gmra.mrb[96].mxu0 %vm1178_vm5, %v27425_v20 }
 0x8de   : > { %19707 = vmatprep.mubr.msk.bf16.mxu0 %vm1178_vm5, %v27426_v10 }
 0x8e5   : > { %19708 = vmatmul.mubr.msk.bf16.gmra.mrb[100].mxu0 %vm1178_vm5, %v27427_v57 }
 0x8e6   : > { %19711 = vmatprep.mubr.msk.bf16.mxu0 %vm1178_vm5, %v26024_v51 }
 0x8ed   : > { %19712 = vmatmul.mubr.msk.bf16.gmra.mrb[104].mxu0 %vm1178_vm5, %v27428_v22  ;;  %v19977_v8 = vpop.f32.mrb[120].mxu1  ;;  %v26445_v22 = vcombine.low %v13326_v13, %v13336_v47 }
 0x8ee   : > { %19715 = vmatprep.mubr.msk.bf16.mxu0 %vm1178_vm5, %v27429_v14  ;;  %v15801_v63 = vpop.f32.mrb[121].mxu1  ;;  %v15810_v42 = vadd.f32 %v19977_v8, %v26435_v7 }
 0x8ef   : > { %v15802_v44 = vadd.f32 %v26435_v7, %v15801_v63  ;;  %v19978_v36 = vpop.f32.mrb[122].mxu1 }
 0x8f0   : > { %v15804_v52 = vpop.f32.mrb[123].mxu1  ;;  %v15834_v8 = vpack.c.bf16 %v15810_v42, %v15810_v42  ;;  %v15813_v13 = vadd.f32 %v19978_v36, %v26435_v7 }
 0x8f1   : > { %v15832_v34 = vpack.c.bf16 %v15802_v44, %v15802_v44  ;;  %v15805_v29 = vadd.f32 %v26435_v7, %v15804_v52  ;;  %v26472_v44 = vld [vmem:[%s26984_s5 + $0x190] sm:$0xff]  }
 0x8f2   : > { %v15929_v52 = vsel %vm5025_vm14, %v15834_v8, 0 }
 0x8f3   : > { %v15841_v35 = vsel %vm5025_vm14, %v15832_v34, 0  ;;  %v15833_v21 = vpack.c.bf16 %v15805_v29, %v15805_v29  ;;  %v21287_v29 = vld [vmem:[%s26992_s13] sm:$0xff]   ;;  %v21288_v34 = vld [vmem:[%s26992_s13 + $0x8] sm:$0xff]  }
 0x8f4   : > { %19984 = vmatpush3.bf16.msra.mxu1 %v15841_v35 }
 0x8f5   : > { %19716 = vmatmul.mubr.msk.bf16.gmra.mrb[108].mxu0 %vm1178_vm5, %v26445_v22  ;;  %v19981_v31 = vpop.f32.mrb[124].mxu1  ;;  %19989 = vmatprep.subr.bf16.mxu1 %v27414_v17  ;;  %v15885_v33 = vsel %vm5025_vm14, %v15833_v21, 0  ;;  %v21289_v21 = vld [vmem:[%s26992_s13 + $0x10] sm:$0xff]  }
 0x8f6   : > { %19723 = vmatprep.mubr.msk.bf16.mxu0 %vm1178_vm5, %v26288_v60  ;;  %v15817_v11 = vpop.f32.mrb[125].mxu1  ;;  %v21240_v60 = vld [vmem:[%s26984_s5 + $0x188] sm:$0xff]  }
 0x8f7   : > { %v19982_v63 = vpop.f32.mrb[126].mxu1  ;;  %19986 = vmatmul.mubr.msk.bf16.vlgmr.msra.gmra.mrb[128].mxu1 %vm5021_vm15, %v21287_v29  ;;  %v15818_v35 = vadd.f32 %v26435_v7, %v15817_v11  ;;  %v21290_v29 = vld [vmem:[%s26992_s13 + $0x18] sm:$0xff]  }
 0x8f8   : > { %v15820_v47 = vpop.f32.mrb[127].mxu1  ;;  %19990 = vmatpush3.bf16.msra.mxu1 %v15885_v33  ;;  %19991 = vmatprep.mubr.msk.bf16.mxu1 %vm21361_vm13, %v27414_v17 }
 0x8f9   : > { %19995 = vmatprep.subr.bf16.mxu1 %v27414_v17  ;;  %v15836_v42 = vpack.c.bf16 %v15818_v35, %v15818_v35  ;;  %v15821_v33 = vadd.f32 %v26435_v7, %v15820_v47  ;;  %v15826_v47 = vadd.f32 %v19981_v31, %v26435_v7  ;;  %v21294_v35 = vld [vmem:[%s26992_s13 + $0x38] sm:$0xff]  }
 0x8fb   : > { %v16017_v11 = vsel %vm5025_vm14, %v15836_v42, 0 }
 0x8fd   : > { %19724 = vmatmul.mubr.msk.bf16.vlgmr.msra.gmra.mrb[80].mxu0 %vm1178_vm5, %v26295_v16 }
 0x8fe   : > { %19727 = vmatprep.mubr.msk.bf16.mxu0 %vm1178_vm5, %v26312_v46  ;;  %19756 = vmatpush3.bf16.msra.mxu0 %v21239_v25  ;;  %v15835_v25 = vpack.c.bf16 %v15813_v13, %v15813_v13  ;;  %v15838_v13 = vpack.c.bf16 %v15826_v47, %v15826_v47 }
 0x8ff   : > { %19757 = vmatprep.subr.bf16.mxu0 %v21240_v60  ;;  %19992 = vmatmul.mubr.msk.bf16.vlgmr.msra.gmra.mrb[132].mxu1 %vm5021_vm15, %v21288_v34  ;;  %v15829_v34 = vadd.f32 %v19982_v63, %v26435_v7  ;;  %v21293_v63 = vld [vmem:[%s26992_s13 + $0x30] sm:$0xff]  }
 0x900   : > { %19996 = vmatpush3.bf16.msra.mxu1 %v15929_v52  ;;  %19997 = vmatprep.mubr.msk.bf16.mxu1 %vm21361_vm13, %v27414_v17  ;;  %v15973_v36 = vsel %vm5025_vm14, %v15835_v25, 0  ;;  %v21291_v52 = vld [vmem:[%s26992_s13 + $0x20] sm:$0xff]   ;;  %v16105_v31 = vsel %vm5025_vm14, %v15838_v13, 0  ;;  %v21292_v25 = vld [vmem:[%s26992_s13 + $0x28] sm:$0xff]  }
 0x901   : > { %20001 = vmatprep.subr.bf16.mxu1 %v27414_v17 }
 0x902   : > { %19758 = vmatpush3.bf16.msra.mxu0 %v21240_v60  ;;  %v15837_v60 = vpack.c.bf16 %v15821_v33, %v15821_v33 }
 0x903   : > { %19791 = vmatprep.subr.bf16.mxu0 %v26472_v44 }
 0x904   : > { %v16061_v8 = vsel %vm5025_vm14, %v15837_v60, 0 }
 0x905   : > { %19728 = vmatmul.mubr.msk.bf16.gmra.mrb[84].mxu0 %vm1178_vm5, %v26316_v40 }
 0x906   : > { %19731 = vmatprep.mubr.msk.bf16.mxu0 %vm1178_vm5, %v26327_v6 }
 0x907   : > { %19998 = vmatmul.mubr.msk.bf16.vlgmr.msra.gmra.mrb[136].mxu1 %vm5021_vm15, %v21289_v21  ;;  %v21244_v21 = vld [vmem:[%s26984_s5 + $0x1a0] sm:$0xff]  }
 0x908   : > { %20002 = vmatpush3.bf16.msra.mxu1 %v15973_v36  ;;  %20003 = vmatprep.mubr.msk.bf16.mxu1 %vm21361_vm13, %v27414_v17  ;;  %v15839_v36 = vpack.c.bf16 %v15829_v34, %v15829_v34 }
 0x909   : > { %20007 = vmatprep.subr.bf16.mxu1 %v27414_v17 }
 0x90a   : > { %v16149_v7 = vsel %vm5025_vm14, %v15839_v36, 0 }
 0x90d   : > { %19732 = vmatmul.mubr.msk.bf16.gmra.mrb[88].mxu0 %vm1178_vm5, %v26144_v50 }
 0x90e   : > { %19735 = vmatprep.mubr.msk.bf16.mxu0 %vm1178_vm5, %v26151_v38 }
 0x90f   : > { %20004 = vmatmul.mubr.msk.bf16.vlgmr.msra.gmra.mrb[140].mxu1 %vm5021_vm15, %v21290_v29 }
 0x910   : > { %20008 = vmatpush3.bf16.msra.mxu1 %v16017_v11  ;;  %20009 = vmatprep.mubr.msk.bf16.mxu1 %vm21361_vm13, %v27414_v17 }
 0x911   : > { %20013 = vmatprep.subr.bf16.mxu1 %v27414_v17 }
 0x915   : > { %19736 = vmatmul.mubr.msk.bf16.gmra.mrb[92].mxu0 %vm1178_vm5, %v26169_v58 }
 0x916   : > { %19739 = vmatprep.mubr.msk.bf16.mxu0 %vm1178_vm5, %v26175_v55 }
 0x917   : > { %20010 = vmatmul.mubr.msk.bf16.vlgmr.msra.gmra.mrb[144].mxu1 %vm5021_vm15, %v21291_v52 }
 0x918   : > { %20014 = vmatpush3.bf16.msra.mxu1 %v16061_v8  ;;  %20015 = vmatprep.mubr.msk.bf16.mxu1 %vm21361_vm13, %v27414_v17 }
 0x919   : > { %20019 = vmatprep.subr.bf16.mxu1 %v27414_v17 }
 0x91d   : > { %19740 = vmatmul.mubr.msk.bf16.gmra.mrb[96].mxu0 %vm1178_vm5, %v26185_v53 }
 0x91e   : > { %19743 = vmatprep.mubr.msk.bf16.mxu0 %vm1178_vm5, %v26191_v5 }
 0x91f   : > { %20016 = vmatmul.mubr.msk.bf16.vlgmr.msra.gmra.mrb[148].mxu1 %vm5021_vm15, %v21292_v25 }
 0x920   : > { %20020 = vmatpush3.bf16.msra.mxu1 %v16105_v31  ;;  %20021 = vmatprep.mubr.msk.bf16.mxu1 %vm21361_vm13, %v27414_v17 }
 0x921   : > { %20025 = vmatprep.subr.bf16.mxu1 %v27414_v17 }
 0x925   : > { %19744 = vmatmul.mubr.msk.bf16.gmra.mrb[100].mxu0 %vm1178_vm5, %v26210_v54 }
 0x926   : > { %19747 = vmatprep.mubr.msk.bf16.mxu0 %vm1178_vm5, %v26221_v4 }
 0x927   : > { %20022 = vmatmul.mubr.msk.bf16.vlgmr.msra.gmra.mrb[152].mxu1 %vm5021_vm15, %v21293_v63 }
 0x928   : > { %20026 = vmatpush3.bf16.msra.mxu1 %v16149_v7  ;;  %20027 = vmatprep.mubr.msk.bf16.mxu1 %vm21361_vm13, %v27414_v17  ;;  %v21242_v17 = vld [vmem:[%s26984_s5 + $0x198] sm:$0xff]  }
 0x92d   : > { %19748 = vmatmul.mubr.msk.bf16.gmra.mrb[104].mxu0 %vm1178_vm5, %v26228_v12 }
 0x92e   : > { %19751 = vmatprep.mubr.msk.bf16.mxu0 %vm1178_vm5, %v26232_v9 }
 0x92f   : > { %20028 = vmatmul.mubr.msk.bf16.vlgmr.msra.gmra.mrb[156].mxu1 %vm5021_vm15, %v21294_v35 }
 0x935   : > { %19752 = vmatmul.mubr.msk.bf16.gmra.mrb[108].mxu0 %vm1178_vm5, %v26252_v37 }
 0x936   : > { %19759 = vmatprep.mubr.msk.bf16.mxu0 %vm1178_vm5, %v26101_v56 }
 0x93d   : > { %19760 = vmatmul.mubr.msk.bf16.vlgmr.msra.gmra.mrb[80].mxu0 %vm1178_vm5, %v26107_v18 }
 0x93e   : > { %19763 = vmatprep.mubr.msk.bf16.mxu0 %vm1178_vm5, %v26114_v39  ;;  %19792 = vmatpush3.bf16.msra.mxu0 %v26472_v44 }
 0x93f   : > { %19793 = vmatprep.subr.bf16.mxu0 %v21242_v17 }
 0x942   : > { %19794 = vmatpush3.bf16.msra.mxu0 %v21242_v17 }
 0x943   : > { %19827 = vmatprep.subr.bf16.mxu0 %v21244_v21 }
 0x945   : > { %19764 = vmatmul.mubr.msk.bf16.gmra.mrb[84].mxu0 %vm1178_vm5, %v26122_v0  ;;  %v11675_v0 = vld [vmem:[#allocation2 + $0xd4] sm:$0x1] }
 0x946   : > { %19767 = vmatprep.mubr.msk.bf16.mxu0 %vm1178_vm5, %v26126_v19  ;;  %v27431_v19 = vld [vmem:[#allocation33_spill] sm:$0xff] }
 0x94d   : > { %19768 = vmatmul.mubr.msk.bf16.gmra.mrb[88].mxu0 %vm1178_vm5, %v26043_v30  ;;  %v26594_v30 = vld [vmem:[#allocation2 + $0xcc] sm:$0xf] }
 0x94e   : > { %19771 = vmatprep.mubr.msk.bf16.mxu0 %vm1178_vm5, %v26047_v43  ;;  %v26596_v43 = vld [vmem:[#allocation2 + $0xd0] sm:$0xf] }
 0x955   : > { %19772 = vmatmul.mubr.msk.bf16.gmra.mrb[92].mxu0 %vm1178_vm5, %v26051_v48  ;;  %v17544_v48 = vcombine.low %v26594_v30, %v26596_v43 }
 0x956   : > { %19775 = vmatprep.mubr.msk.bf16.mxu0 %vm1178_vm5, %v26055_v23  ;;  %v21245_v23 = vld [vmem:[%s26984_s5 + $0x1a8] sm:$0xff]  }
 0x95d   : > { %19776 = vmatmul.mubr.msk.bf16.gmra.mrb[96].mxu0 %vm1178_vm5, %v26065_v26  ;;  %v13981_v26 = vshrl.u32 %v26594_v30, 16 }
 0x95e   : > { %19779 = vmatprep.mubr.msk.bf16.mxu0 %vm1178_vm5, %v26069_v28  ;;  %v13984_v28 = vshll.u32 %v26594_v30, 16 }
 0x960   : > { %v13986_v56 = vrot.slane %v13984_v28, 5 }
 0x965   : > { %19780 = vmatmul.mubr.msk.bf16.gmra.mrb[100].mxu0 %vm1178_vm5, %v26075_v41  ;;  %v13994_v41 = vshrl.u32 %v26596_v43, 16 }
 0x966   : > { %19783 = vmatprep.mubr.msk.bf16.mxu0 %vm1178_vm5, %v26079_v49  ;;  %v13990_v49 = vshll.u32 %v26596_v43, 16 }
 0x967   : > { %v13996_v39 = vrot.slane %v13994_v41, 4 }
 0x968   : > { %v13992_v18 = vrot.slane %v13990_v49, 5 }
 0x96d   : > { %19784 = vmatmul.mubr.msk.bf16.gmra.mrb[104].mxu0 %vm1178_vm5, %v26083_v61  ;;  %v13983_v61 = vrot.slane %v13981_v26, 4 }
 0x96e   : > { %19787 = vmatprep.mubr.msk.bf16.mxu0 %vm1178_vm5, %v26389_v32 }
 0x96f   : > { %v13987_v32 = vor.u32 %v13986_v56, %v13983_v61 }
 0x975   : > { %19788 = vmatmul.mubr.msk.bf16.gmra.mrb[108].mxu0 %vm1178_vm5, %v17544_v48 }
 0x976   : > { %19795 = vmatprep.mubr.msk.bf16.mxu0 %vm1178_vm5, %v27417_v62  ;;  %v13997_v62 = vor.u32 %v13996_v39, %v13992_v18 }
 0x97d   : > { %19796 = vmatmul.mubr.msk.bf16.vlgmr.msra.gmra.mrb[80].mxu0 %vm1178_vm5, %v27418_v45  ;;  %v14000_v45 = vshll.u32 %v11675_v0, 16 }
 0x97e   : > { %19799 = vmatprep.mubr.msk.bf16.mxu0 %vm1178_vm5, %v27419_v3  ;;  %19828 = vmatpush3.bf16.msra.mxu0 %v21244_v21  ;;  %v13988_v3 = vrot.slane %v13987_v32, 4 }
 0x97f   : > { %19829 = vmatprep.subr.bf16.mxu0 %v21245_v23 }
 0x982   : > { %19830 = vmatpush3.bf16.msra.mxu0 %v21245_v23 }
 0x985   : > { %19800 = vmatmul.mubr.msk.bf16.gmra.mrb[84].mxu0 %vm1178_vm5, %v27420_v2  ;;  %v13998_v2 = vrot.slane %v13997_v62, 4 }
 0x986   : > { %19803 = vmatprep.mubr.msk.bf16.mxu0 %vm1178_vm5, %v27421_v27  ;;  %v14002_v27 = vrot.slane %v14000_v45, 5 }
 0x98d   : > { %19804 = vmatmul.mubr.msk.bf16.gmra.mrb[88].mxu0 %vm1178_vm5, %v27422_v15  ;;  %v13993_v15 = vsel %vm21564_vm6, %v13988_v3, %v13992_v18 }
 0x98e   : > { %19807 = vmatprep.mubr.msk.bf16.mxu0 %vm1178_vm5, %v27423_v59 }
 0x995   : > { %19808 = vmatmul.mubr.msk.bf16.gmra.mrb[92].mxu0 %vm1178_vm5, %v27424_v1 }
 0x996   : > { %19811 = vmatprep.mubr.msk.bf16.mxu0 %vm1178_vm5, %v27425_v20 }
 0x99d   : > { %19812 = vmatmul.mubr.msk.bf16.gmra.mrb[96].mxu0 %vm1178_vm5, %v27426_v10 }
 0x99e   : > { %19815 = vmatprep.mubr.msk.bf16.mxu0 %vm1178_vm5, %v27427_v57 }
 0x9a5   : > { %19816 = vmatmul.mubr.msk.bf16.gmra.mrb[100].mxu0 %vm1178_vm5, %v26024_v51  ;;  %v14003_v51 = vsel %vm21564_vm6, %v13998_v2, %v14002_v27 }
 0x9a6   : > { %19819 = vmatprep.mubr.msk.bf16.mxu0 %vm1178_vm5, %v27431_v19  ;;  %v17563_v59 = vcombine.low %v13993_v15, %v14003_v51 }
 0x9ad   : > { %19820 = vmatmul.mubr.msk.bf16.gmra.mrb[104].mxu0 %vm1178_vm5, %v27429_v14 }
 0x9ae   : > { %19823 = vmatprep.mubr.msk.bf16.mxu0 %vm1178_vm5, %v26445_v22 }
 0x9b5   : > { %19824 = vmatmul.mubr.msk.bf16.gmra.mrb[108].mxu0 %vm1178_vm5, %v17563_v59 }
 0x9b6   : > { %19831 = vmatprep.mubr.msk.bf16.mxu0 %vm1178_vm5, %v26295_v16 }
 0x9bd   : > { %19832 = vmatmul.mubr.msk.bf16.vlgmr.msra.gmra.mrb[80].mxu0 %vm1178_vm5, %v26312_v46 }
 0x9be   : > { %19835 = vmatprep.mubr.msk.bf16.mxu0 %vm1178_vm5, %v26316_v40 }
 0x9c5   : > { %19836 = vmatmul.mubr.msk.bf16.gmra.mrb[84].mxu0 %vm1178_vm5, %v26327_v6 }
 0x9c6   : > { %19839 = vmatprep.mubr.msk.bf16.mxu0 %vm1178_vm5, %v26144_v50  ;;  %v14218_v50 = vrot.slane %v26596_v43, 5 }
 0x9ca   : > { %v26653_v1 = vpop.f32.mrb[128].mxu1 }
 0x9cb   : > { %v19987_v20 = vpop.f32.mrb[129].mxu1  ;;  %v16192_v46 = vmul.f32 0.53333336, %v26653_v1  ;;  %v16198_v40 = vmul.f32 0.06666667, %v26653_v1 }
 0x9cd   : > { %19840 = vmatmul.mubr.msk.bf16.gmra.mrb[88].mxu0 %vm1178_vm5, %v26151_v38  ;;  %v17582_v38 = vrot.slane %v26594_v30, 9 }
 0x9ce   : > { %19843 = vmatprep.mubr.msk.bf16.mxu0 %vm1178_vm5, %v26169_v58  ;;  %v14220_v58 = vrot.slane %v14218_v50, 4 }
 0x9d5   : > { %19844 = vmatmul.mubr.msk.bf16.gmra.mrb[92].mxu0 %vm1178_vm5, %v26175_v55  ;;  %v14221_v55 = vrot.slane %v11675_v0, 5 }
 0x9d6   : > { %19847 = vmatprep.mubr.msk.bf16.mxu0 %vm1178_vm5, %v26185_v53 }
 0x9dd   : > { %19848 = vmatmul.mubr.msk.bf16.gmra.mrb[96].mxu0 %vm1178_vm5, %v26191_v5  ;;  %v14219_v5 = vsel %vm21509_vm3, %v17582_v38, %v14218_v50 }
 0x9de   : > { %19851 = vmatprep.mubr.msk.bf16.mxu0 %vm1178_vm5, %v26210_v54  ;;  %v14222_v54 = vsel %vm21509_vm3, %v14220_v58, %v14221_v55 }
 0x9e5   : > { %19852 = vmatmul.mubr.msk.bf16.gmra.mrb[100].mxu0 %vm1178_vm5, %v26221_v4  ;;  %v17583_v4 = vcombine.low %v14219_v5, %v14222_v54 }
 0x9e6   : > { %19855 = vmatprep.mubr.msk.bf16.mxu0 %vm1178_vm5, %v26228_v12  ;;  %v26682_v12 = vpop.f32.mrb[130].mxu1 }
 0x9e7   : > { %v19988_v16 = vpop.f32.mrb[131].mxu1  ;;  %v16199_v24 = vmul.f32 0.06666667, %v26682_v12 }
 0x9ed   : > { %19856 = vmatmul.mubr.msk.bf16.gmra.mrb[104].mxu0 %vm1178_vm5, %v26232_v9  ;;  %v15921_v9 = vpop.f32.mrb[132].mxu1 }
 0x9ee   : > { %19859 = vmatprep.mubr.msk.bf16.mxu0 %vm1178_vm5, %v26252_v37  ;;  %v16194_v6 = vmul.f32 0.46666667, %v15921_v9  ;;  %v16200_v10 = vmul.f32 0.93333334, %v15921_v9  ;;  %v16193_v37 = vmul.f32 0.53333336, %v26682_v12 }
 0x9ef   : > { %v19993_v57 = vpop.f32.mrb[133].mxu1  ;;  %v16204_v60 = vmul.f32 0.6, %v15921_v9  ;;  %v16210_v47 = vmul.f32 0.13333334, %v15921_v9 }
 0x9f0   : > { %v26687_v22 = vadd.f32 %v16194_v6, %v16192_v46  ;;  %v15924_v14 = vpop.f32.mrb[134].mxu1  ;;  %v26690_v11 = vadd.f32 %v16200_v10, %v16198_v40 }
 0x9f1   : > { %v16195_v44 = vmul.f32 0.46666667, %v15924_v14  ;;  %v16201_v42 = vmul.f32 0.93333334, %v15924_v14  ;;  %v19994_v33 = vpop.f32.mrb[135].mxu1 }
 0x9f2   : > { %v15965_v8 = vpop.f32.mrb[136].mxu1  ;;  %v16205_v34 = vmul.f32 0.6, %v15924_v14  ;;  %v16211_v63 = vmul.f32 0.13333334, %v15924_v14 }
 0x9f3   : > { %v26692_v29 = vadd.f32 %v16195_v44, %v16193_v37  ;;  %v26694_v52 = vadd.f32 %v16201_v42, %v16199_v24  ;;  %v16206_v13 = vmul.f32 0.4, %v15965_v8  ;;  %v16212_v31 = vmul.f32 0.8666667, %v15965_v8  ;;  %v19999_v25 = vpop.f32.mrb[137].mxu1 }
 0x9f4   : > { %v15968_v7 = vpop.f32.mrb[138].mxu1  ;;  %v16216_v48 = vmul.f32 0.6666667, %v15965_v8  ;;  %v16222_v23 = vmul.f32 0.2, %v15965_v8 }
 0x9f5   : > { %19860 = vmatmul.mubr.msk.bf16.gmra.mrb[108].mxu0 %vm1178_vm5, %v17583_v4  ;;  %v26696_v36 = vadd.f32 %v16206_v13, %v16204_v60  ;;  %v16207_v35 = vmul.f32 0.4, %v15968_v7  ;;  %v16213_v17 = vmul.f32 0.8666667, %v15968_v7  ;;  %v26698_v21 = vadd.f32 %v16212_v31, %v16210_v47  ;;  %v20000_v30 = vpop.f32.mrb[139].mxu1 }
 0x9f6   : > { %v16009_v26 = vpop.f32.mrb[140].mxu1  ;;  %v16217_v61 = vmul.f32 0.6666667, %v15968_v7  ;;  %v16223_v0 = vmul.f32 0.2, %v15968_v7 }
 0x9f7   : > { %v26700_v43 = vadd.f32 %v16207_v35, %v16205_v34  ;;  %v26702_v28 = vadd.f32 %v16213_v17, %v16211_v63  ;;  %v16218_v41 = vmul.f32 0.33333334, %v16009_v26  ;;  %v16224_v49 = vmul.f32 0.8, %v16009_v26  ;;  %v20005_v56 = vpop.f32.mrb[141].mxu1 }
 0x9f8   : > { %v16012_v39 = vpop.f32.mrb[142].mxu1  ;;  %v16228_v2 = vmul.f32 0.73333335, %v16009_v26  ;;  %v16234_v27 = vmul.f32 0.26666668, %v16009_v26 }
 0x9f9   : > { %v26704_v18 = vadd.f32 %v16218_v41, %v16216_v48  ;;  %v16219_v19 = vmul.f32 0.33333334, %v16012_v39  ;;  %v16225_v32 = vmul.f32 0.8, %v16012_v39  ;;  %v26706_v62 = vadd.f32 %v16224_v49, %v16222_v23  ;;  %v20006_v45 = vpop.f32.mrb[143].mxu1 }
 0x9fa   : > { %v16053_v15 = vpop.f32.mrb[144].mxu1  ;;  %v16229_v50 = vmul.f32 0.73333335, %v16012_v39  ;;  %v16235_v53 = vmul.f32 0.26666668, %v16012_v39 }
 0x9fb   : > { %v26708_v3 = vadd.f32 %v16219_v19, %v16217_v61  ;;  %v26710_v51 = vadd.f32 %v16225_v32, %v16223_v0  ;;  %v16230_v59 = vmul.f32 0.26666668, %v16053_v15  ;;  %v16236_v20 = vmul.f32 0.73333335, %v16053_v15  ;;  %v20011_v38 = vpop.f32.mrb[145].mxu1 }
 0x9fc   : > { %v16056_v55 = vpop.f32.mrb[146].mxu1  ;;  %v16240_v40 = vmul.f32 0.8, %v16053_v15  ;;  %v16246_v9 = vmul.f32 0.33333334, %v16053_v15 }
 0x9fd   : > { %v26712_v58 = vadd.f32 %v16230_v59, %v16228_v2  ;;  %v16231_v5 = vmul.f32 0.26666668, %v16056_v55  ;;  %v16237_v54 = vmul.f32 0.73333335, %v16056_v55  ;;  %v26714_v4 = vadd.f32 %v16236_v20, %v16234_v27  ;;  %v20012_v16 = vpop.f32.mrb[147].mxu1 }
 0x9fe   : > { %v16097_v6 = vpop.f32.mrb[148].mxu1  ;;  %v16241_v14 = vmul.f32 0.8, %v16056_v55  ;;  %v16247_v33 = vmul.f32 0.33333334, %v16056_v55 }
 0x9ff   : > { %v26716_v46 = vadd.f32 %v16231_v5, %v16229_v50  ;;  %v26718_v10 = vadd.f32 %v16237_v54, %v16235_v53  ;;  %v16242_v37 = vmul.f32 0.2, %v16097_v6  ;;  %v16248_v57 = vmul.f32 0.6666667, %v16097_v6  ;;  %v20017_v24 = vpop.f32.mrb[149].mxu1 }
 0xa00   : > { %v16100_v42 = vpop.f32.mrb[150].mxu1  ;;  %v16252_v34 = vmul.f32 0.8666667, %v16097_v6  ;;  %v16258_v25 = vmul.f32 0.4, %v16097_v6 }
 0xa01   : > { %v26720_v44 = vadd.f32 %v16242_v37, %v16240_v40  ;;  %v16243_v60 = vmul.f32 0.2, %v16100_v42  ;;  %v16249_v47 = vmul.f32 0.6666667, %v16100_v42  ;;  %v26722_v8 = vadd.f32 %v16248_v57, %v16246_v9  ;;  %v20018_v13 = vpop.f32.mrb[151].mxu1 }
 0xa02   : > { %v16141_v7 = vpop.f32.mrb[152].mxu1  ;;  %v16253_v30 = vmul.f32 0.8666667, %v16100_v42  ;;  %v16259_v41 = vmul.f32 0.4, %v16100_v42 }
 0xa03   : > { %v26724_v31 = vadd.f32 %v16243_v60, %v16241_v14  ;;  %v26726_v63 = vadd.f32 %v16249_v47, %v16247_v33  ;;  %v16254_v35 = vmul.f32 0.13333334, %v16141_v7  ;;  %v16260_v17 = vmul.f32 0.6, %v16141_v7  ;;  %v20023_v48 = vpop.f32.mrb[153].mxu1 }
 0xa04   : > { %v16144_v26 = vpop.f32.mrb[154].mxu1  ;;  %v16264_v19 = vmul.f32 0.93333334, %v16141_v7  ;;  %v16270_v32 = vmul.f32 0.46666667, %v16141_v7 }
 0xa05   : > { %v26728_v23 = vadd.f32 %v16254_v35, %v16252_v34  ;;  %v16255_v49 = vmul.f32 0.13333334, %v16144_v26  ;;  %v16261_v61 = vmul.f32 0.6, %v16144_v26  ;;  %v26730_v56 = vadd.f32 %v16260_v17, %v16258_v25  ;;  %v20024_v39 = vpop.f32.mrb[155].mxu1 }
 0xa06   : > { %v16265_v45 = vmul.f32 0.93333334, %v16144_v26  ;;  %v16271_v2 = vmul.f32 0.46666667, %v16144_v26  ;;  %v26734_v27 = vpop.f32.mrb[156].mxu1 }
 0xa07   : > { %v26732_v0 = vadd.f32 %v16255_v49, %v16253_v30  ;;  %v26736_v15 = vadd.f32 %v16261_v61, %v16259_v41  ;;  %v16266_v59 = vmul.f32 0.06666667, %v26734_v27  ;;  %v16272_v20 = vmul.f32 0.53333336, %v26734_v27  ;;  %v20029_v50 = vpop.f32.mrb[157].mxu1 }
 0xa08   : > { %v26740_v38 = vpop.f32.mrb[158].mxu1  ;;  %v26755_v6 = vld [vmem:[%s26985_s6 + $0x2] ss:$0 sm:$0xff] }
 0xa09   : > { %v26742_v55 = vadd.f32 %v16266_v59, %v16264_v19  ;;  %v26744_v53 = vadd.f32 %v16272_v20, %v16270_v32  ;;  %v16267_v5 = vmul.f32 0.06666667, %v26740_v38  ;;  %v16273_v54 = vmul.f32 0.53333336, %v26740_v38  ;;  %v20030_v16 = vpop.f32.mrb[159].mxu1 }
 0xa0a   : > { %v26760_v37 = vld [vmem:[%s26986_s7 + $0x2] ss:$0 sm:$0xff] }
 0xa0b   : > { %v26748_v40 = vadd.f32 %v16267_v5, %v16265_v45  ;;  %v26750_v9 = vadd.f32 %v16273_v54, %v16271_v2 }
 0xa90   : > { %v19833_v57 = vpop.f32.mrb[80].mxu0 }
 0xa91   : > { %v14442_v14 = vmul.f32 %v19833_v57, %v26755_v6  ;;  %v14275_v24 = vpop.f32.mrb[81].mxu0 }
 0xa92   : > { %v14440_v42 = vmul.f32 %v26755_v6, %v14275_v24  ;;  %v19834_v33 = vpop.f32.mrb[82].mxu0 }
 0xa93   : > { %v14480_v60 = vadd.f32 %v26760_v37, %v14442_v14  ;;  %v14443_v47 = vmul.f32 %v19834_v33, %v26755_v6  ;;  %v14278_v13 = vpop.f32.mrb[83].mxu0 }
 0xa94   : > { %v14478_v34 = vadd.f32 %v26760_v37, %v14440_v42  ;;  %v14441_v25 = vmul.f32 %v26755_v6, %v14278_v13 }
 0xa95   : > { %v14512_v7 = vmax.f32 %v14480_v60, 0.0  ;;  %v14481_v35 = vadd.f32 %v26760_v37, %v14443_v47 }
 0xa96   : > { %v14510_v17 = vmax.f32 %v14478_v34, 0.0  ;;  %v14479_v30 = vadd.f32 %v26760_v37, %v14441_v25 }
 0xa97   : > { %v14513_v48 = vmax.f32 %v14481_v35, 0.0  ;;  %v16278_v26 = vadd.f32 %v26687_v22, %v14512_v7 }
 0xa98   : > { %v16276_v41 = vadd.f32 %v26653_v1, %v14510_v17  ;;  %v14511_v49 = vmax.f32 %v14479_v30, 0.0  ;;  %v19837_v61 = vpop.f32.mrb[84].mxu0 }
 0xa99   : > { %16310 = vst.msk [vmem:[%s26775_s20 + $0x10] sm:$0xff] %vm1178_vm5, %v16278_v26  ;;  %v16279_v39 = vadd.f32 %v26692_v29, %v14513_v48  ;;  %v14446_v19 = vmul.f32 %v19837_v61, %v26755_v6  ;;  %v14291_v32 = vpop.f32.mrb[85].mxu0 }
 0xa9a   : > { %16308 = vst.msk [vmem:[%s26775_s20] sm:$0xff] %vm1178_vm5, %v16276_v41  ;;  %v16277_v22 = vadd.f32 %v26682_v12, %v14511_v49  ;;  %v14444_v1 = vmul.f32 %v26755_v6, %v14291_v32  ;;  %v19838_v45 = vpop.f32.mrb[86].mxu0 }
 0xa9b   : > { %16311 = vst.msk [vmem:[%s26775_s20 + $0x18] sm:$0xff] %vm1178_vm5, %v16279_v39  ;;  %v14484_v2 = vadd.f32 %v26760_v37, %v14446_v19  ;;  %v14447_v59 = vmul.f32 %v19838_v45, %v26755_v6  ;;  %v14294_v20 = vpop.f32.mrb[87].mxu0 }
 0xa9c   : > { %16309 = vst.msk [vmem:[%s26775_s20 + $0x8] sm:$0xff] %vm1178_vm5, %v16277_v22  ;;  %v14482_v29 = vadd.f32 %v26760_v37, %v14444_v1  ;;  %v14445_v50 = vmul.f32 %v26755_v6, %v14294_v20 }
 0xa9d   : > { %v14516_v5 = vmax.f32 %v14484_v2, 0.0  ;;  %v14485_v12 = vadd.f32 %v26760_v37, %v14447_v59 }
 0xa9e   : > { %v14514_v54 = vmax.f32 %v14482_v29, 0.0  ;;  %v14483_v16 = vadd.f32 %v26760_v37, %v14445_v50 }
 0xa9f   : > { %v14517_v57 = vmax.f32 %v14485_v12, 0.0  ;;  %v16282_v14 = vadd.f32 %v26696_v36, %v14516_v5 }
 0xaa0   : > { %v16280_v24 = vadd.f32 %v26690_v11, %v14514_v54  ;;  %v14515_v42 = vmax.f32 %v14483_v16, 0.0  ;;  %v19841_v33 = vpop.f32.mrb[88].mxu0 }
 0xaa1   : > { %16314 = vst.msk [vmem:[%s26775_s20 + $0x30] sm:$0xff] %vm1178_vm5, %v16282_v14  ;;  %v16283_v60 = vadd.f32 %v26700_v43, %v14517_v57  ;;  %v14450_v47 = vmul.f32 %v19841_v33, %v26755_v6  ;;  %v14307_v13 = vpop.f32.mrb[89].mxu0 }
 0xaa2   : > { %16312 = vst.msk [vmem:[%s26775_s20 + $0x20] sm:$0xff] %vm1178_vm5, %v16280_v24  ;;  %v16281_v34 = vadd.f32 %v26694_v52, %v14515_v42  ;;  %v14448_v25 = vmul.f32 %v26755_v6, %v14307_v13  ;;  %v19842_v7 = vpop.f32.mrb[90].mxu0 }
 0xaa3   : > { %16315 = vst.msk [vmem:[%s26775_s20 + $0x38] sm:$0xff] %vm1178_vm5, %v16283_v60  ;;  %v14488_v11 = vadd.f32 %v26760_v37, %v14450_v47  ;;  %v14451_v36 = vmul.f32 %v19842_v7, %v26755_v6  ;;  %v14310_v35 = vpop.f32.mrb[91].mxu0 }
 0xaa4   : > { %16313 = vst.msk [vmem:[%s26775_s20 + $0x28] sm:$0xff] %vm1178_vm5, %v16281_v34  ;;  %v14486_v43 = vadd.f32 %v26760_v37, %v14448_v25  ;;  %v14449_v17 = vmul.f32 %v26755_v6, %v14310_v35 }
 0xaa5   : > { %v14520_v30 = vmax.f32 %v14488_v11, 0.0  ;;  %v14489_v52 = vadd.f32 %v26760_v37, %v14451_v36 }
 0xaa6   : > { %v14518_v48 = vmax.f32 %v14486_v43, 0.0  ;;  %v14487_v26 = vadd.f32 %v26760_v37, %v14449_v17 }
 0xaa7   : > { %v14521_v41 = vmax.f32 %v14489_v52, 0.0  ;;  %v16286_v49 = vadd.f32 %v26704_v18, %v14520_v30 }
 0xaa8   : > { %v16284_v61 = vadd.f32 %v26698_v21, %v14518_v48  ;;  %v14519_v39 = vmax.f32 %v14487_v26, 0.0  ;;  %v19845_v19 = vpop.f32.mrb[92].mxu0 }
 0xaa9   : > { %16318 = vst.msk [vmem:[%s26775_s20 + $0x50] sm:$0xff] %vm1178_vm5, %v16286_v49  ;;  %v16287_v32 = vadd.f32 %v26708_v3, %v14521_v41  ;;  %v14454_v22 = vmul.f32 %v19845_v19, %v26755_v6  ;;  %v14323_v1 = vpop.f32.mrb[93].mxu0 }
 0xaaa   : > { %16316 = vst.msk [vmem:[%s26775_s20 + $0x40] sm:$0xff] %vm1178_vm5, %v16284_v61  ;;  %v16285_v45 = vadd.f32 %v26702_v28, %v14519_v39  ;;  %v14452_v2 = vmul.f32 %v26755_v6, %v14323_v1  ;;  %v19846_v59 = vpop.f32.mrb[94].mxu0 }
 0xaab   : > { %16319 = vst.msk [vmem:[%s26775_s20 + $0x58] sm:$0xff] %vm1178_vm5, %v16287_v32  ;;  %v14492_v21 = vadd.f32 %v26760_v37, %v14454_v22  ;;  %v14455_v18 = vmul.f32 %v19846_v59, %v26755_v6  ;;  %v14326_v20 = vpop.f32.mrb[95].mxu0 }
 0xaac   : > { %16317 = vst.msk [vmem:[%s26775_s20 + $0x48] sm:$0xff] %vm1178_vm5, %v16285_v45  ;;  %v14490_v3 = vadd.f32 %v26760_v37, %v14452_v2  ;;  %v14453_v29 = vmul.f32 %v26755_v6, %v14326_v20 }
 0xaad   : > { %v14524_v50 = vmax.f32 %v14492_v21, 0.0  ;;  %v14493_v28 = vadd.f32 %v26760_v37, %v14455_v18 }
 0xaae   : > { %v14522_v5 = vmax.f32 %v14490_v3, 0.0  ;;  %v14491_v12 = vadd.f32 %v26760_v37, %v14453_v29 }
 0xaaf   : > { %v14525_v54 = vmax.f32 %v14493_v28, 0.0  ;;  %v16290_v16 = vadd.f32 %v26712_v58, %v14524_v50 }
 0xab0   : > { %v16288_v57 = vadd.f32 %v26706_v62, %v14522_v5  ;;  %v14523_v14 = vmax.f32 %v14491_v12, 0.0  ;;  %v19849_v24 = vpop.f32.mrb[96].mxu0 }
 0xab1   : > { %16322 = vst.msk [vmem:[%s26775_s20 + $0x70] sm:$0xff] %vm1178_vm5, %v16290_v16  ;;  %v16291_v42 = vadd.f32 %v26716_v46, %v14525_v54  ;;  %v14458_v33 = vmul.f32 %v19849_v24, %v26755_v6  ;;  %v14339_v60 = vpop.f32.mrb[97].mxu0 }
 0xab2   : > { %16320 = vst.msk [vmem:[%s26775_s20 + $0x60] sm:$0xff] %vm1178_vm5, %v16288_v57  ;;  %v16289_v47 = vadd.f32 %v26710_v51, %v14523_v14  ;;  %v14456_v13 = vmul.f32 %v26755_v6, %v14339_v60  ;;  %v19850_v34 = vpop.f32.mrb[98].mxu0 }
 0xab3   : > { %16323 = vst.msk [vmem:[%s26775_s20 + $0x78] sm:$0xff] %vm1178_vm5, %v16291_v42  ;;  %v14496_v62 = vadd.f32 %v26760_v37, %v14458_v33  ;;  %v14459_v58 = vmul.f32 %v19850_v34, %v26755_v6  ;;  %v14342_v25 = vpop.f32.mrb[99].mxu0 }
 0xab4   : > { %16321 = vst.msk [vmem:[%s26775_s20 + $0x68] sm:$0xff] %vm1178_vm5, %v16289_v47  ;;  %v14494_v46 = vadd.f32 %v26760_v37, %v14456_v13  ;;  %v14457_v7 = vmul.f32 %v26755_v6, %v14342_v25 }
 0xab5   : > { %v14528_v11 = vmax.f32 %v14496_v62, 0.0  ;;  %v14497_v51 = vadd.f32 %v26760_v37, %v14459_v58 }
 0xab6   : > { %v14526_v36 = vmax.f32 %v14494_v46, 0.0  ;;  %v14495_v35 = vadd.f32 %v26760_v37, %v14457_v7 }
 0xab7   : > { %v14529_v43 = vmax.f32 %v14497_v51, 0.0  ;;  %v16294_v17 = vadd.f32 %v26720_v44, %v14528_v11 }
 0xab8   : > { %v16292_v30 = vadd.f32 %v26714_v4, %v14526_v36  ;;  %v14527_v52 = vmax.f32 %v14495_v35, 0.0  ;;  %v19853_v48 = vpop.f32.mrb[100].mxu0 }
 0xab9   : > { %16326 = vst.msk [vmem:[%s26775_s20 + $0x90] sm:$0xff] %vm1178_vm5, %v16294_v17  ;;  %v16295_v26 = vadd.f32 %v26724_v31, %v14529_v43  ;;  %v14462_v41 = vmul.f32 %v19853_v48, %v26755_v6  ;;  %v14355_v49 = vpop.f32.mrb[101].mxu0 }
 0xaba   : > { %16324 = vst.msk [vmem:[%s26775_s20 + $0x80] sm:$0xff] %vm1178_vm5, %v16292_v30  ;;  %v16293_v61 = vadd.f32 %v26718_v10, %v14527_v52  ;;  %v14460_v39 = vmul.f32 %v26755_v6, %v14355_v49  ;;  %v19854_v19 = vpop.f32.mrb[102].mxu0 }
 0xabb   : > { %16327 = vst.msk [vmem:[%s26775_s20 + $0x98] sm:$0xff] %vm1178_vm5, %v16295_v26  ;;  %v14500_v4 = vadd.f32 %v26760_v37, %v14462_v41  ;;  %v14463_v44 = vmul.f32 %v19854_v19, %v26755_v6  ;;  %v14358_v32 = vpop.f32.mrb[103].mxu0 }
 0xabc   : > { %16325 = vst.msk [vmem:[%s26775_s20 + $0x88] sm:$0xff] %vm1178_vm5, %v16293_v61  ;;  %v14498_v31 = vadd.f32 %v26760_v37, %v14460_v39  ;;  %v14461_v22 = vmul.f32 %v26755_v6, %v14358_v32 }
 0xabd   : > { %v14532_v1 = vmax.f32 %v14500_v4, 0.0  ;;  %v14501_v10 = vadd.f32 %v26760_v37, %v14463_v44 }
 0xabe   : > { %v14530_v45 = vmax.f32 %v14498_v31, 0.0  ;;  %v14499_v2 = vadd.f32 %v26760_v37, %v14461_v22 }
 0xabf   : > { %v14533_v59 = vmax.f32 %v14501_v10, 0.0  ;;  %v16298_v21 = vadd.f32 %v26728_v23, %v14532_v1 }
 0xac0   : > { %v16296_v18 = vadd.f32 %v26722_v8, %v14530_v45  ;;  %v14531_v20 = vmax.f32 %v14499_v2, 0.0  ;;  %v19857_v3 = vpop.f32.mrb[104].mxu0 }
 0xac1   : > { %16330 = vst.msk [vmem:[%s26775_s20 + $0xb0] sm:$0xff] %vm1178_vm5, %v16298_v21  ;;  %v16299_v29 = vadd.f32 %v26732_v0, %v14533_v59  ;;  %v14466_v50 = vmul.f32 %v19857_v3, %v26755_v6  ;;  %v14371_v28 = vpop.f32.mrb[105].mxu0 }
 0xac2   : > { %16328 = vst.msk [vmem:[%s26775_s20 + $0xa0] sm:$0xff] %vm1178_vm5, %v16296_v18  ;;  %v16297_v5 = vadd.f32 %v26726_v63, %v14531_v20  ;;  %v14464_v12 = vmul.f32 %v26755_v6, %v14371_v28  ;;  %v19858_v54 = vpop.f32.mrb[106].mxu0 }
 0xac3   : > { %16331 = vst.msk [vmem:[%s26775_s20 + $0xb8] sm:$0xff] %vm1178_vm5, %v16299_v29  ;;  %v14504_v8 = vadd.f32 %v26760_v37, %v14466_v50  ;;  %v14467_v23 = vmul.f32 %v19858_v54, %v26755_v6  ;;  %v14374_v16 = vpop.f32.mrb[107].mxu0 }
 0xac4   : > { %16329 = vst.msk [vmem:[%s26775_s20 + $0xa8] sm:$0xff] %vm1178_vm5, %v16297_v5  ;;  %v14502_v0 = vadd.f32 %v26760_v37, %v14464_v12  ;;  %v14465_v57 = vmul.f32 %v26755_v6, %v14374_v16 }
 0xac5   : > { %v14536_v14 = vmax.f32 %v14504_v8, 0.0  ;;  %v14505_v63 = vadd.f32 %v26760_v37, %v14467_v23 }
 0xac6   : > { %v14534_v24 = vmax.f32 %v14502_v0, 0.0  ;;  %v14503_v42 = vadd.f32 %v26760_v37, %v14465_v57 }
 0xac7   : > { %v14537_v33 = vmax.f32 %v14505_v63, 0.0  ;;  %v16302_v60 = vadd.f32 %v26742_v55, %v14536_v14 }
 0xac8   : > { %v16300_v47 = vadd.f32 %v26730_v56, %v14534_v24  ;;  %v14535_v13 = vmax.f32 %v14503_v42, 0.0  ;;  %v19861_v34 = vpop.f32.mrb[108].mxu0 }
 0xac9   : > { %16334 = vst.msk [vmem:[%s26775_s20 + $0xd0] sm:$0xff] %vm1178_vm5, %v16302_v60  ;;  %v16303_v62 = vadd.f32 %v26748_v40, %v14537_v33  ;;  %v14470_v58 = vmul.f32 %v19861_v34, %v26755_v6  ;;  %v14387_v25 = vpop.f32.mrb[109].mxu0 }
 0xaca   : > { %16332 = vst.msk [vmem:[%s26775_s20 + $0xc0] sm:$0xff] %vm1178_vm5, %v16300_v47  ;;  %v16301_v46 = vadd.f32 %v26736_v15, %v14535_v13  ;;  %v14468_v55 = vmul.f32 %v26755_v6, %v14387_v25  ;;  %v19862_v7 = vpop.f32.mrb[110].mxu0 }
 0xacb   : > { %16335 = vst.msk [vmem:[%s26775_s20 + $0xd8] sm:$0xff] %vm1178_vm5, %v16303_v62  ;;  %v14508_v56 = vadd.f32 %v26760_v37, %v14470_v58  ;;  %v14471_v11 = vmul.f32 %v19862_v7, %v26755_v6  ;;  %v14390_v40 = vpop.f32.mrb[111].mxu0 }
 0xacc   : > { %16333 = vst.msk [vmem:[%s26775_s20 + $0xc8] sm:$0xff] %vm1178_vm5, %v16301_v46  ;;  %v14506_v51 = vadd.f32 %v26760_v37, %v14468_v55  ;;  %v14469_v36 = vmul.f32 %v26755_v6, %v14390_v40 }
 0xacd   : > { %v14540_v35 = vmax.f32 %v14508_v56, 0.0  ;;  %v14509_v15 = vadd.f32 %v26760_v37, %v14471_v11 }
 0xace   : > { %v14538_v43 = vmax.f32 %v14506_v51, 0.0  ;;  %v14507_v17 = vadd.f32 %v26760_v37, %v14469_v36 }
 0xacf   : > { %v16306_v30 = vadd.f32 %v26734_v27, %v14540_v35  ;;  %v14541_v52 = vmax.f32 %v14509_v15, 0.0 }
 0xad0   : > { %v16304_v48 = vadd.f32 %v26744_v53, %v14538_v43  ;;  %v14539_v26 = vmax.f32 %v14507_v17, 0.0 }
 0xad1   : > { %16338 = vst.msk [vmem:[%s26775_s20 + $0xf0] sm:$0xff] %vm1178_vm5, %v16306_v30  ;;  %v16307_v6 = vadd.f32 %v26740_v38, %v14541_v52 }
 0xad2   : > { %16336 = vst.msk [vmem:[%s26775_s20 + $0xe0] sm:$0xff] %vm1178_vm5, %v16304_v48  ;;  %v16305_v27 = vadd.f32 %v26750_v9, %v14539_v26 }
 0xad3   : > { %16339 = vst.msk [vmem:[%s26775_s20 + $0xf8] sm:$0xff] %vm1178_vm5, %v16307_v6 }
 0xad4   : > { %16337 = vst.msk [vmem:[%s26775_s20 + $0xe8] sm:$0xff] %vm1178_vm5, %v16305_v27 }
 0xad5   : > { %21308 = shalt.err (!%p21305_p3)
}
 0xad6   : > { %s21309_s27 = scalar_lea.hbm %s26925_s2, 4096  ;;  %s21313_s1 = scalar_lea.hbm %s26993_s14, 8192 }
 0xad7   : > { %p21310_p4 = scmp.ne.s32.totalorder %s26925_s2, %s21309_s27  ;;  %p21314_p9 = scmp.lt.u32.totalorder %s26925_s2, %s26993_s14 }
 0xad8   : > { %p21315_p10 = scmp.lt.u32.totalorder %s21313_s1, %s21309_s27  ;;  %p21317_p12 = scmp.lt.u32.totalorder %s21309_s27, %s26925_s2 }
 0xad9   : > { %p21311_p7 = pnand %p21310_p4, %p21478_p5 }
 0xada   : > { %p21316_p11 = por %p21315_p10, %p21314_p9 }
 0xadb   : > { %p21312_p8 = pneg %p21311_p7 }
 0xadc   : > { %p21318_p13 = por %p21317_p12, %p21316_p11 }
 0xade   : > { %p21319_p0 = pnand %p21318_p13, %p21312_p8 }
 0xae0   : > { %21322 = shalt.err (!%p21319_p0)
}
 0xae1   : > { %s21363_s18 = smov 128   ;;  %s21364_s25 = smov 8  }
 0xae2   : > { %20997 = dma.vmem_to_hbm [thread:$0]  (%p21478_p5), %s26927_s26, 4096, %s26925_s2, %s26938_s17, %s21363_s18, %s21363_s18, %s21364_s25  }
 0xae3 PF: > { %p21003_p1 = scmp.ge.s32.totalorder %s21357_s16, 2  ;;  %s16369_s20 = sand.u32 1, %s21345_s29  }
 0xae4   : > { %s16370_s27 = scalar_lea.sflag [#allocation5], %s16369_s20 }
 0xae5   : > { %p21000_p2 = pnand %p21003_p1, %p21482_p6 }
 0xae7   : > { %21340 = dma.done.wait (!%p21000_p2), %s16370_s27, 4096  }
 0xae8   : > { %21342 = vsyncadd (!%p21000_p2), %s16370_s27, 4294963200  ;;  %p24_p3 = scmp.ge.s32.totalorder %s21465_s19, 4   ;;  %s27433_s29 = smov %s21349_s30 }
 0xae9   : > { %s27434_s30 = smov %s21353_s15  ;;  %s27435_s15 = smov %s21476_s22 }
 0xaea   : > { %s27436_s16 = smov %s21465_s19  ;;  %26 = sbr.rel (!%p24_p3) target bundleno = 7 (0x7), region = 141 }
 0xaf1   :  { %16375 = vsyncpa [#allocation5], 1 }
 0xaf2   :  { %16377 = vsyncpa [#allocation5 + $0x1], 1 }

</bundles_post_ra>
